<compile_context>
chip_gen: v5e
topology: v5e:2x2
jax: 0.10.0
libtpu: 0.0.40
codegen_flags: <defaults>
</compile_context>

<pallas_src>
import jax
import jax.numpy as jnp
from jax.experimental import pallas as pl
from jax.experimental.pallas import tpu as pltpu


def _make_kernel(TH, W, C, P, Pk, use_mxu):
    def kernel(xp_ref, wdw_ref, wpw_ref, bp_ref, o_ref):
        # xp_ref : (H+2, W+2, C) bf16 zero-padded input slab (batch squeezed)
        # wdw_ref: (9, C)  f32 depthwise weights with BN scale folded in
        # wpw_ref: (C, Pk) pointwise weights (bf16 for MXU path, f32 for VPU)
        # bp_ref : (1, Pk) f32 folded BN bias pushed through the pointwise conv
        # o_ref  : (TH, W, P) bf16 output row tile
        h = pl.program_id(1)
        row0 = pl.multiple_of(h * TH, TH)     # first padded input row of tile

        wdw = wdw_ref[...]                    # (9, C), tiny

        # Depthwise 3x3: one band load per kh, kw shifts as static slices of
        # the in-register band.  f32 accumulate (portable to v5e; bf16 MAC on
        # v6e/v7x is a possible further step if tolerance allows).
        acc = None
        for kh in range(3):
            band = xp_ref[pl.ds(row0 + kh, TH), :, :].astype(jnp.float32)
            for kw in range(3):
                tap = band[:, kw:kw + W, :] * wdw[3 * kh + kw, :]
                acc = tap if acc is None else acc + tap

        bp = bp_ref[0, :]                     # (Pk,)
        if use_mxu:
            # (TH, W, C) -> (TH*W, C) is a cheap relayout when W % 8 == 0.
            y2 = acc.astype(jnp.bfloat16).reshape(TH * W, C)
            out = jnp.dot(y2, wpw_ref[...], preferred_element_type=jnp.float32)
            out = out.reshape(TH, W, Pk) + bp
        else:
            # Tiny C: C broadcast multiply-adds on the VPU beat a nearly-empty
            # MXU contraction (test shape C=4).
            wpw = wpw_ref[...]                # (C, Pk) f32
            out = acc[:, :, 0:1] * wpw[0, :]
            for c in range(1, C):
                out = out + acc[:, :, c:c + 1] * wpw[c, :]
            out = out + bp
        if Pk != P:
            out = out[:, :, :P]               # drop MXU-only plane padding
        o_ref[...] = out.astype(o_ref.dtype)

    return kernel


def separable_conv2d(x_nchw, w_dw, gamma, beta, run_mean, run_var, w_pw,
                     eps=1e-5):
    """x_nchw: (N, C, H, W) float32.
    w_dw: (C, 1, 3, 3) depthwise weights (PyTorch layout).
    gamma, beta, run_mean, run_var: (C,) BatchNorm params (running stats).
    w_pw: (P, C, 1, 1) pointwise weights (PyTorch layout).
    Returns (N, P, H, W) float32.
    """
    N, C, H, W = x_nchw.shape
    P = w_pw.shape[0]

    # ---- fold BatchNorm (eval) into the conv weights ----
    scale = gamma / jnp.sqrt(run_var + eps)                       # (C,)
    bias = beta - run_mean * scale                                # (C,)
    wdw_hwc = jnp.transpose(w_dw[:, 0, :, :], (1, 2, 0))          # (3,3,C)
    wdw_s = (wdw_hwc * scale).reshape(9, C).astype(jnp.float32)   # (9,C)
    wpw_cp = jnp.transpose(w_pw[:, :, 0, 0], (1, 0)).astype(jnp.float32)  # (C,P)
    b_p = bias @ wpw_cp                                           # (P,)

    # ---- pointwise path + output-plane handling ----
    use_mxu = C >= 16                       # tiny C -> VPU multiply-adds
    if use_mxu and (P % 128 != 0):
        Pk = ((P + 127) // 128) * 128       # MXU N-dim padding only; sliced
    else:                                   # before the store (no writeback
        Pk = P                              # inflation).
    wpw_dtype = jnp.bfloat16 if use_mxu else jnp.float32
    wpw_k = jnp.zeros((C, Pk), wpw_dtype).at[:, :P].set(wpw_cp.astype(wpw_dtype))
    b_k = jnp.zeros((1, Pk), jnp.float32).at[0, :P].set(b_p)

    # ---- layout glue for the NCHW interface: NHWC + 1-px zero halo, bf16 ----
    x_nhwc = jnp.transpose(x_nchw, (0, 2, 3, 1)).astype(jnp.bfloat16)
    x_pad = jnp.pad(x_nhwc, ((0, 0), (1, 1), (1, 1), (0, 0)))     # (N,Hp,Wp,C)
    Hp, Wp = H + 2, W + 2

    # ---- choose the H row-tile TH (VMEM-aware, even-grid preference) ----
    # Rough f32 working bytes per output row (depthwise acc + pointwise out),
    # used to cap TH so the per-step live set stays bounded (and the f32
    # accumulator does not degenerate into full-tile VMEM passes at large C).
    row_bytes = (Wp * C + W * Pk) * 4 * 2
    th_cap = max(8, min(64, (8 << 20) // max(row_bytes, 1)))
    divisors = [d for d in range(1, H + 1)
                if H % d == 0 and (d % 8 == 0 or d == H)]
    cands = [d for d in divisors if d <= th_cap] or [min(divisors)]
    cands.sort(reverse=True)
    TH = cands[0]
    for d in cands:                          # prefer an even parallel grid so
        steps = N * (H // d)                 # 2-TC parts (v7x) split evenly
        if steps >= 2 and steps % 2 == 0:
            TH = d
            break

    grid = (N, H // TH)
    kernel = _make_kernel(TH, W, C, P, Pk, use_mxu)

    # ---- VMEM plan: size the limit from the actual buffers ----
    vmem_need = (2 * Hp * Wp * C * 2                               # bf16 slab, 2 bufs
                 + 9 * C * 4 + C * Pk * jnp.dtype(wpw_dtype).itemsize + Pk * 4
                 + 2 * TH * W * P * 2                              # bf16 out, 2 bufs
                 + 3 * TH * (Wp * C + W * Pk) * 4                  # f32 working set
                 + (4 << 20))                                      # compiler scratch
    vmem_limit = max(int(vmem_need), 16 << 20)
    try:
        cap = int(pltpu.get_tpu_info().vmem_capacity_bytes) * 5 // 8
    except Exception:
        cap = 40 << 20                       # conservative: fits v7x (64 MiB)
    vmem_limit = min(vmem_limit, max(cap, 16 << 20))

    def build(single_buffer_consts):
        const_kw = ({"pipeline_mode": pl.Buffered(1)}
                    if single_buffer_consts else {})
        grid_spec = pltpu.PrefetchScalarGridSpec(
            num_scalar_prefetch=0,
            grid=grid,
            in_specs=[
                # Padded image slab: constant block index along the H-tile
                # axis -> DMA'd once per batch element, VMEM-resident; each
                # step slices its TH+2-row halo window with pl.ds.
                pl.BlockSpec((pl.Squeezed(), Hp, Wp, C),
                             lambda n, h: (n, 0, 0, 0)),
                # Constant-index weight/bias blocks: single-buffered.
                pl.BlockSpec((9, C), lambda n, h: (0, 0), **const_kw),
                pl.BlockSpec((C, Pk), lambda n, h: (0, 0), **const_kw),
                pl.BlockSpec((1, Pk), lambda n, h: (0, 0), **const_kw),
            ],
            out_specs=pl.BlockSpec((pl.Squeezed(), TH, W, P),
                                   lambda n, h: (n, h, 0, 0)),
        )
        return pl.pallas_call(
            kernel,
            out_shape=jax.ShapeDtypeStruct((N, H, W, P), jnp.bfloat16),
            grid_spec=grid_spec,
            compiler_params=pltpu.CompilerParams(
                dimension_semantics=("parallel", "parallel"),
                vmem_limit_bytes=int(vmem_limit),
            ),
        )

    try:
        out_nhwc = build(True)(x_pad, wdw_s, wpw_k, b_k)
    except Exception:
        # Fallback if this Pallas build rejects pl.Buffered(1): default
        # double-buffering (costs one extra copy of the tiny constant blocks).
        out_nhwc = build(False)(x_pad, wdw_s, wpw_k, b_k)

    # Back to the module's NCHW float32 interface.
    return jnp.transpose(out_nhwc, (0, 3, 1, 2)).astype(jnp.float32)


def _reference(x, w_dw, gamma, beta, run_mean, run_var, w_pw, eps=1e-5):
    """Pure-JAX reference with PyTorch (cross-correlation, eval-BN) semantics."""
    N, C, H, W = x.shape
    xp = jnp.pad(x, ((0, 0), (0, 0), (1, 1), (1, 1)))
    dw = jnp.zeros((N, C, H, W), jnp.float32)
    for kh in range(3):
        for kw in range(3):
            dw = dw + (xp[:, :, kh:kh + H, kw:kw + W]
                       * w_dw[:, 0, kh, kw][None, :, None, None])
    scale = gamma / jnp.sqrt(run_var + eps)
    bias = beta - run_mean * scale
    y = dw * scale[None, :, None, None] + bias[None, :, None, None]
    return jnp.einsum('nchw,pc->nphw', y, w_pw[:, :, 0, 0],
                      precision=jax.lax.Precision.HIGHEST)


if __name__ == "__main__":
    key = jax.random.PRNGKey(0)
    k_x, k_dw, k_pw, k_g, k_b, k_m, k_v = jax.random.split(key, 7)

    N, C, H, W = 2, 4, 16, 16   # inplanes = 4
    P = 8                       # planes   = 8

    x = jax.random.normal(k_x, (N, C, H, W), jnp.float32)

    # Deterministic synthetic parameters (shapes per the PyTorch module).
    w_dw = jax.random.normal(k_dw, (C, 1, 3, 3), jnp.float32) * 0.1    # depthwise
    w_pw = jax.random.normal(k_pw, (P, C, 1, 1), jnp.float32) * 0.1    # pointwise
    gamma = 1.0 + 0.1 * jax.random.normal(k_g, (C,), jnp.float32)
    beta = 0.1 * jax.random.normal(k_b, (C,), jnp.float32)
    run_mean = 0.1 * jax.random.normal(k_m, (C,), jnp.float32)
    run_var = jax.random.uniform(k_v, (C,), jnp.float32, 0.5, 1.5)

    out = separable_conv2d(x, w_dw, gamma, beta, run_mean, run_var, w_pw)
    out = jax.block_until_ready(out)
    assert out.shape == (N, P, H, W), out.shape

    ref = _reference(x, w_dw, gamma, beta, run_mean, run_var, w_pw)
    max_err = float(jnp.max(jnp.abs(out - ref)))
    assert jnp.allclose(out, ref, atol=2e-2, rtol=2e-2), max_err

    print("KERNEL_OK")
</pallas_src>

<mosaic_0001>
module attributes {stable_mosaic.version = 11 : i64} {
  func.func @kernel(%arg0: i32, %arg1: i32, %arg2: memref<1x18x18x4xbf16, #tpu.memory_space<vmem>>, %arg3: memref<9x4xf32, #tpu.memory_space<vmem>>, %arg4: memref<4x8xf32, #tpu.memory_space<vmem>>, %arg5: memref<1x8xf32, #tpu.memory_space<vmem>>, %arg6: memref<1x16x16x8xbf16, #tpu.memory_space<vmem>>) attributes {dimension_semantics = [#tpu.dimension_semantics<parallel>, #tpu.dimension_semantics<parallel>], iteration_bounds = array<i64: 2, 1>, scalar_prefetch = 0 : i64, scratch_operands = 0 : i64, tpu.core_type = #tpu.core_type<tc>, window_params = [{transform_indices = @transform_0, window_bounds = array<i64: 1, 18, 18, 4>}, {pipeline_mode = #tpu.pipeline_mode<synchronous>, transform_indices = @transform_1, window_bounds = array<i64: 9, 4>}, {pipeline_mode = #tpu.pipeline_mode<synchronous>, transform_indices = @transform_2, window_bounds = array<i64: 4, 8>}, {pipeline_mode = #tpu.pipeline_mode<synchronous>, transform_indices = @transform_3, window_bounds = array<i64: 1, 8>}, {transform_indices = @transform_4, window_bounds = array<i64: 1, 16, 16, 8>}]} {
    %c16_i32 = arith.constant 16 : i32
    %0 = arith.muli %arg1, %c16_i32 : i32
    %1 = tpu.assume_multiple %0, 16 : i32
    %c0 = arith.constant 0 : index
    %c0_0 = arith.constant 0 : index
    %2 = vector.load %arg3[%c0, %c0_0] : memref<9x4xf32, #tpu.memory_space<vmem>>, vector<9x4xf32>
    %c0_i32 = arith.constant 0 : i32
    %3 = arith.addi %1, %c0_i32 : i32
    %c0_1 = arith.constant 0 : index
    %4 = arith.index_cast %3 : i32 to index
    %c0_2 = arith.constant 0 : index
    %c0_3 = arith.constant 0 : index
    %5 = vector.load %arg2[%c0_1, %4, %c0_2, %c0_3] : memref<1x18x18x4xbf16, #tpu.memory_space<vmem>>, vector<1x16x18x4xbf16>
    %6 = vector.shape_cast %5 : vector<1x16x18x4xbf16> to vector<16x18x4xbf16>
    %7 = arith.extf %6 : vector<16x18x4xbf16> to vector<16x18x4xf32>
    %8 = vector.extract_strided_slice %7 {offsets = [0, 0, 0], sizes = [16, 16, 4], strides = [1, 1, 1]} : vector<16x18x4xf32> to vector<16x16x4xf32>
    %9 = vector.extract_strided_slice %2 {offsets = [0, 0], sizes = [1, 4], strides = [1, 1]} : vector<9x4xf32> to vector<1x4xf32>
    %10 = vector.shape_cast %9 : vector<1x4xf32> to vector<4xf32>
    %11 = vector.shape_cast %10 : vector<4xf32> to vector<1x1x4xf32>
    %12 = vector.broadcast %11 : vector<1x1x4xf32> to vector<16x16x4xf32>
    %13 = arith.mulf %8, %12 : vector<16x16x4xf32>
    %14 = vector.extract_strided_slice %7 {offsets = [0, 1, 0], sizes = [16, 16, 4], strides = [1, 1, 1]} : vector<16x18x4xf32> to vector<16x16x4xf32>
    %15 = vector.extract_strided_slice %2 {offsets = [1, 0], sizes = [1, 4], strides = [1, 1]} : vector<9x4xf32> to vector<1x4xf32>
    %16 = vector.shape_cast %15 : vector<1x4xf32> to vector<4xf32>
    %17 = vector.shape_cast %16 : vector<4xf32> to vector<1x1x4xf32>
    %18 = vector.broadcast %17 : vector<1x1x4xf32> to vector<16x16x4xf32>
    %19 = arith.mulf %14, %18 : vector<16x16x4xf32>
    %20 = arith.addf %13, %19 : vector<16x16x4xf32>
    %21 = vector.extract_strided_slice %7 {offsets = [0, 2, 0], sizes = [16, 16, 4], strides = [1, 1, 1]} : vector<16x18x4xf32> to vector<16x16x4xf32>
    %22 = vector.extract_strided_slice %2 {offsets = [2, 0], sizes = [1, 4], strides = [1, 1]} : vector<9x4xf32> to vector<1x4xf32>
    %23 = vector.shape_cast %22 : vector<1x4xf32> to vector<4xf32>
    %24 = vector.shape_cast %23 : vector<4xf32> to vector<1x1x4xf32>
    %25 = vector.broadcast %24 : vector<1x1x4xf32> to vector<16x16x4xf32>
    %26 = arith.mulf %21, %25 : vector<16x16x4xf32>
    %27 = arith.addf %20, %26 : vector<16x16x4xf32>
    %c1_i32 = arith.constant 1 : i32
    %28 = arith.addi %1, %c1_i32 : i32
    %c0_4 = arith.constant 0 : index
    %29 = arith.index_cast %28 : i32 to index
    %c0_5 = arith.constant 0 : index
    %c0_6 = arith.constant 0 : index
    %30 = vector.load %arg2[%c0_4, %29, %c0_5, %c0_6] : memref<1x18x18x4xbf16, #tpu.memory_space<vmem>>, vector<1x16x18x4xbf16>
    %31 = vector.shape_cast %30 : vector<1x16x18x4xbf16> to vector<16x18x4xbf16>
    %32 = arith.extf %31 : vector<16x18x4xbf16> to vector<16x18x4xf32>
    %33 = vector.extract_strided_slice %32 {offsets = [0, 0, 0], sizes = [16, 16, 4], strides = [1, 1, 1]} : vector<16x18x4xf32> to vector<16x16x4xf32>
    %34 = vector.extract_strided_slice %2 {offsets = [3, 0], sizes = [1, 4], strides = [1, 1]} : vector<9x4xf32> to vector<1x4xf32>
    %35 = vector.shape_cast %34 : vector<1x4xf32> to vector<4xf32>
    %36 = vector.shape_cast %35 : vector<4xf32> to vector<1x1x4xf32>
    %37 = vector.broadcast %36 : vector<1x1x4xf32> to vector<16x16x4xf32>
    %38 = arith.mulf %33, %37 : vector<16x16x4xf32>
    %39 = arith.addf %27, %38 : vector<16x16x4xf32>
    %40 = vector.extract_strided_slice %32 {offsets = [0, 1, 0], sizes = [16, 16, 4], strides = [1, 1, 1]} : vector<16x18x4xf32> to vector<16x16x4xf32>
    %41 = vector.extract_strided_slice %2 {offsets = [4, 0], sizes = [1, 4], strides = [1, 1]} : vector<9x4xf32> to vector<1x4xf32>
    %42 = vector.shape_cast %41 : vector<1x4xf32> to vector<4xf32>
    %43 = vector.shape_cast %42 : vector<4xf32> to vector<1x1x4xf32>
    %44 = vector.broadcast %43 : vector<1x1x4xf32> to vector<16x16x4xf32>
    %45 = arith.mulf %40, %44 : vector<16x16x4xf32>
    %46 = arith.addf %39, %45 : vector<16x16x4xf32>
    %47 = vector.extract_strided_slice %32 {offsets = [0, 2, 0], sizes = [16, 16, 4], strides = [1, 1, 1]} : vector<16x18x4xf32> to vector<16x16x4xf32>
    %48 = vector.extract_strided_slice %2 {offsets = [5, 0], sizes = [1, 4], strides = [1, 1]} : vector<9x4xf32> to vector<1x4xf32>
    %49 = vector.shape_cast %48 : vector<1x4xf32> to vector<4xf32>
    %50 = vector.shape_cast %49 : vector<4xf32> to vector<1x1x4xf32>
    %51 = vector.broadcast %50 : vector<1x1x4xf32> to vector<16x16x4xf32>
    %52 = arith.mulf %47, %51 : vector<16x16x4xf32>
    %53 = arith.addf %46, %52 : vector<16x16x4xf32>
    %c2_i32 = arith.constant 2 : i32
    %54 = arith.addi %1, %c2_i32 : i32
    %c0_7 = arith.constant 0 : index
    %55 = arith.index_cast %54 : i32 to index
    %c0_8 = arith.constant 0 : index
    %c0_9 = arith.constant 0 : index
    %56 = vector.load %arg2[%c0_7, %55, %c0_8, %c0_9] : memref<1x18x18x4xbf16, #tpu.memory_space<vmem>>, vector<1x16x18x4xbf16>
    %57 = vector.shape_cast %56 : vector<1x16x18x4xbf16> to vector<16x18x4xbf16>
    %58 = arith.extf %57 : vector<16x18x4xbf16> to vector<16x18x4xf32>
    %59 = vector.extract_strided_slice %58 {offsets = [0, 0, 0], sizes = [16, 16, 4], strides = [1, 1, 1]} : vector<16x18x4xf32> to vector<16x16x4xf32>
    %60 = vector.extract_strided_slice %2 {offsets = [6, 0], sizes = [1, 4], strides = [1, 1]} : vector<9x4xf32> to vector<1x4xf32>
    %61 = vector.shape_cast %60 : vector<1x4xf32> to vector<4xf32>
    %62 = vector.shape_cast %61 : vector<4xf32> to vector<1x1x4xf32>
    %63 = vector.broadcast %62 : vector<1x1x4xf32> to vector<16x16x4xf32>
    %64 = arith.mulf %59, %63 : vector<16x16x4xf32>
    %65 = arith.addf %53, %64 : vector<16x16x4xf32>
    %66 = vector.extract_strided_slice %58 {offsets = [0, 1, 0], sizes = [16, 16, 4], strides = [1, 1, 1]} : vector<16x18x4xf32> to vector<16x16x4xf32>
    %67 = vector.extract_strided_slice %2 {offsets = [7, 0], sizes = [1, 4], strides = [1, 1]} : vector<9x4xf32> to vector<1x4xf32>
    %68 = vector.shape_cast %67 : vector<1x4xf32> to vector<4xf32>
    %69 = vector.shape_cast %68 : vector<4xf32> to vector<1x1x4xf32>
    %70 = vector.broadcast %69 : vector<1x1x4xf32> to vector<16x16x4xf32>
    %71 = arith.mulf %66, %70 : vector<16x16x4xf32>
    %72 = arith.addf %65, %71 : vector<16x16x4xf32>
    %73 = vector.extract_strided_slice %58 {offsets = [0, 2, 0], sizes = [16, 16, 4], strides = [1, 1, 1]} : vector<16x18x4xf32> to vector<16x16x4xf32>
    %74 = vector.extract_strided_slice %2 {offsets = [8, 0], sizes = [1, 4], strides = [1, 1]} : vector<9x4xf32> to vector<1x4xf32>
    %75 = vector.shape_cast %74 : vector<1x4xf32> to vector<4xf32>
    %76 = vector.shape_cast %75 : vector<4xf32> to vector<1x1x4xf32>
    %77 = vector.broadcast %76 : vector<1x1x4xf32> to vector<16x16x4xf32>
    %78 = arith.mulf %73, %77 : vector<16x16x4xf32>
    %79 = arith.addf %72, %78 : vector<16x16x4xf32>
    %c0_10 = arith.constant 0 : index
    %c0_11 = arith.constant 0 : index
    %80 = vector.load %arg5[%c0_10, %c0_11] : memref<1x8xf32, #tpu.memory_space<vmem>>, vector<1x8xf32>
    %81 = vector.shape_cast %80 : vector<1x8xf32> to vector<8xf32>
    %c0_12 = arith.constant 0 : index
    %c0_13 = arith.constant 0 : index
    %82 = vector.load %arg4[%c0_12, %c0_13] : memref<4x8xf32, #tpu.memory_space<vmem>>, vector<4x8xf32>
    %83 = vector.extract_strided_slice %79 {offsets = [0, 0, 0], sizes = [16, 16, 1], strides = [1, 1, 1]} : vector<16x16x4xf32> to vector<16x16x1xf32>
    %84 = vector.extract_strided_slice %82 {offsets = [0, 0], sizes = [1, 8], strides = [1, 1]} : vector<4x8xf32> to vector<1x8xf32>
    %85 = vector.shape_cast %84 : vector<1x8xf32> to vector<8xf32>
    %86 = vector.shape_cast %85 : vector<8xf32> to vector<1x1x8xf32>
    %87 = vector.broadcast %83 : vector<16x16x1xf32> to vector<16x16x8xf32>
    %88 = vector.broadcast %86 : vector<1x1x8xf32> to vector<16x16x8xf32>
    %89 = arith.mulf %87, %88 : vector<16x16x8xf32>
    %90 = vector.extract_strided_slice %79 {offsets = [0, 0, 1], sizes = [16, 16, 1], strides = [1, 1, 1]} : vector<16x16x4xf32> to vector<16x16x1xf32>
    %91 = vector.extract_strided_slice %82 {offsets = [1, 0], sizes = [1, 8], strides = [1, 1]} : vector<4x8xf32> to vector<1x8xf32>
    %92 = vector.shape_cast %91 : vector<1x8xf32> to vector<8xf32>
    %93 = vector.shape_cast %92 : vector<8xf32> to vector<1x1x8xf32>
    %94 = vector.broadcast %90 : vector<16x16x1xf32> to vector<16x16x8xf32>
    %95 = vector.broadcast %93 : vector<1x1x8xf32> to vector<16x16x8xf32>
    %96 = arith.mulf %94, %95 : vector<16x16x8xf32>
    %97 = arith.addf %89, %96 : vector<16x16x8xf32>
    %98 = vector.extract_strided_slice %79 {offsets = [0, 0, 2], sizes = [16, 16, 1], strides = [1, 1, 1]} : vector<16x16x4xf32> to vector<16x16x1xf32>
    %99 = vector.extract_strided_slice %82 {offsets = [2, 0], sizes = [1, 8], strides = [1, 1]} : vector<4x8xf32> to vector<1x8xf32>
    %100 = vector.shape_cast %99 : vector<1x8xf32> to vector<8xf32>
    %101 = vector.shape_cast %100 : vector<8xf32> to vector<1x1x8xf32>
    %102 = vector.broadcast %98 : vector<16x16x1xf32> to vector<16x16x8xf32>
    %103 = vector.broadcast %101 : vector<1x1x8xf32> to vector<16x16x8xf32>
    %104 = arith.mulf %102, %103 : vector<16x16x8xf32>
    %105 = arith.addf %97, %104 : vector<16x16x8xf32>
    %106 = vector.extract_strided_slice %79 {offsets = [0, 0, 3], sizes = [16, 16, 1], strides = [1, 1, 1]} : vector<16x16x4xf32> to vector<16x16x1xf32>
    %107 = vector.extract_strided_slice %82 {offsets = [3, 0], sizes = [1, 8], strides = [1, 1]} : vector<4x8xf32> to vector<1x8xf32>
    %108 = vector.shape_cast %107 : vector<1x8xf32> to vector<8xf32>
    %109 = vector.shape_cast %108 : vector<8xf32> to vector<1x1x8xf32>
    %110 = vector.broadcast %106 : vector<16x16x1xf32> to vector<16x16x8xf32>
    %111 = vector.broadcast %109 : vector<1x1x8xf32> to vector<16x16x8xf32>
    %112 = arith.mulf %110, %111 : vector<16x16x8xf32>
    %113 = arith.addf %105, %112 : vector<16x16x8xf32>
    %114 = vector.shape_cast %81 : vector<8xf32> to vector<1x1x8xf32>
    %115 = vector.broadcast %114 : vector<1x1x8xf32> to vector<16x16x8xf32>
    %116 = arith.addf %113, %115 : vector<16x16x8xf32>
    %117 = arith.truncf %116 : vector<16x16x8xf32> to vector<16x16x8xbf16>
    %c0_14 = arith.constant 0 : index
    %c0_15 = arith.constant 0 : index
    %c0_16 = arith.constant 0 : index
    %c0_17 = arith.constant 0 : index
    %118 = vector.load %arg6[%c0_14, %c0_15, %c0_16, %c0_17] : memref<1x16x16x8xbf16, #tpu.memory_space<vmem>>, vector<1x16x16x8xbf16>
    %119 = vector.shape_cast %118 : vector<1x16x16x8xbf16> to vector<16x16x8xbf16>
    %120 = vector.shape_cast %117 : vector<16x16x8xbf16> to vector<1x16x16x8xbf16>
    tpu.vector_store %arg6[%c0_14, %c0_15, %c0_16, %c0_17], %120 {strides = array<i32>} : memref<1x16x16x8xbf16, #tpu.memory_space<vmem>>, vector<1x16x16x8xbf16>,
    return
  }
  func.func @transform_0(%arg0: i32, %arg1: i32) -> (i32, i32, i32, i32) {
    %c0_i32 = arith.constant 0 : i32
    %c0_i32_0 = arith.constant 0 : i32
    %c0_i32_1 = arith.constant 0 : i32
    %c0_i32_2 = arith.constant 0 : i32
    return %arg0, %c0_i32, %c0_i32_0, %c0_i32_1 : i32, i32, i32, i32
  }
  func.func @transform_1(%arg0: i32, %arg1: i32) -> (i32, i32) {
    %c0_i32 = arith.constant 0 : i32
    %c0_i32_0 = arith.constant 0 : i32
    %c0_i32_1 = arith.constant 0 : i32
    return %c0_i32, %c0_i32_0 : i32, i32
  }
  func.func @transform_2(%arg0: i32, %arg1: i32) -> (i32, i32) {
    %c0_i32 = arith.constant 0 : i32
    %c0_i32_0 = arith.constant 0 : i32
    %c0_i32_1 = arith.constant 0 : i32
    return %c0_i32, %c0_i32_0 : i32, i32
  }
  func.func @transform_3(%arg0: i32, %arg1: i32) -> (i32, i32) {
    %c0_i32 = arith.constant 0 : i32
    %c0_i32_0 = arith.constant 0 : i32
    %c0_i32_1 = arith.constant 0 : i32
    return %c0_i32, %c0_i32_0 : i32, i32
  }
  func.func @transform_4(%arg0: i32, %arg1: i32) -> (i32, i32, i32, i32) {
    %c0_i32 = arith.constant 0 : i32
    %c0_i32_0 = arith.constant 0 : i32
    %c0_i32_1 = arith.constant 0 : i32
    return %arg0, %arg1, %c0_i32, %c0_i32_0 : i32, i32, i32, i32
  }
}

module attributes {stable_mosaic.version = 11 : i64} {
  func.func @kernel(%arg0: i32, %arg1: i32, %arg2: memref<1x18x18x4xbf16, #tpu.memory_space<vmem>>, %arg3: memref<9x4xf32, #tpu.memory_space<vmem>>, %arg4: memref<4x8xf32, #tpu.memory_space<vmem>>, %arg5: memref<1x8xf32, #tpu.memory_space<vmem>>, %arg6: memref<1x16x16x8xbf16, #tpu.memory_space<vmem>>) attributes {dimension_semantics = [#tpu.dimension_semantics<parallel>, #tpu.dimension_semantics<parallel>], iteration_bounds = array<i64: 2, 1>, scalar_prefetch = 0 : i64, scratch_operands = 0 : i64, tpu.core_type = #tpu.core_type<tc>, window_params = [{transform_indices = @transform_0, window_bounds = array<i64: 1, 18, 18, 4>}, {pipeline_mode = #tpu.pipeline_mode<synchronous>, transform_indices = @transform_1, window_bounds = array<i64: 9, 4>}, {pipeline_mode = #tpu.pipeline_mode<synchronous>, transform_indices = @transform_2, window_bounds = array<i64: 4, 8>}, {pipeline_mode = #tpu.pipeline_mode<synchronous>, transform_indices = @transform_3, window_bounds = array<i64: 1, 8>}, {transform_indices = @transform_4, window_bounds = array<i64: 1, 16, 16, 8>}]} {
    %c16_i32 = arith.constant 16 : i32
    %0 = arith.muli %arg1, %c16_i32 : i32
    %1 = tpu.assume_multiple %0, 16 : i32
    %c0 = arith.constant 0 : index
    %c0_0 = arith.constant 0 : index
    %2 = vector.load %arg3[%c0, %c0_0] : memref<9x4xf32, #tpu.memory_space<vmem>>, vector<9x4xf32>
    %c0_i32 = arith.constant 0 : i32
    %3 = arith.addi %1, %c0_i32 : i32
    %c0_1 = arith.constant 0 : index
    %4 = arith.index_cast %3 : i32 to index
    %c0_2 = arith.constant 0 : index
    %c0_3 = arith.constant 0 : index
    %5 = vector.load %arg2[%c0_1, %4, %c0_2, %c0_3] : memref<1x18x18x4xbf16, #tpu.memory_space<vmem>>, vector<1x16x18x4xbf16>
    %6 = vector.shape_cast %5 : vector<1x16x18x4xbf16> to vector<16x18x4xbf16>
    %7 = arith.extf %6 : vector<16x18x4xbf16> to vector<16x18x4xf32>
    %8 = vector.extract_strided_slice %7 {offsets = [0, 0, 0], sizes = [16, 16, 4], strides = [1, 1, 1]} : vector<16x18x4xf32> to vector<16x16x4xf32>
    %9 = vector.extract_strided_slice %2 {offsets = [0, 0], sizes = [1, 4], strides = [1, 1]} : vector<9x4xf32> to vector<1x4xf32>
    %10 = vector.shape_cast %9 : vector<1x4xf32> to vector<4xf32>
    %11 = vector.shape_cast %10 : vector<4xf32> to vector<1x1x4xf32>
    %12 = vector.broadcast %11 : vector<1x1x4xf32> to vector<16x16x4xf32>
    %13 = arith.mulf %8, %12 : vector<16x16x4xf32>
    %14 = vector.extract_strided_slice %7 {offsets = [0, 1, 0], sizes = [16, 16, 4], strides = [1, 1, 1]} : vector<16x18x4xf32> to vector<16x16x4xf32>
    %15 = vector.extract_strided_slice %2 {offsets = [1, 0], sizes = [1, 4], strides = [1, 1]} : vector<9x4xf32> to vector<1x4xf32>
    %16 = vector.shape_cast %15 : vector<1x4xf32> to vector<4xf32>
    %17 = vector.shape_cast %16 : vector<4xf32> to vector<1x1x4xf32>
    %18 = vector.broadcast %17 : vector<1x1x4xf32> to vector<16x16x4xf32>
    %19 = arith.mulf %14, %18 : vector<16x16x4xf32>
    %20 = arith.addf %13, %19 : vector<16x16x4xf32>
    %21 = vector.extract_strided_slice %7 {offsets = [0, 2, 0], sizes = [16, 16, 4], strides = [1, 1, 1]} : vector<16x18x4xf32> to vector<16x16x4xf32>
    %22 = vector.extract_strided_slice %2 {offsets = [2, 0], sizes = [1, 4], strides = [1, 1]} : vector<9x4xf32> to vector<1x4xf32>
    %23 = vector.shape_cast %22 : vector<1x4xf32> to vector<4xf32>
    %24 = vector.shape_cast %23 : vector<4xf32> to vector<1x1x4xf32>
    %25 = vector.broadcast %24 : vector<1x1x4xf32> to vector<16x16x4xf32>
    %26 = arith.mulf %21, %25 : vector<16x16x4xf32>
    %27 = arith.addf %20, %26 : vector<16x16x4xf32>
    %c1_i32 = arith.constant 1 : i32
    %28 = arith.addi %1, %c1_i32 : i32
    %c0_4 = arith.constant 0 : index
    %29 = arith.index_cast %28 : i32 to index
    %c0_5 = arith.constant 0 : index
    %c0_6 = arith.constant 0 : index
    %30 = vector.load %arg2[%c0_4, %29, %c0_5, %c0_6] : memref<1x18x18x4xbf16, #tpu.memory_space<vmem>>, vector<1x16x18x4xbf16>
    %31 = vector.shape_cast %30 : vector<1x16x18x4xbf16> to vector<16x18x4xbf16>
    %32 = arith.extf %31 : vector<16x18x4xbf16> to vector<16x18x4xf32>
    %33 = vector.extract_strided_slice %32 {offsets = [0, 0, 0], sizes = [16, 16, 4], strides = [1, 1, 1]} : vector<16x18x4xf32> to vector<16x16x4xf32>
    %34 = vector.extract_strided_slice %2 {offsets = [3, 0], sizes = [1, 4], strides = [1, 1]} : vector<9x4xf32> to vector<1x4xf32>
    %35 = vector.shape_cast %34 : vector<1x4xf32> to vector<4xf32>
    %36 = vector.shape_cast %35 : vector<4xf32> to vector<1x1x4xf32>
    %37 = vector.broadcast %36 : vector<1x1x4xf32> to vector<16x16x4xf32>
    %38 = arith.mulf %33, %37 : vector<16x16x4xf32>
    %39 = arith.addf %27, %38 : vector<16x16x4xf32>
    %40 = vector.extract_strided_slice %32 {offsets = [0, 1, 0], sizes = [16, 16, 4], strides = [1, 1, 1]} : vector<16x18x4xf32> to vector<16x16x4xf32>
    %41 = vector.extract_strided_slice %2 {offsets = [4, 0], sizes = [1, 4], strides = [1, 1]} : vector<9x4xf32> to vector<1x4xf32>
    %42 = vector.shape_cast %41 : vector<1x4xf32> to vector<4xf32>
    %43 = vector.shape_cast %42 : vector<4xf32> to vector<1x1x4xf32>
    %44 = vector.broadcast %43 : vector<1x1x4xf32> to vector<16x16x4xf32>
    %45 = arith.mulf %40, %44 : vector<16x16x4xf32>
    %46 = arith.addf %39, %45 : vector<16x16x4xf32>
    %47 = vector.extract_strided_slice %32 {offsets = [0, 2, 0], sizes = [16, 16, 4], strides = [1, 1, 1]} : vector<16x18x4xf32> to vector<16x16x4xf32>
    %48 = vector.extract_strided_slice %2 {offsets = [5, 0], sizes = [1, 4], strides = [1, 1]} : vector<9x4xf32> to vector<1x4xf32>
    %49 = vector.shape_cast %48 : vector<1x4xf32> to vector<4xf32>
    %50 = vector.shape_cast %49 : vector<4xf32> to vector<1x1x4xf32>
    %51 = vector.broadcast %50 : vector<1x1x4xf32> to vector<16x16x4xf32>
    %52 = arith.mulf %47, %51 : vector<16x16x4xf32>
    %53 = arith.addf %46, %52 : vector<16x16x4xf32>
    %c2_i32 = arith.constant 2 : i32
    %54 = arith.addi %1, %c2_i32 : i32
    %c0_7 = arith.constant 0 : index
    %55 = arith.index_cast %54 : i32 to index
    %c0_8 = arith.constant 0 : index
    %c0_9 = arith.constant 0 : index
    %56 = vector.load %arg2[%c0_7, %55, %c0_8, %c0_9] : memref<1x18x18x4xbf16, #tpu.memory_space<vmem>>, vector<1x16x18x4xbf16>
    %57 = vector.shape_cast %56 : vector<1x16x18x4xbf16> to vector<16x18x4xbf16>
    %58 = arith.extf %57 : vector<16x18x4xbf16> to vector<16x18x4xf32>
    %59 = vector.extract_strided_slice %58 {offsets = [0, 0, 0], sizes = [16, 16, 4], strides = [1, 1, 1]} : vector<16x18x4xf32> to vector<16x16x4xf32>
    %60 = vector.extract_strided_slice %2 {offsets = [6, 0], sizes = [1, 4], strides = [1, 1]} : vector<9x4xf32> to vector<1x4xf32>
    %61 = vector.shape_cast %60 : vector<1x4xf32> to vector<4xf32>
    %62 = vector.shape_cast %61 : vector<4xf32> to vector<1x1x4xf32>
    %63 = vector.broadcast %62 : vector<1x1x4xf32> to vector<16x16x4xf32>
    %64 = arith.mulf %59, %63 : vector<16x16x4xf32>
    %65 = arith.addf %53, %64 : vector<16x16x4xf32>
    %66 = vector.extract_strided_slice %58 {offsets = [0, 1, 0], sizes = [16, 16, 4], strides = [1, 1, 1]} : vector<16x18x4xf32> to vector<16x16x4xf32>
    %67 = vector.extract_strided_slice %2 {offsets = [7, 0], sizes = [1, 4], strides = [1, 1]} : vector<9x4xf32> to vector<1x4xf32>
    %68 = vector.shape_cast %67 : vector<1x4xf32> to vector<4xf32>
    %69 = vector.shape_cast %68 : vector<4xf32> to vector<1x1x4xf32>
    %70 = vector.broadcast %69 : vector<1x1x4xf32> to vector<16x16x4xf32>
    %71 = arith.mulf %66, %70 : vector<16x16x4xf32>
    %72 = arith.addf %65, %71 : vector<16x16x4xf32>
    %73 = vector.extract_strided_slice %58 {offsets = [0, 2, 0], sizes = [16, 16, 4], strides = [1, 1, 1]} : vector<16x18x4xf32> to vector<16x16x4xf32>
    %74 = vector.extract_strided_slice %2 {offsets = [8, 0], sizes = [1, 4], strides = [1, 1]} : vector<9x4xf32> to vector<1x4xf32>
    %75 = vector.shape_cast %74 : vector<1x4xf32> to vector<4xf32>
    %76 = vector.shape_cast %75 : vector<4xf32> to vector<1x1x4xf32>
    %77 = vector.broadcast %76 : vector<1x1x4xf32> to vector<16x16x4xf32>
    %78 = arith.mulf %73, %77 : vector<16x16x4xf32>
    %79 = arith.addf %72, %78 : vector<16x16x4xf32>
    %c0_10 = arith.constant 0 : index
    %c0_11 = arith.constant 0 : index
    %80 = vector.load %arg5[%c0_10, %c0_11] : memref<1x8xf32, #tpu.memory_space<vmem>>, vector<1x8xf32>
    %81 = vector.shape_cast %80 : vector<1x8xf32> to vector<8xf32>
    %c0_12 = arith.constant 0 : index
    %c0_13 = arith.constant 0 : index
    %82 = vector.load %arg4[%c0_12, %c0_13] : memref<4x8xf32, #tpu.memory_space<vmem>>, vector<4x8xf32>
    %83 = vector.extract_strided_slice %79 {offsets = [0, 0, 0], sizes = [16, 16, 1], strides = [1, 1, 1]} : vector<16x16x4xf32> to vector<16x16x1xf32>
    %84 = vector.extract_strided_slice %82 {offsets = [0, 0], sizes = [1, 8], strides = [1, 1]} : vector<4x8xf32> to vector<1x8xf32>
    %85 = vector.shape_cast %84 : vector<1x8xf32> to vector<8xf32>
    %86 = vector.shape_cast %85 : vector<8xf32> to vector<1x1x8xf32>
    %87 = vector.broadcast %83 : vector<16x16x1xf32> to vector<16x16x8xf32>
    %88 = vector.broadcast %86 : vector<1x1x8xf32> to vector<16x16x8xf32>
    %89 = arith.mulf %87, %88 : vector<16x16x8xf32>
    %90 = vector.extract_strided_slice %79 {offsets = [0, 0, 1], sizes = [16, 16, 1], strides = [1, 1, 1]} : vector<16x16x4xf32> to vector<16x16x1xf32>
    %91 = vector.extract_strided_slice %82 {offsets = [1, 0], sizes = [1, 8], strides = [1, 1]} : vector<4x8xf32> to vector<1x8xf32>
    %92 = vector.shape_cast %91 : vector<1x8xf32> to vector<8xf32>
    %93 = vector.shape_cast %92 : vector<8xf32> to vector<1x1x8xf32>
    %94 = vector.broadcast %90 : vector<16x16x1xf32> to vector<16x16x8xf32>
    %95 = vector.broadcast %93 : vector<1x1x8xf32> to vector<16x16x8xf32>
    %96 = arith.mulf %94, %95 : vector<16x16x8xf32>
    %97 = arith.addf %89, %96 : vector<16x16x8xf32>
    %98 = vector.extract_strided_slice %79 {offsets = [0, 0, 2], sizes = [16, 16, 1], strides = [1, 1, 1]} : vector<16x16x4xf32> to vector<16x16x1xf32>
    %99 = vector.extract_strided_slice %82 {offsets = [2, 0], sizes = [1, 8], strides = [1, 1]} : vector<4x8xf32> to vector<1x8xf32>
    %100 = vector.shape_cast %99 : vector<1x8xf32> to vector<8xf32>
    %101 = vector.shape_cast %100 : vector<8xf32> to vector<1x1x8xf32>
    %102 = vector.broadcast %98 : vector<16x16x1xf32> to vector<16x16x8xf32>
    %103 = vector.broadcast %101 : vector<1x1x8xf32> to vector<16x16x8xf32>
    %104 = arith.mulf %102, %103 : vector<16x16x8xf32>
    %105 = arith.addf %97, %104 : vector<16x16x8xf32>
    %106 = vector.extract_strided_slice %79 {offsets = [0, 0, 3], sizes = [16, 16, 1], strides = [1, 1, 1]} : vector<16x16x4xf32> to vector<16x16x1xf32>
    %107 = vector.extract_strided_slice %82 {offsets = [3, 0], sizes = [1, 8], strides = [1, 1]} : vector<4x8xf32> to vector<1x8xf32>
    %108 = vector.shape_cast %107 : vector<1x8xf32> to vector<8xf32>
    %109 = vector.shape_cast %108 : vector<8xf32> to vector<1x1x8xf32>
    %110 = vector.broadcast %106 : vector<16x16x1xf32> to vector<16x16x8xf32>
    %111 = vector.broadcast %109 : vector<1x1x8xf32> to vector<16x16x8xf32>
    %112 = arith.mulf %110, %111 : vector<16x16x8xf32>
    %113 = arith.addf %105, %112 : vector<16x16x8xf32>
    %114 = vector.shape_cast %81 : vector<8xf32> to vector<1x1x8xf32>
    %115 = vector.broadcast %114 : vector<1x1x8xf32> to vector<16x16x8xf32>
    %116 = arith.addf %113, %115 : vector<16x16x8xf32>
    %117 = arith.truncf %116 : vector<16x16x8xf32> to vector<16x16x8xbf16>
    %c0_14 = arith.constant 0 : index
    %c0_15 = arith.constant 0 : index
    %c0_16 = arith.constant 0 : index
    %c0_17 = arith.constant 0 : index
    %118 = vector.load %arg6[%c0_14, %c0_15, %c0_16, %c0_17] : memref<1x16x16x8xbf16, #tpu.memory_space<vmem>>, vector<1x16x16x8xbf16>
    %119 = vector.shape_cast %118 : vector<1x16x16x8xbf16> to vector<16x16x8xbf16>
    %120 = vector.shape_cast %117 : vector<16x16x8xbf16> to vector<1x16x16x8xbf16>
    tpu.vector_store %arg6[%c0_14, %c0_15, %c0_16, %c0_17], %120 {strides = array<i32>} : memref<1x16x16x8xbf16, #tpu.memory_space<vmem>>, vector<1x16x16x8xbf16>,
    return
  }
  func.func @transform_0(%arg0: i32, %arg1: i32) -> (i32, i32, i32, i32) {
    %c0_i32 = arith.constant 0 : i32
    %c0_i32_0 = arith.constant 0 : i32
    %c0_i32_1 = arith.constant 0 : i32
    %c0_i32_2 = arith.constant 0 : i32
    return %arg0, %c0_i32, %c0_i32_0, %c0_i32_1 : i32, i32, i32, i32
  }
  func.func @transform_1(%arg0: i32, %arg1: i32) -> (i32, i32) {
    %c0_i32 = arith.constant 0 : i32
    %c0_i32_0 = arith.constant 0 : i32
    %c0_i32_1 = arith.constant 0 : i32
    return %c0_i32, %c0_i32_0 : i32, i32
  }
  func.func @transform_2(%arg0: i32, %arg1: i32) -> (i32, i32) {
    %c0_i32 = arith.constant 0 : i32
    %c0_i32_0 = arith.constant 0 : i32
    %c0_i32_1 = arith.constant 0 : i32
    return %c0_i32, %c0_i32_0 : i32, i32
  }
  func.func @transform_3(%arg0: i32, %arg1: i32) -> (i32, i32) {
    %c0_i32 = arith.constant 0 : i32
    %c0_i32_0 = arith.constant 0 : i32
    %c0_i32_1 = arith.constant 0 : i32
    return %c0_i32, %c0_i32_0 : i32, i32
  }
  func.func @transform_4(%arg0: i32, %arg1: i32) -> (i32, i32, i32, i32) {
    %c0_i32 = arith.constant 0 : i32
    %c0_i32_0 = arith.constant 0 : i32
    %c0_i32_1 = arith.constant 0 : i32
    return %arg0, %arg1, %c0_i32, %c0_i32_0 : i32, i32, i32, i32
  }
}

</mosaic_0001>

<bundles_post_ra>
// kernel: tpu_custom_call.1
= control target key start
LH: loop header
LB: loop body
LE: loop exit
PB: predicated region body
PF: predicated region fallthrough
CT: control target
= control target key end

     0   :  { %s3431_s15 = smov 0   ;;  %s3433_s16 = smov 0   ;;  %s5469_s0 = inlined_call_operand.vmem [shape: bf16[2,18,18,4], index: 0, kind: input, shape index: {}]   ;;  %s5470_s1 = inlined_call_operand.vmem [shape: f32[9,4], index: 1, kind: input, shape index: {}]   ;;  %s5471_s2 = inlined_call_operand.vmem [shape: f32[4,8], index: 2, kind: input, shape index: {}]   ;;  %s5472_s3 = inlined_call_operand.vmem [shape: f32[1,8], index: 3, kind: input, shape index: {}]   ;;  %s5473_s4 = inlined_call_operand.vmem [shape: bf16[2,16,16,8], index: 4, kind: output, shape index: {}]  }
   0x1   :  { %s3435_s17 = smov 0  }
   0x2 LB: > { %s26_s18 = sadd.s32 1, %s3396_s16  ;;  %p3111_p0 = scmp.ge.s32.totalorder %s3400_s17, 1  ;;  %s3400_s17 = sphi %s3435_s17, %s14_s17   ;;  %s3396_s16 = sphi %s3433_s16, %s5638_s16   ;;  %s3392_s15 = sphi %s3431_s15, %s5637_s15  }
   0x3   : > { %p28_p1 = scmp.ge.s32.totalorder %s26_s18, 2  ;;  %p176_p2 = scmp.lt.s32.totalorder %s3400_s17, 3 }
   0x5   : > { %s5640_s18 = smov (%p28_p1, %s26_s18), 0  ;;  %p177_p3 = pnand %p3111_p0, %p176_p2 }
   0x7   : > { %180 = sbr.rel (%p177_p3) target bundleno = 728 (0x2d8), region = 36 }
   0xc   : > { %p207_p4 = scmp.lt.s32.totalorder %s3392_s15, 1  ;;  %v3402_v0 = vmov 0   ;;  %v224_v1 = vld [vmem:[%s5470_s1] sm:$0xff]  ;;  %vm455_vm0 = vcmask 1046528   ;;  %vm697_vm1 = vcmask 1045504   ;;  %vm2977_vm2 = vcmask 60416  }
   0xd   : > { %3364 = vset.pattern.permute.xlu2 %v3402_v0  ;;  %3363 = vset.pattern.permute.xlu1 %v3402_v0  ;;  %v3455_v2 = vperm.slane %v224_v1, 0  ;;  %v3457_v3 = vperm.slane %v224_v1, 1  ;;  %v3464_v4 = vperm.slane %v224_v1, 2  ;;  %v3466_v5 = vperm.slane %v224_v1, 3  ;;  %v3517_v34 = vld [vmem:[%s5470_s1 + $0x8] ss:$0 sm:$0xff] }
   0xe   : > { %3362 = vset.pattern.permute.xlu0 %v3402_v0  ;;  %s5642_s15 = smov (!%p207_p4, %s3392_s15), 1  ;;  %v3468_v6 = vperm.slane %v224_v1, 4  ;;  %v3472_v9 = vperm.slane %v224_v1, 5  ;;  %v3475_v11 = vperm.slane %v224_v1, 6  ;;  %v3477_v12 = vperm.slane %v224_v1, 7 }
   0xf   : > { %s3333_s21 = smul.u32 216, %s5642_s15  ;;  %s3213_s9 = sshll.u32 %s5642_s15, 7 }
  0x10   : > { %s5259_s12 = scalar_lea.vmem %s5473_s4, %s3213_s9 }
  0x11   : > { %s3462_s24 = scalar_lea.vmem %s5469_s0, %s3333_s21 }
  0x12   : > { %v3310_v7 = vld [vmem:[%s3462_s24 + $0x18] sm:$0xff]   ;;  %v3121_v8 = vld [vmem:[%s3462_s24 + $0x24] sm:$0xff]   ;;  %v3326_v10 = vld [vmem:[%s3462_s24 + $0x30] sm:$0xff]  }
  0x13   : > { %v3479_v13 = vunpack.c.l.bf16 %v3310_v7  ;;  %v3481_v14 = vunpack.c.h.bf16 %v3310_v7  ;;  %v900_v15 = vunpack.c.l.bf16 %v3121_v8  ;;  %v3483_v16 = vunpack.c.h.bf16 %v3121_v8  ;;  %v232_v17 = vld [vmem:[%s3462_s24 + $0xc] sm:$0xff]  }
  0x14   : > { %v3486_v18 = vunpack.c.l.bf16 %v3326_v10  ;;  %v3488_v19 = vunpack.c.h.bf16 %v3326_v10  ;;  %v280_v20 = vunpack.c.l.bf16 %v232_v17  ;;  %v3490_v21 = vunpack.c.h.bf16 %v232_v17 }
  0x15   : > { %v330_v22 = vmul.f32 %v3479_v13, %v3455_v2  ;;  %v365_v23 = vmul.f32 %v3479_v13, %v3457_v3  ;;  %v3498_v24 = vmul.f32 %v3481_v14, %v3457_v3  ;;  %v607_v25 = vmul.f32 %v3479_v13, %v3464_v4 }
  0x16   : > { %v3504_v26 = vmul.f32 %v3481_v14, %v3464_v4  ;;  %v947_v27 = vmul.f32 %v3466_v5, %v900_v15  ;;  %v1014_v28 = vmul.f32 %v3468_v6, %v900_v15  ;;  %v3510_v29 = vmul.f32 %v3468_v6, %v3483_v16 }
  0x17   : > { %v466_v30 = vrot.slane %v365_v23, 1  ;;  %v467_v31 = vrot.slane %v3498_v24, 1  ;;  %v708_v32 = vrot.slane %v607_v25, 2  ;;  %v1255_v33 = vmul.f32 %v3472_v9, %v900_v15  ;;  %v3120_v24 = vld [vmem:[%s3462_s24 + $0x20] sm:$0x1] }
  0x18   : > { %v709_v35 = vrot.slane %v3504_v26, 2  ;;  %v1114_v36 = vrot.slane %v1014_v28, 1  ;;  %v1115_v37 = vrot.slane %v3510_v29, 1  ;;  %v3523_v38 = vmul.f32 %v3472_v9, %v3483_v16  ;;  %v3215_v28 = vld [vmem:[%s3462_s24] sm:$0xff]  }
  0x19   : > { %v468_v39 = vsel %vm455_vm0, %v466_v30, %v467_v31  ;;  %v1355_v40 = vrot.slane %v1255_v33, 2  ;;  %v1594_v41 = vmul.f32 %v3486_v18, %v3475_v11  ;;  %v1661_v42 = vmul.f32 %v3486_v18, %v3477_v12 }
  0x1a   : > { %v572_v43 = vadd.f32 %v468_v39, %v330_v22  ;;  %v710_v44 = vsel %vm697_vm1, %v708_v32, %v709_v35  ;;  %v1116_v45 = vsel %vm455_vm0, %v1114_v36, %v1115_v37  ;;  %v5488_v46 = vrot.slane %v3523_v38, 2 }
  0x1b   : > { %v3541_v47 = vmul.f32 %v3488_v19, %v3477_v12  ;;  %v1761_v48 = vrot.slane %v1661_v42, 1  ;;  %v1902_v49 = vmul.f32 %v3517_v34, %v3486_v18  ;;  %v3547_v50 = vmul.f32 %v3517_v34, %v3488_v19 }
  0x1c   : > { %v814_v51 = vadd.f32 %v710_v44, %v572_v43  ;;  %v1357_v52 = vsel %vm697_vm1, %v1355_v40, %v5488_v46  ;;  %v328_v53 = vmul.f32 %v3455_v2, %v280_v20  ;;  %v362_v54 = vmul.f32 %v3457_v3, %v280_v20 }
  0x1d   : > { %v5487_v55 = vrot.slane %v3541_v47, 1  ;;  %v2002_v56 = vrot.slane %v1902_v49, 2  ;;  %v5484_v57 = vrot.slane %v3547_v50, 2  ;;  %v3558_v58 = vmul.f32 %v3457_v3, %v3490_v21 }
  0x1e   : > { %v979_v59 = vadd.f32 %v947_v27, %v814_v51  ;;  %v461_v60 = vrot.slane %v362_v54, 1  ;;  %v604_v61 = vmul.f32 %v3464_v4, %v280_v20  ;;  %v3563_v62 = vmul.f32 %v3464_v4, %v3490_v21  ;;  %v3166_v20 = vld [vmem:[%s3462_s24 + $0x24] sm:$0xff]  }
  0x1f   : > { %v1763_v63 = vsel %vm455_vm0, %v1761_v48, %v5487_v55  ;;  %v2004_v0 = vsel %vm697_vm1, %v2002_v56, %v5484_v57  ;;  %v5483_v1 = vrot.slane %v3558_v58, 1  ;;  %v945_v7 = vmul.f32 %v3479_v13, %v3466_v5 }
  0x20   : > { %v1220_v8 = vadd.f32 %v1116_v45, %v979_v59  ;;  %v703_v10 = vrot.slane %v604_v61, 2  ;;  %v5481_v15 = vrot.slane %v3563_v62, 2  ;;  %v1011_v17 = vmul.f32 %v3479_v13, %v3468_v6 }
  0x21   : > { %v463_v22 = vsel %vm455_vm0, %v461_v60, %v5483_v1  ;;  %v3583_v23 = vmul.f32 %v3481_v14, %v3468_v6  ;;  %v1252_v25 = vmul.f32 %v3479_v13, %v3472_v9  ;;  %v3589_v27 = vmul.f32 %v3481_v14, %v3472_v9  ;;  %v234_v1 = vld [vmem:[%s3462_s24 + $0x14] sm:$0x1] }
  0x22   : > { %v1461_v30 = vadd.f32 %v1357_v52, %v1220_v8  ;;  %v570_v32 = vadd.f32 %v463_v22, %v328_v53  ;;  %v705_v33 = vsel %vm697_vm1, %v703_v10, %v5481_v15  ;;  %v1109_v36 = vrot.slane %v1011_v17, 1 }
  0x23   : > { %v5479_v39 = vrot.slane %v3583_v23, 1  ;;  %v1350_v40 = vrot.slane %v1252_v25, 2  ;;  %v5478_v42 = vrot.slane %v3589_v27, 2  ;;  %v1544_v43 = vunpack.c.l.bf16 %v3166_v20 }
  0x24   : > { %v1626_v44 = vadd.f32 %v1594_v41, %v1461_v30  ;;  %v812_v45 = vadd.f32 %v705_v33, %v570_v32  ;;  %v3597_v48 = vunpack.c.h.bf16 %v3166_v20  ;;  %v3216_v49 = vunpack.c.l.bf16 %v3215_v28  ;;  %v3115_v20 = vld [vmem:[%s3462_s24 + $0xc] sm:$0xff]  }
  0x25   : > { %v1111_v51 = vsel %vm455_vm0, %v1109_v36, %v5479_v39  ;;  %v1352_v52 = vsel %vm697_vm1, %v1350_v40, %v5478_v42  ;;  %v1592_v53 = vmul.f32 %v3475_v11, %v1544_v43  ;;  %v1658_v54 = vmul.f32 %v3477_v12, %v1544_v43 }
  0x26   : > { %v1867_v56 = vadd.f32 %v1763_v63, %v1626_v44  ;;  %v977_v59 = vadd.f32 %v945_v7, %v812_v45  ;;  %v3609_v41 = vmul.f32 %v3477_v12, %v3597_v48  ;;  %v1899_v60 = vmul.f32 %v3517_v34, %v1544_v43 }
  0x27   : > { %v1756_v61 = vrot.slane %v1658_v54, 1  ;;  %v3614_v8 = vmul.f32 %v3517_v34, %v3597_v48  ;;  %v3616_v10 = vunpack.c.h.bf16 %v3215_v28  ;;  %v326_v17 = vmul.f32 %v3216_v49, %v3455_v2 }
  0x28   : > { %v3620_v22 = vadd.f32 %v2004_v0, %v1867_v56  ;;  %v1218_v63 = vadd.f32 %v1111_v51, %v977_v59  ;;  %v5477_v7 = vrot.slane %v3609_v41, 1  ;;  %v1997_v25 = vrot.slane %v1899_v60, 2 }
  0x29   : > { %v5476_v30 = vrot.slane %v3614_v8, 2  ;;  %v359_v32 = vmul.f32 %v3216_v49, %v3457_v3  ;;  %v3627_v33 = vmul.f32 %v3616_v10, %v3457_v3  ;;  %v601_v28 = vmul.f32 %v3216_v49, %v3464_v4 }
  0x2a   : > { %2160 = vperm.xlu2 %3364, %v3620_v22   ;;  %v1459_v36 = vadd.f32 %v1352_v52, %v1218_v63  ;;  %v1758_v0 = vsel %vm455_vm0, %v1756_v61, %v5477_v7  ;;  %v3636_v40 = vmul.f32 %v3616_v10, %v3464_v4  ;;  %v894_v43 = vunpack.c.l.bf16 %v3115_v20  ;;  %v3123_v7 = vld [vmem:[%s3462_s24 + $0x2c] sm:$0x1] }
  0x2b   : > { %v1999_v44 = vsel %vm697_vm1, %v1997_v25, %v5476_v30  ;;  %v456_v45 = vrot.slane %v359_v32, 1  ;;  %v5474_v51 = vrot.slane %v3627_v33, 1  ;;  %v698_v49 = vrot.slane %v601_v28, 2 }
  0x2c   : > { %v1624_v54 = vadd.f32 %v1592_v53, %v1459_v36  ;;  %v5475_v52 = vrot.slane %v3636_v40, 2  ;;  %v3643_v56 = vunpack.c.h.bf16 %v3115_v20  ;;  %v943_v59 = vmul.f32 %v3466_v5, %v894_v43 }
  0x2d   : > { %v458_v60 = vsel %vm455_vm0, %v456_v45, %v5474_v51  ;;  %v1008_v61 = vmul.f32 %v3468_v6, %v894_v43  ;;  %v1249_v63 = vmul.f32 %v3472_v9, %v894_v43  ;;  %v1590_v25 = vmul.f32 %v3479_v13, %v3475_v11 }
  0x2e   : > { %v1865_v32 = vadd.f32 %v1758_v0, %v1624_v54  ;;  %v568_v53 = vadd.f32 %v458_v60, %v326_v17  ;;  %v700_v20 = vsel %vm697_vm1, %v698_v49, %v5475_v52  ;;  %v3658_v28 = vmul.f32 %v3468_v6, %v3643_v56  ;;  %v237_v17 = vld [vmem:[%s3462_s24 + $0x20] sm:$0x1] }
  0x2f   : > { %v1104_v36 = vrot.slane %v1008_v61, 1  ;;  %v3662_v45 = vmul.f32 %v3472_v9, %v3643_v56  ;;  %v1345_v51 = vrot.slane %v1249_v63, 2  ;;  %v1655_v43 = vmul.f32 %v3479_v13, %v3477_v12 }
  0x30   : > { %v3667_v0 = vadd.f32 %v1999_v44, %v1865_v32  ;;  %v810_v54 = vadd.f32 %v700_v20, %v568_v53  ;;  %v5480_v49 = vrot.slane %v3658_v28, 1  ;;  %v3672_v60 = vmul.f32 %v3481_v14, %v3477_v12 }
  0x31   : > { %v5482_v61 = vrot.slane %v3662_v45, 2  ;;  %v1751_v52 = vrot.slane %v1655_v43, 1  ;;  %v1896_v63 = vmul.f32 %v3517_v34, %v3479_v13  ;;  %v3679_v30 = vmul.f32 %v3517_v34, %v3481_v14  ;;  %v3171_v43 = vld [vmem:[%s3462_s24 + $0x38] sm:$0x1] }
  0x32   : > { %2150 = vperm.xlu1 %3363, %v3667_v0   ;;  %v975_v44 = vadd.f32 %v943_v59, %v810_v54  ;;  %v1106_v32 = vsel %vm455_vm0, %v1104_v36, %v5480_v49  ;;  %v5485_v53 = vrot.slane %v3672_v60, 1  ;;  %v285_v20 = vunpack.c.l.bf16 %v237_v17 }
  0x33   : > { %v1347_v13 = vsel %vm697_vm1, %v1345_v51, %v5482_v61  ;;  %v1992_v42 = vrot.slane %v1896_v63, 2  ;;  %v5486_v39 = vrot.slane %v3679_v30, 2  ;;  %v331_v59 = vmul.f32 %v3481_v14, %v3455_v2 }
  0x34   : > { %v1216_v54 = vadd.f32 %v1106_v32, %v975_v44  ;;  %v1753_v36 = vsel %vm455_vm0, %v1751_v52, %v5485_v53  ;;  %v367_v49 = vmul.f32 %v3457_v3, %v285_v20  ;;  %v609_v17 = vmul.f32 %v3464_v4, %v285_v20 }
  0x35   : > { %v1994_v15 = vsel %vm697_vm1, %v1992_v42, %v5486_v39  ;;  %v902_v51 = vunpack.c.l.bf16 %v3123_v7  ;;  %v948_v63 = vmul.f32 %v3466_v5, %v3483_v16  ;;  %v1549_v61 = vunpack.c.l.bf16 %v3171_v43 }
  0x36   : > { %v1457_v57 = vadd.f32 %v1347_v13, %v1216_v54  ;;  %v469_v44 = vrot.slane %v367_v49, 1  ;;  %v711_v32 = vrot.slane %v609_v17, 2  ;;  %v1595_v52 = vmul.f32 %v3488_v19, %v3475_v11 }
  0x37   : > { %v1016_v53 = vmul.f32 %v3468_v6, %v902_v51  ;;  %v1257_v20 = vmul.f32 %v3472_v9, %v902_v51  ;;  %v1663_v42 = vmul.f32 %v3477_v12, %v1549_v61  ;;  %v1904_v7 = vmul.f32 %v3517_v34, %v1549_v61 }
  0x38   : > { %v1622_v39 = vadd.f32 %v1590_v25, %v1457_v57  ;;  %v470_v16 = vsel %vm455_vm0, %v467_v31, %v469_v44  ;;  %v712_v49 = vsel %vm697_vm1, %v709_v35, %v711_v32  ;;  %v282_v43 = vunpack.c.l.bf16 %v234_v1  ;;  %v3168_v25 = vld [vmem:[%s3462_s24 + $0x2c] sm:$0x1] }
  0x39   : > { %v573_v13 = vadd.f32 %v470_v16, %v331_v59  ;;  %v1117_v54 = vrot.slane %v1016_v53, 1  ;;  %v1358_v17 = vrot.slane %v1257_v20, 2  ;;  %v1764_v51 = vrot.slane %v1663_v42, 1  ;;  %v231_v59 = vld [vmem:[%s3462_s24 + $0x8] sm:$0x1] }
  0x3a   : > { %v1863_v55 = vadd.f32 %v1753_v36, %v1622_v39  ;;  %v2005_v46 = vrot.slane %v1904_v7, 2  ;;  %v329_v61 = vmul.f32 %v3455_v2, %v3490_v21  ;;  %v364_v57 = vmul.f32 %v3457_v3, %v282_v43 }
  0x3b   : > { %v815_v31 = vadd.f32 %v712_v49, %v573_v13  ;;  %v1118_v26 = vsel %vm455_vm0, %v1115_v37, %v1117_v54  ;;  %v5540_v35 = vrot.slane %v3523_v38, 2  ;;  %v5541_v53 = vrot.slane %v3541_v47, 1 }
  0x3c   : > { %v3732_v36 = vadd.f32 %v1994_v15, %v1863_v55  ;;  %v5542_v21 = vrot.slane %v3547_v50, 2  ;;  %v464_v32 = vrot.slane %v364_v57, 1  ;;  %v606_v29 = vmul.f32 %v3464_v4, %v282_v43 }
  0x3d   : > { %v1359_v1 = vsel %vm697_vm1, %v5540_v35, %v1358_v17  ;;  %v1765_v39 = vsel %vm455_vm0, %v5541_v53, %v1764_v51  ;;  %v980_v20 = vadd.f32 %v948_v63, %v815_v31  ;;  %v899_v37 = vunpack.c.l.bf16 %v3120_v24 }
  0x3e   : > { %v2006_v44 = vsel %vm697_vm1, %v5542_v21, %v2005_v46  ;;  %v946_v38 = vmul.f32 %v3481_v14, %v3466_v5  ;;  %v1546_v42 = vunpack.c.l.bf16 %v3168_v25  ;;  %2140 = vperm.xlu0 %3362, %v3732_v36   ;;  %v5543_v47 = vrot.slane %v3558_v58, 1 }
  0x3f   : > { %v706_v15 = vrot.slane %v606_v29, 2  ;;  %v1593_v50 = vmul.f32 %v3475_v11, %v3597_v48  ;;  %v279_v46 = vunpack.c.l.bf16 %v231_v59  ;;  %v1221_v7 = vadd.f32 %v1118_v26, %v980_v20  ;;  %v3117_v26 = vld [vmem:[%s3462_s24 + $0x14] sm:$0x1] }
  0x40   : > { %v465_v55 = vsel %vm455_vm0, %v5543_v47, %v464_v32  ;;  %v1013_v63 = vmul.f32 %v3468_v6, %v899_v37  ;;  %v1254_v49 = vmul.f32 %v3472_v9, %v899_v37  ;;  %v5544_v43 = vrot.slane %v3563_v62, 2 }
  0x41   : > { %v571_v16 = vadd.f32 %v465_v55, %v329_v61  ;;  %v1660_v58 = vmul.f32 %v3477_v12, %v1546_v42  ;;  %v1901_v54 = vmul.f32 %v3517_v34, %v1546_v42  ;;  %v327_v48 = vmul.f32 %v3616_v10, %v3455_v2 }
  0x42   : > { %v707_v13 = vsel %vm697_vm1, %v5544_v43, %v706_v15  ;;  %v1462_v17 = vadd.f32 %v1359_v1, %v1221_v7  ;;  %v1112_v57 = vrot.slane %v1013_v63, 1  ;;  %v1353_v61 = vrot.slane %v1254_v49, 2  ;;  %v3165_v1 = vld [vmem:[%s3462_s24 + $0x20] sm:$0x1] }
  0x43   : > { %v813_v51 = vadd.f32 %v707_v13, %v571_v16  ;;  %v1759_v24 = vrot.slane %v1660_v58, 1  ;;  %v2000_v25 = vrot.slane %v1901_v54, 2  ;;  %v361_v31 = vmul.f32 %v3457_v3, %v279_v46 }
  0x44   : > { %v603_v62 = vmul.f32 %v3464_v4, %v279_v46  ;;  %v1627_v35 = vadd.f32 %v1595_v52, %v1462_v17  ;;  %v5545_v59 = vrot.slane %v3583_v23, 1  ;;  %v5546_v32 = vrot.slane %v3589_v27, 2 }
  0x45   : > { %v978_v53 = vadd.f32 %v946_v38, %v813_v51  ;;  %v5547_v29 = vrot.slane %v3609_v41, 1  ;;  %v5548_v37 = vrot.slane %v3614_v8, 2  ;;  %v459_v47 = vrot.slane %v361_v31, 1 }
  0x46   : > { %v1113_v21 = vsel %vm455_vm0, %v5545_v59, %v1112_v57  ;;  %v1354_v10 = vsel %vm697_vm1, %v5546_v32, %v1353_v61  ;;  %v701_v52 = vrot.slane %v603_v62, 2  ;;  %v1868_v38 = vadd.f32 %v1765_v39, %v1627_v35 }
  0x47   : > { %v1760_v20 = vsel %vm455_vm0, %v5547_v29, %v1759_v24  ;;  %v2001_v42 = vsel %vm697_vm1, %v5548_v37, %v2000_v25  ;;  %v1219_v55 = vadd.f32 %v1113_v21, %v978_v53  ;;  %v896_v23 = vunpack.c.l.bf16 %v3117_v26  ;;  %v3327_v26 = vld [vmem:[%s3462_s24 + $0x48] sm:$0xff]  }
  0x48   : > { %v944_v15 = vmul.f32 %v3466_v5, %v3643_v56  ;;  %v5549_v27 = vrot.slane %v3627_v33, 1  ;;  %v5550_v41 = vrot.slane %v3636_v40, 2  ;;  %v1543_v16 = vunpack.c.l.bf16 %v3165_v1 }
  0x49   : > { %v1591_v8 = vmul.f32 %v3481_v14, %v3475_v11  ;;  %v3781_v63 = vadd.f32 %v2006_v44, %v1868_v38  ;;  %v1460_v39 = vadd.f32 %v1354_v10, %v1219_v55  ;;  %v1010_v43 = vmul.f32 %v3468_v6, %v896_v23 }
  0x4a   : > { %v460_v46 = vsel %vm455_vm0, %v5549_v27, %v459_v47  ;;  %v702_v7 = vsel %vm697_vm1, %v5550_v41, %v701_v52  ;;  %v1251_v56 = vmul.f32 %v3472_v9, %v896_v23  ;;  %v1657_v33 = vmul.f32 %v3477_v12, %v1543_v16 }
  0x4b   : > { %v569_v49 = vadd.f32 %v460_v46, %v327_v48  ;;  %v1898_v13 = vmul.f32 %v3517_v34, %v1543_v16  ;;  %v334_v40 = vmul.f32 %v3486_v18, %v3455_v2  ;;  %2165 = vperm.xlu2 %3364, %v3781_v63   ;;  %v1625_v14 = vadd.f32 %v1593_v50, %v1460_v39  ;;  %v3127_v50 = vld [vmem:[%s3462_s24 + $0x3c] sm:$0xff]  }
  0x4c   : > { %v1107_v58 = vrot.slane %v1010_v43, 1  ;;  %v371_v54 = vmul.f32 %v3486_v18, %v3457_v3  ;;  %v1348_v48 = vrot.slane %v1251_v56, 2  ;;  %v1754_v17 = vrot.slane %v1657_v33, 1 }
  0x4d   : > { %v811_v44 = vadd.f32 %v702_v7, %v569_v49  ;;  %v1995_v51 = vrot.slane %v1898_v13, 2  ;;  %v3794_v57 = vmul.f32 %v3488_v19, %v3457_v3  ;;  %v1866_v61 = vadd.f32 %v1760_v20, %v1625_v14 }
  0x4e   : > { %v5551_v25 = vrot.slane %v3658_v28, 1  ;;  %v476_v62 = vrot.slane %v371_v54, 1  ;;  %v5552_v35 = vrot.slane %v3662_v45, 2  ;;  %v5553_v59 = vrot.slane %v3672_v60, 1 }
  0x4f   : > { %v976_v24 = vadd.f32 %v944_v15, %v811_v44  ;;  %v5554_v32 = vrot.slane %v3679_v30, 2  ;;  %v477_v1 = vrot.slane %v3794_v57, 1  ;;  %v3811_v28 = vadd.f32 %v2001_v42, %v1866_v61  ;;  %v239_v44 = vld [vmem:[%s3462_s24 + $0x24] sm:$0xff]   ;;  %v3126_v61 = vld [vmem:[%s3462_s24 + $0x38] sm:$0x1] }
  0x50   : > { %v1108_v31 = vsel %vm455_vm0, %v5551_v25, %v1107_v58  ;;  %v1349_v53 = vsel %vm697_vm1, %v5552_v35, %v1348_v48  ;;  %v1755_v21 = vsel %vm455_vm0, %v5553_v59, %v1754_v17  ;;  %v613_v20 = vmul.f32 %v3486_v18, %v3464_v4 }
  0x51   : > { %v1996_v10 = vsel %vm697_vm1, %v5554_v32, %v1995_v51  ;;  %v1217_v29 = vadd.f32 %v1108_v31, %v976_v24  ;;  %v3817_v45 = vmul.f32 %v3488_v19, %v3464_v4  ;;  %v478_v60 = vsel %vm455_vm0, %v476_v62, %v477_v1  ;;  %2155 = vperm.xlu1 %3363, %v3811_v28   ;;  %v240_v51 = vld [vmem:[%s3462_s24 + $0x2c] sm:$0x1] }
  0x52   : > { %v906_v37 = vunpack.c.l.bf16 %v3127_v50  ;;  %v3822_v30 = vunpack.c.h.bf16 %v3127_v50  ;;  %v3824_v47 = vunpack.c.l.bf16 %v3327_v26  ;;  %v576_v52 = vadd.f32 %v478_v60, %v334_v40 }
  0x53   : > { %v1458_v42 = vadd.f32 %v1349_v53, %v1217_v29  ;;  %v718_v38 = vrot.slane %v613_v20, 2  ;;  %v719_v55 = vrot.slane %v3817_v45, 2  ;;  %v3842_v39 = vunpack.c.h.bf16 %v3327_v26 }
  0x54   : > { %v951_v23 = vmul.f32 %v3466_v5, %v906_v37  ;;  %v1020_v15 = vmul.f32 %v3468_v6, %v906_v37  ;;  %v3832_v27 = vmul.f32 %v3468_v6, %v3822_v30  ;;  %v1261_v46 = vmul.f32 %v3472_v9, %v906_v37 }
  0x55   : > { %v1623_v41 = vadd.f32 %v1591_v8, %v1458_v42  ;;  %v720_v7 = vsel %vm697_vm1, %v718_v38, %v719_v55  ;;  %v3840_v16 = vmul.f32 %v3472_v9, %v3822_v30  ;;  %v1598_v40 = vmul.f32 %v3824_v47, %v3475_v11 }
  0x56   : > { %v818_v49 = vadd.f32 %v720_v7, %v576_v52  ;;  %v1124_v43 = vrot.slane %v1020_v15, 1  ;;  %v1125_v56 = vrot.slane %v3832_v27, 1  ;;  %v1365_v33 = vrot.slane %v1261_v46, 2  ;;  %v3320_v27 = vld [vmem:[%s3462_s24 + $0x60] sm:$0xff]  }
  0x57   : > { %v1864_v13 = vadd.f32 %v1755_v21, %v1623_v41  ;;  %v5491_v8 = vrot.slane %v3840_v16, 2  ;;  %v1667_v14 = vmul.f32 %v3824_v47, %v3477_v12  ;;  %v3856_v48 = vmul.f32 %v3842_v39, %v3477_v12 }
  0x58   : > { %v983_v58 = vadd.f32 %v951_v23, %v818_v49  ;;  %v1126_v54 = vsel %vm455_vm0, %v1124_v43, %v1125_v56  ;;  %v1908_v17 = vmul.f32 %v3517_v34, %v3824_v47  ;;  %v3869_v62 = vmul.f32 %v3517_v34, %v3842_v39  ;;  %v3173_v49 = vld [vmem:[%s3462_s24 + $0x3c] sm:$0xff]  }
  0x59   : > { %v3862_v24 = vadd.f32 %v1996_v10, %v1864_v13  ;;  %v1367_v25 = vsel %vm697_vm1, %v1365_v33, %v5491_v8  ;;  %v1771_v31 = vrot.slane %v1667_v14, 1  ;;  %v5490_v26 = vrot.slane %v3856_v48, 1 }
  0x5a   : > { %v1224_v50 = vadd.f32 %v1126_v54, %v983_v58  ;;  %v2012_v35 = vrot.slane %v1908_v17, 2  ;;  %v287_v53 = vunpack.c.h.bf16 %v239_v44  ;;  %v5489_v59 = vrot.slane %v3869_v62, 2 }
  0x5b   : > { %2145 = vperm.xlu0 %3362, %v3862_v24   ;;  %v288_v21 = vunpack.c.l.bf16 %v240_v51  ;;  %v905_v32 = vunpack.c.l.bf16 %v3126_v61  ;;  %v950_v10 = vmul.f32 %v3488_v19, %v3466_v5  ;;  %v1773_v20 = vsel %vm455_vm0, %v1771_v31, %v5490_v26  ;;  %v3174_v61 = vld [vmem:[%s3462_s24 + $0x44] sm:$0x1] }
  0x5c   : > { %v1465_v29 = vadd.f32 %v1367_v25, %v1224_v50  ;;  %v333_v60 = vmul.f32 %v3455_v2, %v287_v53  ;;  %v369_v37 = vmul.f32 %v3457_v3, %v287_v53  ;;  %v2014_v42 = vsel %vm697_vm1, %v2012_v35, %v5489_v59 }
  0x5d   : > { %v370_v52 = vmul.f32 %v3457_v3, %v288_v21  ;;  %v611_v38 = vmul.f32 %v3464_v4, %v287_v53  ;;  %v612_v23 = vmul.f32 %v3464_v4, %v288_v21  ;;  %v1018_v41 = vmul.f32 %v3488_v19, %v3468_v6 }
  0x5e   : > { %v1630_v15 = vadd.f32 %v1598_v40, %v1465_v29  ;;  %v472_v46 = vrot.slane %v369_v37, 1  ;;  %v1019_v7 = vmul.f32 %v3468_v6, %v905_v32  ;;  %v1259_v14 = vmul.f32 %v3488_v19, %v3472_v9 }
  0x5f   : > { %v474_v43 = vrot.slane %v370_v52, 1  ;;  %v714_v33 = vrot.slane %v611_v38, 2  ;;  %v716_v13 = vrot.slane %v612_v23, 2  ;;  %v1120_v54 = vrot.slane %v1018_v41, 1 }
  0x60   : > { %v1871_v58 = vadd.f32 %v1773_v20, %v1630_v15  ;;  %v1122_v17 = vrot.slane %v1019_v7, 1  ;;  %v1260_v51 = vmul.f32 %v3472_v9, %v905_v32  ;;  %v1361_v31 = vrot.slane %v1259_v14, 2 }
  0x61   : > { %v475_v40 = vsel %vm455_vm0, %v472_v46, %v474_v43  ;;  %v717_v25 = vsel %vm697_vm1, %v714_v33, %v716_v13  ;;  %v1551_v50 = vunpack.c.h.bf16 %v3173_v49  ;;  %v1552_v37 = vunpack.c.l.bf16 %v3174_v61 }
  0x62   : > { %v3897_v35 = vadd.f32 %v2014_v42, %v1871_v58  ;;  %v575_v53 = vadd.f32 %v475_v40, %v333_v60  ;;  %v1123_v21 = vsel %vm455_vm0, %v1120_v54, %v1122_v17  ;;  %v1363_v29 = vrot.slane %v1260_v51, 2 }
  0x63   : > { %v1597_v20 = vmul.f32 %v3475_v11, %v1551_v50  ;;  %v1665_v52 = vmul.f32 %v3477_v12, %v1551_v50  ;;  %v1906_v32 = vmul.f32 %v3517_v34, %v1551_v50  ;;  %v286_v15 = vunpack.c.l.bf16 %v239_v44 }
  0x64   : > { %2180 = vperm.xlu2 %3364, %v3897_v35   ;;  %v817_v38 = vadd.f32 %v717_v25, %v575_v53  ;;  %v1364_v23 = vsel %vm697_vm1, %v1361_v31, %v1363_v29  ;;  %v949_v42 = vmul.f32 %v3486_v18, %v3466_v5  ;;  %v1666_v60 = vmul.f32 %v3477_v12, %v1552_v37 }
  0x65   : > { %v1767_v41 = vrot.slane %v1665_v52, 1  ;;  %v1907_v7 = vmul.f32 %v3517_v34, %v1552_v37  ;;  %v2008_v43 = vrot.slane %v1906_v32, 2  ;;  %v332_v14 = vmul.f32 %v3455_v2, %v286_v15 }
  0x66   : > { %v982_v13 = vadd.f32 %v950_v10, %v817_v38  ;;  %v368_v58 = vmul.f32 %v3457_v3, %v286_v15  ;;  %v610_v17 = vmul.f32 %v3464_v4, %v286_v15  ;;  %v1769_v51 = vrot.slane %v1666_v60, 1  ;;  %v3919_v38 = vld [vmem:[%s3462_s24 + $0x3c] sm:$0xff]   ;;  %v246_v15 = vld [vmem:[%s3462_s24 + $0x44] sm:$0x1] }
  0x67   : > { %v2010_v44 = vrot.slane %v1907_v7, 2  ;;  %v1017_v61 = vmul.f32 %v3486_v18, %v3468_v6  ;;  %v1258_v40 = vmul.f32 %v3486_v18, %v3472_v9  ;;  %v1550_v53 = vunpack.c.l.bf16 %v3173_v49 }
  0x68   : > { %v1223_v25 = vadd.f32 %v1123_v21, %v982_v13  ;;  %v471_v50 = vrot.slane %v368_v58, 1  ;;  %v713_v10 = vrot.slane %v610_v17, 2  ;;  %v1770_v29 = vsel %vm455_vm0, %v1767_v41, %v1769_v51  ;;  %v3132_v21 = vld [vmem:[%s3462_s24 + $0x50] sm:$0x1] }
  0x69   : > { %v2011_v37 = vsel %vm697_vm1, %v2008_v43, %v2010_v44  ;;  %v1119_v52 = vrot.slane %v1017_v61, 1  ;;  %v1360_v32 = vrot.slane %v1258_v40, 2  ;;  %v1596_v18 = vmul.f32 %v3475_v11, %v1550_v53 }
  0x6a   : > { %v1464_v60 = vadd.f32 %v1364_v23, %v1223_v25  ;;  %v473_v7 = vsel %vm455_vm0, %v471_v50, %v472_v46  ;;  %v715_v59 = vsel %vm697_vm1, %v713_v10, %v714_v33  ;;  %v1664_v17 = vmul.f32 %v3477_v12, %v1550_v53 }
  0x6b   : > { %v574_v13 = vadd.f32 %v473_v7, %v332_v14  ;;  %v1121_v49 = vsel %vm455_vm0, %v1119_v52, %v1120_v54  ;;  %v1362_v58 = vsel %vm697_vm1, %v1360_v32, %v1361_v31  ;;  %v1905_v44 = vmul.f32 %v3517_v34, %v1550_v53 }
  0x6c   : > { %v1629_v51 = vadd.f32 %v1597_v20, %v1464_v60  ;;  %v293_v61 = vunpack.c.h.bf16 %v3919_v38  ;;  %v294_v23 = vunpack.c.l.bf16 %v246_v15  ;;  %v1766_v46 = vrot.slane %v1664_v17, 1  ;;  %v3179_v60 = vld [vmem:[%s3462_s24 + $0x54] sm:$0xff]  }
  0x6d   : > { %v816_v40 = vadd.f32 %v715_v59, %v574_v13  ;;  %v911_v33 = vunpack.c.l.bf16 %v3132_v21  ;;  %v954_v25 = vmul.f32 %v3842_v39, %v3466_v5  ;;  %v2007_v50 = vrot.slane %v1905_v44, 2 }
  0x6e   : > { %v1870_v14 = vadd.f32 %v1770_v29, %v1629_v51  ;;  %v337_v54 = vmul.f32 %v3455_v2, %v293_v61  ;;  %v3935_v31 = vmul.f32 %v3457_v3, %v293_v61  ;;  %v1768_v10 = vsel %vm455_vm0, %v1766_v46, %v1767_v41  ;;  %v3180_v51 = vld [vmem:[%s3462_s24 + $0x5c] sm:$0x1] }
  0x6f   : > { %v981_v20 = vadd.f32 %v949_v42, %v816_v40  ;;  %v376_v53 = vmul.f32 %v3457_v3, %v294_v23  ;;  %v3940_v59 = vmul.f32 %v3464_v4, %v293_v61  ;;  %v2009_v32 = vsel %vm697_vm1, %v2007_v50, %v2008_v43 }
  0x70   : > { %v3942_v52 = vadd.f32 %v2011_v37, %v1870_v14  ;;  %v482_v29 = vrot.slane %v3935_v31, 1  ;;  %v618_v15 = vmul.f32 %v3464_v4, %v294_v23  ;;  %v1024_v41 = vmul.f32 %v3842_v39, %v3468_v6 }
  0x71   : > { %v1222_v7 = vadd.f32 %v1121_v49, %v981_v20  ;;  %v484_v21 = vrot.slane %v376_v53, 1  ;;  %v724_v42 = vrot.slane %v3940_v59, 2  ;;  %v1025_v37 = vmul.f32 %v3468_v6, %v911_v33 }
  0x72   : > { %5555 = vst [vmem:[#allocation2_spill] sm:$0xff] %v3942_v52  ;;  %2175 = vperm.xlu1 %3363, %v3942_v52   ;;  %v726_v13 = vrot.slane %v618_v15, 2  ;;  %v1265_v43 = vmul.f32 %v3842_v39, %v3472_v9  ;;  %v1266_v17 = vmul.f32 %v3472_v9, %v911_v33  ;;  %v1130_v61 = vrot.slane %v1024_v41, 1 }
  0x73   : > { %v1463_v44 = vadd.f32 %v1362_v58, %v1222_v7  ;;  %v485_v49 = vsel %vm455_vm0, %v482_v29, %v484_v21  ;;  %v1557_v23 = vunpack.c.h.bf16 %v3179_v60  ;;  %v1132_v14 = vrot.slane %v1025_v37, 1 }
  0x74   : > { %v579_v40 = vadd.f32 %v485_v49, %v337_v54  ;;  %v727_v46 = vsel %vm697_vm1, %v724_v42, %v726_v13  ;;  %v1371_v50 = vrot.slane %v1265_v43, 2  ;;  %v1373_v20 = vrot.slane %v1266_v17, 2 }
  0x75   : > { %v1628_v31 = vadd.f32 %v1596_v18, %v1463_v44  ;;  %v1558_v53 = vunpack.c.l.bf16 %v3180_v51  ;;  %v1601_v59 = vmul.f32 %v3475_v11, %v1557_v23  ;;  %v1133_v26 = vsel %vm455_vm0, %v1130_v61, %v1132_v14  ;;  %v243_v14 = vld [vmem:[%s3462_s24 + $0x38] sm:$0x1] }
  0x76   : > { %v821_v15 = vadd.f32 %v727_v46, %v579_v40  ;;  %v1671_v33 = vmul.f32 %v3477_v12, %v1557_v23  ;;  %v1912_v58 = vmul.f32 %v3517_v34, %v1557_v23  ;;  %v1374_v54 = vsel %vm697_vm1, %v1371_v50, %v1373_v20 }
  0x77   : > { %v1869_v7 = vadd.f32 %v1768_v10, %v1628_v31  ;;  %v1672_v21 = vmul.f32 %v3477_v12, %v1558_v53  ;;  %v1913_v41 = vmul.f32 %v3517_v34, %v1558_v53  ;;  %v292_v43 = vunpack.c.l.bf16 %v3919_v38 }
  0x78   : > { %v986_v18 = vadd.f32 %v954_v25, %v821_v15  ;;  %v1777_v13 = vrot.slane %v1671_v33, 1  ;;  %v2018_v37 = vrot.slane %v1912_v58, 2  ;;  %v953_v49 = vmul.f32 %v3824_v47, %v3466_v5 }
  0x79   : > { %v3967_v17 = vadd.f32 %v2009_v32, %v1869_v7  ;;  %v1779_v51 = vrot.slane %v1672_v21, 1  ;;  %v2020_v44 = vrot.slane %v1913_v41, 2  ;;  %v336_v23 = vmul.f32 %v3455_v2, %v292_v43 }
  0x7a   : > { %v1227_v10 = vadd.f32 %v1133_v26, %v986_v18  ;;  %v374_v40 = vmul.f32 %v3457_v3, %v292_v43  ;;  %v616_v46 = vmul.f32 %v3464_v4, %v292_v43  ;;  %v1023_v32 = vmul.f32 %v3824_v47, %v3468_v6 }
  0x7b   : > { %2170 = vperm.xlu0 %3362, %v3967_v17   ;;  %v1780_v25 = vsel %vm455_vm0, %v1777_v13, %v1779_v51  ;;  %v2021_v38 = vsel %vm697_vm1, %v2018_v37, %v2020_v44  ;;  %v1264_v26 = vmul.f32 %v3824_v47, %v3472_v9  ;;  %v1556_v15 = vunpack.c.l.bf16 %v3179_v60  ;;  %v3129_v44 = vld [vmem:[%s3462_s24 + $0x44] sm:$0x1] }
  0x7c   : > { %v1468_v31 = vadd.f32 %v1374_v54, %v1227_v10  ;;  %v481_v20 = vrot.slane %v374_v40, 1  ;;  %v723_v53 = vrot.slane %v616_v46, 2  ;;  %v1129_v33 = vrot.slane %v1023_v32, 1  ;;  %v3177_v32 = vld [vmem:[%s3462_s24 + $0x50] sm:$0x1] }
  0x7d   : > { %v1370_v58 = vrot.slane %v1264_v26, 2  ;;  %v291_v7 = vunpack.c.l.bf16 %v243_v14  ;;  %v335_v21 = vmul.f32 %v3488_v19, %v3455_v2  ;;  %v1600_v51 = vmul.f32 %v3475_v11, %v1556_v15 }
  0x7e   : > { %v1633_v41 = vadd.f32 %v1601_v59, %v1468_v31  ;;  %v483_v18 = vsel %vm455_vm0, %v481_v20, %v482_v29  ;;  %v725_v43 = vsel %vm697_vm1, %v723_v53, %v724_v42  ;;  %v1131_v54 = vsel %vm455_vm0, %v1129_v33, %v1130_v61  ;;  %v250_v33 = vld [vmem:[%s3462_s24 + $0x54] sm:$0xff]  }
  0x7f   : > { %v578_v8 = vadd.f32 %v483_v18, %v336_v23  ;;  %v1372_v60 = vsel %vm697_vm1, %v1370_v58, %v1371_v50  ;;  %v1670_v10 = vmul.f32 %v3477_v12, %v1556_v15  ;;  %v1911_v46 = vmul.f32 %v3517_v34, %v1556_v15 }
  0x80   : > { %v1874_v40 = vadd.f32 %v1780_v25, %v1633_v41  ;;  %v373_v19 = vmul.f32 %v3457_v3, %v291_v7  ;;  %v615_v29 = vmul.f32 %v3464_v4, %v291_v7  ;;  %v908_v14 = vunpack.c.l.bf16 %v3129_v44 }
  0x81   : > { %v820_v59 = vadd.f32 %v725_v43, %v578_v8  ;;  %v1776_v42 = vrot.slane %v1670_v10, 1  ;;  %v952_v23 = vmul.f32 %v3466_v5, %v3822_v30  ;;  %v2017_v50 = vrot.slane %v1911_v46, 2 }
  0x82   : > { %v3997_v61 = vadd.f32 %v2021_v38, %v1874_v40  ;;  %v479_v26 = vrot.slane %v373_v19, 1  ;;  %v721_v31 = vrot.slane %v615_v29, 2  ;;  %v1022_v53 = vmul.f32 %v3468_v6, %v908_v14 }
  0x83   : > { %v985_v25 = vadd.f32 %v953_v49, %v820_v59  ;;  %v1778_v20 = vsel %vm455_vm0, %v1776_v42, %v1777_v13  ;;  %v1263_v15 = vmul.f32 %v3472_v9, %v908_v14  ;;  %v2019_v8 = vsel %vm697_vm1, %v2017_v50, %v2018_v37 }
  0x84   : > { %2195 = vperm.xlu2 %3364, %v3997_v61   ;;  %v480_v30 = vsel %vm455_vm0, %v477_v1, %v479_v26  ;;  %v722_v38 = vsel %vm697_vm1, %v719_v55, %v721_v31  ;;  %v1555_v49 = vunpack.c.l.bf16 %v3177_v32  ;;  %v1127_v7 = vrot.slane %v1022_v53, 1 }
  0x85   : > { %v1226_v58 = vadd.f32 %v1131_v54, %v985_v25  ;;  %v577_v13 = vadd.f32 %v480_v30, %v335_v21  ;;  %v1368_v41 = vrot.slane %v1263_v15, 2  ;;  %v1599_v18 = vmul.f32 %v3842_v39, %v3475_v11 }
  0x86   : > { %v1669_v43 = vmul.f32 %v3477_v12, %v1555_v49  ;;  %v1910_v37 = vmul.f32 %v3517_v34, %v1555_v49  ;;  %v298_v57 = vunpack.c.l.bf16 %v250_v33  ;;  %v1128_v45 = vsel %vm455_vm0, %v1125_v56, %v1127_v7 }
  0x87   : > { %v1467_v44 = vadd.f32 %v1372_v60, %v1226_v58  ;;  %v819_v1 = vadd.f32 %v722_v38, %v577_v13  ;;  %v5556_v55 = vrot.slane %v3840_v16, 2  ;;  %v4021_v40 = vunpack.c.h.bf16 %v250_v33 }
  0x88   : > { %v1774_v54 = vrot.slane %v1669_v43, 1  ;;  %v2015_v10 = vrot.slane %v1910_v37, 2  ;;  %v340_v46 = vmul.f32 %v3455_v2, %v298_v57  ;;  %v380_v60 = vmul.f32 %v3457_v3, %v298_v57 }
  0x89   : > { %v1369_v21 = vsel %vm697_vm1, %v5556_v55, %v1368_v41  ;;  %v1632_v19 = vadd.f32 %v1600_v51, %v1467_v44  ;;  %v984_v34 = vadd.f32 %v952_v23, %v819_v1  ;;  %v622_v29 = vmul.f32 %v3464_v4, %v298_v57  ;;  %v3184_v23 = vld [vmem:[%s3462_s24 + $0x6c] sm:$0xff]  }
  0x8a   : > { %v5557_v59 = vrot.slane %v3856_v48, 1  ;;  %v5558_v16 = vrot.slane %v3869_v62, 2  ;;  %v4035_v14 = vmul.f32 %v3457_v3, %v4021_v40  ;;  %v4039_v51 = vmul.f32 %v3464_v4, %v4021_v40 }
  0x8b   : > { %v1873_v32 = vadd.f32 %v1778_v20, %v1632_v19  ;;  %v1225_v50 = vadd.f32 %v1128_v45, %v984_v34  ;;  %v491_v26 = vrot.slane %v380_v60, 1  ;;  %v733_v31 = vrot.slane %v622_v29, 2  ;;  %v4085_v34 = vld [vmem:[%s5470_s1 + $0x8] ss:$0 sm:$0xff] }
  0x8c   : > { %v1775_v56 = vsel %vm455_vm0, %v5557_v59, %v1774_v54  ;;  %v2016_v42 = vsel %vm697_vm1, %v5558_v16, %v2015_v10  ;;  %v5497_v48 = vrot.slane %v4035_v14, 1  ;;  %v5496_v25 = vrot.slane %v4039_v51, 2  ;;  %v249_v54 = vld [vmem:[%s3462_s24 + $0x50] sm:$0x1] }
  0x8d   : > { %v4044_v62 = vunpack.c.l.bf16 %v3320_v27  ;;  %v4046_v53 = vunpack.c.h.bf16 %v3320_v27  ;;  %v4048_v15 = vadd.f32 %v2019_v8, %v1873_v32  ;;  %v1466_v33 = vadd.f32 %v1369_v21, %v1225_v50 }
  0x8e   : > { %v1562_v30 = vunpack.c.l.bf16 %v3184_v23  ;;  %v4050_v38 = vunpack.c.h.bf16 %v3184_v23  ;;  %v493_v20 = vsel %vm455_vm0, %v491_v26, %v5497_v48  ;;  %v735_v49 = vsel %vm697_vm1, %v733_v31, %v5496_v25  ;;  %v3134_v26 = vld [vmem:[%s3462_s24 + $0x54] sm:$0xff]   ;;  %v3140_v48 = vld [vmem:[%s3462_s24 + $0x6c] sm:$0xff]  }
  0x8f   : > { %5559 = vst [vmem:[#allocation3_spill] sm:$0xff] %v4048_v15  ;;  %v957_v58 = vmul.f32 %v4044_v62, %v3466_v5  ;;  %v1029_v8 = vmul.f32 %v4044_v62, %v3468_v6  ;;  %2190 = vperm.xlu1 %3363, %v4048_v15   ;;  %v1631_v13 = vadd.f32 %v1599_v18, %v1466_v33  ;;  %v297_v50 = vunpack.c.l.bf16 %v249_v54 }
  0x90   : > { %v582_v7 = vadd.f32 %v493_v20, %v340_v46  ;;  %v4065_v41 = vmul.f32 %v4046_v53, %v3468_v6  ;;  %v1270_v43 = vmul.f32 %v4044_v62, %v3472_v9  ;;  %v4071_v57 = vmul.f32 %v4046_v53, %v3472_v9  ;;  %v3135_v20 = vld [vmem:[%s3462_s24 + $0x5c] sm:$0x1] }
  0x91   : > { %v1139_v37 = vrot.slane %v1029_v8, 1  ;;  %v1604_v44 = vmul.f32 %v3475_v11, %v1562_v30  ;;  %v1676_v1 = vmul.f32 %v3477_v12, %v1562_v30  ;;  %v1872_v45 = vadd.f32 %v1775_v56, %v1631_v13 }
  0x92   : > { %v824_v55 = vadd.f32 %v735_v49, %v582_v7  ;;  %v5495_v18 = vrot.slane %v4065_v41, 1  ;;  %v1380_v21 = vrot.slane %v1270_v43, 2  ;;  %v5494_v10 = vrot.slane %v4071_v57, 2 }
  0x93   : > { %v4080_v46 = vmul.f32 %v3477_v12, %v4050_v38  ;;  %v1786_v19 = vrot.slane %v1676_v1, 1  ;;  %v1917_v60 = vmul.f32 %v4085_v34, %v1562_v30  ;;  %v4088_v29 = vadd.f32 %v2016_v42, %v1872_v45 }
  0x94   : > { %v989_v27 = vadd.f32 %v957_v58, %v824_v55  ;;  %v1141_v59 = vsel %vm455_vm0, %v1139_v37, %v5495_v18  ;;  %v4095_v56 = vmul.f32 %v4085_v34, %v4050_v38  ;;  %v1382_v16 = vsel %vm697_vm1, %v1380_v21, %v5494_v10 }
  0x95   : > { %5560 = vst [vmem:[#allocation4_spill] sm:$0xff] %v4088_v29  ;;  %v5493_v23 = vrot.slane %v4080_v46, 1  ;;  %v2027_v32 = vrot.slane %v1917_v60, 2  ;;  %2185 = vperm.xlu0 %3362, %v4088_v29   ;;  %v339_v33 = vmul.f32 %v3842_v39, %v3455_v2  ;;  %v4108_v30 = vmul.f32 %v3842_v39, %v3457_v3 }
  0x96   : > { %v1230_v42 = vadd.f32 %v1141_v59, %v989_v27  ;;  %v5492_v31 = vrot.slane %v4095_v56, 2  ;;  %v379_v58 = vmul.f32 %v3457_v3, %v297_v50  ;;  %v620_v8 = vmul.f32 %v3842_v39, %v3464_v4  ;;  %v3183_v59 = vld [vmem:[%s3462_s24 + $0x68] sm:$0x1] }
  0x97   : > { %v1788_v49 = vsel %vm455_vm0, %v1786_v19, %v5493_v23  ;;  %v621_v13 = vmul.f32 %v3464_v4, %v297_v50  ;;  %v487_v37 = vrot.slane %v4108_v30, 1  ;;  %v913_v1 = vunpack.c.h.bf16 %v3134_v26 }
  0x98   : > { %v1471_v7 = vadd.f32 %v1382_v16, %v1230_v42  ;;  %v2029_v43 = vsel %vm697_vm1, %v2027_v32, %v5492_v31  ;;  %v489_v45 = vrot.slane %v379_v58, 1  ;;  %v729_v55 = vrot.slane %v620_v8, 2 }
  0x99   : > { %v731_v21 = vrot.slane %v621_v13, 2  ;;  %v914_v54 = vunpack.c.l.bf16 %v3135_v20  ;;  %v956_v60 = vmul.f32 %v3466_v5, %v913_v1  ;;  %v1027_v27 = vmul.f32 %v3468_v6, %v913_v1 }
  0x9a   : > { %v1636_v19 = vadd.f32 %v1604_v44, %v1471_v7  ;;  %v1268_v39 = vmul.f32 %v3472_v9, %v913_v1  ;;  %v490_v16 = vsel %vm455_vm0, %v487_v37, %v489_v45  ;;  %v1561_v7 = vunpack.c.l.bf16 %v3183_v59 }
  0x9b   : > { %v732_v50 = vsel %vm697_vm1, %v729_v55, %v731_v21  ;;  %v1028_v32 = vmul.f32 %v3468_v6, %v914_v54  ;;  %v1269_v42 = vmul.f32 %v3472_v9, %v914_v54  ;;  %v581_v58 = vadd.f32 %v490_v16, %v339_v33 }
  0x9c   : > { %v1877_v30 = vadd.f32 %v1788_v49, %v1636_v19  ;;  %v1135_v8 = vrot.slane %v1027_v27, 1  ;;  %v1376_v20 = vrot.slane %v1268_v39, 2  ;;  %v1603_v31 = vmul.f32 %v4046_v53, %v3475_v11 }
  0x9d   : > { %v1137_v44 = vrot.slane %v1028_v32, 1  ;;  %v1378_v13 = vrot.slane %v1269_v42, 2  ;;  %v823_v23 = vadd.f32 %v732_v50, %v581_v58  ;;  %v1674_v45 = vmul.f32 %v4046_v53, %v3477_v12 }
  0x9e   : > { %v4132_v1 = vadd.f32 %v2029_v43, %v1877_v30  ;;  %v1915_v21 = vmul.f32 %v4085_v34, %v4046_v53  ;;  %v1675_v54 = vmul.f32 %v3477_v12, %v1561_v7  ;;  %v1916_v19 = vmul.f32 %v4085_v34, %v1561_v7 }
  0x9f   : > { %v1138_v49 = vsel %vm455_vm0, %v1135_v8, %v1137_v44  ;;  %v1379_v33 = vsel %vm697_vm1, %v1376_v20, %v1378_v13  ;;  %v988_v27 = vadd.f32 %v956_v60, %v823_v23  ;;  %v1782_v43 = vrot.slane %v1674_v45, 1 }
  0xa0   : > { %2210 = vperm.xlu2 %3364, %v4132_v1   ;;  %v2023_v39 = vrot.slane %v1915_v21, 2  ;;  %v338_v59 = vmul.f32 %v3824_v47, %v3455_v2  ;;  %v1784_v16 = vrot.slane %v1675_v54, 1  ;;  %v2025_v50 = vrot.slane %v1916_v19, 2 }
  0xa1   : > { %v377_v32 = vmul.f32 %v3824_v47, %v3457_v3  ;;  %v619_v42 = vmul.f32 %v3824_v47, %v3464_v4  ;;  %v1229_v30 = vadd.f32 %v1138_v49, %v988_v27  ;;  %v912_v58 = vunpack.c.l.bf16 %v3134_v26  ;;  %v255_v49 = vld [vmem:[%s3462_s24 + $0x68] sm:$0x1] }
  0xa2   : > { %v1602_v44 = vmul.f32 %v4044_v62, %v3475_v11  ;;  %v1673_v23 = vmul.f32 %v4044_v62, %v3477_v12  ;;  %v1785_v60 = vsel %vm455_vm0, %v1782_v43, %v1784_v16  ;;  %v2026_v13 = vsel %vm697_vm1, %v2023_v39, %v2025_v50 }
  0xa3   : > { %v486_v7 = vrot.slane %v377_v32, 1  ;;  %v728_v45 = vrot.slane %v619_v42, 2  ;;  %v1470_v21 = vadd.f32 %v1379_v33, %v1229_v30  ;;  %v955_v54 = vmul.f32 %v3466_v5, %v912_v58 }
  0xa4   : > { %v1026_v47 = vmul.f32 %v3468_v6, %v912_v58  ;;  %v1267_v26 = vmul.f32 %v3472_v9, %v912_v58  ;;  %v1781_v10 = vrot.slane %v1673_v23, 1  ;;  %v1914_v16 = vmul.f32 %v4085_v34, %v4044_v62 }
  0xa5   : > { %v488_v19 = vsel %vm455_vm0, %v486_v7, %v487_v37  ;;  %v730_v27 = vsel %vm697_vm1, %v728_v45, %v729_v55  ;;  %v1635_v50 = vadd.f32 %v1603_v31, %v1470_v21  ;;  %v303_v25 = vunpack.c.l.bf16 %v255_v49  ;;  %v3141_v45 = vld [vmem:[%s3462_s24 + $0x74] sm:$0x1] }
  0xa6   : > { %v580_v32 = vadd.f32 %v488_v19, %v338_v59  ;;  %v1134_v33 = vrot.slane %v1026_v47, 1  ;;  %v1375_v42 = vrot.slane %v1267_v26, 2  ;;  %v1783_v30 = vsel %vm455_vm0, %v1781_v10, %v1782_v43 }
  0xa7   : > { %v2022_v18 = vrot.slane %v1914_v16, 2  ;;  %v343_v58 = vmul.f32 %v4046_v53, %v3455_v2  ;;  %v1876_v37 = vadd.f32 %v1785_v60, %v1635_v50  ;;  %v4173_v59 = vmul.f32 %v4046_v53, %v3457_v3 }
  0xa8   : > { %v822_v7 = vadd.f32 %v730_v27, %v580_v32  ;;  %v1136_v55 = vsel %vm455_vm0, %v1134_v33, %v1135_v8  ;;  %v1377_v23 = vsel %vm697_vm1, %v1375_v42, %v1376_v20  ;;  %v385_v10 = vmul.f32 %v3457_v3, %v303_v25  ;;  %v3189_v33 = vld [vmem:[%s3462_s24 + $0x80] sm:$0x1] }
  0xa9   : > { %v2024_v31 = vsel %vm697_vm1, %v2022_v18, %v2023_v39  ;;  %v626_v43 = vmul.f32 %v4046_v53, %v3464_v4  ;;  %v4178_v21 = vadd.f32 %v2026_v13, %v1876_v37  ;;  %v627_v8 = vmul.f32 %v3464_v4, %v303_v25  ;;  %v3329_v13 = vld [vmem:[%s3462_s24 + $0x78] sm:$0xff]  }
  0xaa   : > { %v987_v60 = vadd.f32 %v955_v54, %v822_v7  ;;  %v919_v20 = vunpack.c.h.bf16 %v3140_v48  ;;  %v497_v47 = vrot.slane %v4173_v59, 1  ;;  %v499_v18 = vrot.slane %v385_v10, 1 }
  0xab   : > { %5561 = vst [vmem:[#allocation5_spill] sm:$0xff] %v4178_v21  ;;  %v739_v39 = vrot.slane %v626_v43, 2  ;;  %v920_v26 = vunpack.c.l.bf16 %v3141_v45  ;;  %2205 = vperm.xlu1 %3363, %v4178_v21   ;;  %v741_v19 = vrot.slane %v627_v8, 2  ;;  %v4198_v43 = vunpack.c.h.bf16 %v3329_v13 }
  0xac   : > { %v1228_v49 = vadd.f32 %v1136_v55, %v987_v60  ;;  %v960_v27 = vmul.f32 %v3466_v5, %v919_v20  ;;  %v4185_v16 = vmul.f32 %v3468_v6, %v919_v20  ;;  %v500_v54 = vsel %vm455_vm0, %v497_v47, %v499_v18 }
  0xad   : > { %v1034_v25 = vmul.f32 %v3468_v6, %v920_v26  ;;  %v4191_v50 = vmul.f32 %v3472_v9, %v919_v20  ;;  %v1275_v32 = vmul.f32 %v3472_v9, %v920_v26  ;;  %v585_v37 = vadd.f32 %v500_v54, %v343_v58 }
  0xae   : > { %v1469_v42 = vadd.f32 %v1377_v23, %v1228_v49  ;;  %v742_v7 = vsel %vm697_vm1, %v739_v39, %v741_v19  ;;  %v1145_v55 = vrot.slane %v4185_v16, 1  ;;  %v1567_v20 = vunpack.c.l.bf16 %v3189_v33 }
  0xaf   : > { %v1147_v45 = vrot.slane %v1034_v25, 1  ;;  %v1386_v59 = vrot.slane %v4191_v50, 2  ;;  %v1388_v10 = vrot.slane %v1275_v32, 2  ;;  %v827_v8 = vadd.f32 %v742_v7, %v585_v37 }
  0xb0   : > { %v1634_v60 = vadd.f32 %v1602_v44, %v1469_v42  ;;  %v342_v18 = vmul.f32 %v4044_v62, %v3455_v2  ;;  %v1607_v26 = vmul.f32 %v4198_v43, %v3475_v11  ;;  %v1680_v49 = vmul.f32 %v4198_v43, %v3477_v12  ;;  %v252_v42 = vld [vmem:[%s3462_s24 + $0x5c] sm:$0x1] }
  0xb1   : > { %v1148_v23 = vsel %vm455_vm0, %v1145_v55, %v1147_v45  ;;  %v1389_v58 = vsel %vm697_vm1, %v1386_v59, %v1388_v10  ;;  %v992_v16 = vadd.f32 %v960_v27, %v827_v8  ;;  %v1681_v44 = vmul.f32 %v3477_v12, %v1567_v20 }
  0xb2   : > { %v1875_v19 = vadd.f32 %v1783_v30, %v1634_v60  ;;  %v1921_v54 = vmul.f32 %v4085_v34, %v4198_v43  ;;  %v1792_v25 = vrot.slane %v1680_v49, 1  ;;  %v1922_v50 = vmul.f32 %v4085_v34, %v1567_v20 }
  0xb3   : > { %v383_v32 = vmul.f32 %v4044_v62, %v3457_v3  ;;  %v625_v33 = vmul.f32 %v4044_v62, %v3464_v4  ;;  %v1233_v7 = vadd.f32 %v1148_v23, %v992_v16  ;;  %v1794_v30 = vrot.slane %v1681_v44, 1 }
  0xb4   : > { %v4217_v37 = vadd.f32 %v2024_v31, %v1875_v19  ;;  %v2033_v27 = vrot.slane %v1921_v54, 2  ;;  %v2035_v45 = vrot.slane %v1922_v50, 2  ;;  %v918_v8 = vunpack.c.l.bf16 %v3140_v48 }
  0xb5   : > { %v496_v10 = vrot.slane %v383_v32, 1  ;;  %v738_v60 = vrot.slane %v625_v33, 2  ;;  %v1474_v49 = vadd.f32 %v1389_v58, %v1233_v7  ;;  %v1795_v20 = vsel %vm455_vm0, %v1792_v25, %v1794_v30 }
  0xb6   : > { %5562 = vst [vmem:[#allocation6_spill] sm:$0xff] %v4217_v37  ;;  %2200 = vperm.xlu0 %3362, %v4217_v37   ;;  %v4221_v21 = vunpack.c.l.bf16 %v3329_v13  ;;  %v300_v29 = vunpack.c.l.bf16 %v252_v42  ;;  %v2036_v62 = vsel %vm697_vm1, %v2033_v27, %v2035_v45  ;;  %v959_v19 = vmul.f32 %v3466_v5, %v918_v8  ;;  %v3138_v45 = vld [vmem:[%s3462_s24 + $0x68] sm:$0x1] }
  0xb7   : > { %v498_v31 = vsel %vm455_vm0, %v496_v10, %v497_v47  ;;  %v740_v23 = vsel %vm697_vm1, %v738_v60, %v739_v39  ;;  %v1639_v16 = vadd.f32 %v1607_v26, %v1474_v49  ;;  %v1032_v48 = vmul.f32 %v3468_v6, %v918_v8  ;;  %v3186_v10 = vld [vmem:[%s3462_s24 + $0x74] sm:$0x1] }
  0xb8   : > { %v584_v44 = vadd.f32 %v498_v31, %v342_v18  ;;  %v1273_v58 = vmul.f32 %v3472_v9, %v918_v8  ;;  %v1606_v13 = vmul.f32 %v4221_v21, %v3475_v11  ;;  %v1679_v54 = vmul.f32 %v4221_v21, %v3477_v12 }
  0xb9   : > { %v1920_v47 = vmul.f32 %v4085_v34, %v4221_v21  ;;  %v341_v39 = vmul.f32 %v3455_v2, %v4021_v40  ;;  %v1880_v26 = vadd.f32 %v1795_v20, %v1639_v16  ;;  %v1144_v18 = vrot.slane %v1032_v48, 1 }
  0xba   : > { %v826_v50 = vadd.f32 %v740_v23, %v584_v44  ;;  %v1385_v32 = vrot.slane %v1273_v58, 2  ;;  %v1791_v33 = vrot.slane %v1679_v54, 1  ;;  %v382_v7 = vmul.f32 %v3457_v3, %v300_v29 }
  0xbb   : > { %v2032_v42 = vrot.slane %v1920_v47, 2  ;;  %v624_v30 = vmul.f32 %v3464_v4, %v300_v29  ;;  %v4241_v60 = vadd.f32 %v2036_v62, %v1880_v26  ;;  %v1146_v49 = vsel %vm455_vm0, %v1144_v18, %v1145_v55 }
  0xbc   : > { %v991_v8 = vadd.f32 %v959_v19, %v826_v50  ;;  %v1387_v31 = vsel %vm697_vm1, %v1385_v32, %v1386_v59  ;;  %v1793_v40 = vsel %vm455_vm0, %v1791_v33, %v1792_v25  ;;  %v494_v23 = vrot.slane %v382_v7, 1 }
  0xbd   : > { %5563 = vst [vmem:[#allocation7_spill] sm:$0xff] %v4241_v60  ;;  %v2034_v20 = vsel %vm697_vm1, %v2032_v42, %v2033_v27  ;;  %v736_v16 = vrot.slane %v624_v30, 2  ;;  %2225 = vperm.xlu2 %3364, %v4241_v60   ;;  %v917_v48 = vunpack.c.l.bf16 %v3138_v45  ;;  %v958_v29 = vmul.f32 %v4046_v53, %v3466_v5 }
  0xbe   : > { %v1232_v44 = vadd.f32 %v1146_v49, %v991_v8  ;;  %v1564_v62 = vunpack.c.l.bf16 %v3186_v10  ;;  %v5564_v19 = vrot.slane %v4035_v14, 1  ;;  %v5565_v59 = vrot.slane %v4039_v51, 2 }
  0xbf   : > { %v1605_v27 = vmul.f32 %v3475_v11, %v4050_v38  ;;  %v346_v58 = vmul.f32 %v4221_v21, %v3455_v2  ;;  %v1031_v26 = vmul.f32 %v3468_v6, %v917_v48  ;;  %v1272_v53 = vmul.f32 %v3472_v9, %v917_v48 }
  0xc0   : > { %v495_v55 = vsel %vm455_vm0, %v5564_v19, %v494_v23  ;;  %v737_v25 = vsel %vm697_vm1, %v5565_v59, %v736_v16  ;;  %v1473_v54 = vadd.f32 %v1387_v31, %v1232_v44  ;;  %v1678_v14 = vmul.f32 %v3477_v12, %v1564_v62  ;;  %v3330_v44 = vld [vmem:[%s3462_s24 + $0x90] sm:$0xff]  }
  0xc1   : > { %v583_v47 = vadd.f32 %v495_v55, %v341_v39  ;;  %v1919_v50 = vmul.f32 %v4085_v34, %v1564_v62  ;;  %v389_v51 = vmul.f32 %v4221_v21, %v3457_v3  ;;  %v4268_v38 = vmul.f32 %v4198_v43, %v3457_v3 }
  0xc2   : > { %v1638_v18 = vadd.f32 %v1606_v13, %v1473_v54  ;;  %v1142_v39 = vrot.slane %v1031_v26, 1  ;;  %v1383_v33 = vrot.slane %v1272_v53, 2  ;;  %v1789_v42 = vrot.slane %v1678_v14, 1  ;;  %v3145_v13 = vld [vmem:[%s3462_s24 + $0x84] sm:$0xff]  }
  0xc3   : > { %v825_v32 = vadd.f32 %v737_v25, %v583_v47  ;;  %v2030_v7 = vrot.slane %v1919_v50, 2  ;;  %v506_v30 = vrot.slane %v389_v51, 1  ;;  %v5507_v45 = vrot.slane %v4268_v38, 1 }
  0xc4   : > { %v1879_v10 = vadd.f32 %v1793_v40, %v1638_v18  ;;  %v5566_v49 = vrot.slane %v4065_v41, 1  ;;  %v5567_v23 = vrot.slane %v4071_v57, 2  ;;  %v5568_v48 = vrot.slane %v4080_v46, 1  ;;  %v4291_v57 = vld [vmem:[%s3462_s24 + $0x6c] sm:$0xff]  }
  0xc5   : > { %v990_v8 = vadd.f32 %v958_v29, %v825_v32  ;;  %v5569_v19 = vrot.slane %v4095_v56, 2  ;;  %v508_v41 = vsel %vm455_vm0, %v506_v30, %v5507_v45  ;;  %v631_v40 = vmul.f32 %v4221_v21, %v3464_v4 }
  0xc6   : > { %v1143_v31 = vsel %vm455_vm0, %v5566_v49, %v1142_v39  ;;  %v1384_v16 = vsel %vm697_vm1, %v5567_v23, %v1383_v33  ;;  %v1790_v62 = vsel %vm455_vm0, %v5568_v48, %v1789_v42  ;;  %v4293_v29 = vadd.f32 %v2034_v20, %v1879_v10 }
  0xc7   : > { %v2031_v55 = vsel %vm697_vm1, %v5569_v19, %v2030_v7  ;;  %v1231_v59 = vadd.f32 %v1143_v31, %v990_v8  ;;  %v588_v25 = vadd.f32 %v508_v41, %v346_v58  ;;  %v4297_v46 = vmul.f32 %v4198_v43, %v3464_v4 }
  0xc8   : > { %5570 = vst [vmem:[#allocation8_spill] sm:$0xff] %v4293_v29  ;;  %v748_v56 = vrot.slane %v631_v40, 2  ;;  %v924_v54 = vunpack.c.l.bf16 %v3145_v13  ;;  %v4299_v47 = vunpack.c.h.bf16 %v3145_v13  ;;  %v4301_v26 = vunpack.c.l.bf16 %v3330_v44  ;;  %2220 = vperm.xlu1 %3363, %v4293_v29   ;;  %v258_v13 = vld [vmem:[%s3462_s24 + $0x74] sm:$0x1] }
  0xc9   : > { %v1472_v53 = vadd.f32 %v1384_v16, %v1231_v59  ;;  %v5506_v14 = vrot.slane %v4297_v46, 2  ;;  %v4305_v50 = vunpack.c.h.bf16 %v3330_v44  ;;  %v305_v20 = vunpack.c.h.bf16 %v4291_v57 }
  0xca   : > { %v963_v58 = vmul.f32 %v3466_v5, %v924_v54  ;;  %v1038_v51 = vmul.f32 %v3468_v6, %v924_v54  ;;  %v4312_v18 = vmul.f32 %v3468_v6, %v4299_v47  ;;  %v1279_v32 = vmul.f32 %v3472_v9, %v924_v54 }
  0xcb   : > { %v1637_v39 = vadd.f32 %v1605_v27, %v1472_v53  ;;  %v750_v33 = vsel %vm697_vm1, %v748_v56, %v5506_v14  ;;  %v4320_v42 = vmul.f32 %v3472_v9, %v4299_v47  ;;  %v1610_v7 = vmul.f32 %v4301_v26, %v3475_v11 }
  0xcc   : > { %v830_v30 = vadd.f32 %v750_v33, %v588_v25  ;;  %v1154_v10 = vrot.slane %v1038_v51, 1  ;;  %v5505_v8 = vrot.slane %v4312_v18, 1  ;;  %v1395_v49 = vrot.slane %v1279_v32, 2  ;;  %v3144_v51 = vld [vmem:[%s3462_s24 + $0x80] sm:$0x1] }
  0xcd   : > { %v1878_v31 = vadd.f32 %v1790_v62, %v1637_v39  ;;  %v5504_v23 = vrot.slane %v4320_v42, 2  ;;  %v1685_v27 = vmul.f32 %v4301_v26, %v3477_v12  ;;  %v4330_v16 = vmul.f32 %v4305_v50, %v3477_v12 }
  0xce   : > { %v995_v44 = vadd.f32 %v963_v58, %v830_v30  ;;  %v1156_v48 = vsel %vm455_vm0, %v1154_v10, %v5505_v8  ;;  %v1926_v19 = vmul.f32 %v4085_v34, %v4301_v26  ;;  %v4340_v62 = vmul.f32 %v4085_v34, %v4305_v50 }
  0xcf   : > { %v4342_v41 = vadd.f32 %v2031_v55, %v1878_v31  ;;  %v1397_v40 = vsel %vm697_vm1, %v1395_v49, %v5504_v23  ;;  %v1801_v59 = vrot.slane %v1685_v27, 1  ;;  %v5503_v25 = vrot.slane %v4330_v16, 1  ;;  %v3191_v27 = vld [vmem:[%s3462_s24 + $0x84] sm:$0xff]  }
  0xd0   : > { %v1236_v56 = vadd.f32 %v1156_v48, %v995_v44  ;;  %v2042_v54 = vrot.slane %v1926_v19, 2  ;;  %v5502_v53 = vrot.slane %v4340_v62, 2  ;;  %v306_v58 = vunpack.c.l.bf16 %v258_v13 }
  0xd1   : > { %5571 = vst [vmem:[#allocation9_spill] sm:$0xff] %v4342_v41  ;;  %2215 = vperm.xlu0 %3362, %v4342_v41   ;;  %v1803_v55 = vsel %vm455_vm0, %v1801_v59, %v5503_v25  ;;  %v345_v32 = vmul.f32 %v3455_v2, %v305_v20  ;;  %v4356_v39 = vmul.f32 %v3457_v3, %v305_v20  ;;  %v923_v48 = vunpack.c.l.bf16 %v3144_v51 }
  0xd2   : > { %v4359_v33 = vmul.f32 %v3464_v4, %v305_v20  ;;  %v1477_v30 = vadd.f32 %v1397_v40, %v1236_v56  ;;  %v2044_v10 = vsel %vm697_vm1, %v2042_v54, %v5502_v53  ;;  %v388_v49 = vmul.f32 %v3457_v3, %v306_v58 }
  0xd3   : > { %v630_v31 = vmul.f32 %v3464_v4, %v306_v58  ;;  %v502_v13 = vrot.slane %v4356_v39, 1  ;;  %v962_v20 = vmul.f32 %v4198_v43, %v3466_v5  ;;  %v1036_v56 = vmul.f32 %v4198_v43, %v3468_v6  ;;  %v3192_v39 = vld [vmem:[%s3462_s24 + $0x8c] sm:$0x1] }
  0xd4   : > { %v5514_v44 = vrot.slane %v4359_v33, 2  ;;  %v1642_v19 = vadd.f32 %v1610_v7, %v1477_v30  ;;  %v504_v40 = vrot.slane %v388_v49, 1  ;;  %v1037_v54 = vmul.f32 %v3468_v6, %v923_v48 }
  0xd5   : > { %v746_v59 = vrot.slane %v630_v31, 2  ;;  %v1277_v58 = vmul.f32 %v4198_v43, %v3472_v9  ;;  %v1278_v53 = vmul.f32 %v3472_v9, %v923_v48  ;;  %v1569_v25 = vunpack.c.h.bf16 %v3191_v27 }
  0xd6   : > { %v1883_v23 = vadd.f32 %v1803_v55, %v1642_v19  ;;  %v505_v51 = vsel %vm455_vm0, %v502_v13, %v504_v40  ;;  %v1150_v30 = vrot.slane %v1036_v56, 1  ;;  %v1152_v31 = vrot.slane %v1037_v54, 1 }
  0xd7   : > { %v747_v7 = vsel %vm697_vm1, %v5514_v44, %v746_v59  ;;  %v587_v49 = vadd.f32 %v505_v51, %v345_v32  ;;  %v1391_v8 = vrot.slane %v1277_v58, 2  ;;  %v1393_v14 = vrot.slane %v1278_v53, 2 }
  0xd8   : > { %v4382_v45 = vadd.f32 %v2044_v10, %v1883_v23  ;;  %v1570_v41 = vunpack.c.l.bf16 %v3192_v39  ;;  %v1609_v29 = vmul.f32 %v3475_v11, %v1569_v25  ;;  %v1683_v48 = vmul.f32 %v3477_v12, %v1569_v25 }
  0xd9   : > { %v829_v37 = vadd.f32 %v747_v7, %v587_v49  ;;  %v1153_v55 = vsel %vm455_vm0, %v1150_v30, %v1152_v31  ;;  %v1394_v19 = vsel %vm697_vm1, %v1391_v8, %v1393_v14  ;;  %v1924_v40 = vmul.f32 %v4085_v34, %v1569_v25 }
  0xda   : > { %5572 = vst [vmem:[#allocation10_spill] sm:$0xff] %v4382_v45  ;;  %2240 = vperm.xlu2 %3364, %v4382_v45   ;;  %v1684_v32 = vmul.f32 %v3477_v12, %v1570_v41  ;;  %v1797_v59 = vrot.slane %v1683_v48, 1  ;;  %v1925_v23 = vmul.f32 %v4085_v34, %v1570_v41  ;;  %v304_v53 = vunpack.c.l.bf16 %v4291_v57  ;;  %v263_v45 = vld [vmem:[%s3462_s24 + $0x84] sm:$0xff]  }
  0xdb   : > { %v994_v10 = vadd.f32 %v962_v20, %v829_v37  ;;  %v2038_v56 = vrot.slane %v1924_v40, 2  ;;  %v961_v54 = vmul.f32 %v4221_v21, %v3466_v5  ;;  %v1035_v58 = vmul.f32 %v4221_v21, %v3468_v6 }
  0xdc   : > { %v1799_v14 = vrot.slane %v1684_v32, 1  ;;  %v2040_v25 = vrot.slane %v1925_v23, 2  ;;  %v344_v39 = vmul.f32 %v3455_v2, %v304_v53  ;;  %v386_v51 = vmul.f32 %v3457_v3, %v304_v53 }
  0xdd   : > { %v1235_v7 = vadd.f32 %v1153_v55, %v994_v10  ;;  %v628_v41 = vmul.f32 %v3464_v4, %v304_v53  ;;  %v1149_v57 = vrot.slane %v1035_v58, 1  ;;  %v1276_v37 = vmul.f32 %v4221_v21, %v3472_v9  ;;  %v264_v55 = vld [vmem:[%s3462_s24 + $0x8c] sm:$0x1] }
  0xde   : > { %v1800_v20 = vsel %vm455_vm0, %v1797_v59, %v1799_v14  ;;  %v2041_v49 = vsel %vm697_vm1, %v2038_v56, %v2040_v25  ;;  %v501_v31 = vrot.slane %v386_v51, 1  ;;  %v1568_v48 = vunpack.c.l.bf16 %v3191_v27  ;;  %v3150_v14 = vld [vmem:[%s3462_s24 + $0x98] sm:$0x1] }
  0xdf   : > { %v1476_v40 = vadd.f32 %v1394_v19, %v1235_v7  ;;  %v743_v32 = vrot.slane %v628_v41, 2  ;;  %v1151_v23 = vsel %vm455_vm0, %v1149_v57, %v1150_v30  ;;  %v1390_v44 = vrot.slane %v1276_v37, 2 }
  0xe0   : > { %v503_v53 = vsel %vm455_vm0, %v501_v31, %v502_v13  ;;  %v1608_v10 = vmul.f32 %v3475_v11, %v1568_v48  ;;  %v1682_v58 = vmul.f32 %v3477_v12, %v1568_v48  ;;  %v1923_v21 = vmul.f32 %v4085_v34, %v1568_v48 }
  0xe1   : > { %v1641_v15 = vadd.f32 %v1609_v29, %v1476_v40  ;;  %v586_v25 = vadd.f32 %v503_v53, %v344_v39  ;;  %v5573_v27 = vrot.slane %v4359_v33, 2  ;;  %v1392_v30 = vsel %vm697_vm1, %v1390_v44, %v1391_v8  ;;  %v3197_v53 = vld [vmem:[%s3462_s24 + $0x9c] sm:$0xff]  }
  0xe2   : > { %v1796_v51 = vrot.slane %v1682_v58, 1  ;;  %v2037_v7 = vrot.slane %v1923_v21, 2  ;;  %v311_v41 = vunpack.c.h.bf16 %v263_v45  ;;  %v312_v57 = vunpack.c.l.bf16 %v264_v55 }
  0xe3   : > { %v745_v19 = vsel %vm697_vm1, %v743_v32, %v5573_v27  ;;  %v1882_v13 = vadd.f32 %v1800_v20, %v1641_v15  ;;  %v929_v31 = vunpack.c.l.bf16 %v3150_v14  ;;  %v966_v48 = vmul.f32 %v4305_v50, %v3466_v5 }
  0xe4   : > { %v828_v37 = vadd.f32 %v745_v19, %v586_v25  ;;  %v1798_v29 = vsel %vm455_vm0, %v1796_v51, %v1797_v59  ;;  %v2039_v39 = vsel %vm697_vm1, %v2037_v7, %v2038_v56  ;;  %v349_v33 = vmul.f32 %v3455_v2, %v311_v41  ;;  %v3198_v51 = vld [vmem:[%s3462_s24 + $0xa4] sm:$0x1] }
  0xe5   : > { %v393_v40 = vmul.f32 %v3457_v3, %v311_v41  ;;  %v4422_v8 = vadd.f32 %v2041_v49, %v1882_v13  ;;  %v394_v32 = vmul.f32 %v3457_v3, %v312_v57  ;;  %v635_v15 = vmul.f32 %v3464_v4, %v311_v41 }
  0xe6   : > { %v993_v44 = vadd.f32 %v961_v54, %v828_v37  ;;  %v636_v55 = vmul.f32 %v3464_v4, %v312_v57  ;;  %v1042_v59 = vmul.f32 %v4305_v50, %v3468_v6  ;;  %v1043_v56 = vmul.f32 %v3468_v6, %v929_v31 }
  0xe7   : > { %5574 = vst [vmem:[#allocation11_spill] sm:$0xff] %v4422_v8  ;;  %v512_v20 = vrot.slane %v393_v40, 1  ;;  %2235 = vperm.xlu1 %3363, %v4422_v8   ;;  %v514_v49 = vrot.slane %v394_v32, 1  ;;  %v754_v21 = vrot.slane %v635_v15, 2  ;;  %v1283_v54 = vmul.f32 %v4305_v50, %v3472_v9 }
  0xe8   : > { %v1234_v58 = vadd.f32 %v1151_v23, %v993_v44  ;;  %v756_v14 = vrot.slane %v636_v55, 2  ;;  %v1160_v25 = vrot.slane %v1042_v59, 1  ;;  %v1162_v27 = vrot.slane %v1043_v56, 1 }
  0xe9   : > { %v1284_v19 = vmul.f32 %v3472_v9, %v929_v31  ;;  %v515_v41 = vsel %vm455_vm0, %v512_v20, %v514_v49  ;;  %v1401_v57 = vrot.slane %v1283_v54, 2  ;;  %v1575_v13 = vunpack.c.h.bf16 %v3197_v53 }
  0xea   : > { %v1475_v7 = vadd.f32 %v1392_v30, %v1234_v58  ;;  %v591_v37 = vadd.f32 %v515_v41, %v349_v33  ;;  %v757_v40 = vsel %vm697_vm1, %v754_v21, %v756_v14  ;;  %v1163_v23 = vsel %vm455_vm0, %v1160_v25, %v1162_v27 }
  0xeb   : > { %v1403_v44 = vrot.slane %v1284_v19, 2  ;;  %v1576_v15 = vunpack.c.l.bf16 %v3198_v51  ;;  %v1613_v55 = vmul.f32 %v3475_v11, %v1575_v13  ;;  %v1689_v59 = vmul.f32 %v3477_v12, %v1575_v13 }
  0xec   : > { %v1640_v32 = vadd.f32 %v1608_v10, %v1475_v7  ;;  %v833_v56 = vadd.f32 %v757_v40, %v591_v37  ;;  %v1930_v30 = vmul.f32 %v4085_v34, %v1575_v13  ;;  %v310_v58 = vunpack.c.l.bf16 %v263_v45 }
  0xed   : > { %v1404_v31 = vsel %vm697_vm1, %v1401_v57, %v1403_v44  ;;  %v1690_v33 = vmul.f32 %v3477_v12, %v1576_v15  ;;  %v1807_v54 = vrot.slane %v1689_v59, 1  ;;  %v1931_v14 = vmul.f32 %v4085_v34, %v1576_v15 }
  0xee   : > { %v1881_v49 = vadd.f32 %v1798_v29, %v1640_v32  ;;  %v998_v27 = vadd.f32 %v966_v48, %v833_v56  ;;  %v2048_v10 = vrot.slane %v1930_v30, 2  ;;  %v348_v19 = vmul.f32 %v3455_v2, %v310_v58  ;;  %v261_v48 = vld [vmem:[%s3462_s24 + $0x80] sm:$0x1] }
  0xef   : > { %v392_v51 = vmul.f32 %v3457_v3, %v310_v58  ;;  %v1809_v41 = vrot.slane %v1690_v33, 1  ;;  %v2050_v37 = vrot.slane %v1931_v14, 2  ;;  %v634_v13 = vmul.f32 %v3464_v4, %v310_v58 }
  0xf0   : > { %v4447_v7 = vadd.f32 %v2039_v39, %v1881_v49  ;;  %v1239_v45 = vadd.f32 %v1163_v23, %v998_v27  ;;  %v965_v40 = vmul.f32 %v4301_v26, %v3466_v5  ;;  %v1041_v44 = vmul.f32 %v4301_v26, %v3468_v6 }
  0xf1   : > { %v511_v29 = vrot.slane %v392_v51, 1  ;;  %v1810_v32 = vsel %vm455_vm0, %v1807_v54, %v1809_v41  ;;  %v2051_v39 = vsel %vm697_vm1, %v2048_v10, %v2050_v37  ;;  %v753_v15 = vrot.slane %v634_v13, 2 }
  0xf2   : > { %5575 = vst [vmem:[#allocation12_spill] sm:$0xff] %v4447_v7  ;;  %2230 = vperm.xlu0 %3362, %v4447_v7   ;;  %v1282_v59 = vmul.f32 %v4301_v26, %v3472_v9  ;;  %v1480_v23 = vadd.f32 %v1404_v31, %v1239_v45  ;;  %v1159_v30 = vrot.slane %v1041_v44, 1  ;;  %v1574_v58 = vunpack.c.l.bf16 %v3197_v53  ;;  %v3147_v7 = vld [vmem:[%s3462_s24 + $0x8c] sm:$0x1] }
  0xf3   : > { %v513_v56 = vsel %vm455_vm0, %v511_v29, %v512_v20  ;;  %v755_v33 = vsel %vm697_vm1, %v753_v15, %v754_v21  ;;  %v309_v27 = vunpack.c.l.bf16 %v261_v48  ;;  %v347_v53 = vmul.f32 %v4198_v43, %v3455_v2  ;;  %v3195_v15 = vld [vmem:[%s3462_s24 + $0x98] sm:$0x1] }
  0xf4   : > { %v590_v49 = vadd.f32 %v513_v56, %v348_v19  ;;  %v1400_v14 = vrot.slane %v1282_v59, 2  ;;  %v1645_v51 = vadd.f32 %v1613_v55, %v1480_v23  ;;  %v1161_v41 = vsel %vm455_vm0, %v1159_v30, %v1160_v25 }
  0xf5   : > { %v1612_v37 = vmul.f32 %v3475_v11, %v1574_v58  ;;  %v1688_v13 = vmul.f32 %v3477_v12, %v1574_v58  ;;  %v1929_v20 = vmul.f32 %v4085_v34, %v1574_v58  ;;  %v391_v55 = vmul.f32 %v3457_v3, %v309_v27 }
  0xf6   : > { %v832_v8 = vadd.f32 %v755_v33, %v590_v49  ;;  %v1402_v31 = vsel %vm697_vm1, %v1400_v14, %v1401_v57  ;;  %v1886_v21 = vadd.f32 %v1810_v32, %v1645_v51  ;;  %v633_v25 = vmul.f32 %v3464_v4, %v309_v27 }
  0xf7   : > { %v1806_v19 = vrot.slane %v1688_v13, 1  ;;  %v2047_v29 = vrot.slane %v1929_v20, 2  ;;  %v926_v44 = vunpack.c.l.bf16 %v3147_v7  ;;  %v964_v48 = vmul.f32 %v3466_v5, %v4299_v47 }
  0xf8   : > { %v997_v45 = vadd.f32 %v965_v40, %v832_v8  ;;  %v4475_v57 = vadd.f32 %v2051_v39, %v1886_v21  ;;  %v509_v23 = vrot.slane %v391_v55, 1  ;;  %v751_v43 = vrot.slane %v633_v25, 2  ;;  %v268_v8 = vld [vmem:[%s3462_s24 + $0x9c] sm:$0xff]  }
  0xf9   : > { %v1808_v59 = vsel %vm455_vm0, %v1806_v19, %v1807_v54  ;;  %v2049_v56 = vsel %vm697_vm1, %v2047_v29, %v2048_v10  ;;  %v1040_v30 = vmul.f32 %v3468_v6, %v926_v44  ;;  %v1281_v58 = vmul.f32 %v3472_v9, %v926_v44 }
  0xfa   : > { %5576 = vst [vmem:[#allocation13_spill] sm:$0xff] %v4475_v57  ;;  %v1238_v32 = vadd.f32 %v1161_v41, %v997_v45  ;;  %2255 = vperm.xlu2 %3364, %v4475_v57   ;;  %v5577_v7 = vrot.slane %v4268_v38, 1  ;;  %v5578_v40 = vrot.slane %v4297_v46, 2  ;;  %v1573_v39 = vunpack.c.l.bf16 %v3195_v15 }
  0xfb   : > { %v1611_v49 = vmul.f32 %v4305_v50, %v3475_v11  ;;  %v1157_v14 = vrot.slane %v1040_v30, 1  ;;  %v1398_v27 = vrot.slane %v1281_v58, 2  ;;  %v316_v38 = vunpack.c.l.bf16 %v268_v8 }
  0xfc   : > { %v510_v47 = vsel %vm455_vm0, %v5577_v7, %v509_v23  ;;  %v752_v54 = vsel %vm697_vm1, %v5578_v40, %v751_v43  ;;  %v1479_v10 = vadd.f32 %v1402_v31, %v1238_v32  ;;  %v1687_v51 = vmul.f32 %v3477_v12, %v1573_v39  ;;  %v3323_v23 = vld [vmem:[%s3462_s24 + $0xa8] sm:$0xff]   ;;  %v3202_v43 = vld [vmem:[%s3462_s24 + $0xb4] sm:$0xff]  }
  0xfd   : > { %v589_v33 = vadd.f32 %v510_v47, %v347_v53  ;;  %v1928_v41 = vmul.f32 %v4085_v34, %v1573_v39  ;;  %v4493_v13 = vunpack.c.h.bf16 %v268_v8  ;;  %v5579_v21 = vrot.slane %v4312_v18, 1 }
  0xfe   : > { %v1644_v46 = vadd.f32 %v1612_v37, %v1479_v10  ;;  %v5580_v31 = vrot.slane %v4320_v42, 2  ;;  %v1804_v55 = vrot.slane %v1687_v51, 1  ;;  %v352_v45 = vmul.f32 %v3455_v2, %v316_v38 }
  0xff   : > { %v831_v20 = vadd.f32 %v752_v54, %v589_v33  ;;  %v1158_v19 = vsel %vm455_vm0, %v5579_v21, %v1157_v14  ;;  %v2045_v25 = vrot.slane %v1928_v41, 2  ;;  %v398_v29 = vmul.f32 %v3457_v3, %v316_v38 }
 0x100   : > { %v1399_v53 = vsel %vm697_vm1, %v5580_v31, %v1398_v27  ;;  %v1885_v44 = vadd.f32 %v1808_v59, %v1644_v46  ;;  %v4505_v37 = vmul.f32 %v3457_v3, %v4493_v13  ;;  %v640_v18 = vmul.f32 %v3464_v4, %v316_v38  ;;  %v267_v59 = vld [vmem:[%s3462_s24 + $0x98] sm:$0x1] }
 0x101   : > { %v996_v15 = vadd.f32 %v964_v48, %v831_v20  ;;  %v5581_v42 = vrot.slane %v4330_v16, 1  ;;  %v5582_v30 = vrot.slane %v4340_v62, 2  ;;  %v521_v8 = vrot.slane %v398_v29, 1 }
 0x102   : > { %v4518_v48 = vmul.f32 %v3464_v4, %v4493_v13  ;;  %v4521_v7 = vadd.f32 %v2049_v56, %v1885_v44  ;;  %v5528_v40 = vrot.slane %v4505_v37, 1  ;;  %v763_v54 = vrot.slane %v640_v18, 2 }
 0x103   : > { %v1805_v32 = vsel %vm455_vm0, %v5581_v42, %v1804_v55  ;;  %v2046_v58 = vsel %vm697_vm1, %v5582_v30, %v2045_v25  ;;  %v1237_v47 = vadd.f32 %v1158_v19, %v996_v15  ;;  %v4525_v39 = vunpack.c.l.bf16 %v3323_v23 }
 0x104   : > { %5583 = vst [vmem:[#allocation14_spill] sm:$0xff] %v4521_v7  ;;  %v5527_v16 = vrot.slane %v4518_v48, 2  ;;  %v4527_v10 = vunpack.c.h.bf16 %v3323_v23  ;;  %v1580_v62 = vunpack.c.l.bf16 %v3202_v43  ;;  %2250 = vperm.xlu1 %3363, %v4521_v7   ;;  %v523_v14 = vsel %vm455_vm0, %v521_v8, %v5528_v40 }
 0x105   : > { %v1478_v33 = vadd.f32 %v1399_v53, %v1237_v47  ;;  %v4533_v56 = vunpack.c.h.bf16 %v3202_v43  ;;  %v315_v27 = vunpack.c.l.bf16 %v267_v59  ;;  %v594_v51 = vadd.f32 %v523_v14, %v352_v45  ;;  %v3152_v47 = vld [vmem:[%s3462_s24 + $0x9c] sm:$0xff]  }
 0x106   : > { %v765_v41 = vsel %vm697_vm1, %v763_v54, %v5527_v16  ;;  %v969_v38 = vmul.f32 %v4525_v39, %v3466_v5  ;;  %v1047_v46 = vmul.f32 %v4525_v39, %v3468_v6  ;;  %v4544_v21 = vmul.f32 %v4527_v10, %v3468_v6 }
 0x107   : > { %v1643_v20 = vadd.f32 %v1611_v49, %v1478_v33  ;;  %v1288_v19 = vmul.f32 %v4525_v39, %v3472_v9  ;;  %v4550_v31 = vmul.f32 %v4527_v10, %v3472_v9  ;;  %v836_v53 = vadd.f32 %v765_v41, %v594_v51 }
 0x108   : > { %v1169_v55 = vrot.slane %v1047_v46, 1  ;;  %v1616_v25 = vmul.f32 %v3475_v11, %v1580_v62  ;;  %v1694_v45 = vmul.f32 %v3477_v12, %v1580_v62  ;;  %v5525_v49 = vrot.slane %v4544_v21, 1 }
 0x109   : > { %v1884_v29 = vadd.f32 %v1805_v32, %v1643_v20  ;;  %v1410_v44 = vrot.slane %v1288_v19, 2  ;;  %v5524_v15 = vrot.slane %v4550_v31, 2  ;;  %v1001_v18 = vadd.f32 %v969_v38, %v836_v53  ;;  %v3153_v38 = vld [vmem:[%s3462_s24 + $0xa4] sm:$0x1] }
 0x10a   : > { %v4558_v23 = vmul.f32 %v3477_v12, %v4533_v56  ;;  %v1816_v43 = vrot.slane %v1694_v45, 1  ;;  %v1935_v42 = vmul.f32 %v4085_v34, %v1580_v62  ;;  %v1171_v32 = vsel %vm455_vm0, %v1169_v55, %v5525_v49  ;;  %v3201_v55 = vld [vmem:[%s3462_s24 + $0xb0] sm:$0x1] }
 0x10b   : > { %v4561_v30 = vadd.f32 %v2046_v58, %v1884_v29  ;;  %v1412_v8 = vsel %vm697_vm1, %v1410_v44, %v5524_v15  ;;  %v4571_v59 = vmul.f32 %v4085_v34, %v4533_v56  ;;  %v1242_v54 = vadd.f32 %v1171_v32, %v1001_v18 }
 0x10c   : > { %v5523_v33 = vrot.slane %v4558_v23, 1  ;;  %v2057_v62 = vrot.slane %v1935_v42, 2  ;;  %v351_v58 = vmul.f32 %v4305_v50, %v3455_v2  ;;  %v4581_v51 = vmul.f32 %v4305_v50, %v3457_v3 }
 0x10d   : > { %5584 = vst [vmem:[#allocation15_spill] sm:$0xff] %v4561_v30  ;;  %2245 = vperm.xlu0 %3362, %v4561_v30   ;;  %v5526_v14 = vrot.slane %v4571_v59, 2  ;;  %v397_v34 = vmul.f32 %v3457_v3, %v315_v27  ;;  %v4586_v41 = vmul.f32 %v4305_v50, %v3464_v4  ;;  %v1483_v46 = vadd.f32 %v1412_v8, %v1242_v54 }
 0x10e   : > { %v1818_v20 = vsel %vm455_vm0, %v1816_v43, %v5523_v33  ;;  %v639_v19 = vmul.f32 %v3464_v4, %v315_v27  ;;  %v931_v53 = vunpack.c.h.bf16 %v3152_v47  ;;  %v517_v29 = vrot.slane %v4581_v51, 1 }
 0x10f   : > { %v2059_v45 = vsel %vm697_vm1, %v2057_v62, %v5526_v14  ;;  %v519_v44 = vrot.slane %v397_v34, 1  ;;  %v759_v50 = vrot.slane %v4586_v41, 2  ;;  %v1648_v18 = vadd.f32 %v1616_v25, %v1483_v46 }
 0x110   : > { %v761_v42 = vrot.slane %v639_v19, 2  ;;  %v932_v32 = vunpack.c.l.bf16 %v3153_v38  ;;  %v968_v8 = vmul.f32 %v3466_v5, %v931_v53  ;;  %v1045_v27 = vmul.f32 %v3468_v6, %v931_v53 }
 0x111   : > { %v520_v43 = vsel %vm455_vm0, %v517_v29, %v519_v44  ;;  %v1286_v54 = vmul.f32 %v3472_v9, %v931_v53  ;;  %v1579_v33 = vunpack.c.l.bf16 %v3201_v55  ;;  %v1889_v15 = vadd.f32 %v1818_v20, %v1648_v18  ;;  %v4616_v55 = vld [vmem:[%s5470_s1 + $0x8] ss:$0 sm:$0xff] }
 0x112   : > { %v593_v49 = vadd.f32 %v520_v43, %v351_v58  ;;  %v762_v62 = vsel %vm697_vm1, %v759_v50, %v761_v42  ;;  %v1046_v51 = vmul.f32 %v3468_v6, %v932_v32  ;;  %v1165_v34 = vrot.slane %v1045_v27, 1 }
 0x113   : > { %v1287_v25 = vmul.f32 %v3472_v9, %v932_v32  ;;  %v1406_v41 = vrot.slane %v1286_v54, 2  ;;  %v1615_v38 = vmul.f32 %v4527_v10, %v3475_v11  ;;  %v4608_v46 = vadd.f32 %v2059_v45, %v1889_v15 }
 0x114   : > { %v835_v19 = vadd.f32 %v762_v62, %v593_v49  ;;  %v1167_v44 = vrot.slane %v1046_v51, 1  ;;  %v1692_v53 = vmul.f32 %v4527_v10, %v3477_v12  ;;  %v1693_v58 = vmul.f32 %v3477_v12, %v1579_v33 }
 0x115   : > { %v1408_v20 = vrot.slane %v1287_v25, 2  ;;  %v1933_v18 = vmul.f32 %v4616_v55, %v4527_v10  ;;  %v1934_v42 = vmul.f32 %v4616_v55, %v1579_v33  ;;  %2270 = vperm.xlu2 %3364, %v4608_v46   ;;  %v350_v32 = vmul.f32 %v4301_v26, %v3455_v2 }
 0x116   : > { %v1000_v49 = vadd.f32 %v968_v8, %v835_v19  ;;  %v1168_v15 = vsel %vm455_vm0, %v1165_v34, %v1167_v44  ;;  %v1812_v45 = vrot.slane %v1692_v53, 1  ;;  %v1814_v27 = vrot.slane %v1693_v58, 1  ;;  %v273_v58 = vld [vmem:[%s3462_s24 + $0xb0] sm:$0x1] }
 0x117   : > { %v1409_v43 = vsel %vm697_vm1, %v1406_v41, %v1408_v20  ;;  %v2053_v54 = vrot.slane %v1933_v18, 2  ;;  %v2055_v62 = vrot.slane %v1934_v42, 2  ;;  %v395_v25 = vmul.f32 %v4301_v26, %v3457_v3 }
 0x118   : > { %v1241_v51 = vadd.f32 %v1168_v15, %v1000_v49  ;;  %v637_v33 = vmul.f32 %v4301_v26, %v3464_v4  ;;  %v930_v8 = vunpack.c.l.bf16 %v3152_v47  ;;  %v1815_v19 = vsel %vm455_vm0, %v1812_v45, %v1814_v27 }
 0x119   : > { %v2056_v44 = vsel %vm697_vm1, %v2053_v54, %v2055_v62  ;;  %v1614_v53 = vmul.f32 %v4525_v39, %v3475_v11  ;;  %v1691_v20 = vmul.f32 %v4525_v39, %v3477_v12  ;;  %v516_v42 = vrot.slane %v395_v25, 1 }
 0x11a   : > { %v1482_v18 = vadd.f32 %v1409_v43, %v1241_v51  ;;  %v758_v49 = vrot.slane %v637_v33, 2  ;;  %v967_v15 = vmul.f32 %v3466_v5, %v930_v8  ;;  %v1044_v14 = vmul.f32 %v3468_v6, %v930_v8 }
 0x11b   : > { %v1285_v26 = vmul.f32 %v3472_v9, %v930_v8  ;;  %v1811_v47 = vrot.slane %v1691_v20, 1  ;;  %v1932_v27 = vmul.f32 %v4616_v55, %v4525_v39  ;;  %v518_v16 = vsel %vm455_vm0, %v516_v42, %v517_v29  ;;  %v3158_v29 = vld [vmem:[%s3462_s24 + $0xb4] sm:$0xff]  }
 0x11c   : > { %v1647_v62 = vadd.f32 %v1615_v38, %v1482_v18  ;;  %v760_v40 = vsel %vm697_vm1, %v758_v49, %v759_v50  ;;  %v321_v43 = vunpack.c.l.bf16 %v273_v58  ;;  %v592_v51 = vadd.f32 %v518_v16, %v350_v32  ;;  %v3332_v32 = vld [vmem:[%s3462_s24 + $0xc0] sm:$0xff]  }
 0x11d   : > { %v1164_v25 = vrot.slane %v1044_v14, 1  ;;  %v1405_v33 = vrot.slane %v1285_v26, 2  ;;  %v1813_v30 = vsel %vm455_vm0, %v1811_v47, %v1812_v45  ;;  %v2052_v8 = vrot.slane %v1932_v27, 2  ;;  %v3159_v14 = vld [vmem:[%s3462_s24 + $0xbc] sm:$0x1] }
 0x11e   : > { %v1888_v7 = vadd.f32 %v1815_v19, %v1647_v62  ;;  %v355_v20 = vmul.f32 %v4527_v10, %v3455_v2  ;;  %v4649_v38 = vmul.f32 %v4527_v10, %v3457_v3  ;;  %v834_v18 = vadd.f32 %v760_v40, %v592_v51  ;;  %v3207_v45 = vld [vmem:[%s3462_s24 + $0xc8] sm:$0x1] }
 0x11f   : > { %v1166_v50 = vsel %vm455_vm0, %v1164_v25, %v1165_v34  ;;  %v1407_v58 = vsel %vm697_vm1, %v1405_v33, %v1406_v41  ;;  %v403_v16 = vmul.f32 %v3457_v3, %v321_v43  ;;  %v2054_v42 = vsel %vm697_vm1, %v2052_v8, %v2053_v54 }
 0x120   : > { %v4658_v19 = vadd.f32 %v2056_v44, %v1888_v7  ;;  %v527_v49 = vrot.slane %v4649_v38, 1  ;;  %v4664_v26 = vmul.f32 %v4527_v10, %v3464_v4  ;;  %v999_v40 = vadd.f32 %v967_v15, %v834_v18 }
 0x121   : > { %v529_v47 = vrot.slane %v403_v16, 1  ;;  %v645_v34 = vmul.f32 %v3464_v4, %v321_v43  ;;  %v937_v41 = vunpack.c.h.bf16 %v3158_v29  ;;  %v938_v62 = vunpack.c.l.bf16 %v3159_v14 }
 0x122   : > { %5585 = vst [vmem:[#allocation16_spill] sm:$0xff] %v4658_v19  ;;  %2265 = vperm.xlu1 %3363, %v4658_v19   ;;  %v769_v27 = vrot.slane %v4664_v26, 2  ;;  %v4669_v7 = vunpack.c.h.bf16 %v3332_v32  ;;  %v1585_v44 = vunpack.c.l.bf16 %v3207_v45  ;;  %v1240_v54 = vadd.f32 %v1166_v50, %v999_v40  ;;  %v270_v19 = vld [vmem:[%s3462_s24 + $0xa4] sm:$0x1] }
 0x123   : > { %v530_v51 = vsel %vm455_vm0, %v527_v49, %v529_v47  ;;  %v771_v25 = vrot.slane %v645_v34, 2  ;;  %v972_v33 = vmul.f32 %v3466_v5, %v937_v41  ;;  %v4674_v15 = vmul.f32 %v3468_v6, %v937_v41 }
 0x124   : > { %v597_v8 = vadd.f32 %v530_v51, %v355_v20  ;;  %v1052_v43 = vmul.f32 %v3468_v6, %v938_v62  ;;  %v1292_v38 = vmul.f32 %v3472_v9, %v937_v41  ;;  %v1481_v18 = vadd.f32 %v1407_v58, %v1240_v54 }
 0x125   : > { %v772_v16 = vsel %vm697_vm1, %v769_v27, %v771_v25  ;;  %v1293_v14 = vmul.f32 %v3472_v9, %v938_v62  ;;  %v1619_v50 = vmul.f32 %v4669_v7, %v3475_v11  ;;  %v1175_v26 = vrot.slane %v4674_v15, 1 }
 0x126   : > { %v839_v45 = vadd.f32 %v772_v16, %v597_v8  ;;  %v1177_v40 = vrot.slane %v1052_v43, 1  ;;  %v1416_v20 = vrot.slane %v1292_v38, 2  ;;  %v1646_v47 = vadd.f32 %v1614_v53, %v1481_v18 }
 0x127   : > { %v1418_v34 = vrot.slane %v1293_v14, 2  ;;  %v1698_v51 = vmul.f32 %v4669_v7, %v3477_v12  ;;  %v1699_v58 = vmul.f32 %v3477_v12, %v1585_v44  ;;  %v1939_v62 = vmul.f32 %v4616_v55, %v4669_v7 }
 0x128   : > { %v1004_v41 = vadd.f32 %v972_v33, %v839_v45  ;;  %v1178_v54 = vsel %vm455_vm0, %v1175_v26, %v1177_v40  ;;  %v1940_v25 = vmul.f32 %v4616_v55, %v1585_v44  ;;  %v1887_v8 = vadd.f32 %v1813_v30, %v1646_v47 }
 0x129   : > { %v1419_v15 = vsel %vm697_vm1, %v1416_v20, %v1418_v34  ;;  %v1822_v43 = vrot.slane %v1698_v51, 1  ;;  %v1824_v53 = vrot.slane %v1699_v58, 1  ;;  %v2063_v18 = vrot.slane %v1939_v62, 2 }
 0x12a   : > { %v1245_v38 = vadd.f32 %v1178_v54, %v1004_v41  ;;  %v2065_v16 = vrot.slane %v1940_v25, 2  ;;  %v354_v14 = vmul.f32 %v4525_v39, %v3455_v2  ;;  %v4694_v33 = vadd.f32 %v2054_v42, %v1887_v8 }
 0x12b   : > { %v1825_v45 = vsel %vm455_vm0, %v1822_v43, %v1824_v53  ;;  %v401_v40 = vmul.f32 %v4525_v39, %v3457_v3  ;;  %v643_v30 = vmul.f32 %v4525_v39, %v3464_v4  ;;  %v936_v34 = vunpack.c.l.bf16 %v3158_v29 }
 0x12c   : > { %v1486_v44 = vadd.f32 %v1419_v15, %v1245_v38  ;;  %v2066_v47 = vsel %vm697_vm1, %v2063_v18, %v2065_v16  ;;  %v4702_v51 = vunpack.c.l.bf16 %v3332_v32  ;;  %2260 = vperm.xlu0 %3362, %v4694_v33   ;;  %v318_v42 = vunpack.c.l.bf16 %v270_v19 }
 0x12d   : > { %v526_v58 = vrot.slane %v401_v40, 1  ;;  %v768_v41 = vrot.slane %v643_v30, 2  ;;  %v353_v54 = vmul.f32 %v3455_v2, %v4493_v13  ;;  %v971_v25 = vmul.f32 %v3466_v5, %v936_v34 }
 0x12e   : > { %v1651_v62 = vadd.f32 %v1619_v50, %v1486_v44  ;;  %v1050_v39 = vmul.f32 %v3468_v6, %v936_v34  ;;  %v1291_v8 = vmul.f32 %v3472_v9, %v936_v34  ;;  %v1618_v15 = vmul.f32 %v4702_v51, %v3475_v11  ;;  %v3204_v44 = vld [vmem:[%s3462_s24 + $0xbc] sm:$0x1] }
 0x12f   : > { %v528_v29 = vsel %vm455_vm0, %v526_v58, %v527_v49  ;;  %v770_v32 = vsel %vm697_vm1, %v768_v41, %v769_v27  ;;  %v1697_v19 = vmul.f32 %v4702_v51, %v3477_v12  ;;  %v1938_v40 = vmul.f32 %v4616_v55, %v4702_v51  ;;  %v3156_v27 = vld [vmem:[%s3462_s24 + $0xb0] sm:$0x1] }
 0x130   : > { %v1892_v13 = vadd.f32 %v1825_v45, %v1651_v62  ;;  %v596_v50 = vadd.f32 %v528_v29, %v354_v14  ;;  %v1174_v53 = vrot.slane %v1050_v39, 1  ;;  %v1415_v38 = vrot.slane %v1291_v8, 2 }
 0x131   : > { %v1821_v16 = vrot.slane %v1697_v19, 1  ;;  %v400_v30 = vmul.f32 %v3457_v3, %v318_v42  ;;  %v642_v49 = vmul.f32 %v3464_v4, %v318_v42  ;;  %v2062_v62 = vrot.slane %v1938_v40, 2  ;;  %v276_v40 = vld [vmem:[%s3462_s24 + $0xbc] sm:$0x1] }
 0x132   : > { %v4722_v34 = vadd.f32 %v2066_v47, %v1892_v13  ;;  %v838_v58 = vadd.f32 %v770_v32, %v596_v50  ;;  %v1176_v41 = vsel %vm455_vm0, %v1174_v53, %v1175_v26  ;;  %v1417_v14 = vsel %vm697_vm1, %v1415_v38, %v1416_v20  ;;  %v4731_v13 = vld [vmem:[%s3462_s24 + $0xb4] sm:$0xff]  }
 0x133   : > { %v1823_v45 = vsel %vm455_vm0, %v1821_v16, %v1822_v43  ;;  %v524_v39 = vrot.slane %v400_v30, 1  ;;  %v766_v8 = vrot.slane %v642_v49, 2  ;;  %v935_v42 = vunpack.c.l.bf16 %v3156_v27 }
 0x134   : > { %2285 = vperm.xlu2 %3364, %v4722_v34   ;;  %v1003_v29 = vadd.f32 %v971_v25, %v838_v58  ;;  %v970_v19 = vmul.f32 %v4527_v10, %v3466_v5  ;;  %v1582_v47 = vunpack.c.l.bf16 %v3204_v44  ;;  %v2064_v26 = vsel %vm697_vm1, %v2062_v62, %v2063_v18 }
 0x135   : > { %v5586_v20 = vrot.slane %v4505_v37, 1  ;;  %v5587_v32 = vrot.slane %v4518_v48, 2  ;;  %v1617_v25 = vmul.f32 %v3475_v11, %v4533_v56  ;;  %v1049_v10 = vmul.f32 %v3468_v6, %v935_v42 }
 0x136   : > { %v1244_v53 = vadd.f32 %v1176_v41, %v1003_v29  ;;  %v1290_v16 = vmul.f32 %v3472_v9, %v935_v42  ;;  %v1696_v18 = vmul.f32 %v3477_v12, %v1582_v47  ;;  %v1937_v37 = vmul.f32 %v4616_v55, %v1582_v47 }
 0x137   : > { %v525_v43 = vsel %vm455_vm0, %v5586_v20, %v524_v39  ;;  %v767_v50 = vsel %vm697_vm1, %v5587_v32, %v766_v8  ;;  %v323_v30 = vunpack.c.h.bf16 %v4731_v13  ;;  %v1172_v27 = vrot.slane %v1049_v10, 1  ;;  %v3162_v20 = vld [vmem:[%s3462_s24 + $0xc8] sm:$0x1] }
 0x138   : > { %v595_v38 = vadd.f32 %v525_v43, %v353_v54  ;;  %v1485_v48 = vadd.f32 %v1417_v14, %v1244_v53  ;;  %v1413_v44 = vrot.slane %v1290_v16, 2  ;;  %v1819_v58 = vrot.slane %v1696_v18, 1 }
 0x139   : > { %v2060_v56 = vrot.slane %v1937_v37, 2  ;;  %v324_v41 = vunpack.c.l.bf16 %v276_v40  ;;  %v357_v54 = vmul.f32 %v3455_v2, %v323_v30  ;;  %v5588_v8 = vrot.slane %v4544_v21, 1 }
 0x13a   : > { %v837_v49 = vadd.f32 %v767_v50, %v595_v38  ;;  %v1650_v62 = vadd.f32 %v1618_v15, %v1485_v48  ;;  %v5589_v42 = vrot.slane %v4550_v31, 2  ;;  %v5590_v14 = vrot.slane %v4558_v23, 1 }
 0x13b   : > { %v1173_v29 = vsel %vm455_vm0, %v5588_v8, %v1172_v27  ;;  %v5591_v32 = vrot.slane %v4571_v59, 2  ;;  %v4763_v15 = vmul.f32 %v3457_v3, %v323_v30  ;;  %v406_v21 = vmul.f32 %v3457_v3, %v324_v41 }
 0x13c   : > { %v1002_v39 = vadd.f32 %v970_v19, %v837_v49  ;;  %v1414_v47 = vsel %vm697_vm1, %v5589_v42, %v1413_v44  ;;  %v1820_v43 = vsel %vm455_vm0, %v5590_v14, %v1819_v58  ;;  %v1891_v19 = vadd.f32 %v1823_v45, %v1650_v62 }
 0x13d   : > { %v2061_v50 = vsel %vm697_vm1, %v5591_v32, %v2060_v56  ;;  %v3403_v31 = vmov 1   ;;  %v4768_v38 = vmul.f32 %v3464_v4, %v323_v30  ;;  %v648_v23 = vmul.f32 %v3464_v4, %v324_v41  ;;  %v3209_v30 = vld [vmem:[%s3462_s24 + $0xcc] sm:$0xff]   ;;  %v3210_v56 = vld [vmem:[%s3462_s24 + $0xd4] sm:$0x1] }
 0x13e   : > { %v1243_v53 = vadd.f32 %v1173_v29, %v1002_v39  ;;  %3365 = vset.pattern.permute.xlu2 %v3403_v31  ;;  %v532_v59 = vrot.slane %v4763_v15, 1  ;;  %v534_v10 = vrot.slane %v406_v21, 1  ;;  %v941_v16 = vunpack.c.l.bf16 %v3162_v20 }
 0x13f   : > { %v974_v40 = vmul.f32 %v4669_v7, %v3466_v5  ;;  %2332 = vperm.xlu2 %3365, %v3732_v36   ;;  %v4775_v45 = vadd.f32 %v2064_v26, %v1891_v19  ;;  %v774_v37 = vrot.slane %v4768_v38, 2  ;;  %v776_v48 = vrot.slane %v648_v23, 2 }
 0x140   : > { %v1484_v18 = vadd.f32 %v1414_v47, %v1243_v53  ;;  %v535_v49 = vsel %vm455_vm0, %v532_v59, %v534_v10  ;;  %v1054_v27 = vmul.f32 %v4669_v7, %v3468_v6  ;;  %v1055_v44 = vmul.f32 %v3468_v6, %v941_v16 }
 0x141   : > { %5592 = vst [vmem:[#allocation17_spill] sm:$0xff] %v4775_v45  ;;  %v4785_v58 = vmul.f32 %v4669_v7, %v3472_v9  ;;  %2280 = vperm.xlu1 %3363, %v4775_v45   ;;  %v599_v41 = vadd.f32 %v535_v49, %v357_v54  ;;  %v777_v62 = vsel %vm697_vm1, %v774_v37, %v776_v48  ;;  %v1587_v47 = vunpack.c.h.bf16 %v3209_v30 }
 0x142   : > { %v1649_v26 = vadd.f32 %v1617_v25, %v1484_v18  ;;  %v1296_v39 = vmul.f32 %v3472_v9, %v941_v16  ;;  %v1180_v8 = vrot.slane %v1054_v27, 1  ;;  %v1182_v29 = vrot.slane %v1055_v44, 1  ;;  %v4802_v16 = vpop.permute.xlu2 %2160 }
 0x143   : > { %v1421_v42 = vrot.slane %v4785_v58, 2  ;;  %v841_v14 = vadd.f32 %v777_v62, %v599_v41  ;;  %v1588_v15 = vunpack.c.l.bf16 %v3210_v56  ;;  %v1701_v21 = vmul.f32 %v3477_v12, %v1587_v47 }
 0x144   : > { %v1890_v20 = vadd.f32 %v1820_v43, %v1649_v26  ;;  %v1423_v32 = vrot.slane %v1296_v39, 2  ;;  %v1183_v7 = vsel %vm455_vm0, %v1180_v8, %v1182_v29  ;;  %v1942_v25 = vmul.f32 %v4616_v55, %v1587_v47 }
 0x145   : > { %v1006_v19 = vadd.f32 %v974_v40, %v841_v14  ;;  %v1702_v53 = vmul.f32 %v3477_v12, %v1588_v15  ;;  %v1827_v23 = vrot.slane %v1701_v21, 1  ;;  %v1943_v10 = vmul.f32 %v4616_v55, %v1588_v15 }
 0x146   : > { %v4795_v54 = vadd.f32 %v2061_v50, %v1890_v20  ;;  %v1424_v38 = vsel %vm697_vm1, %v1421_v42, %v1423_v32  ;;  %v322_v43 = vunpack.c.l.bf16 %v4731_v13  ;;  %v1621_v50 = vmul.f32 %v3475_v11, %v1587_v47 }
 0x147   : > { %2344 = vperm.xlu2 %3365, %v3811_v28   ;;  %v1247_v18 = vadd.f32 %v1183_v7, %v1006_v19  ;;  %v1829_v48 = vrot.slane %v1702_v53, 1  ;;  %v2068_v40 = vrot.slane %v1942_v25, 2  ;;  %v2070_v49 = vrot.slane %v1943_v10, 2 }
 0x148   : > { %2275 = vperm.xlu0 %3362, %v4795_v54   ;;  %v404_v27 = vmul.f32 %v3457_v3, %v322_v43  ;;  %v646_v44 = vmul.f32 %v3464_v4, %v322_v43  ;;  %v1053_v58 = vmul.f32 %v4702_v51, %v3468_v6  ;;  %v356_v26 = vmul.f32 %v3455_v2, %v322_v43 }
 0x149   : > { %v1488_v13 = vadd.f32 %v1424_v38, %v1247_v18  ;;  %v1830_v56 = vsel %vm455_vm0, %v1827_v23, %v1829_v48  ;;  %v1294_v39 = vmul.f32 %v4702_v51, %v3472_v9  ;;  %v1586_v29 = vunpack.c.l.bf16 %v3209_v30 }
 0x14a   : > { %v531_v41 = vrot.slane %v404_v27, 1  ;;  %v773_v62 = vrot.slane %v646_v44, 2  ;;  %v2071_v20 = vsel %vm697_vm1, %v2068_v40, %v2070_v49  ;;  %v1179_v14 = vrot.slane %v1053_v58, 1  ;;  %v4821_v9 = vpop.permute.xlu2 %2165  ;;  %v5593_v27 = vld [vmem:[#allocation3_spill] sm:$0xff]  ;;  %v5594_v58 = vld [vmem:[#allocation4_spill] sm:$0xff] }
 0x14b   : > { %v1653_v47 = vadd.f32 %v1621_v50, %v1488_v13  ;;  %v973_v15 = vmul.f32 %v4702_v51, %v3466_v5  ;;  %v1420_v2 = vrot.slane %v1294_v39, 2  ;;  %v1700_v7 = vmul.f32 %v3477_v12, %v1586_v29  ;;  %v5595_v13 = vld [vmem:[#allocation10_spill] sm:$0xff] }
 0x14c   : > { %v533_v3 = vsel %vm455_vm0, %v531_v41, %v532_v59  ;;  %v775_v4 = vsel %vm697_vm1, %v773_v62, %v774_v37  ;;  %v1181_v59 = vsel %vm455_vm0, %v1179_v14, %v1180_v8  ;;  %v1941_v37 = vmul.f32 %v4616_v55, %v1586_v29  ;;  %v5597_v62 = vld [vmem:[#allocation6_spill] sm:$0xff] }
 0x14d   : > { %v1894_v6 = vadd.f32 %v1830_v56, %v1653_v47  ;;  %v598_v32 = vadd.f32 %v533_v3, %v356_v26  ;;  %v1422_v19 = vsel %vm697_vm1, %v1420_v2, %v1421_v42  ;;  %v1826_v5 = vrot.slane %v1700_v7, 1  ;;  %v5596_v26 = vld [vmem:[#allocation5_spill] sm:$0xff]  ;;  %v5598_v47 = vld [vmem:[#allocation8_spill] sm:$0xff]  ;;  %v5603_v7 = vld [vmem:[#allocation14_spill] sm:$0xff] }
 0x14e   : > { %v1620_v12 = vmul.f32 %v3475_v11, %v1586_v29  ;;  %v2067_v53 = vrot.slane %v1941_v37, 2  ;;  %v5606_v37 = vld [vmem:[#allocation15_spill] sm:$0xff] }
 0x14f   : > { %2352 = vperm.xlu2 %3365, %v3781_v63   ;;  %v4823_v30 = vadd.f32 %v2071_v20, %v1894_v6  ;;  %v840_v21 = vadd.f32 %v775_v4, %v598_v32  ;;  %v1828_v10 = vsel %vm455_vm0, %v1826_v5, %v1827_v23  ;;  %v4843_v23 = vpop.permute.xlu1 %2150  ;;  %v5599_v20 = vld [vmem:[#allocation9_spill] sm:$0xff]  ;;  %v5600_v6 = vld [vmem:[#allocation11_spill] sm:$0xff]  ;;  %v5601_v32 = vld [vmem:[#allocation12_spill] sm:$0xff] }
 0x150   : > { %v2069_v55 = vsel %vm697_vm1, %v2067_v53, %v2068_v40  ;;  %v2141_v40 = vpop.permute.xlu0 %2140 }
 0x151   : > { %2295 = vperm.xlu1 %3363, %v4823_v30   ;;  %v1005_v25 = vadd.f32 %v973_v15, %v840_v21 }
 0x152   : > { %v4832_v43 = vpop.permute.xlu2 %2180 }
 0x153   : > { %v1246_v51 = vadd.f32 %v1181_v59, %v1005_v25  ;;  %v4896_v59 = vld [vmem:[%s5471_s2] sm:$0xf]  ;;  %v3404_v25 = vmov 2  }
 0x154   : > { %5605 = vst [vmem:[#allocation10_spill] sm:$0xff] %v4896_v59  ;;  %v4904_v5 = vperm.slane %v4896_v59, 1 }
 0x155   : > { %v1487_v38 = vadd.f32 %v1422_v19, %v1246_v51  ;;  %v4900_v19 = vperm.slane %v4896_v59, 0 }
 0x157   : > { %2364 = vperm.xlu2 %3365, %v3897_v35   ;;  %v1652_v8 = vadd.f32 %v1620_v12, %v1487_v38  ;;  %v2156_v48 = vpop.permute.xlu1 %2155  ;;  %v2299_v12 = vmul.f32 %v4900_v19, %v2141_v40  ;;  %v5607_v38 = vld [vmem:[#allocation16_spill] sm:$0xff] }
 0x159   : > { %v1893_v18 = vadd.f32 %v1828_v10, %v1652_v8  ;;  %3367 = vset.pattern.permute.xlu1 %v3403_v31 }
 0x15a   : > { %2340 = vperm.xlu1 %3367, %v3667_v0   ;;  %v4841_v11 = vpop.permute.xlu2 %2195 }
 0x15b   : > { %v4837_v42 = vadd.f32 %v2069_v55, %v1893_v18 }
 0x15d   : > { %2290 = vperm.xlu0 %3362, %v4837_v42  }
 0x15f   : > { %2376 = vperm.xlu2 %3365, %v3997_v61   ;;  %v4857_v44 = vpop.permute.xlu1 %2175 }
 0x162   : > { %2348 = vperm.xlu1 %3367, %v3620_v22   ;;  %v4849_v50 = vpop.permute.xlu2 %2210 }
 0x165   : > { %3366 = vset.pattern.permute.xlu0 %v3403_v31  ;;  %v4859_v31 = vpop.permute.xlu0 %2145 }
 0x166   : > { %2336 = vperm.xlu0 %3366, %v3862_v24  }
 0x167   : > { %2388 = vperm.xlu2 %3365, %v4132_v1   ;;  %v4866_v41 = vpop.permute.xlu1 %2190 }
 0x16a   : > { %2360 = vperm.xlu1 %3367, %v3942_v52   ;;  %v4854_v49 = vpop.permute.xlu2 %2225 }
 0x16d   : > { %v4872_v29 = vpop.permute.xlu0 %2170 }
 0x16e   : > { %2356 = vperm.xlu0 %3366, %v3967_v17  }
 0x16f   : > { %2400 = vperm.xlu2 %3365, %v4241_v60   ;;  %v4879_v4 = vpop.permute.xlu1 %2205 }
 0x172   : > { %2372 = vperm.xlu1 %3367, %v5593_v27   ;;  %v4863_v56 = vpop.permute.xlu2 %2240 }
 0x175   : > { %v4881_v14 = vpop.permute.xlu0 %2185 }
 0x176   : > { %2368 = vperm.xlu0 %3366, %v5594_v58  }
 0x177   : > { %2412 = vperm.xlu2 %3365, %v5595_v13   ;;  %v4888_v2 = vpop.permute.xlu1 %2220 }
 0x178   : > { %5602 = vst [vmem:[#allocation3_spill] sm:$0xff] %v4888_v2  ;;  %v2302_v2 = vmul.f32 %v4900_v19, %v2156_v48 }
 0x17a   : > { %2384 = vperm.xlu1 %3367, %v5596_v26   ;;  %v4870_v39 = vpop.permute.xlu2 %2255 }
 0x17d   : > { %v4891_v21 = vpop.permute.xlu0 %2200 }
 0x17e   : > { %2380 = vperm.xlu0 %3366, %v5597_v62   ;;  %5604 = vst [vmem:[#allocation4_spill] sm:$0xff] %v4891_v21 }
 0x17f   : > { %2424 = vperm.xlu2 %3365, %v4475_v57   ;;  %v4909_v10 = vpop.permute.xlu1 %2235 }
 0x180   : > { %5608 = vst [vmem:[#allocation5_spill] sm:$0xff] %v4909_v10  ;;  %v2304_v10 = vmul.f32 %v4900_v19, %v4821_v9 }
 0x182   : > { %2396 = vperm.xlu1 %3367, %v5598_v47   ;;  %v4877_v3 = vpop.permute.xlu2 %2270 }
 0x185   : > { %v4913_v55 = vpop.permute.xlu0 %2215 }
 0x186   : > { %2392 = vperm.xlu0 %3366, %v5599_v20  }
 0x187   : > { %2436 = vperm.xlu2 %3365, %v4608_v46  }
 0x18a   : > { %2408 = vperm.xlu1 %3367, %v5600_v6  }
 0x18e   : > { %2404 = vperm.xlu0 %3366, %v5601_v32   ;;  %v4886_v15 = vpop.permute.xlu2 %2285 }
 0x18f   : > { %2448 = vperm.xlu2 %3365, %v4722_v34  }
 0x192   : > { %2420 = vperm.xlu1 %3367, %v5603_v7  }
 0x196   : > { %2416 = vperm.xlu0 %3366, %v5606_v37  }
 0x197   : > { %3368 = vset.pattern.permute.xlu2 %v3404_v25 }
 0x198   : > { %2525 = vperm.xlu2 %3368, %v3732_v36  }
 0x199   : > { %v2333_v51 = vpop.permute.xlu2 %2332 }
 0x19a   : > { %v2460_v53 = vmul.f32 %v4904_v5, %v2333_v51  ;;  %2432 = vperm.xlu1 %3367, %v5607_v38   ;;  %v4922_v51 = vpop.permute.xlu1 %2250 }
 0x19b   : > { %5609 = vst [vmem:[#allocation6_spill] sm:$0xff] %v4922_v51  ;;  %v2307_v51 = vmul.f32 %v4900_v19, %v4832_v43 }
 0x19c   : > { %v4911_v8 = vadd.f32 %v2460_v53, %v2299_v12  ;;  %v4925_v12 = vpop.permute.xlu0 %2230 }
 0x19d   : > { %5610 = vst [vmem:[#allocation8_spill] sm:$0xff] %v4925_v12 }
 0x19e   : > { %2428 = vperm.xlu0 %3366, %v4694_v33  }
 0x1a0   : > { %2537 = vperm.xlu2 %3368, %v3811_v28  }
 0x1a1   : > { %v2345_v18 = vpop.permute.xlu2 %2344 }
 0x1a2   : > { %v2463_v21 = vmul.f32 %v4904_v5, %v2345_v18  ;;  %2444 = vperm.xlu1 %3367, %v4775_v45  }
 0x1a4   : > { %v4920_v40 = vadd.f32 %v2463_v21, %v2302_v2  ;;  %v4935_v2 = vpop.permute.xlu1 %2265  ;;  %v4940_v12 = vpop.permute.xlu0 %2245 }
 0x1a5   : > { %5611 = vst [vmem:[#allocation9_spill] sm:$0xff] %v4935_v2 }
 0x1a6   : > { %2440 = vperm.xlu0 %3366, %v4795_v54   ;;  %5612 = vst [vmem:[#allocation11_spill] sm:$0xff] %v4940_v12 }
 0x1a8   : > { %2545 = vperm.xlu2 %3368, %v3781_v63  }
 0x1a9   : > { %v2353_v53 = vpop.permute.xlu2 %2352 }
 0x1aa   : > { %v2465_v48 = vmul.f32 %v4904_v5, %v2353_v53  ;;  %2456 = vperm.xlu1 %3367, %v4823_v30  }
 0x1ac   : > { %v4932_v18 = vadd.f32 %v2465_v48, %v2304_v10  ;;  %v2310_v48 = vmul.f32 %v4900_v19, %v4841_v11  ;;  %v4953_v12 = vpop.permute.xlu0 %2260 }
 0x1ae   : > { %2452 = vperm.xlu0 %3366, %v4837_v42  }
 0x1b0   : > { %2557 = vperm.xlu2 %3368, %v3897_v35  }
 0x1b1   : > { %v2365_v21 = vpop.permute.xlu2 %2364 }
 0x1b2   : > { %v2468_v9 = vmul.f32 %v4904_v5, %v2365_v21  ;;  %3370 = vset.pattern.permute.xlu1 %v3404_v25 }
 0x1b3   : > { %2533 = vperm.xlu1 %3370, %v3667_v0   ;;  %v4950_v2 = vpop.permute.xlu1 %2280 }
 0x1b4   : > { %v4944_v53 = vadd.f32 %v2468_v9, %v2307_v51  ;;  %5613 = vst [vmem:[#allocation12_spill] sm:$0xff] %v4950_v2  ;;  %v2313_v51 = vmul.f32 %v4900_v19, %v4849_v50 }
 0x1b6   : > { %3369 = vset.pattern.permute.xlu0 %v3404_v25 }
 0x1b7   : > { %2529 = vperm.xlu0 %3369, %v3862_v24  }
 0x1b8   : > { %2569 = vperm.xlu2 %3368, %v3997_v61  }
 0x1b9   : > { %v2377_v10 = vpop.permute.xlu2 %2376 }
 0x1ba   : > { %v2471_v43 = vmul.f32 %v4904_v5, %v2377_v10  ;;  %v4968_v2 = vpop.permute.xlu0 %2275 }
 0x1bb   : > { %2541 = vperm.xlu1 %3370, %v3620_v22  }
 0x1bc   : > { %v4956_v21 = vadd.f32 %v2471_v43, %v2310_v48  ;;  %v2316_v43 = vmul.f32 %v4900_v19, %v4854_v49 }
 0x1bf   : > { %2549 = vperm.xlu0 %3369, %v3967_v17  }
 0x1c0   : > { %2581 = vperm.xlu2 %3368, %v4132_v1  }
 0x1c1   : > { %v2389_v25 = vpop.permute.xlu2 %2388 }
 0x1c2   : > { %v2474_v11 = vmul.f32 %v4904_v5, %v2389_v25 }
 0x1c3   : > { %2553 = vperm.xlu1 %3370, %v3942_v52   ;;  %v4964_v9 = vpop.permute.xlu1 %2295 }
 0x1c4   : > { %5614 = vst [vmem:[#allocation14_spill] sm:$0xff] %v4964_v9  ;;  %v4966_v10 = vadd.f32 %v2474_v11, %v2313_v51  ;;  %v2301_v51 = vmul.f32 %v4900_v19, %v4843_v23 }
 0x1c7   : > { %2561 = vperm.xlu0 %3369, %v5594_v58  }
 0x1c8   : > { %2593 = vperm.xlu2 %3368, %v4241_v60  }
 0x1c9   : > { %v2401_v48 = vpop.permute.xlu2 %2400 }
 0x1ca   : > { %v2477_v50 = vmul.f32 %v4904_v5, %v2401_v48  ;;  %v2319_v48 = vmul.f32 %v4900_v19, %v4863_v56 }
 0x1cb   : > { %2565 = vperm.xlu1 %3370, %v5593_v27  }
 0x1cc   : > { %v4976_v25 = vadd.f32 %v2477_v50, %v2316_v43  ;;  %v2341_v52 = vpop.permute.xlu1 %2340 }
 0x1cd   : > { %v2462_v11 = vmul.f32 %v4904_v5, %v2341_v52  ;;  %v2303_v52 = vmul.f32 %v4900_v19, %v4802_v16 }
 0x1ce   : > { %5615 = vst [vmem:[#allocation15_spill] sm:$0xff] %v4976_v25 }
 0x1cf   : > { %2573 = vperm.xlu0 %3369, %v5597_v62   ;;  %v4982_v9 = vpop.permute.xlu0 %2290  ;;  %v4984_v60 = vadd.f32 %v2462_v11, %v2301_v51 }
 0x1d0   : > { %2605 = vperm.xlu2 %3368, %v5595_v13  }
 0x1d1   : > { %v2413_v49 = vpop.permute.xlu2 %2412 }
 0x1d2   : > { %v2480_v43 = vmul.f32 %v4904_v5, %v2413_v49  ;;  %v2300_v49 = vmul.f32 %v4900_v19, %v4859_v31 }
 0x1d3   : > { %2577 = vperm.xlu1 %3370, %v5596_v26  }
 0x1d4   : > { %v4991_v50 = vadd.f32 %v2480_v43, %v2319_v48  ;;  %v2349_v23 = vpop.permute.xlu1 %2348  ;;  %v2322_v48 = vmul.f32 %v4900_v19, %v4870_v39 }
 0x1d5   : > { %v2464_v25 = vmul.f32 %v4904_v5, %v2349_v23 }
 0x1d6   : > { %5616 = vst [vmem:[#allocation16_spill] sm:$0xff] %v4991_v50 }
 0x1d7   : > { %2585 = vperm.xlu0 %3369, %v5599_v20   ;;  %v4997_v51 = vadd.f32 %v2464_v25, %v2303_v52  ;;  %v2306_v52 = vmul.f32 %v4900_v19, %v4857_v44 }
 0x1d8   : > { %2617 = vperm.xlu2 %3368, %v4475_v57   ;;  %v2337_v11 = vpop.permute.xlu0 %2336 }
 0x1d9   : > { %v2425_v56 = vpop.permute.xlu2 %2424  ;;  %v2461_v43 = vmul.f32 %v4904_v5, %v2337_v11 }
 0x1da   : > { %v2483_v16 = vmul.f32 %v4904_v5, %v2425_v56  ;;  %v2305_v56 = vmul.f32 %v4900_v19, %v4872_v29 }
 0x1db   : > { %v5006_v50 = vadd.f32 %v2461_v43, %v2300_v49  ;;  %2589 = vperm.xlu1 %3370, %v5598_v47   ;;  %v2325_v49 = vmul.f32 %v4900_v19, %v4877_v3 }
 0x1dc   : > { %v5009_v25 = vadd.f32 %v2483_v16, %v2322_v48  ;;  %v2361_v23 = vpop.permute.xlu1 %2360 }
 0x1dd   : > { %v2467_v57 = vmul.f32 %v4904_v5, %v2361_v23  ;;  %v2309_v23 = vmul.f32 %v4900_v19, %v4866_v41 }
 0x1df   : > { %2597 = vperm.xlu0 %3369, %v5601_v32   ;;  %v5015_v31 = vadd.f32 %v2467_v57, %v2306_v52 }
 0x1e0   : > { %2629 = vperm.xlu2 %3368, %v4608_v46   ;;  %v2357_v39 = vpop.permute.xlu0 %2356 }
 0x1e1   : > { %v2437_v11 = vpop.permute.xlu2 %2436  ;;  %v2466_v48 = vmul.f32 %v4904_v5, %v2357_v39 }
 0x1e2   : > { %v2486_v44 = vmul.f32 %v4904_v5, %v2437_v11  ;;  %v2308_v11 = vmul.f32 %v4900_v19, %v4881_v14 }
 0x1e3   : > { %v5024_v43 = vadd.f32 %v2466_v48, %v2305_v56  ;;  %2601 = vperm.xlu1 %3370, %v5600_v6   ;;  %v2328_v56 = vmul.f32 %v4900_v19, %v4886_v15  ;;  %v3405_v15 = vmov 3  }
 0x1e4   : > { %v5027_v57 = vadd.f32 %v2486_v44, %v2325_v49  ;;  %v2373_v16 = vpop.permute.xlu1 %2372 }
 0x1e5   : > { %v2470_v52 = vmul.f32 %v4904_v5, %v2373_v16 }
 0x1e7   : > { %2609 = vperm.xlu0 %3369, %v5606_v37   ;;  %v5033_v29 = vadd.f32 %v2470_v52, %v2309_v23  ;;  %v2312_v23 = vmul.f32 %v4900_v19, %v4879_v4 }
 0x1e8   : > { %2641 = vperm.xlu2 %3368, %v4722_v34   ;;  %v2369_v3 = vpop.permute.xlu0 %2368 }
 0x1e9   : > { %v2449_v39 = vpop.permute.xlu2 %2448  ;;  %v2469_v49 = vmul.f32 %v4904_v5, %v2369_v3 }
 0x1ea   : > { %v2489_v41 = vmul.f32 %v4904_v5, %v2449_v39  ;;  %v5055_v39 = vperm.slane %v4896_v59, 2 }
 0x1eb   : > { %v5042_v48 = vadd.f32 %v2469_v49, %v2308_v11  ;;  %2613 = vperm.xlu1 %3370, %v5603_v7   ;;  %v5618_v11 = vld [vmem:[#allocation4_spill] sm:$0xff] }
 0x1ec   : > { %v5045_v44 = vadd.f32 %v2489_v41, %v2328_v56  ;;  %v2385_v16 = vpop.permute.xlu1 %2384  ;;  %v2311_v56 = vmul.f32 %v4900_v19, %v5618_v11 }
 0x1ed   : > { %v2473_v52 = vmul.f32 %v4904_v5, %v2385_v16 }
 0x1ef   : > { %2621 = vperm.xlu0 %3369, %v4694_v33   ;;  %v5051_v14 = vadd.f32 %v2473_v52, %v2312_v23 }
 0x1f0   : > { %3371 = vset.pattern.permute.xlu2 %v3405_v15  ;;  %v2381_v3 = vpop.permute.xlu0 %2380 }
 0x1f1   : > { %5617 = vst [vmem:[#allocation18_spill] sm:$0xff] %v5051_v14  ;;  %2718 = vperm.xlu2 %3371, %v3732_v36   ;;  %v2472_v49 = vmul.f32 %v4904_v5, %v2381_v3  ;;  %v5619_v36 = vld [vmem:[#allocation3_spill] sm:$0xff] }
 0x1f2   : > { %v2526_v4 = vpop.permute.xlu2 %2525  ;;  %v2315_v59 = vmul.f32 %v4900_v19, %v5619_v36 }
 0x1f3   : > { %v2653_v41 = vmul.f32 %v5055_v39, %v2526_v4  ;;  %v5061_v16 = vadd.f32 %v2472_v49, %v2311_v56  ;;  %2625 = vperm.xlu1 %3370, %v5607_v38   ;;  %v2314_v56 = vmul.f32 %v4900_v19, %v4913_v55 }
 0x1f4   : > { %v2397_v23 = vpop.permute.xlu1 %2396 }
 0x1f5   : > { %v5065_v52 = vadd.f32 %v2653_v41, %v4911_v8  ;;  %v2476_v14 = vmul.f32 %v4904_v5, %v2397_v23 }
 0x1f7   : > { %2633 = vperm.xlu0 %3369, %v4795_v54   ;;  %v5071_v11 = vadd.f32 %v2476_v14, %v2315_v59  ;;  %v5620_v59 = vld [vmem:[#allocation5_spill] sm:$0xff] }
 0x1f8   : > { %v2393_v3 = vpop.permute.xlu0 %2392  ;;  %v2318_v14 = vmul.f32 %v4900_v19, %v5620_v59 }
 0x1f9   : > { %2730 = vperm.xlu2 %3371, %v3811_v28   ;;  %v2475_v49 = vmul.f32 %v4904_v5, %v2393_v3 }
 0x1fa   : > { %v2538_v4 = vpop.permute.xlu2 %2537 }
 0x1fb   : > { %v2656_v8 = vmul.f32 %v5055_v39, %v2538_v4  ;;  %v5078_v41 = vadd.f32 %v2475_v49, %v2314_v56  ;;  %2637 = vperm.xlu1 %3370, %v4775_v45   ;;  %v5621_v56 = vld [vmem:[#allocation8_spill] sm:$0xff] }
 0x1fc   : > { %v2409_v23 = vpop.permute.xlu1 %2408  ;;  %v2317_v49 = vmul.f32 %v4900_v19, %v5621_v56 }
 0x1fd   : > { %v5082_v36 = vadd.f32 %v2656_v8, %v4920_v40  ;;  %v2479_v28 = vmul.f32 %v4904_v5, %v2409_v23 }
 0x1ff   : > { %2645 = vperm.xlu0 %3369, %v4837_v42   ;;  %v5088_v55 = vadd.f32 %v2479_v28, %v2318_v14  ;;  %v5623_v14 = vld [vmem:[#allocation6_spill] sm:$0xff] }
 0x200   : > { %v2405_v3 = vpop.permute.xlu0 %2404  ;;  %v2321_v28 = vmul.f32 %v4900_v19, %v5623_v14 }
 0x201   : > { %2738 = vperm.xlu2 %3371, %v3781_v63   ;;  %v2478_v4 = vmul.f32 %v4904_v5, %v2405_v3 }
 0x202   : > { %v2546_v45 = vpop.permute.xlu2 %2545 }
 0x203   : > { %v2658_v40 = vmul.f32 %v5055_v39, %v2546_v45  ;;  %v5095_v8 = vadd.f32 %v2478_v4, %v2317_v49  ;;  %2649 = vperm.xlu1 %3370, %v4823_v30   ;;  %v5624_v45 = vld [vmem:[#allocation11_spill] sm:$0xff] }
 0x204   : > { %v2421_v23 = vpop.permute.xlu1 %2420  ;;  %v2320_v49 = vmul.f32 %v4900_v19, %v5624_v45 }
 0x205   : > { %v5099_v59 = vadd.f32 %v2658_v40, %v4932_v18  ;;  %v2482_v63 = vmul.f32 %v4904_v5, %v2421_v23 }
 0x207   : > { %5622 = vst [vmem:[#allocation4_spill] sm:$0xff] %v5099_v59  ;;  %3372 = vset.pattern.permute.xlu0 %v3405_v15  ;;  %v5104_v56 = vadd.f32 %v2482_v63, %v2321_v28 }
 0x208   : > { %2722 = vperm.xlu0 %3372, %v3862_v24   ;;  %v2417_v3 = vpop.permute.xlu0 %2416  ;;  %v5625_v24 = vld [vmem:[#allocation9_spill] sm:$0xff] }
 0x209   : > { %2750 = vperm.xlu2 %3371, %v3897_v35   ;;  %v2481_v4 = vmul.f32 %v4904_v5, %v2417_v3  ;;  %v2324_v35 = vmul.f32 %v4900_v19, %v5625_v24  ;;  %v2326_v24 = vmul.f32 %v4900_v19, %v4968_v2 }
 0x20a   : > { %v2558_v18 = vpop.permute.xlu2 %2557 }
 0x20b   : > { %v2661_v40 = vmul.f32 %v5055_v39, %v2558_v18  ;;  %v5112_v59 = vadd.f32 %v2481_v4, %v2320_v49  ;;  %3373 = vset.pattern.permute.xlu1 %v3405_v15  ;;  %v2323_v15 = vmul.f32 %v4900_v19, %v4953_v12 }
 0x20c   : > { %2726 = vperm.xlu1 %3373, %v3667_v0   ;;  %v2433_v23 = vpop.permute.xlu1 %2432 }
 0x20d   : > { %v5116_v14 = vadd.f32 %v2661_v40, %v4944_v53  ;;  %v2485_v28 = vmul.f32 %v4904_v5, %v2433_v23 }
 0x20f   : > { %v5121_v63 = vadd.f32 %v2485_v28, %v2324_v35 }
 0x210   : > { %2742 = vperm.xlu0 %3372, %v3967_v17   ;;  %v2429_v3 = vpop.permute.xlu0 %2428  ;;  %v5626_v17 = vld [vmem:[#allocation12_spill] sm:$0xff] }
 0x211   : > { %2762 = vperm.xlu2 %3371, %v3997_v61   ;;  %v2484_v0 = vmul.f32 %v4904_v5, %v2429_v3  ;;  %v2327_v40 = vmul.f32 %v4900_v19, %v5626_v17  ;;  %v5627_v3 = vld [vmem:[#allocation2_spill] sm:$0xff]  ;;  %v2329_v17 = vmul.f32 %v4900_v19, %v4982_v9 }
 0x212   : > { %v2570_v45 = vpop.permute.xlu2 %2569 }
 0x213   : > { %v2664_v53 = vmul.f32 %v5055_v39, %v2570_v45  ;;  %v5129_v49 = vadd.f32 %v2484_v0, %v2323_v15 }
 0x214   : > { %2734 = vperm.xlu1 %3373, %v3620_v22   ;;  %v2445_v4 = vpop.permute.xlu1 %2444 }
 0x215   : > { %v5133_v18 = vadd.f32 %v2664_v53, %v4956_v21  ;;  %v2488_v61 = vmul.f32 %v4904_v5, %v2445_v4  ;;  %v5629_v4 = vld [vmem:[#allocation7_spill] sm:$0xff] }
 0x217   : > { %v5138_v23 = vadd.f32 %v2488_v61, %v2327_v40 }
 0x218   : > { %2754 = vperm.xlu0 %3372, %v5594_v58   ;;  %v2441_v12 = vpop.permute.xlu0 %2440  ;;  %v5628_v58 = vld [vmem:[#allocation14_spill] sm:$0xff] }
 0x219   : > { %2774 = vperm.xlu2 %3371, %v4132_v1   ;;  %v2487_v22 = vmul.f32 %v4904_v5, %v2441_v12  ;;  %v2330_v45 = vmul.f32 %v4900_v19, %v5628_v58 }
 0x21a   : > { %v2582_v35 = vpop.permute.xlu2 %2581 }
 0x21b   : > { %v2667_v21 = vmul.f32 %v5055_v39, %v2582_v35  ;;  %v5146_v28 = vadd.f32 %v2487_v22, %v2326_v24  ;;  %v5630_v24 = vld [vmem:[#allocation15_spill] sm:$0xff] }
 0x21c   : > { %2746 = vperm.xlu1 %3373, %v5627_v3   ;;  %v2457_v15 = vpop.permute.xlu1 %2456 }
 0x21d   : > { %v5150_v0 = vadd.f32 %v2667_v21, %v4966_v10  ;;  %v2491_v1 = vmul.f32 %v4904_v5, %v2457_v15  ;;  %v5631_v15 = vld [vmem:[#allocation16_spill] sm:$0xff] }
 0x21f   : > { %v5155_v53 = vadd.f32 %v2491_v1, %v2330_v45  ;;  %v5632_v45 = vld [vmem:[#allocation13_spill] sm:$0xff] }
 0x220   : > { %2766 = vperm.xlu0 %3372, %v5597_v62   ;;  %v2453_v2 = vpop.permute.xlu0 %2452 }
 0x221   : > { %2786 = vperm.xlu2 %3371, %v5629_v4   ;;  %v2490_v40 = vmul.f32 %v4904_v5, %v2453_v2 }
 0x222   : > { %v2594_v61 = vpop.permute.xlu2 %2593 }
 0x223   : > { %v2670_v10 = vmul.f32 %v5055_v39, %v2594_v61  ;;  %v5163_v12 = vadd.f32 %v2490_v40, %v2329_v17 }
 0x224   : > { %2758 = vperm.xlu1 %3373, %v5593_v27  }
 0x225   : > { %v5167_v22 = vadd.f32 %v2670_v10, %v5630_v24  ;;  %v2534_v35 = vpop.permute.xlu1 %2533 }
 0x226   : > { %v2655_v62 = vmul.f32 %v5055_v39, %v2534_v35 }
 0x228   : > { %2778 = vperm.xlu0 %3372, %v5599_v20   ;;  %v5172_v21 = vadd.f32 %v2655_v62, %v4984_v60 }
 0x229   : > { %2798 = vperm.xlu2 %3371, %v5595_v13   ;;  %v2530_v19 = vpop.permute.xlu0 %2529 }
 0x22a   : > { %v2606_v5 = vpop.permute.xlu2 %2605  ;;  %v2654_v9 = vmul.f32 %v5055_v39, %v2530_v19 }
 0x22b   : > { %v2673_v3 = vmul.f32 %v5055_v39, %v2606_v5 }
 0x22c   : > { %v5178_v27 = vadd.f32 %v2654_v9, %v5006_v50  ;;  %2770 = vperm.xlu1 %3373, %v5596_v26  }
 0x22d   : > { %v5182_v58 = vadd.f32 %v2673_v3, %v5631_v15  ;;  %v2542_v20 = vpop.permute.xlu1 %2541  ;;  %v5634_v3 = vld [vmem:[#allocation10_spill] sm:$0xff] }
 0x22e   : > { %v2657_v60 = vmul.f32 %v5055_v39, %v2542_v20  ;;  %v5235_v15 = vperm.slane %v5634_v3, 3 }
 0x230   : > { %2790 = vperm.xlu0 %3372, %v5601_v32   ;;  %v5187_v13 = vadd.f32 %v2657_v60, %v4997_v51 }
 0x231   : > { %2810 = vperm.xlu2 %3371, %v5632_v45   ;;  %v2550_v1 = vpop.permute.xlu0 %2549 }
 0x232   : > { %v2618_v2 = vpop.permute.xlu2 %2617  ;;  %v2659_v50 = vmul.f32 %v5055_v39, %v2550_v1 }
 0x233   : > { %v2676_v4 = vmul.f32 %v5055_v39, %v2618_v2 }
 0x234   : > { %v5193_v26 = vadd.f32 %v2659_v50, %v5024_v43  ;;  %2782 = vperm.xlu1 %3373, %v5598_v47  }
 0x235   : > { %v5197_v17 = vadd.f32 %v2676_v4, %v5009_v25  ;;  %v2554_v32 = vpop.permute.xlu1 %2553 }
 0x236   : > { %v2660_v51 = vmul.f32 %v5055_v39, %v2554_v32  ;;  %v5635_v32 = vld [vmem:[#allocation17_spill] sm:$0xff] }
 0x238   : > { %2802 = vperm.xlu0 %3372, %v5606_v37   ;;  %v5202_v40 = vadd.f32 %v2660_v51, %v5015_v31 }
 0x239   : > { %2822 = vperm.xlu2 %3371, %v4608_v46   ;;  %v2562_v61 = vpop.permute.xlu0 %2561 }
 0x23a   : > { %v2630_v10 = vpop.permute.xlu2 %2629  ;;  %v2662_v43 = vmul.f32 %v5055_v39, %v2562_v61 }
 0x23b   : > { %v2679_v24 = vmul.f32 %v5055_v39, %v2630_v10 }
 0x23c   : > { %v5208_v47 = vadd.f32 %v2662_v43, %v5042_v48  ;;  %2794 = vperm.xlu1 %3373, %v5600_v6  }
 0x23d   : > { %v5212_v25 = vadd.f32 %v2679_v24, %v5027_v57  ;;  %v2566_v37 = vpop.permute.xlu1 %2565 }
 0x23e   : > { %v2663_v31 = vmul.f32 %v5055_v39, %v2566_v37 }
 0x240   : > { %2814 = vperm.xlu0 %3372, %v4694_v33   ;;  %v5217_v46 = vadd.f32 %v2663_v31, %v5033_v29 }
 0x241   : > { %2834 = vperm.xlu2 %3371, %v4722_v34   ;;  %v2574_v35 = vpop.permute.xlu0 %2573  ;;  %v5633_v34 = vld [vmem:[#allocation18_spill] sm:$0xff] }
 0x242   : > { %v2642_v62 = vpop.permute.xlu2 %2641  ;;  %v2665_v48 = vmul.f32 %v5055_v39, %v2574_v35 }
 0x243   : > { %v2682_v19 = vmul.f32 %v5055_v39, %v2642_v62 }
 0x244   : > { %v5223_v6 = vadd.f32 %v2665_v48, %v5061_v16  ;;  %2806 = vperm.xlu1 %3373, %v5603_v7  }
 0x245   : > { %v5227_v57 = vadd.f32 %v2682_v19, %v5045_v44  ;;  %v2578_v33 = vpop.permute.xlu1 %2577  ;;  %v5636_v19 = vld [vmem:[#allocation4_spill] sm:$0xff] }
 0x246   : > { %v2666_v29 = vmul.f32 %v5055_v39, %v2578_v33 }
 0x248   : > { %2826 = vperm.xlu0 %3372, %v4795_v54   ;;  %v5232_v5 = vadd.f32 %v2666_v29, %v5633_v34  ;;  %v5246_v54 = vld [vmem:[%s5472_s3] ss:$0 sm:$0xff] }
 0x249   : > { %v2586_v9 = vpop.permute.xlu0 %2585 }
 0x24a   : > { %v2668_v16 = vmul.f32 %v5055_v39, %v2586_v9 }
 0x24b   : > { %v2719_v20 = vpop.permute.xlu2 %2718 }
 0x24c   : > { %v2846_v7 = vmul.f32 %v5235_v15, %v2719_v20  ;;  %v5240_v44 = vadd.f32 %v2668_v16, %v5078_v41  ;;  %2818 = vperm.xlu1 %3373, %v5607_v38  }
 0x24d   : > { %v2590_v60 = vpop.permute.xlu1 %2589 }
 0x24e   : > { %v2878_v45 = vadd.f32 %v2846_v7, %v5065_v52  ;;  %v2669_v1 = vmul.f32 %v5055_v39, %v2590_v60 }
 0x250   : > { %v2913_v2 = vadd.f32 %v5246_v54, %v2878_v45  ;;  %2838 = vperm.xlu0 %3372, %v4837_v42   ;;  %v5254_v41 = vadd.f32 %v2669_v1, %v5071_v11 }
 0x251   : > { %v2598_v38 = vpop.permute.xlu0 %2597 }
 0x252   : > { %v2945_v50 = vpack.c.bf16 %v2913_v2, %v2913_v2  ;;  %v2671_v52 = vmul.f32 %v5055_v39, %v2598_v38 }
 0x253   : > { %v2731_v4 = vpop.permute.xlu2 %2730 }
 0x254   : > { %2978 = vst.msk [vmem:[%s5259_s12] sm:$0xf] %vm2977_vm2, %v2945_v50  ;;  %v2849_v42 = vmul.f32 %v5235_v15, %v2731_v4  ;;  %v5266_v11 = vadd.f32 %v2671_v52, %v5095_v8  ;;  %2830 = vperm.xlu1 %3373, %v5635_v32  }
 0x255   : > { %v2602_v51 = vpop.permute.xlu1 %2601 }
 0x256   : > { %v2881_v61 = vadd.f32 %v2849_v42, %v5082_v36  ;;  %v2672_v10 = vmul.f32 %v5055_v39, %v2602_v51 }
 0x258   : > { %v2916_v43 = vadd.f32 %v5246_v54, %v2881_v61  ;;  %v5273_v24 = vadd.f32 %v2672_v10, %v5088_v55 }
 0x259   : > { %v2610_v37 = vpop.permute.xlu0 %2609 }
 0x25a   : > { %v2948_v31 = vpack.c.bf16 %v2916_v43, %v2916_v43  ;;  %v2674_v35 = vmul.f32 %v5055_v39, %v2610_v37 }
 0x25b   : > { %v2739_v62 = vpop.permute.xlu2 %2738 }
 0x25c   : > { %2981 = vst.msk [vmem:[%s5259_s12 + $0xc] sm:$0xf] %vm2977_vm2, %v2948_v31  ;;  %v2851_v8 = vmul.f32 %v5235_v15, %v2739_v62  ;;  %v5280_v48 = vadd.f32 %v2674_v35, %v5112_v59  ;;  %2842 = vperm.xlu1 %3373, %v4823_v30  }
 0x25d   : > { %v2614_v36 = vpop.permute.xlu1 %2613 }
 0x25e   : > { %v2883_v33 = vadd.f32 %v2851_v8, %v5636_v19  ;;  %v2675_v55 = vmul.f32 %v5055_v39, %v2614_v36 }
 0x260   : > { %v2918_v29 = vadd.f32 %v5246_v54, %v2883_v33  ;;  %v5287_v34 = vadd.f32 %v2675_v55, %v5104_v56 }
 0x261   : > { %v2622_v9 = vpop.permute.xlu0 %2621 }
 0x262   : > { %v2950_v3 = vpack.c.bf16 %v2918_v29, %v2918_v29  ;;  %v2677_v16 = vmul.f32 %v5055_v39, %v2622_v9 }
 0x263   : > { %v2751_v20 = vpop.permute.xlu2 %2750 }
 0x264   : > { %2983 = vst.msk [vmem:[%s5259_s12 + $0x14] sm:$0xf] %vm2977_vm2, %v2950_v3  ;;  %v2854_v30 = vmul.f32 %v5235_v15, %v2751_v20  ;;  %v5294_v59 = vadd.f32 %v2677_v16, %v5129_v49 }
 0x265   : > { %v2626_v7 = vpop.permute.xlu1 %2625 }
 0x266   : > { %v2886_v60 = vadd.f32 %v2854_v30, %v5116_v14  ;;  %v2678_v45 = vmul.f32 %v5055_v39, %v2626_v7 }
 0x268   : > { %v2921_v56 = vadd.f32 %v5246_v54, %v2886_v60  ;;  %v5300_v1 = vadd.f32 %v2678_v45, %v5121_v63 }
 0x269   : > { %v2634_v2 = vpop.permute.xlu0 %2633 }
 0x26a   : > { %v2953_v38 = vpack.c.bf16 %v2921_v56, %v2921_v56  ;;  %v2680_v50 = vmul.f32 %v5055_v39, %v2634_v2 }
 0x26b   : > { %v2763_v52 = vpop.permute.xlu2 %2762 }
 0x26c   : > { %2986 = vst.msk [vmem:[%s5259_s12 + $0x20] sm:$0xf] %vm2977_vm2, %v2953_v38  ;;  %v2857_v49 = vmul.f32 %v5235_v15, %v2763_v52  ;;  %v5307_v4 = vadd.f32 %v2680_v50, %v5146_v28 }
 0x26d   : > { %v2638_v14 = vpop.permute.xlu1 %2637 }
 0x26e   : > { %v2889_v42 = vadd.f32 %v2857_v49, %v5133_v18  ;;  %v2681_v32 = vmul.f32 %v5055_v39, %v2638_v14 }
 0x270   : > { %v2924_v63 = vadd.f32 %v5246_v54, %v2889_v42  ;;  %v5313_v51 = vadd.f32 %v2681_v32, %v5138_v23 }
 0x271   : > { %v2646_v61 = vpop.permute.xlu0 %2645 }
 0x272   : > { %v2956_v10 = vpack.c.bf16 %v2924_v63, %v2924_v63  ;;  %v2683_v43 = vmul.f32 %v5055_v39, %v2646_v61 }
 0x273   : > { %v2775_v37 = vpop.permute.xlu2 %2774 }
 0x274   : > { %2989 = vst.msk [vmem:[%s5259_s12 + $0x2c] sm:$0xf] %vm2977_vm2, %v2956_v10  ;;  %v2860_v28 = vmul.f32 %v5235_v15, %v2775_v37  ;;  %v5320_v31 = vadd.f32 %v2683_v43, %v5163_v12 }
 0x275   : > { %v2650_v18 = vpop.permute.xlu1 %2649 }
 0x276   : > { %v2892_v35 = vadd.f32 %v2860_v28, %v5150_v0  ;;  %v2684_v62 = vmul.f32 %v5055_v39, %v2650_v18 }
 0x278   : > { %v2927_v23 = vadd.f32 %v5246_v54, %v2892_v35  ;;  %v5326_v8 = vadd.f32 %v2684_v62, %v5155_v53 }
 0x27a   : > { %v2959_v36 = vpack.c.bf16 %v2927_v23, %v2927_v23  ;;  %v2723_v19 = vpop.permute.xlu0 %2722 }
 0x27b   : > { %v2787_v33 = vpop.permute.xlu2 %2786  ;;  %v2847_v55 = vmul.f32 %v5235_v15, %v2723_v19 }
 0x27c   : > { %2992 = vst.msk [vmem:[%s5259_s12 + $0x38] sm:$0xf] %vm2977_vm2, %v2959_v36  ;;  %v2863_v12 = vmul.f32 %v5235_v15, %v2787_v33 }
 0x27d   : > { %v2879_v0 = vadd.f32 %v2847_v55, %v5178_v27 }
 0x27e   : > { %v2895_v39 = vadd.f32 %v2863_v12, %v5167_v22  ;;  %v2727_v29 = vpop.permute.xlu1 %2726 }
 0x27f   : > { %v2914_v9 = vadd.f32 %v5246_v54, %v2879_v0  ;;  %v2848_v53 = vmul.f32 %v5235_v15, %v2727_v29 }
 0x280   : > { %v2930_v3 = vadd.f32 %v5246_v54, %v2895_v39 }
 0x281   : > { %v2946_v16 = vpack.c.bf16 %v2914_v9, %v2914_v9  ;;  %v2880_v20 = vadd.f32 %v2848_v53, %v5172_v21 }
 0x282   : > { %v2962_v30 = vpack.c.bf16 %v2930_v3, %v2930_v3  ;;  %v2743_v7 = vpop.permute.xlu0 %2742 }
 0x283   : > { %v2799_v60 = vpop.permute.xlu2 %2798  ;;  %2979 = vst.msk [vmem:[%s5259_s12 + $0x4] sm:$0xf] %vm2977_vm2, %v2946_v16  ;;  %v2852_v27 = vmul.f32 %v5235_v15, %v2743_v7  ;;  %v2915_v22 = vadd.f32 %v5246_v54, %v2880_v20 }
 0x284   : > { %v2866_v45 = vmul.f32 %v5235_v15, %v2799_v60  ;;  %2995 = vst.msk [vmem:[%s5259_s12 + $0x44] sm:$0xf] %vm2977_vm2, %v2962_v30 }
 0x285   : > { %v2884_v56 = vadd.f32 %v2852_v27, %v5193_v26  ;;  %v2947_v2 = vpack.c.bf16 %v2915_v22, %v2915_v22 }
 0x286   : > { %v2898_v21 = vadd.f32 %v2866_v45, %v5182_v58  ;;  %v2735_v38 = vpop.permute.xlu1 %2734 }
 0x287   : > { %v2919_v50 = vadd.f32 %v5246_v54, %v2884_v56  ;;  %2980 = vst.msk [vmem:[%s5259_s12 + $0x8] sm:$0xf] %vm2977_vm2, %v2947_v2  ;;  %v2850_v52 = vmul.f32 %v5235_v15, %v2735_v38 }
 0x288   : > { %v2933_v49 = vadd.f32 %v5246_v54, %v2898_v21 }
 0x289   : > { %v2951_v14 = vpack.c.bf16 %v2919_v50, %v2919_v50  ;;  %v2882_v42 = vadd.f32 %v2850_v52, %v5187_v13 }
 0x28a   : > { %v2965_v32 = vpack.c.bf16 %v2933_v49, %v2933_v49  ;;  %v2755_v63 = vpop.permute.xlu0 %2754 }
 0x28b   : > { %v2811_v26 = vpop.permute.xlu2 %2810  ;;  %2984 = vst.msk [vmem:[%s5259_s12 + $0x18] sm:$0xf] %vm2977_vm2, %v2951_v14  ;;  %v2855_v58 = vmul.f32 %v5235_v15, %v2755_v63  ;;  %v2917_v61 = vadd.f32 %v5246_v54, %v2882_v42 }
 0x28c   : > { %v2869_v10 = vmul.f32 %v5235_v15, %v2811_v26  ;;  %2998 = vst.msk [vmem:[%s5259_s12 + $0x50] sm:$0xf] %vm2977_vm2, %v2965_v32 }
 0x28d   : > { %v2887_v43 = vadd.f32 %v2855_v58, %v5208_v47  ;;  %v2949_v37 = vpack.c.bf16 %v2917_v61, %v2917_v61 }
 0x28e   : > { %v2901_v13 = vadd.f32 %v2869_v10, %v5197_v17  ;;  %v2747_v28 = vpop.permute.xlu1 %2746 }
 0x28f   : > { %v2922_v18 = vadd.f32 %v5246_v54, %v2887_v43  ;;  %2982 = vst.msk [vmem:[%s5259_s12 + $0x10] sm:$0xf] %vm2977_vm2, %v2949_v37  ;;  %v2853_v35 = vmul.f32 %v5235_v15, %v2747_v28 }
 0x290   : > { %v2936_v62 = vadd.f32 %v5246_v54, %v2901_v13 }
 0x291   : > { %v2954_v23 = vpack.c.bf16 %v2922_v18, %v2922_v18  ;;  %v2885_v36 = vadd.f32 %v2853_v35, %v5202_v40 }
 0x292   : > { %v2968_v19 = vpack.c.bf16 %v2936_v62, %v2936_v62  ;;  %v2767_v33 = vpop.permute.xlu0 %2766 }
 0x293   : > { %v2823_v47 = vpop.permute.xlu2 %2822  ;;  %2987 = vst.msk [vmem:[%s5259_s12 + $0x24] sm:$0xf] %vm2977_vm2, %v2954_v23  ;;  %v2858_v17 = vmul.f32 %v5235_v15, %v2767_v33  ;;  %v2920_v55 = vadd.f32 %v5246_v54, %v2885_v36 }
 0x294   : > { %v2872_v12 = vmul.f32 %v5235_v15, %v2823_v47  ;;  %3001 = vst.msk [vmem:[%s5259_s12 + $0x5c] sm:$0xf] %vm2977_vm2, %v2968_v19 }
 0x295   : > { %v2890_v0 = vadd.f32 %v2858_v17, %v5223_v6  ;;  %v2952_v39 = vpack.c.bf16 %v2920_v55, %v2920_v55 }
 0x296   : > { %v2904_v40 = vadd.f32 %v2872_v12, %v5212_v25  ;;  %v2759_v29 = vpop.permute.xlu1 %2758 }
 0x297   : > { %v2925_v9 = vadd.f32 %v5246_v54, %v2890_v0  ;;  %2985 = vst.msk [vmem:[%s5259_s12 + $0x1c] sm:$0xf] %vm2977_vm2, %v2952_v39  ;;  %v2856_v53 = vmul.f32 %v5235_v15, %v2759_v29 }
 0x298   : > { %v2939_v3 = vadd.f32 %v5246_v54, %v2904_v40 }
 0x299   : > { %v2957_v16 = vpack.c.bf16 %v2925_v9, %v2925_v9  ;;  %v2888_v20 = vadd.f32 %v2856_v53, %v5217_v46 }
 0x29a   : > { %v2971_v30 = vpack.c.bf16 %v2939_v3, %v2939_v3  ;;  %v2779_v7 = vpop.permute.xlu0 %2778 }
 0x29b   : > { %v2835_v6 = vpop.permute.xlu2 %2834  ;;  %2990 = vst.msk [vmem:[%s5259_s12 + $0x30] sm:$0xf] %vm2977_vm2, %v2957_v16  ;;  %v2861_v25 = vmul.f32 %v5235_v15, %v2779_v7  ;;  %v2923_v60 = vadd.f32 %v5246_v54, %v2888_v20 }
 0x29c   : > { %v2875_v27 = vmul.f32 %v5235_v15, %v2835_v6  ;;  %3004 = vst.msk [vmem:[%s5259_s12 + $0x68] sm:$0xf] %vm2977_vm2, %v2971_v30 }
 0x29d   : > { %v2893_v22 = vadd.f32 %v2861_v25, %v5240_v44  ;;  %v2955_v45 = vpack.c.bf16 %v2923_v60, %v2923_v60 }
 0x29e   : > { %v2907_v46 = vadd.f32 %v2875_v27, %v5227_v57  ;;  %v2771_v56 = vpop.permute.xlu1 %2770 }
 0x29f   : > { %v2928_v2 = vadd.f32 %v5246_v54, %v2893_v22  ;;  %2988 = vst.msk [vmem:[%s5259_s12 + $0x28] sm:$0xf] %vm2977_vm2, %v2955_v45  ;;  %v2859_v21 = vmul.f32 %v5235_v15, %v2771_v56 }
 0x2a0   : > { %v2942_v38 = vadd.f32 %v5246_v54, %v2907_v46 }
 0x2a1   : > { %v2960_v50 = vpack.c.bf16 %v2928_v2, %v2928_v2  ;;  %v2891_v52 = vadd.f32 %v2859_v21, %v5232_v5 }
 0x2a2   : > { %v2974_v49 = vpack.c.bf16 %v2942_v38, %v2942_v38  ;;  %v2791_v14 = vpop.permute.xlu0 %2790 }
 0x2a3   : > { %2993 = vst.msk [vmem:[%s5259_s12 + $0x3c] sm:$0xf] %vm2977_vm2, %v2960_v50  ;;  %v2864_v57 = vmul.f32 %v5235_v15, %v2791_v14  ;;  %v2926_v44 = vadd.f32 %v5246_v54, %v2891_v52 }
 0x2a4   : > { %3007 = vst.msk [vmem:[%s5259_s12 + $0x74] sm:$0xf] %vm2977_vm2, %v2974_v49 }
 0x2a5   : > { %v2896_v42 = vadd.f32 %v2864_v57, %v5266_v11  ;;  %v2958_v32 = vpack.c.bf16 %v2926_v44, %v2926_v44 }
 0x2a6   : > { %v2783_v63 = vpop.permute.xlu1 %2782 }
 0x2a7   : > { %v2931_v26 = vadd.f32 %v5246_v54, %v2896_v42  ;;  %2991 = vst.msk [vmem:[%s5259_s12 + $0x34] sm:$0xf] %vm2977_vm2, %v2958_v32  ;;  %v2862_v5 = vmul.f32 %v5235_v15, %v2783_v63 }
 0x2a9   : > { %v2963_v58 = vpack.c.bf16 %v2931_v26, %v2931_v26  ;;  %v2894_v61 = vadd.f32 %v2862_v5, %v5254_v41 }
 0x2aa   : > { %v2803_v10 = vpop.permute.xlu0 %2802 }
 0x2ab   : > { %2996 = vst.msk [vmem:[%s5259_s12 + $0x48] sm:$0xf] %vm2977_vm2, %v2963_v58  ;;  %v2867_v43 = vmul.f32 %v5235_v15, %v2803_v10  ;;  %v2929_v11 = vadd.f32 %v5246_v54, %v2894_v61 }
 0x2ad   : > { %v2899_v37 = vadd.f32 %v2867_v43, %v5280_v48  ;;  %v2961_v13 = vpack.c.bf16 %v2929_v11, %v2929_v11 }
 0x2ae   : > { %v2795_v28 = vpop.permute.xlu1 %2794 }
 0x2af   : > { %v2934_v18 = vadd.f32 %v5246_v54, %v2899_v37  ;;  %2994 = vst.msk [vmem:[%s5259_s12 + $0x40] sm:$0xf] %vm2977_vm2, %v2961_v13  ;;  %v2865_v35 = vmul.f32 %v5235_v15, %v2795_v28 }
 0x2b1   : > { %v2966_v41 = vpack.c.bf16 %v2934_v18, %v2934_v18  ;;  %v2897_v62 = vadd.f32 %v2865_v35, %v5273_v24 }
 0x2b2   : > { %v2815_v23 = vpop.permute.xlu0 %2814 }
 0x2b3   : > { %2999 = vst.msk [vmem:[%s5259_s12 + $0x54] sm:$0xf] %vm2977_vm2, %v2966_v41  ;;  %v2870_v36 = vmul.f32 %v5235_v15, %v2815_v23  ;;  %v2932_v48 = vadd.f32 %v5246_v54, %v2897_v62 }
 0x2b5   : > { %v2902_v19 = vadd.f32 %v2870_v36, %v5294_v59  ;;  %v2964_v33 = vpack.c.bf16 %v2932_v48, %v2932_v48 }
 0x2b6   : > { %v2807_v47 = vpop.permute.xlu1 %2806 }
 0x2b7   : > { %v2937_v17 = vadd.f32 %v5246_v54, %v2902_v19  ;;  %2997 = vst.msk [vmem:[%s5259_s12 + $0x4c] sm:$0xf] %vm2977_vm2, %v2964_v33  ;;  %v2868_v55 = vmul.f32 %v5235_v15, %v2807_v47 }
 0x2b9   : > { %v2969_v24 = vpack.c.bf16 %v2937_v17, %v2937_v17  ;;  %v2900_v12 = vadd.f32 %v2868_v55, %v5287_v34 }
 0x2ba   : > { %v2827_v0 = vpop.permute.xlu0 %2826 }
 0x2bb   : > { %3002 = vst.msk [vmem:[%s5259_s12 + $0x60] sm:$0xf] %vm2977_vm2, %v2969_v24  ;;  %v2873_v39 = vmul.f32 %v5235_v15, %v2827_v0  ;;  %v2935_v59 = vadd.f32 %v5246_v54, %v2900_v12 }
 0x2bd   : > { %v2905_v40 = vadd.f32 %v2873_v39, %v5307_v4  ;;  %v2967_v29 = vpack.c.bf16 %v2935_v59, %v2935_v59 }
 0x2be   : > { %v2819_v9 = vpop.permute.xlu1 %2818 }
 0x2bf   : > { %v2940_v53 = vadd.f32 %v5246_v54, %v2905_v40  ;;  %3000 = vst.msk [vmem:[%s5259_s12 + $0x58] sm:$0xf] %vm2977_vm2, %v2967_v29  ;;  %v2871_v3 = vmul.f32 %v5235_v15, %v2819_v9 }
 0x2c1   : > { %v2972_v34 = vpack.c.bf16 %v2940_v53, %v2940_v53  ;;  %v2903_v16 = vadd.f32 %v2871_v3, %v5300_v1 }
 0x2c2   : > { %v2839_v20 = vpop.permute.xlu0 %2838 }
 0x2c3   : > { %3005 = vst.msk [vmem:[%s5259_s12 + $0x6c] sm:$0xf] %vm2977_vm2, %v2972_v34  ;;  %v2876_v30 = vmul.f32 %v5235_v15, %v2839_v20  ;;  %v2938_v4 = vadd.f32 %v5246_v54, %v2903_v16 }
 0x2c5   : > { %v2908_v7 = vadd.f32 %v2876_v30, %v5320_v31  ;;  %v2970_v6 = vpack.c.bf16 %v2938_v4, %v2938_v4 }
 0x2c6   : > { %v2831_v25 = vpop.permute.xlu1 %2830 }
 0x2c7   : > { %v2943_v60 = vadd.f32 %v5246_v54, %v2908_v7  ;;  %3003 = vst.msk [vmem:[%s5259_s12 + $0x64] sm:$0xf] %vm2977_vm2, %v2970_v6  ;;  %v2874_v27 = vmul.f32 %v5235_v15, %v2831_v25 }
 0x2c9   : > { %v2975_v1 = vpack.c.bf16 %v2943_v60, %v2943_v60  ;;  %v2906_v22 = vadd.f32 %v2874_v27, %v5313_v51 }
 0x2cb   : > { %3008 = vst.msk [vmem:[%s5259_s12 + $0x78] sm:$0xf] %vm2977_vm2, %v2975_v1  ;;  %v2941_v45 = vadd.f32 %v5246_v54, %v2906_v22 }
 0x2cd   : > { %v2973_v46 = vpack.c.bf16 %v2941_v45, %v2941_v45 }
 0x2ce   : > { %v2843_v56 = vpop.permute.xlu1 %2842 }
 0x2cf   : > { %3006 = vst.msk [vmem:[%s5259_s12 + $0x70] sm:$0xf] %vm2977_vm2, %v2973_v46  ;;  %v2877_v31 = vmul.f32 %v5235_v15, %v2843_v56 }
 0x2d1   : > { %v2909_v2 = vadd.f32 %v2877_v31, %v5326_v8 }
 0x2d3   : > { %v2944_v21 = vadd.f32 %v5246_v54, %v2909_v2 }
 0x2d5   : > { %v2976_v38 = vpack.c.bf16 %v2944_v21, %v2944_v21 }
 0x2d7   : > { %3009 = vst.msk [vmem:[%s5259_s12 + $0x7c] sm:$0xf] %vm2977_vm2, %v2976_v38 }
 0x2d8 PF: > { %s14_s17 = sadd.s32 1, %s3400_s17   ;;  %s5637_s15 = smov %s3396_s16 }
 0x2d9   : > { %p11_p5 = scmp.ge.s32.totalorder %s14_s17, 4   ;;  %s5638_s16 = smov %s5640_s18 }
 0x2db   :  { %13 = sbr.rel (!%p11_p5) target bundleno = 2 (0x2), region = 69 }

// kernel: tpu_custom_call.1
= control target key start
LH: loop header
LB: loop body
LE: loop exit
PB: predicated region body
PF: predicated region fallthrough
CT: control target
= control target key end

     0   :  { %s3431_s15 = smov 0   ;;  %s3433_s16 = smov 0   ;;  %s5469_s0 = inlined_call_operand.vmem [shape: bf16[2,18,18,4], index: 0, kind: input, shape index: {}]   ;;  %s5470_s1 = inlined_call_operand.vmem [shape: f32[9,4], index: 1, kind: input, shape index: {}]   ;;  %s5471_s2 = inlined_call_operand.vmem [shape: f32[4,8], index: 2, kind: input, shape index: {}]   ;;  %s5472_s3 = inlined_call_operand.vmem [shape: f32[1,8], index: 3, kind: input, shape index: {}]   ;;  %s5473_s4 = inlined_call_operand.vmem [shape: bf16[2,16,16,8], index: 4, kind: output, shape index: {}]  }
   0x1   :  { %s3435_s17 = smov 0  }
   0x2 LB: > { %s26_s18 = sadd.s32 1, %s3396_s16  ;;  %p3111_p0 = scmp.ge.s32.totalorder %s3400_s17, 1  ;;  %s3400_s17 = sphi %s3435_s17, %s14_s17   ;;  %s3396_s16 = sphi %s3433_s16, %s5638_s16   ;;  %s3392_s15 = sphi %s3431_s15, %s5637_s15  }
   0x3   : > { %p28_p1 = scmp.ge.s32.totalorder %s26_s18, 2  ;;  %p176_p2 = scmp.lt.s32.totalorder %s3400_s17, 3 }
   0x5   : > { %s5640_s18 = smov (%p28_p1, %s26_s18), 0  ;;  %p177_p3 = pnand %p3111_p0, %p176_p2 }
   0x7   : > { %180 = sbr.rel (%p177_p3) target bundleno = 728 (0x2d8), region = 36 }
   0xc   : > { %p207_p4 = scmp.lt.s32.totalorder %s3392_s15, 1  ;;  %v3402_v0 = vmov 0   ;;  %v224_v1 = vld [vmem:[%s5470_s1] sm:$0xff]  ;;  %vm455_vm0 = vcmask 1046528   ;;  %vm697_vm1 = vcmask 1045504   ;;  %vm2977_vm2 = vcmask 60416  }
   0xd   : > { %3364 = vset.pattern.permute.xlu2 %v3402_v0  ;;  %3363 = vset.pattern.permute.xlu1 %v3402_v0  ;;  %v3455_v2 = vperm.slane %v224_v1, 0  ;;  %v3457_v3 = vperm.slane %v224_v1, 1  ;;  %v3464_v4 = vperm.slane %v224_v1, 2  ;;  %v3466_v5 = vperm.slane %v224_v1, 3  ;;  %v3517_v34 = vld [vmem:[%s5470_s1 + $0x8] ss:$0 sm:$0xff] }
   0xe   : > { %3362 = vset.pattern.permute.xlu0 %v3402_v0  ;;  %s5642_s15 = smov (!%p207_p4, %s3392_s15), 1  ;;  %v3468_v6 = vperm.slane %v224_v1, 4  ;;  %v3472_v9 = vperm.slane %v224_v1, 5  ;;  %v3475_v11 = vperm.slane %v224_v1, 6  ;;  %v3477_v12 = vperm.slane %v224_v1, 7 }
   0xf   : > { %s3333_s21 = smul.u32 216, %s5642_s15  ;;  %s3213_s9 = sshll.u32 %s5642_s15, 7 }
  0x10   : > { %s5259_s12 = scalar_lea.vmem %s5473_s4, %s3213_s9 }
  0x11   : > { %s3462_s24 = scalar_lea.vmem %s5469_s0, %s3333_s21 }
  0x12   : > { %v3310_v7 = vld [vmem:[%s3462_s24 + $0x18] sm:$0xff]   ;;  %v3121_v8 = vld [vmem:[%s3462_s24 + $0x24] sm:$0xff]   ;;  %v3326_v10 = vld [vmem:[%s3462_s24 + $0x30] sm:$0xff]  }
  0x13   : > { %v3479_v13 = vunpack.c.l.bf16 %v3310_v7  ;;  %v3481_v14 = vunpack.c.h.bf16 %v3310_v7  ;;  %v900_v15 = vunpack.c.l.bf16 %v3121_v8  ;;  %v3483_v16 = vunpack.c.h.bf16 %v3121_v8  ;;  %v232_v17 = vld [vmem:[%s3462_s24 + $0xc] sm:$0xff]  }
  0x14   : > { %v3486_v18 = vunpack.c.l.bf16 %v3326_v10  ;;  %v3488_v19 = vunpack.c.h.bf16 %v3326_v10  ;;  %v280_v20 = vunpack.c.l.bf16 %v232_v17  ;;  %v3490_v21 = vunpack.c.h.bf16 %v232_v17 }
  0x15   : > { %v330_v22 = vmul.f32 %v3479_v13, %v3455_v2  ;;  %v365_v23 = vmul.f32 %v3479_v13, %v3457_v3  ;;  %v3498_v24 = vmul.f32 %v3481_v14, %v3457_v3  ;;  %v607_v25 = vmul.f32 %v3479_v13, %v3464_v4 }
  0x16   : > { %v3504_v26 = vmul.f32 %v3481_v14, %v3464_v4  ;;  %v947_v27 = vmul.f32 %v3466_v5, %v900_v15  ;;  %v1014_v28 = vmul.f32 %v3468_v6, %v900_v15  ;;  %v3510_v29 = vmul.f32 %v3468_v6, %v3483_v16 }
  0x17   : > { %v466_v30 = vrot.slane %v365_v23, 1  ;;  %v467_v31 = vrot.slane %v3498_v24, 1  ;;  %v708_v32 = vrot.slane %v607_v25, 2  ;;  %v1255_v33 = vmul.f32 %v3472_v9, %v900_v15  ;;  %v3120_v24 = vld [vmem:[%s3462_s24 + $0x20] sm:$0x1] }
  0x18   : > { %v709_v35 = vrot.slane %v3504_v26, 2  ;;  %v1114_v36 = vrot.slane %v1014_v28, 1  ;;  %v1115_v37 = vrot.slane %v3510_v29, 1  ;;  %v3523_v38 = vmul.f32 %v3472_v9, %v3483_v16  ;;  %v3215_v28 = vld [vmem:[%s3462_s24] sm:$0xff]  }
  0x19   : > { %v468_v39 = vsel %vm455_vm0, %v466_v30, %v467_v31  ;;  %v1355_v40 = vrot.slane %v1255_v33, 2  ;;  %v1594_v41 = vmul.f32 %v3486_v18, %v3475_v11  ;;  %v1661_v42 = vmul.f32 %v3486_v18, %v3477_v12 }
  0x1a   : > { %v572_v43 = vadd.f32 %v468_v39, %v330_v22  ;;  %v710_v44 = vsel %vm697_vm1, %v708_v32, %v709_v35  ;;  %v1116_v45 = vsel %vm455_vm0, %v1114_v36, %v1115_v37  ;;  %v5488_v46 = vrot.slane %v3523_v38, 2 }
  0x1b   : > { %v3541_v47 = vmul.f32 %v3488_v19, %v3477_v12  ;;  %v1761_v48 = vrot.slane %v1661_v42, 1  ;;  %v1902_v49 = vmul.f32 %v3517_v34, %v3486_v18  ;;  %v3547_v50 = vmul.f32 %v3517_v34, %v3488_v19 }
  0x1c   : > { %v814_v51 = vadd.f32 %v710_v44, %v572_v43  ;;  %v1357_v52 = vsel %vm697_vm1, %v1355_v40, %v5488_v46  ;;  %v328_v53 = vmul.f32 %v3455_v2, %v280_v20  ;;  %v362_v54 = vmul.f32 %v3457_v3, %v280_v20 }
  0x1d   : > { %v5487_v55 = vrot.slane %v3541_v47, 1  ;;  %v2002_v56 = vrot.slane %v1902_v49, 2  ;;  %v5484_v57 = vrot.slane %v3547_v50, 2  ;;  %v3558_v58 = vmul.f32 %v3457_v3, %v3490_v21 }
  0x1e   : > { %v979_v59 = vadd.f32 %v947_v27, %v814_v51  ;;  %v461_v60 = vrot.slane %v362_v54, 1  ;;  %v604_v61 = vmul.f32 %v3464_v4, %v280_v20  ;;  %v3563_v62 = vmul.f32 %v3464_v4, %v3490_v21  ;;  %v3166_v20 = vld [vmem:[%s3462_s24 + $0x24] sm:$0xff]  }
  0x1f   : > { %v1763_v63 = vsel %vm455_vm0, %v1761_v48, %v5487_v55  ;;  %v2004_v0 = vsel %vm697_vm1, %v2002_v56, %v5484_v57  ;;  %v5483_v1 = vrot.slane %v3558_v58, 1  ;;  %v945_v7 = vmul.f32 %v3479_v13, %v3466_v5 }
  0x20   : > { %v1220_v8 = vadd.f32 %v1116_v45, %v979_v59  ;;  %v703_v10 = vrot.slane %v604_v61, 2  ;;  %v5481_v15 = vrot.slane %v3563_v62, 2  ;;  %v1011_v17 = vmul.f32 %v3479_v13, %v3468_v6 }
  0x21   : > { %v463_v22 = vsel %vm455_vm0, %v461_v60, %v5483_v1  ;;  %v3583_v23 = vmul.f32 %v3481_v14, %v3468_v6  ;;  %v1252_v25 = vmul.f32 %v3479_v13, %v3472_v9  ;;  %v3589_v27 = vmul.f32 %v3481_v14, %v3472_v9  ;;  %v234_v1 = vld [vmem:[%s3462_s24 + $0x14] sm:$0x1] }
  0x22   : > { %v1461_v30 = vadd.f32 %v1357_v52, %v1220_v8  ;;  %v570_v32 = vadd.f32 %v463_v22, %v328_v53  ;;  %v705_v33 = vsel %vm697_vm1, %v703_v10, %v5481_v15  ;;  %v1109_v36 = vrot.slane %v1011_v17, 1 }
  0x23   : > { %v5479_v39 = vrot.slane %v3583_v23, 1  ;;  %v1350_v40 = vrot.slane %v1252_v25, 2  ;;  %v5478_v42 = vrot.slane %v3589_v27, 2  ;;  %v1544_v43 = vunpack.c.l.bf16 %v3166_v20 }
  0x24   : > { %v1626_v44 = vadd.f32 %v1594_v41, %v1461_v30  ;;  %v812_v45 = vadd.f32 %v705_v33, %v570_v32  ;;  %v3597_v48 = vunpack.c.h.bf16 %v3166_v20  ;;  %v3216_v49 = vunpack.c.l.bf16 %v3215_v28  ;;  %v3115_v20 = vld [vmem:[%s3462_s24 + $0xc] sm:$0xff]  }
  0x25   : > { %v1111_v51 = vsel %vm455_vm0, %v1109_v36, %v5479_v39  ;;  %v1352_v52 = vsel %vm697_vm1, %v1350_v40, %v5478_v42  ;;  %v1592_v53 = vmul.f32 %v3475_v11, %v1544_v43  ;;  %v1658_v54 = vmul.f32 %v3477_v12, %v1544_v43 }
  0x26   : > { %v1867_v56 = vadd.f32 %v1763_v63, %v1626_v44  ;;  %v977_v59 = vadd.f32 %v945_v7, %v812_v45  ;;  %v3609_v41 = vmul.f32 %v3477_v12, %v3597_v48  ;;  %v1899_v60 = vmul.f32 %v3517_v34, %v1544_v43 }
  0x27   : > { %v1756_v61 = vrot.slane %v1658_v54, 1  ;;  %v3614_v8 = vmul.f32 %v3517_v34, %v3597_v48  ;;  %v3616_v10 = vunpack.c.h.bf16 %v3215_v28  ;;  %v326_v17 = vmul.f32 %v3216_v49, %v3455_v2 }
  0x28   : > { %v3620_v22 = vadd.f32 %v2004_v0, %v1867_v56  ;;  %v1218_v63 = vadd.f32 %v1111_v51, %v977_v59  ;;  %v5477_v7 = vrot.slane %v3609_v41, 1  ;;  %v1997_v25 = vrot.slane %v1899_v60, 2 }
  0x29   : > { %v5476_v30 = vrot.slane %v3614_v8, 2  ;;  %v359_v32 = vmul.f32 %v3216_v49, %v3457_v3  ;;  %v3627_v33 = vmul.f32 %v3616_v10, %v3457_v3  ;;  %v601_v28 = vmul.f32 %v3216_v49, %v3464_v4 }
  0x2a   : > { %2160 = vperm.xlu2 %3364, %v3620_v22   ;;  %v1459_v36 = vadd.f32 %v1352_v52, %v1218_v63  ;;  %v1758_v0 = vsel %vm455_vm0, %v1756_v61, %v5477_v7  ;;  %v3636_v40 = vmul.f32 %v3616_v10, %v3464_v4  ;;  %v894_v43 = vunpack.c.l.bf16 %v3115_v20  ;;  %v3123_v7 = vld [vmem:[%s3462_s24 + $0x2c] sm:$0x1] }
  0x2b   : > { %v1999_v44 = vsel %vm697_vm1, %v1997_v25, %v5476_v30  ;;  %v456_v45 = vrot.slane %v359_v32, 1  ;;  %v5474_v51 = vrot.slane %v3627_v33, 1  ;;  %v698_v49 = vrot.slane %v601_v28, 2 }
  0x2c   : > { %v1624_v54 = vadd.f32 %v1592_v53, %v1459_v36  ;;  %v5475_v52 = vrot.slane %v3636_v40, 2  ;;  %v3643_v56 = vunpack.c.h.bf16 %v3115_v20  ;;  %v943_v59 = vmul.f32 %v3466_v5, %v894_v43 }
  0x2d   : > { %v458_v60 = vsel %vm455_vm0, %v456_v45, %v5474_v51  ;;  %v1008_v61 = vmul.f32 %v3468_v6, %v894_v43  ;;  %v1249_v63 = vmul.f32 %v3472_v9, %v894_v43  ;;  %v1590_v25 = vmul.f32 %v3479_v13, %v3475_v11 }
  0x2e   : > { %v1865_v32 = vadd.f32 %v1758_v0, %v1624_v54  ;;  %v568_v53 = vadd.f32 %v458_v60, %v326_v17  ;;  %v700_v20 = vsel %vm697_vm1, %v698_v49, %v5475_v52  ;;  %v3658_v28 = vmul.f32 %v3468_v6, %v3643_v56  ;;  %v237_v17 = vld [vmem:[%s3462_s24 + $0x20] sm:$0x1] }
  0x2f   : > { %v1104_v36 = vrot.slane %v1008_v61, 1  ;;  %v3662_v45 = vmul.f32 %v3472_v9, %v3643_v56  ;;  %v1345_v51 = vrot.slane %v1249_v63, 2  ;;  %v1655_v43 = vmul.f32 %v3479_v13, %v3477_v12 }
  0x30   : > { %v3667_v0 = vadd.f32 %v1999_v44, %v1865_v32  ;;  %v810_v54 = vadd.f32 %v700_v20, %v568_v53  ;;  %v5480_v49 = vrot.slane %v3658_v28, 1  ;;  %v3672_v60 = vmul.f32 %v3481_v14, %v3477_v12 }
  0x31   : > { %v5482_v61 = vrot.slane %v3662_v45, 2  ;;  %v1751_v52 = vrot.slane %v1655_v43, 1  ;;  %v1896_v63 = vmul.f32 %v3517_v34, %v3479_v13  ;;  %v3679_v30 = vmul.f32 %v3517_v34, %v3481_v14  ;;  %v3171_v43 = vld [vmem:[%s3462_s24 + $0x38] sm:$0x1] }
  0x32   : > { %2150 = vperm.xlu1 %3363, %v3667_v0   ;;  %v975_v44 = vadd.f32 %v943_v59, %v810_v54  ;;  %v1106_v32 = vsel %vm455_vm0, %v1104_v36, %v5480_v49  ;;  %v5485_v53 = vrot.slane %v3672_v60, 1  ;;  %v285_v20 = vunpack.c.l.bf16 %v237_v17 }
  0x33   : > { %v1347_v13 = vsel %vm697_vm1, %v1345_v51, %v5482_v61  ;;  %v1992_v42 = vrot.slane %v1896_v63, 2  ;;  %v5486_v39 = vrot.slane %v3679_v30, 2  ;;  %v331_v59 = vmul.f32 %v3481_v14, %v3455_v2 }
  0x34   : > { %v1216_v54 = vadd.f32 %v1106_v32, %v975_v44  ;;  %v1753_v36 = vsel %vm455_vm0, %v1751_v52, %v5485_v53  ;;  %v367_v49 = vmul.f32 %v3457_v3, %v285_v20  ;;  %v609_v17 = vmul.f32 %v3464_v4, %v285_v20 }
  0x35   : > { %v1994_v15 = vsel %vm697_vm1, %v1992_v42, %v5486_v39  ;;  %v902_v51 = vunpack.c.l.bf16 %v3123_v7  ;;  %v948_v63 = vmul.f32 %v3466_v5, %v3483_v16  ;;  %v1549_v61 = vunpack.c.l.bf16 %v3171_v43 }
  0x36   : > { %v1457_v57 = vadd.f32 %v1347_v13, %v1216_v54  ;;  %v469_v44 = vrot.slane %v367_v49, 1  ;;  %v711_v32 = vrot.slane %v609_v17, 2  ;;  %v1595_v52 = vmul.f32 %v3488_v19, %v3475_v11 }
  0x37   : > { %v1016_v53 = vmul.f32 %v3468_v6, %v902_v51  ;;  %v1257_v20 = vmul.f32 %v3472_v9, %v902_v51  ;;  %v1663_v42 = vmul.f32 %v3477_v12, %v1549_v61  ;;  %v1904_v7 = vmul.f32 %v3517_v34, %v1549_v61 }
  0x38   : > { %v1622_v39 = vadd.f32 %v1590_v25, %v1457_v57  ;;  %v470_v16 = vsel %vm455_vm0, %v467_v31, %v469_v44  ;;  %v712_v49 = vsel %vm697_vm1, %v709_v35, %v711_v32  ;;  %v282_v43 = vunpack.c.l.bf16 %v234_v1  ;;  %v3168_v25 = vld [vmem:[%s3462_s24 + $0x2c] sm:$0x1] }
  0x39   : > { %v573_v13 = vadd.f32 %v470_v16, %v331_v59  ;;  %v1117_v54 = vrot.slane %v1016_v53, 1  ;;  %v1358_v17 = vrot.slane %v1257_v20, 2  ;;  %v1764_v51 = vrot.slane %v1663_v42, 1  ;;  %v231_v59 = vld [vmem:[%s3462_s24 + $0x8] sm:$0x1] }
  0x3a   : > { %v1863_v55 = vadd.f32 %v1753_v36, %v1622_v39  ;;  %v2005_v46 = vrot.slane %v1904_v7, 2  ;;  %v329_v61 = vmul.f32 %v3455_v2, %v3490_v21  ;;  %v364_v57 = vmul.f32 %v3457_v3, %v282_v43 }
  0x3b   : > { %v815_v31 = vadd.f32 %v712_v49, %v573_v13  ;;  %v1118_v26 = vsel %vm455_vm0, %v1115_v37, %v1117_v54  ;;  %v5540_v35 = vrot.slane %v3523_v38, 2  ;;  %v5541_v53 = vrot.slane %v3541_v47, 1 }
  0x3c   : > { %v3732_v36 = vadd.f32 %v1994_v15, %v1863_v55  ;;  %v5542_v21 = vrot.slane %v3547_v50, 2  ;;  %v464_v32 = vrot.slane %v364_v57, 1  ;;  %v606_v29 = vmul.f32 %v3464_v4, %v282_v43 }
  0x3d   : > { %v1359_v1 = vsel %vm697_vm1, %v5540_v35, %v1358_v17  ;;  %v1765_v39 = vsel %vm455_vm0, %v5541_v53, %v1764_v51  ;;  %v980_v20 = vadd.f32 %v948_v63, %v815_v31  ;;  %v899_v37 = vunpack.c.l.bf16 %v3120_v24 }
  0x3e   : > { %v2006_v44 = vsel %vm697_vm1, %v5542_v21, %v2005_v46  ;;  %v946_v38 = vmul.f32 %v3481_v14, %v3466_v5  ;;  %v1546_v42 = vunpack.c.l.bf16 %v3168_v25  ;;  %2140 = vperm.xlu0 %3362, %v3732_v36   ;;  %v5543_v47 = vrot.slane %v3558_v58, 1 }
  0x3f   : > { %v706_v15 = vrot.slane %v606_v29, 2  ;;  %v1593_v50 = vmul.f32 %v3475_v11, %v3597_v48  ;;  %v279_v46 = vunpack.c.l.bf16 %v231_v59  ;;  %v1221_v7 = vadd.f32 %v1118_v26, %v980_v20  ;;  %v3117_v26 = vld [vmem:[%s3462_s24 + $0x14] sm:$0x1] }
  0x40   : > { %v465_v55 = vsel %vm455_vm0, %v5543_v47, %v464_v32  ;;  %v1013_v63 = vmul.f32 %v3468_v6, %v899_v37  ;;  %v1254_v49 = vmul.f32 %v3472_v9, %v899_v37  ;;  %v5544_v43 = vrot.slane %v3563_v62, 2 }
  0x41   : > { %v571_v16 = vadd.f32 %v465_v55, %v329_v61  ;;  %v1660_v58 = vmul.f32 %v3477_v12, %v1546_v42  ;;  %v1901_v54 = vmul.f32 %v3517_v34, %v1546_v42  ;;  %v327_v48 = vmul.f32 %v3616_v10, %v3455_v2 }
  0x42   : > { %v707_v13 = vsel %vm697_vm1, %v5544_v43, %v706_v15  ;;  %v1462_v17 = vadd.f32 %v1359_v1, %v1221_v7  ;;  %v1112_v57 = vrot.slane %v1013_v63, 1  ;;  %v1353_v61 = vrot.slane %v1254_v49, 2  ;;  %v3165_v1 = vld [vmem:[%s3462_s24 + $0x20] sm:$0x1] }
  0x43   : > { %v813_v51 = vadd.f32 %v707_v13, %v571_v16  ;;  %v1759_v24 = vrot.slane %v1660_v58, 1  ;;  %v2000_v25 = vrot.slane %v1901_v54, 2  ;;  %v361_v31 = vmul.f32 %v3457_v3, %v279_v46 }
  0x44   : > { %v603_v62 = vmul.f32 %v3464_v4, %v279_v46  ;;  %v1627_v35 = vadd.f32 %v1595_v52, %v1462_v17  ;;  %v5545_v59 = vrot.slane %v3583_v23, 1  ;;  %v5546_v32 = vrot.slane %v3589_v27, 2 }
  0x45   : > { %v978_v53 = vadd.f32 %v946_v38, %v813_v51  ;;  %v5547_v29 = vrot.slane %v3609_v41, 1  ;;  %v5548_v37 = vrot.slane %v3614_v8, 2  ;;  %v459_v47 = vrot.slane %v361_v31, 1 }
  0x46   : > { %v1113_v21 = vsel %vm455_vm0, %v5545_v59, %v1112_v57  ;;  %v1354_v10 = vsel %vm697_vm1, %v5546_v32, %v1353_v61  ;;  %v701_v52 = vrot.slane %v603_v62, 2  ;;  %v1868_v38 = vadd.f32 %v1765_v39, %v1627_v35 }
  0x47   : > { %v1760_v20 = vsel %vm455_vm0, %v5547_v29, %v1759_v24  ;;  %v2001_v42 = vsel %vm697_vm1, %v5548_v37, %v2000_v25  ;;  %v1219_v55 = vadd.f32 %v1113_v21, %v978_v53  ;;  %v896_v23 = vunpack.c.l.bf16 %v3117_v26  ;;  %v3327_v26 = vld [vmem:[%s3462_s24 + $0x48] sm:$0xff]  }
  0x48   : > { %v944_v15 = vmul.f32 %v3466_v5, %v3643_v56  ;;  %v5549_v27 = vrot.slane %v3627_v33, 1  ;;  %v5550_v41 = vrot.slane %v3636_v40, 2  ;;  %v1543_v16 = vunpack.c.l.bf16 %v3165_v1 }
  0x49   : > { %v1591_v8 = vmul.f32 %v3481_v14, %v3475_v11  ;;  %v3781_v63 = vadd.f32 %v2006_v44, %v1868_v38  ;;  %v1460_v39 = vadd.f32 %v1354_v10, %v1219_v55  ;;  %v1010_v43 = vmul.f32 %v3468_v6, %v896_v23 }
  0x4a   : > { %v460_v46 = vsel %vm455_vm0, %v5549_v27, %v459_v47  ;;  %v702_v7 = vsel %vm697_vm1, %v5550_v41, %v701_v52  ;;  %v1251_v56 = vmul.f32 %v3472_v9, %v896_v23  ;;  %v1657_v33 = vmul.f32 %v3477_v12, %v1543_v16 }
  0x4b   : > { %v569_v49 = vadd.f32 %v460_v46, %v327_v48  ;;  %v1898_v13 = vmul.f32 %v3517_v34, %v1543_v16  ;;  %v334_v40 = vmul.f32 %v3486_v18, %v3455_v2  ;;  %2165 = vperm.xlu2 %3364, %v3781_v63   ;;  %v1625_v14 = vadd.f32 %v1593_v50, %v1460_v39  ;;  %v3127_v50 = vld [vmem:[%s3462_s24 + $0x3c] sm:$0xff]  }
  0x4c   : > { %v1107_v58 = vrot.slane %v1010_v43, 1  ;;  %v371_v54 = vmul.f32 %v3486_v18, %v3457_v3  ;;  %v1348_v48 = vrot.slane %v1251_v56, 2  ;;  %v1754_v17 = vrot.slane %v1657_v33, 1 }
  0x4d   : > { %v811_v44 = vadd.f32 %v702_v7, %v569_v49  ;;  %v1995_v51 = vrot.slane %v1898_v13, 2  ;;  %v3794_v57 = vmul.f32 %v3488_v19, %v3457_v3  ;;  %v1866_v61 = vadd.f32 %v1760_v20, %v1625_v14 }
  0x4e   : > { %v5551_v25 = vrot.slane %v3658_v28, 1  ;;  %v476_v62 = vrot.slane %v371_v54, 1  ;;  %v5552_v35 = vrot.slane %v3662_v45, 2  ;;  %v5553_v59 = vrot.slane %v3672_v60, 1 }
  0x4f   : > { %v976_v24 = vadd.f32 %v944_v15, %v811_v44  ;;  %v5554_v32 = vrot.slane %v3679_v30, 2  ;;  %v477_v1 = vrot.slane %v3794_v57, 1  ;;  %v3811_v28 = vadd.f32 %v2001_v42, %v1866_v61  ;;  %v239_v44 = vld [vmem:[%s3462_s24 + $0x24] sm:$0xff]   ;;  %v3126_v61 = vld [vmem:[%s3462_s24 + $0x38] sm:$0x1] }
  0x50   : > { %v1108_v31 = vsel %vm455_vm0, %v5551_v25, %v1107_v58  ;;  %v1349_v53 = vsel %vm697_vm1, %v5552_v35, %v1348_v48  ;;  %v1755_v21 = vsel %vm455_vm0, %v5553_v59, %v1754_v17  ;;  %v613_v20 = vmul.f32 %v3486_v18, %v3464_v4 }
  0x51   : > { %v1996_v10 = vsel %vm697_vm1, %v5554_v32, %v1995_v51  ;;  %v1217_v29 = vadd.f32 %v1108_v31, %v976_v24  ;;  %v3817_v45 = vmul.f32 %v3488_v19, %v3464_v4  ;;  %v478_v60 = vsel %vm455_vm0, %v476_v62, %v477_v1  ;;  %2155 = vperm.xlu1 %3363, %v3811_v28   ;;  %v240_v51 = vld [vmem:[%s3462_s24 + $0x2c] sm:$0x1] }
  0x52   : > { %v906_v37 = vunpack.c.l.bf16 %v3127_v50  ;;  %v3822_v30 = vunpack.c.h.bf16 %v3127_v50  ;;  %v3824_v47 = vunpack.c.l.bf16 %v3327_v26  ;;  %v576_v52 = vadd.f32 %v478_v60, %v334_v40 }
  0x53   : > { %v1458_v42 = vadd.f32 %v1349_v53, %v1217_v29  ;;  %v718_v38 = vrot.slane %v613_v20, 2  ;;  %v719_v55 = vrot.slane %v3817_v45, 2  ;;  %v3842_v39 = vunpack.c.h.bf16 %v3327_v26 }
  0x54   : > { %v951_v23 = vmul.f32 %v3466_v5, %v906_v37  ;;  %v1020_v15 = vmul.f32 %v3468_v6, %v906_v37  ;;  %v3832_v27 = vmul.f32 %v3468_v6, %v3822_v30  ;;  %v1261_v46 = vmul.f32 %v3472_v9, %v906_v37 }
  0x55   : > { %v1623_v41 = vadd.f32 %v1591_v8, %v1458_v42  ;;  %v720_v7 = vsel %vm697_vm1, %v718_v38, %v719_v55  ;;  %v3840_v16 = vmul.f32 %v3472_v9, %v3822_v30  ;;  %v1598_v40 = vmul.f32 %v3824_v47, %v3475_v11 }
  0x56   : > { %v818_v49 = vadd.f32 %v720_v7, %v576_v52  ;;  %v1124_v43 = vrot.slane %v1020_v15, 1  ;;  %v1125_v56 = vrot.slane %v3832_v27, 1  ;;  %v1365_v33 = vrot.slane %v1261_v46, 2  ;;  %v3320_v27 = vld [vmem:[%s3462_s24 + $0x60] sm:$0xff]  }
  0x57   : > { %v1864_v13 = vadd.f32 %v1755_v21, %v1623_v41  ;;  %v5491_v8 = vrot.slane %v3840_v16, 2  ;;  %v1667_v14 = vmul.f32 %v3824_v47, %v3477_v12  ;;  %v3856_v48 = vmul.f32 %v3842_v39, %v3477_v12 }
  0x58   : > { %v983_v58 = vadd.f32 %v951_v23, %v818_v49  ;;  %v1126_v54 = vsel %vm455_vm0, %v1124_v43, %v1125_v56  ;;  %v1908_v17 = vmul.f32 %v3517_v34, %v3824_v47  ;;  %v3869_v62 = vmul.f32 %v3517_v34, %v3842_v39  ;;  %v3173_v49 = vld [vmem:[%s3462_s24 + $0x3c] sm:$0xff]  }
  0x59   : > { %v3862_v24 = vadd.f32 %v1996_v10, %v1864_v13  ;;  %v1367_v25 = vsel %vm697_vm1, %v1365_v33, %v5491_v8  ;;  %v1771_v31 = vrot.slane %v1667_v14, 1  ;;  %v5490_v26 = vrot.slane %v3856_v48, 1 }
  0x5a   : > { %v1224_v50 = vadd.f32 %v1126_v54, %v983_v58  ;;  %v2012_v35 = vrot.slane %v1908_v17, 2  ;;  %v287_v53 = vunpack.c.h.bf16 %v239_v44  ;;  %v5489_v59 = vrot.slane %v3869_v62, 2 }
  0x5b   : > { %2145 = vperm.xlu0 %3362, %v3862_v24   ;;  %v288_v21 = vunpack.c.l.bf16 %v240_v51  ;;  %v905_v32 = vunpack.c.l.bf16 %v3126_v61  ;;  %v950_v10 = vmul.f32 %v3488_v19, %v3466_v5  ;;  %v1773_v20 = vsel %vm455_vm0, %v1771_v31, %v5490_v26  ;;  %v3174_v61 = vld [vmem:[%s3462_s24 + $0x44] sm:$0x1] }
  0x5c   : > { %v1465_v29 = vadd.f32 %v1367_v25, %v1224_v50  ;;  %v333_v60 = vmul.f32 %v3455_v2, %v287_v53  ;;  %v369_v37 = vmul.f32 %v3457_v3, %v287_v53  ;;  %v2014_v42 = vsel %vm697_vm1, %v2012_v35, %v5489_v59 }
  0x5d   : > { %v370_v52 = vmul.f32 %v3457_v3, %v288_v21  ;;  %v611_v38 = vmul.f32 %v3464_v4, %v287_v53  ;;  %v612_v23 = vmul.f32 %v3464_v4, %v288_v21  ;;  %v1018_v41 = vmul.f32 %v3488_v19, %v3468_v6 }
  0x5e   : > { %v1630_v15 = vadd.f32 %v1598_v40, %v1465_v29  ;;  %v472_v46 = vrot.slane %v369_v37, 1  ;;  %v1019_v7 = vmul.f32 %v3468_v6, %v905_v32  ;;  %v1259_v14 = vmul.f32 %v3488_v19, %v3472_v9 }
  0x5f   : > { %v474_v43 = vrot.slane %v370_v52, 1  ;;  %v714_v33 = vrot.slane %v611_v38, 2  ;;  %v716_v13 = vrot.slane %v612_v23, 2  ;;  %v1120_v54 = vrot.slane %v1018_v41, 1 }
  0x60   : > { %v1871_v58 = vadd.f32 %v1773_v20, %v1630_v15  ;;  %v1122_v17 = vrot.slane %v1019_v7, 1  ;;  %v1260_v51 = vmul.f32 %v3472_v9, %v905_v32  ;;  %v1361_v31 = vrot.slane %v1259_v14, 2 }
  0x61   : > { %v475_v40 = vsel %vm455_vm0, %v472_v46, %v474_v43  ;;  %v717_v25 = vsel %vm697_vm1, %v714_v33, %v716_v13  ;;  %v1551_v50 = vunpack.c.h.bf16 %v3173_v49  ;;  %v1552_v37 = vunpack.c.l.bf16 %v3174_v61 }
  0x62   : > { %v3897_v35 = vadd.f32 %v2014_v42, %v1871_v58  ;;  %v575_v53 = vadd.f32 %v475_v40, %v333_v60  ;;  %v1123_v21 = vsel %vm455_vm0, %v1120_v54, %v1122_v17  ;;  %v1363_v29 = vrot.slane %v1260_v51, 2 }
  0x63   : > { %v1597_v20 = vmul.f32 %v3475_v11, %v1551_v50  ;;  %v1665_v52 = vmul.f32 %v3477_v12, %v1551_v50  ;;  %v1906_v32 = vmul.f32 %v3517_v34, %v1551_v50  ;;  %v286_v15 = vunpack.c.l.bf16 %v239_v44 }
  0x64   : > { %2180 = vperm.xlu2 %3364, %v3897_v35   ;;  %v817_v38 = vadd.f32 %v717_v25, %v575_v53  ;;  %v1364_v23 = vsel %vm697_vm1, %v1361_v31, %v1363_v29  ;;  %v949_v42 = vmul.f32 %v3486_v18, %v3466_v5  ;;  %v1666_v60 = vmul.f32 %v3477_v12, %v1552_v37 }
  0x65   : > { %v1767_v41 = vrot.slane %v1665_v52, 1  ;;  %v1907_v7 = vmul.f32 %v3517_v34, %v1552_v37  ;;  %v2008_v43 = vrot.slane %v1906_v32, 2  ;;  %v332_v14 = vmul.f32 %v3455_v2, %v286_v15 }
  0x66   : > { %v982_v13 = vadd.f32 %v950_v10, %v817_v38  ;;  %v368_v58 = vmul.f32 %v3457_v3, %v286_v15  ;;  %v610_v17 = vmul.f32 %v3464_v4, %v286_v15  ;;  %v1769_v51 = vrot.slane %v1666_v60, 1  ;;  %v3919_v38 = vld [vmem:[%s3462_s24 + $0x3c] sm:$0xff]   ;;  %v246_v15 = vld [vmem:[%s3462_s24 + $0x44] sm:$0x1] }
  0x67   : > { %v2010_v44 = vrot.slane %v1907_v7, 2  ;;  %v1017_v61 = vmul.f32 %v3486_v18, %v3468_v6  ;;  %v1258_v40 = vmul.f32 %v3486_v18, %v3472_v9  ;;  %v1550_v53 = vunpack.c.l.bf16 %v3173_v49 }
  0x68   : > { %v1223_v25 = vadd.f32 %v1123_v21, %v982_v13  ;;  %v471_v50 = vrot.slane %v368_v58, 1  ;;  %v713_v10 = vrot.slane %v610_v17, 2  ;;  %v1770_v29 = vsel %vm455_vm0, %v1767_v41, %v1769_v51  ;;  %v3132_v21 = vld [vmem:[%s3462_s24 + $0x50] sm:$0x1] }
  0x69   : > { %v2011_v37 = vsel %vm697_vm1, %v2008_v43, %v2010_v44  ;;  %v1119_v52 = vrot.slane %v1017_v61, 1  ;;  %v1360_v32 = vrot.slane %v1258_v40, 2  ;;  %v1596_v18 = vmul.f32 %v3475_v11, %v1550_v53 }
  0x6a   : > { %v1464_v60 = vadd.f32 %v1364_v23, %v1223_v25  ;;  %v473_v7 = vsel %vm455_vm0, %v471_v50, %v472_v46  ;;  %v715_v59 = vsel %vm697_vm1, %v713_v10, %v714_v33  ;;  %v1664_v17 = vmul.f32 %v3477_v12, %v1550_v53 }
  0x6b   : > { %v574_v13 = vadd.f32 %v473_v7, %v332_v14  ;;  %v1121_v49 = vsel %vm455_vm0, %v1119_v52, %v1120_v54  ;;  %v1362_v58 = vsel %vm697_vm1, %v1360_v32, %v1361_v31  ;;  %v1905_v44 = vmul.f32 %v3517_v34, %v1550_v53 }
  0x6c   : > { %v1629_v51 = vadd.f32 %v1597_v20, %v1464_v60  ;;  %v293_v61 = vunpack.c.h.bf16 %v3919_v38  ;;  %v294_v23 = vunpack.c.l.bf16 %v246_v15  ;;  %v1766_v46 = vrot.slane %v1664_v17, 1  ;;  %v3179_v60 = vld [vmem:[%s3462_s24 + $0x54] sm:$0xff]  }
  0x6d   : > { %v816_v40 = vadd.f32 %v715_v59, %v574_v13  ;;  %v911_v33 = vunpack.c.l.bf16 %v3132_v21  ;;  %v954_v25 = vmul.f32 %v3842_v39, %v3466_v5  ;;  %v2007_v50 = vrot.slane %v1905_v44, 2 }
  0x6e   : > { %v1870_v14 = vadd.f32 %v1770_v29, %v1629_v51  ;;  %v337_v54 = vmul.f32 %v3455_v2, %v293_v61  ;;  %v3935_v31 = vmul.f32 %v3457_v3, %v293_v61  ;;  %v1768_v10 = vsel %vm455_vm0, %v1766_v46, %v1767_v41  ;;  %v3180_v51 = vld [vmem:[%s3462_s24 + $0x5c] sm:$0x1] }
  0x6f   : > { %v981_v20 = vadd.f32 %v949_v42, %v816_v40  ;;  %v376_v53 = vmul.f32 %v3457_v3, %v294_v23  ;;  %v3940_v59 = vmul.f32 %v3464_v4, %v293_v61  ;;  %v2009_v32 = vsel %vm697_vm1, %v2007_v50, %v2008_v43 }
  0x70   : > { %v3942_v52 = vadd.f32 %v2011_v37, %v1870_v14  ;;  %v482_v29 = vrot.slane %v3935_v31, 1  ;;  %v618_v15 = vmul.f32 %v3464_v4, %v294_v23  ;;  %v1024_v41 = vmul.f32 %v3842_v39, %v3468_v6 }
  0x71   : > { %v1222_v7 = vadd.f32 %v1121_v49, %v981_v20  ;;  %v484_v21 = vrot.slane %v376_v53, 1  ;;  %v724_v42 = vrot.slane %v3940_v59, 2  ;;  %v1025_v37 = vmul.f32 %v3468_v6, %v911_v33 }
  0x72   : > { %5555 = vst [vmem:[#allocation2_spill] sm:$0xff] %v3942_v52  ;;  %2175 = vperm.xlu1 %3363, %v3942_v52   ;;  %v726_v13 = vrot.slane %v618_v15, 2  ;;  %v1265_v43 = vmul.f32 %v3842_v39, %v3472_v9  ;;  %v1266_v17 = vmul.f32 %v3472_v9, %v911_v33  ;;  %v1130_v61 = vrot.slane %v1024_v41, 1 }
  0x73   : > { %v1463_v44 = vadd.f32 %v1362_v58, %v1222_v7  ;;  %v485_v49 = vsel %vm455_vm0, %v482_v29, %v484_v21  ;;  %v1557_v23 = vunpack.c.h.bf16 %v3179_v60  ;;  %v1132_v14 = vrot.slane %v1025_v37, 1 }
  0x74   : > { %v579_v40 = vadd.f32 %v485_v49, %v337_v54  ;;  %v727_v46 = vsel %vm697_vm1, %v724_v42, %v726_v13  ;;  %v1371_v50 = vrot.slane %v1265_v43, 2  ;;  %v1373_v20 = vrot.slane %v1266_v17, 2 }
  0x75   : > { %v1628_v31 = vadd.f32 %v1596_v18, %v1463_v44  ;;  %v1558_v53 = vunpack.c.l.bf16 %v3180_v51  ;;  %v1601_v59 = vmul.f32 %v3475_v11, %v1557_v23  ;;  %v1133_v26 = vsel %vm455_vm0, %v1130_v61, %v1132_v14  ;;  %v243_v14 = vld [vmem:[%s3462_s24 + $0x38] sm:$0x1] }
  0x76   : > { %v821_v15 = vadd.f32 %v727_v46, %v579_v40  ;;  %v1671_v33 = vmul.f32 %v3477_v12, %v1557_v23  ;;  %v1912_v58 = vmul.f32 %v3517_v34, %v1557_v23  ;;  %v1374_v54 = vsel %vm697_vm1, %v1371_v50, %v1373_v20 }
  0x77   : > { %v1869_v7 = vadd.f32 %v1768_v10, %v1628_v31  ;;  %v1672_v21 = vmul.f32 %v3477_v12, %v1558_v53  ;;  %v1913_v41 = vmul.f32 %v3517_v34, %v1558_v53  ;;  %v292_v43 = vunpack.c.l.bf16 %v3919_v38 }
  0x78   : > { %v986_v18 = vadd.f32 %v954_v25, %v821_v15  ;;  %v1777_v13 = vrot.slane %v1671_v33, 1  ;;  %v2018_v37 = vrot.slane %v1912_v58, 2  ;;  %v953_v49 = vmul.f32 %v3824_v47, %v3466_v5 }
  0x79   : > { %v3967_v17 = vadd.f32 %v2009_v32, %v1869_v7  ;;  %v1779_v51 = vrot.slane %v1672_v21, 1  ;;  %v2020_v44 = vrot.slane %v1913_v41, 2  ;;  %v336_v23 = vmul.f32 %v3455_v2, %v292_v43 }
  0x7a   : > { %v1227_v10 = vadd.f32 %v1133_v26, %v986_v18  ;;  %v374_v40 = vmul.f32 %v3457_v3, %v292_v43  ;;  %v616_v46 = vmul.f32 %v3464_v4, %v292_v43  ;;  %v1023_v32 = vmul.f32 %v3824_v47, %v3468_v6 }
  0x7b   : > { %2170 = vperm.xlu0 %3362, %v3967_v17   ;;  %v1780_v25 = vsel %vm455_vm0, %v1777_v13, %v1779_v51  ;;  %v2021_v38 = vsel %vm697_vm1, %v2018_v37, %v2020_v44  ;;  %v1264_v26 = vmul.f32 %v3824_v47, %v3472_v9  ;;  %v1556_v15 = vunpack.c.l.bf16 %v3179_v60  ;;  %v3129_v44 = vld [vmem:[%s3462_s24 + $0x44] sm:$0x1] }
  0x7c   : > { %v1468_v31 = vadd.f32 %v1374_v54, %v1227_v10  ;;  %v481_v20 = vrot.slane %v374_v40, 1  ;;  %v723_v53 = vrot.slane %v616_v46, 2  ;;  %v1129_v33 = vrot.slane %v1023_v32, 1  ;;  %v3177_v32 = vld [vmem:[%s3462_s24 + $0x50] sm:$0x1] }
  0x7d   : > { %v1370_v58 = vrot.slane %v1264_v26, 2  ;;  %v291_v7 = vunpack.c.l.bf16 %v243_v14  ;;  %v335_v21 = vmul.f32 %v3488_v19, %v3455_v2  ;;  %v1600_v51 = vmul.f32 %v3475_v11, %v1556_v15 }
  0x7e   : > { %v1633_v41 = vadd.f32 %v1601_v59, %v1468_v31  ;;  %v483_v18 = vsel %vm455_vm0, %v481_v20, %v482_v29  ;;  %v725_v43 = vsel %vm697_vm1, %v723_v53, %v724_v42  ;;  %v1131_v54 = vsel %vm455_vm0, %v1129_v33, %v1130_v61  ;;  %v250_v33 = vld [vmem:[%s3462_s24 + $0x54] sm:$0xff]  }
  0x7f   : > { %v578_v8 = vadd.f32 %v483_v18, %v336_v23  ;;  %v1372_v60 = vsel %vm697_vm1, %v1370_v58, %v1371_v50  ;;  %v1670_v10 = vmul.f32 %v3477_v12, %v1556_v15  ;;  %v1911_v46 = vmul.f32 %v3517_v34, %v1556_v15 }
  0x80   : > { %v1874_v40 = vadd.f32 %v1780_v25, %v1633_v41  ;;  %v373_v19 = vmul.f32 %v3457_v3, %v291_v7  ;;  %v615_v29 = vmul.f32 %v3464_v4, %v291_v7  ;;  %v908_v14 = vunpack.c.l.bf16 %v3129_v44 }
  0x81   : > { %v820_v59 = vadd.f32 %v725_v43, %v578_v8  ;;  %v1776_v42 = vrot.slane %v1670_v10, 1  ;;  %v952_v23 = vmul.f32 %v3466_v5, %v3822_v30  ;;  %v2017_v50 = vrot.slane %v1911_v46, 2 }
  0x82   : > { %v3997_v61 = vadd.f32 %v2021_v38, %v1874_v40  ;;  %v479_v26 = vrot.slane %v373_v19, 1  ;;  %v721_v31 = vrot.slane %v615_v29, 2  ;;  %v1022_v53 = vmul.f32 %v3468_v6, %v908_v14 }
  0x83   : > { %v985_v25 = vadd.f32 %v953_v49, %v820_v59  ;;  %v1778_v20 = vsel %vm455_vm0, %v1776_v42, %v1777_v13  ;;  %v1263_v15 = vmul.f32 %v3472_v9, %v908_v14  ;;  %v2019_v8 = vsel %vm697_vm1, %v2017_v50, %v2018_v37 }
  0x84   : > { %2195 = vperm.xlu2 %3364, %v3997_v61   ;;  %v480_v30 = vsel %vm455_vm0, %v477_v1, %v479_v26  ;;  %v722_v38 = vsel %vm697_vm1, %v719_v55, %v721_v31  ;;  %v1555_v49 = vunpack.c.l.bf16 %v3177_v32  ;;  %v1127_v7 = vrot.slane %v1022_v53, 1 }
  0x85   : > { %v1226_v58 = vadd.f32 %v1131_v54, %v985_v25  ;;  %v577_v13 = vadd.f32 %v480_v30, %v335_v21  ;;  %v1368_v41 = vrot.slane %v1263_v15, 2  ;;  %v1599_v18 = vmul.f32 %v3842_v39, %v3475_v11 }
  0x86   : > { %v1669_v43 = vmul.f32 %v3477_v12, %v1555_v49  ;;  %v1910_v37 = vmul.f32 %v3517_v34, %v1555_v49  ;;  %v298_v57 = vunpack.c.l.bf16 %v250_v33  ;;  %v1128_v45 = vsel %vm455_vm0, %v1125_v56, %v1127_v7 }
  0x87   : > { %v1467_v44 = vadd.f32 %v1372_v60, %v1226_v58  ;;  %v819_v1 = vadd.f32 %v722_v38, %v577_v13  ;;  %v5556_v55 = vrot.slane %v3840_v16, 2  ;;  %v4021_v40 = vunpack.c.h.bf16 %v250_v33 }
  0x88   : > { %v1774_v54 = vrot.slane %v1669_v43, 1  ;;  %v2015_v10 = vrot.slane %v1910_v37, 2  ;;  %v340_v46 = vmul.f32 %v3455_v2, %v298_v57  ;;  %v380_v60 = vmul.f32 %v3457_v3, %v298_v57 }
  0x89   : > { %v1369_v21 = vsel %vm697_vm1, %v5556_v55, %v1368_v41  ;;  %v1632_v19 = vadd.f32 %v1600_v51, %v1467_v44  ;;  %v984_v34 = vadd.f32 %v952_v23, %v819_v1  ;;  %v622_v29 = vmul.f32 %v3464_v4, %v298_v57  ;;  %v3184_v23 = vld [vmem:[%s3462_s24 + $0x6c] sm:$0xff]  }
  0x8a   : > { %v5557_v59 = vrot.slane %v3856_v48, 1  ;;  %v5558_v16 = vrot.slane %v3869_v62, 2  ;;  %v4035_v14 = vmul.f32 %v3457_v3, %v4021_v40  ;;  %v4039_v51 = vmul.f32 %v3464_v4, %v4021_v40 }
  0x8b   : > { %v1873_v32 = vadd.f32 %v1778_v20, %v1632_v19  ;;  %v1225_v50 = vadd.f32 %v1128_v45, %v984_v34  ;;  %v491_v26 = vrot.slane %v380_v60, 1  ;;  %v733_v31 = vrot.slane %v622_v29, 2  ;;  %v4085_v34 = vld [vmem:[%s5470_s1 + $0x8] ss:$0 sm:$0xff] }
  0x8c   : > { %v1775_v56 = vsel %vm455_vm0, %v5557_v59, %v1774_v54  ;;  %v2016_v42 = vsel %vm697_vm1, %v5558_v16, %v2015_v10  ;;  %v5497_v48 = vrot.slane %v4035_v14, 1  ;;  %v5496_v25 = vrot.slane %v4039_v51, 2  ;;  %v249_v54 = vld [vmem:[%s3462_s24 + $0x50] sm:$0x1] }
  0x8d   : > { %v4044_v62 = vunpack.c.l.bf16 %v3320_v27  ;;  %v4046_v53 = vunpack.c.h.bf16 %v3320_v27  ;;  %v4048_v15 = vadd.f32 %v2019_v8, %v1873_v32  ;;  %v1466_v33 = vadd.f32 %v1369_v21, %v1225_v50 }
  0x8e   : > { %v1562_v30 = vunpack.c.l.bf16 %v3184_v23  ;;  %v4050_v38 = vunpack.c.h.bf16 %v3184_v23  ;;  %v493_v20 = vsel %vm455_vm0, %v491_v26, %v5497_v48  ;;  %v735_v49 = vsel %vm697_vm1, %v733_v31, %v5496_v25  ;;  %v3134_v26 = vld [vmem:[%s3462_s24 + $0x54] sm:$0xff]   ;;  %v3140_v48 = vld [vmem:[%s3462_s24 + $0x6c] sm:$0xff]  }
  0x8f   : > { %5559 = vst [vmem:[#allocation3_spill] sm:$0xff] %v4048_v15  ;;  %v957_v58 = vmul.f32 %v4044_v62, %v3466_v5  ;;  %v1029_v8 = vmul.f32 %v4044_v62, %v3468_v6  ;;  %2190 = vperm.xlu1 %3363, %v4048_v15   ;;  %v1631_v13 = vadd.f32 %v1599_v18, %v1466_v33  ;;  %v297_v50 = vunpack.c.l.bf16 %v249_v54 }
  0x90   : > { %v582_v7 = vadd.f32 %v493_v20, %v340_v46  ;;  %v4065_v41 = vmul.f32 %v4046_v53, %v3468_v6  ;;  %v1270_v43 = vmul.f32 %v4044_v62, %v3472_v9  ;;  %v4071_v57 = vmul.f32 %v4046_v53, %v3472_v9  ;;  %v3135_v20 = vld [vmem:[%s3462_s24 + $0x5c] sm:$0x1] }
  0x91   : > { %v1139_v37 = vrot.slane %v1029_v8, 1  ;;  %v1604_v44 = vmul.f32 %v3475_v11, %v1562_v30  ;;  %v1676_v1 = vmul.f32 %v3477_v12, %v1562_v30  ;;  %v1872_v45 = vadd.f32 %v1775_v56, %v1631_v13 }
  0x92   : > { %v824_v55 = vadd.f32 %v735_v49, %v582_v7  ;;  %v5495_v18 = vrot.slane %v4065_v41, 1  ;;  %v1380_v21 = vrot.slane %v1270_v43, 2  ;;  %v5494_v10 = vrot.slane %v4071_v57, 2 }
  0x93   : > { %v4080_v46 = vmul.f32 %v3477_v12, %v4050_v38  ;;  %v1786_v19 = vrot.slane %v1676_v1, 1  ;;  %v1917_v60 = vmul.f32 %v4085_v34, %v1562_v30  ;;  %v4088_v29 = vadd.f32 %v2016_v42, %v1872_v45 }
  0x94   : > { %v989_v27 = vadd.f32 %v957_v58, %v824_v55  ;;  %v1141_v59 = vsel %vm455_vm0, %v1139_v37, %v5495_v18  ;;  %v4095_v56 = vmul.f32 %v4085_v34, %v4050_v38  ;;  %v1382_v16 = vsel %vm697_vm1, %v1380_v21, %v5494_v10 }
  0x95   : > { %5560 = vst [vmem:[#allocation4_spill] sm:$0xff] %v4088_v29  ;;  %v5493_v23 = vrot.slane %v4080_v46, 1  ;;  %v2027_v32 = vrot.slane %v1917_v60, 2  ;;  %2185 = vperm.xlu0 %3362, %v4088_v29   ;;  %v339_v33 = vmul.f32 %v3842_v39, %v3455_v2  ;;  %v4108_v30 = vmul.f32 %v3842_v39, %v3457_v3 }
  0x96   : > { %v1230_v42 = vadd.f32 %v1141_v59, %v989_v27  ;;  %v5492_v31 = vrot.slane %v4095_v56, 2  ;;  %v379_v58 = vmul.f32 %v3457_v3, %v297_v50  ;;  %v620_v8 = vmul.f32 %v3842_v39, %v3464_v4  ;;  %v3183_v59 = vld [vmem:[%s3462_s24 + $0x68] sm:$0x1] }
  0x97   : > { %v1788_v49 = vsel %vm455_vm0, %v1786_v19, %v5493_v23  ;;  %v621_v13 = vmul.f32 %v3464_v4, %v297_v50  ;;  %v487_v37 = vrot.slane %v4108_v30, 1  ;;  %v913_v1 = vunpack.c.h.bf16 %v3134_v26 }
  0x98   : > { %v1471_v7 = vadd.f32 %v1382_v16, %v1230_v42  ;;  %v2029_v43 = vsel %vm697_vm1, %v2027_v32, %v5492_v31  ;;  %v489_v45 = vrot.slane %v379_v58, 1  ;;  %v729_v55 = vrot.slane %v620_v8, 2 }
  0x99   : > { %v731_v21 = vrot.slane %v621_v13, 2  ;;  %v914_v54 = vunpack.c.l.bf16 %v3135_v20  ;;  %v956_v60 = vmul.f32 %v3466_v5, %v913_v1  ;;  %v1027_v27 = vmul.f32 %v3468_v6, %v913_v1 }
  0x9a   : > { %v1636_v19 = vadd.f32 %v1604_v44, %v1471_v7  ;;  %v1268_v39 = vmul.f32 %v3472_v9, %v913_v1  ;;  %v490_v16 = vsel %vm455_vm0, %v487_v37, %v489_v45  ;;  %v1561_v7 = vunpack.c.l.bf16 %v3183_v59 }
  0x9b   : > { %v732_v50 = vsel %vm697_vm1, %v729_v55, %v731_v21  ;;  %v1028_v32 = vmul.f32 %v3468_v6, %v914_v54  ;;  %v1269_v42 = vmul.f32 %v3472_v9, %v914_v54  ;;  %v581_v58 = vadd.f32 %v490_v16, %v339_v33 }
  0x9c   : > { %v1877_v30 = vadd.f32 %v1788_v49, %v1636_v19  ;;  %v1135_v8 = vrot.slane %v1027_v27, 1  ;;  %v1376_v20 = vrot.slane %v1268_v39, 2  ;;  %v1603_v31 = vmul.f32 %v4046_v53, %v3475_v11 }
  0x9d   : > { %v1137_v44 = vrot.slane %v1028_v32, 1  ;;  %v1378_v13 = vrot.slane %v1269_v42, 2  ;;  %v823_v23 = vadd.f32 %v732_v50, %v581_v58  ;;  %v1674_v45 = vmul.f32 %v4046_v53, %v3477_v12 }
  0x9e   : > { %v4132_v1 = vadd.f32 %v2029_v43, %v1877_v30  ;;  %v1915_v21 = vmul.f32 %v4085_v34, %v4046_v53  ;;  %v1675_v54 = vmul.f32 %v3477_v12, %v1561_v7  ;;  %v1916_v19 = vmul.f32 %v4085_v34, %v1561_v7 }
  0x9f   : > { %v1138_v49 = vsel %vm455_vm0, %v1135_v8, %v1137_v44  ;;  %v1379_v33 = vsel %vm697_vm1, %v1376_v20, %v1378_v13  ;;  %v988_v27 = vadd.f32 %v956_v60, %v823_v23  ;;  %v1782_v43 = vrot.slane %v1674_v45, 1 }
  0xa0   : > { %2210 = vperm.xlu2 %3364, %v4132_v1   ;;  %v2023_v39 = vrot.slane %v1915_v21, 2  ;;  %v338_v59 = vmul.f32 %v3824_v47, %v3455_v2  ;;  %v1784_v16 = vrot.slane %v1675_v54, 1  ;;  %v2025_v50 = vrot.slane %v1916_v19, 2 }
  0xa1   : > { %v377_v32 = vmul.f32 %v3824_v47, %v3457_v3  ;;  %v619_v42 = vmul.f32 %v3824_v47, %v3464_v4  ;;  %v1229_v30 = vadd.f32 %v1138_v49, %v988_v27  ;;  %v912_v58 = vunpack.c.l.bf16 %v3134_v26  ;;  %v255_v49 = vld [vmem:[%s3462_s24 + $0x68] sm:$0x1] }
  0xa2   : > { %v1602_v44 = vmul.f32 %v4044_v62, %v3475_v11  ;;  %v1673_v23 = vmul.f32 %v4044_v62, %v3477_v12  ;;  %v1785_v60 = vsel %vm455_vm0, %v1782_v43, %v1784_v16  ;;  %v2026_v13 = vsel %vm697_vm1, %v2023_v39, %v2025_v50 }
  0xa3   : > { %v486_v7 = vrot.slane %v377_v32, 1  ;;  %v728_v45 = vrot.slane %v619_v42, 2  ;;  %v1470_v21 = vadd.f32 %v1379_v33, %v1229_v30  ;;  %v955_v54 = vmul.f32 %v3466_v5, %v912_v58 }
  0xa4   : > { %v1026_v47 = vmul.f32 %v3468_v6, %v912_v58  ;;  %v1267_v26 = vmul.f32 %v3472_v9, %v912_v58  ;;  %v1781_v10 = vrot.slane %v1673_v23, 1  ;;  %v1914_v16 = vmul.f32 %v4085_v34, %v4044_v62 }
  0xa5   : > { %v488_v19 = vsel %vm455_vm0, %v486_v7, %v487_v37  ;;  %v730_v27 = vsel %vm697_vm1, %v728_v45, %v729_v55  ;;  %v1635_v50 = vadd.f32 %v1603_v31, %v1470_v21  ;;  %v303_v25 = vunpack.c.l.bf16 %v255_v49  ;;  %v3141_v45 = vld [vmem:[%s3462_s24 + $0x74] sm:$0x1] }
  0xa6   : > { %v580_v32 = vadd.f32 %v488_v19, %v338_v59  ;;  %v1134_v33 = vrot.slane %v1026_v47, 1  ;;  %v1375_v42 = vrot.slane %v1267_v26, 2  ;;  %v1783_v30 = vsel %vm455_vm0, %v1781_v10, %v1782_v43 }
  0xa7   : > { %v2022_v18 = vrot.slane %v1914_v16, 2  ;;  %v343_v58 = vmul.f32 %v4046_v53, %v3455_v2  ;;  %v1876_v37 = vadd.f32 %v1785_v60, %v1635_v50  ;;  %v4173_v59 = vmul.f32 %v4046_v53, %v3457_v3 }
  0xa8   : > { %v822_v7 = vadd.f32 %v730_v27, %v580_v32  ;;  %v1136_v55 = vsel %vm455_vm0, %v1134_v33, %v1135_v8  ;;  %v1377_v23 = vsel %vm697_vm1, %v1375_v42, %v1376_v20  ;;  %v385_v10 = vmul.f32 %v3457_v3, %v303_v25  ;;  %v3189_v33 = vld [vmem:[%s3462_s24 + $0x80] sm:$0x1] }
  0xa9   : > { %v2024_v31 = vsel %vm697_vm1, %v2022_v18, %v2023_v39  ;;  %v626_v43 = vmul.f32 %v4046_v53, %v3464_v4  ;;  %v4178_v21 = vadd.f32 %v2026_v13, %v1876_v37  ;;  %v627_v8 = vmul.f32 %v3464_v4, %v303_v25  ;;  %v3329_v13 = vld [vmem:[%s3462_s24 + $0x78] sm:$0xff]  }
  0xaa   : > { %v987_v60 = vadd.f32 %v955_v54, %v822_v7  ;;  %v919_v20 = vunpack.c.h.bf16 %v3140_v48  ;;  %v497_v47 = vrot.slane %v4173_v59, 1  ;;  %v499_v18 = vrot.slane %v385_v10, 1 }
  0xab   : > { %5561 = vst [vmem:[#allocation5_spill] sm:$0xff] %v4178_v21  ;;  %v739_v39 = vrot.slane %v626_v43, 2  ;;  %v920_v26 = vunpack.c.l.bf16 %v3141_v45  ;;  %2205 = vperm.xlu1 %3363, %v4178_v21   ;;  %v741_v19 = vrot.slane %v627_v8, 2  ;;  %v4198_v43 = vunpack.c.h.bf16 %v3329_v13 }
  0xac   : > { %v1228_v49 = vadd.f32 %v1136_v55, %v987_v60  ;;  %v960_v27 = vmul.f32 %v3466_v5, %v919_v20  ;;  %v4185_v16 = vmul.f32 %v3468_v6, %v919_v20  ;;  %v500_v54 = vsel %vm455_vm0, %v497_v47, %v499_v18 }
  0xad   : > { %v1034_v25 = vmul.f32 %v3468_v6, %v920_v26  ;;  %v4191_v50 = vmul.f32 %v3472_v9, %v919_v20  ;;  %v1275_v32 = vmul.f32 %v3472_v9, %v920_v26  ;;  %v585_v37 = vadd.f32 %v500_v54, %v343_v58 }
  0xae   : > { %v1469_v42 = vadd.f32 %v1377_v23, %v1228_v49  ;;  %v742_v7 = vsel %vm697_vm1, %v739_v39, %v741_v19  ;;  %v1145_v55 = vrot.slane %v4185_v16, 1  ;;  %v1567_v20 = vunpack.c.l.bf16 %v3189_v33 }
  0xaf   : > { %v1147_v45 = vrot.slane %v1034_v25, 1  ;;  %v1386_v59 = vrot.slane %v4191_v50, 2  ;;  %v1388_v10 = vrot.slane %v1275_v32, 2  ;;  %v827_v8 = vadd.f32 %v742_v7, %v585_v37 }
  0xb0   : > { %v1634_v60 = vadd.f32 %v1602_v44, %v1469_v42  ;;  %v342_v18 = vmul.f32 %v4044_v62, %v3455_v2  ;;  %v1607_v26 = vmul.f32 %v4198_v43, %v3475_v11  ;;  %v1680_v49 = vmul.f32 %v4198_v43, %v3477_v12  ;;  %v252_v42 = vld [vmem:[%s3462_s24 + $0x5c] sm:$0x1] }
  0xb1   : > { %v1148_v23 = vsel %vm455_vm0, %v1145_v55, %v1147_v45  ;;  %v1389_v58 = vsel %vm697_vm1, %v1386_v59, %v1388_v10  ;;  %v992_v16 = vadd.f32 %v960_v27, %v827_v8  ;;  %v1681_v44 = vmul.f32 %v3477_v12, %v1567_v20 }
  0xb2   : > { %v1875_v19 = vadd.f32 %v1783_v30, %v1634_v60  ;;  %v1921_v54 = vmul.f32 %v4085_v34, %v4198_v43  ;;  %v1792_v25 = vrot.slane %v1680_v49, 1  ;;  %v1922_v50 = vmul.f32 %v4085_v34, %v1567_v20 }
  0xb3   : > { %v383_v32 = vmul.f32 %v4044_v62, %v3457_v3  ;;  %v625_v33 = vmul.f32 %v4044_v62, %v3464_v4  ;;  %v1233_v7 = vadd.f32 %v1148_v23, %v992_v16  ;;  %v1794_v30 = vrot.slane %v1681_v44, 1 }
  0xb4   : > { %v4217_v37 = vadd.f32 %v2024_v31, %v1875_v19  ;;  %v2033_v27 = vrot.slane %v1921_v54, 2  ;;  %v2035_v45 = vrot.slane %v1922_v50, 2  ;;  %v918_v8 = vunpack.c.l.bf16 %v3140_v48 }
  0xb5   : > { %v496_v10 = vrot.slane %v383_v32, 1  ;;  %v738_v60 = vrot.slane %v625_v33, 2  ;;  %v1474_v49 = vadd.f32 %v1389_v58, %v1233_v7  ;;  %v1795_v20 = vsel %vm455_vm0, %v1792_v25, %v1794_v30 }
  0xb6   : > { %5562 = vst [vmem:[#allocation6_spill] sm:$0xff] %v4217_v37  ;;  %2200 = vperm.xlu0 %3362, %v4217_v37   ;;  %v4221_v21 = vunpack.c.l.bf16 %v3329_v13  ;;  %v300_v29 = vunpack.c.l.bf16 %v252_v42  ;;  %v2036_v62 = vsel %vm697_vm1, %v2033_v27, %v2035_v45  ;;  %v959_v19 = vmul.f32 %v3466_v5, %v918_v8  ;;  %v3138_v45 = vld [vmem:[%s3462_s24 + $0x68] sm:$0x1] }
  0xb7   : > { %v498_v31 = vsel %vm455_vm0, %v496_v10, %v497_v47  ;;  %v740_v23 = vsel %vm697_vm1, %v738_v60, %v739_v39  ;;  %v1639_v16 = vadd.f32 %v1607_v26, %v1474_v49  ;;  %v1032_v48 = vmul.f32 %v3468_v6, %v918_v8  ;;  %v3186_v10 = vld [vmem:[%s3462_s24 + $0x74] sm:$0x1] }
  0xb8   : > { %v584_v44 = vadd.f32 %v498_v31, %v342_v18  ;;  %v1273_v58 = vmul.f32 %v3472_v9, %v918_v8  ;;  %v1606_v13 = vmul.f32 %v4221_v21, %v3475_v11  ;;  %v1679_v54 = vmul.f32 %v4221_v21, %v3477_v12 }
  0xb9   : > { %v1920_v47 = vmul.f32 %v4085_v34, %v4221_v21  ;;  %v341_v39 = vmul.f32 %v3455_v2, %v4021_v40  ;;  %v1880_v26 = vadd.f32 %v1795_v20, %v1639_v16  ;;  %v1144_v18 = vrot.slane %v1032_v48, 1 }
  0xba   : > { %v826_v50 = vadd.f32 %v740_v23, %v584_v44  ;;  %v1385_v32 = vrot.slane %v1273_v58, 2  ;;  %v1791_v33 = vrot.slane %v1679_v54, 1  ;;  %v382_v7 = vmul.f32 %v3457_v3, %v300_v29 }
  0xbb   : > { %v2032_v42 = vrot.slane %v1920_v47, 2  ;;  %v624_v30 = vmul.f32 %v3464_v4, %v300_v29  ;;  %v4241_v60 = vadd.f32 %v2036_v62, %v1880_v26  ;;  %v1146_v49 = vsel %vm455_vm0, %v1144_v18, %v1145_v55 }
  0xbc   : > { %v991_v8 = vadd.f32 %v959_v19, %v826_v50  ;;  %v1387_v31 = vsel %vm697_vm1, %v1385_v32, %v1386_v59  ;;  %v1793_v40 = vsel %vm455_vm0, %v1791_v33, %v1792_v25  ;;  %v494_v23 = vrot.slane %v382_v7, 1 }
  0xbd   : > { %5563 = vst [vmem:[#allocation7_spill] sm:$0xff] %v4241_v60  ;;  %v2034_v20 = vsel %vm697_vm1, %v2032_v42, %v2033_v27  ;;  %v736_v16 = vrot.slane %v624_v30, 2  ;;  %2225 = vperm.xlu2 %3364, %v4241_v60   ;;  %v917_v48 = vunpack.c.l.bf16 %v3138_v45  ;;  %v958_v29 = vmul.f32 %v4046_v53, %v3466_v5 }
  0xbe   : > { %v1232_v44 = vadd.f32 %v1146_v49, %v991_v8  ;;  %v1564_v62 = vunpack.c.l.bf16 %v3186_v10  ;;  %v5564_v19 = vrot.slane %v4035_v14, 1  ;;  %v5565_v59 = vrot.slane %v4039_v51, 2 }
  0xbf   : > { %v1605_v27 = vmul.f32 %v3475_v11, %v4050_v38  ;;  %v346_v58 = vmul.f32 %v4221_v21, %v3455_v2  ;;  %v1031_v26 = vmul.f32 %v3468_v6, %v917_v48  ;;  %v1272_v53 = vmul.f32 %v3472_v9, %v917_v48 }
  0xc0   : > { %v495_v55 = vsel %vm455_vm0, %v5564_v19, %v494_v23  ;;  %v737_v25 = vsel %vm697_vm1, %v5565_v59, %v736_v16  ;;  %v1473_v54 = vadd.f32 %v1387_v31, %v1232_v44  ;;  %v1678_v14 = vmul.f32 %v3477_v12, %v1564_v62  ;;  %v3330_v44 = vld [vmem:[%s3462_s24 + $0x90] sm:$0xff]  }
  0xc1   : > { %v583_v47 = vadd.f32 %v495_v55, %v341_v39  ;;  %v1919_v50 = vmul.f32 %v4085_v34, %v1564_v62  ;;  %v389_v51 = vmul.f32 %v4221_v21, %v3457_v3  ;;  %v4268_v38 = vmul.f32 %v4198_v43, %v3457_v3 }
  0xc2   : > { %v1638_v18 = vadd.f32 %v1606_v13, %v1473_v54  ;;  %v1142_v39 = vrot.slane %v1031_v26, 1  ;;  %v1383_v33 = vrot.slane %v1272_v53, 2  ;;  %v1789_v42 = vrot.slane %v1678_v14, 1  ;;  %v3145_v13 = vld [vmem:[%s3462_s24 + $0x84] sm:$0xff]  }
  0xc3   : > { %v825_v32 = vadd.f32 %v737_v25, %v583_v47  ;;  %v2030_v7 = vrot.slane %v1919_v50, 2  ;;  %v506_v30 = vrot.slane %v389_v51, 1  ;;  %v5507_v45 = vrot.slane %v4268_v38, 1 }
  0xc4   : > { %v1879_v10 = vadd.f32 %v1793_v40, %v1638_v18  ;;  %v5566_v49 = vrot.slane %v4065_v41, 1  ;;  %v5567_v23 = vrot.slane %v4071_v57, 2  ;;  %v5568_v48 = vrot.slane %v4080_v46, 1  ;;  %v4291_v57 = vld [vmem:[%s3462_s24 + $0x6c] sm:$0xff]  }
  0xc5   : > { %v990_v8 = vadd.f32 %v958_v29, %v825_v32  ;;  %v5569_v19 = vrot.slane %v4095_v56, 2  ;;  %v508_v41 = vsel %vm455_vm0, %v506_v30, %v5507_v45  ;;  %v631_v40 = vmul.f32 %v4221_v21, %v3464_v4 }
  0xc6   : > { %v1143_v31 = vsel %vm455_vm0, %v5566_v49, %v1142_v39  ;;  %v1384_v16 = vsel %vm697_vm1, %v5567_v23, %v1383_v33  ;;  %v1790_v62 = vsel %vm455_vm0, %v5568_v48, %v1789_v42  ;;  %v4293_v29 = vadd.f32 %v2034_v20, %v1879_v10 }
  0xc7   : > { %v2031_v55 = vsel %vm697_vm1, %v5569_v19, %v2030_v7  ;;  %v1231_v59 = vadd.f32 %v1143_v31, %v990_v8  ;;  %v588_v25 = vadd.f32 %v508_v41, %v346_v58  ;;  %v4297_v46 = vmul.f32 %v4198_v43, %v3464_v4 }
  0xc8   : > { %5570 = vst [vmem:[#allocation8_spill] sm:$0xff] %v4293_v29  ;;  %v748_v56 = vrot.slane %v631_v40, 2  ;;  %v924_v54 = vunpack.c.l.bf16 %v3145_v13  ;;  %v4299_v47 = vunpack.c.h.bf16 %v3145_v13  ;;  %v4301_v26 = vunpack.c.l.bf16 %v3330_v44  ;;  %2220 = vperm.xlu1 %3363, %v4293_v29   ;;  %v258_v13 = vld [vmem:[%s3462_s24 + $0x74] sm:$0x1] }
  0xc9   : > { %v1472_v53 = vadd.f32 %v1384_v16, %v1231_v59  ;;  %v5506_v14 = vrot.slane %v4297_v46, 2  ;;  %v4305_v50 = vunpack.c.h.bf16 %v3330_v44  ;;  %v305_v20 = vunpack.c.h.bf16 %v4291_v57 }
  0xca   : > { %v963_v58 = vmul.f32 %v3466_v5, %v924_v54  ;;  %v1038_v51 = vmul.f32 %v3468_v6, %v924_v54  ;;  %v4312_v18 = vmul.f32 %v3468_v6, %v4299_v47  ;;  %v1279_v32 = vmul.f32 %v3472_v9, %v924_v54 }
  0xcb   : > { %v1637_v39 = vadd.f32 %v1605_v27, %v1472_v53  ;;  %v750_v33 = vsel %vm697_vm1, %v748_v56, %v5506_v14  ;;  %v4320_v42 = vmul.f32 %v3472_v9, %v4299_v47  ;;  %v1610_v7 = vmul.f32 %v4301_v26, %v3475_v11 }
  0xcc   : > { %v830_v30 = vadd.f32 %v750_v33, %v588_v25  ;;  %v1154_v10 = vrot.slane %v1038_v51, 1  ;;  %v5505_v8 = vrot.slane %v4312_v18, 1  ;;  %v1395_v49 = vrot.slane %v1279_v32, 2  ;;  %v3144_v51 = vld [vmem:[%s3462_s24 + $0x80] sm:$0x1] }
  0xcd   : > { %v1878_v31 = vadd.f32 %v1790_v62, %v1637_v39  ;;  %v5504_v23 = vrot.slane %v4320_v42, 2  ;;  %v1685_v27 = vmul.f32 %v4301_v26, %v3477_v12  ;;  %v4330_v16 = vmul.f32 %v4305_v50, %v3477_v12 }
  0xce   : > { %v995_v44 = vadd.f32 %v963_v58, %v830_v30  ;;  %v1156_v48 = vsel %vm455_vm0, %v1154_v10, %v5505_v8  ;;  %v1926_v19 = vmul.f32 %v4085_v34, %v4301_v26  ;;  %v4340_v62 = vmul.f32 %v4085_v34, %v4305_v50 }
  0xcf   : > { %v4342_v41 = vadd.f32 %v2031_v55, %v1878_v31  ;;  %v1397_v40 = vsel %vm697_vm1, %v1395_v49, %v5504_v23  ;;  %v1801_v59 = vrot.slane %v1685_v27, 1  ;;  %v5503_v25 = vrot.slane %v4330_v16, 1  ;;  %v3191_v27 = vld [vmem:[%s3462_s24 + $0x84] sm:$0xff]  }
  0xd0   : > { %v1236_v56 = vadd.f32 %v1156_v48, %v995_v44  ;;  %v2042_v54 = vrot.slane %v1926_v19, 2  ;;  %v5502_v53 = vrot.slane %v4340_v62, 2  ;;  %v306_v58 = vunpack.c.l.bf16 %v258_v13 }
  0xd1   : > { %5571 = vst [vmem:[#allocation9_spill] sm:$0xff] %v4342_v41  ;;  %2215 = vperm.xlu0 %3362, %v4342_v41   ;;  %v1803_v55 = vsel %vm455_vm0, %v1801_v59, %v5503_v25  ;;  %v345_v32 = vmul.f32 %v3455_v2, %v305_v20  ;;  %v4356_v39 = vmul.f32 %v3457_v3, %v305_v20  ;;  %v923_v48 = vunpack.c.l.bf16 %v3144_v51 }
  0xd2   : > { %v4359_v33 = vmul.f32 %v3464_v4, %v305_v20  ;;  %v1477_v30 = vadd.f32 %v1397_v40, %v1236_v56  ;;  %v2044_v10 = vsel %vm697_vm1, %v2042_v54, %v5502_v53  ;;  %v388_v49 = vmul.f32 %v3457_v3, %v306_v58 }
  0xd3   : > { %v630_v31 = vmul.f32 %v3464_v4, %v306_v58  ;;  %v502_v13 = vrot.slane %v4356_v39, 1  ;;  %v962_v20 = vmul.f32 %v4198_v43, %v3466_v5  ;;  %v1036_v56 = vmul.f32 %v4198_v43, %v3468_v6  ;;  %v3192_v39 = vld [vmem:[%s3462_s24 + $0x8c] sm:$0x1] }
  0xd4   : > { %v5514_v44 = vrot.slane %v4359_v33, 2  ;;  %v1642_v19 = vadd.f32 %v1610_v7, %v1477_v30  ;;  %v504_v40 = vrot.slane %v388_v49, 1  ;;  %v1037_v54 = vmul.f32 %v3468_v6, %v923_v48 }
  0xd5   : > { %v746_v59 = vrot.slane %v630_v31, 2  ;;  %v1277_v58 = vmul.f32 %v4198_v43, %v3472_v9  ;;  %v1278_v53 = vmul.f32 %v3472_v9, %v923_v48  ;;  %v1569_v25 = vunpack.c.h.bf16 %v3191_v27 }
  0xd6   : > { %v1883_v23 = vadd.f32 %v1803_v55, %v1642_v19  ;;  %v505_v51 = vsel %vm455_vm0, %v502_v13, %v504_v40  ;;  %v1150_v30 = vrot.slane %v1036_v56, 1  ;;  %v1152_v31 = vrot.slane %v1037_v54, 1 }
  0xd7   : > { %v747_v7 = vsel %vm697_vm1, %v5514_v44, %v746_v59  ;;  %v587_v49 = vadd.f32 %v505_v51, %v345_v32  ;;  %v1391_v8 = vrot.slane %v1277_v58, 2  ;;  %v1393_v14 = vrot.slane %v1278_v53, 2 }
  0xd8   : > { %v4382_v45 = vadd.f32 %v2044_v10, %v1883_v23  ;;  %v1570_v41 = vunpack.c.l.bf16 %v3192_v39  ;;  %v1609_v29 = vmul.f32 %v3475_v11, %v1569_v25  ;;  %v1683_v48 = vmul.f32 %v3477_v12, %v1569_v25 }
  0xd9   : > { %v829_v37 = vadd.f32 %v747_v7, %v587_v49  ;;  %v1153_v55 = vsel %vm455_vm0, %v1150_v30, %v1152_v31  ;;  %v1394_v19 = vsel %vm697_vm1, %v1391_v8, %v1393_v14  ;;  %v1924_v40 = vmul.f32 %v4085_v34, %v1569_v25 }
  0xda   : > { %5572 = vst [vmem:[#allocation10_spill] sm:$0xff] %v4382_v45  ;;  %2240 = vperm.xlu2 %3364, %v4382_v45   ;;  %v1684_v32 = vmul.f32 %v3477_v12, %v1570_v41  ;;  %v1797_v59 = vrot.slane %v1683_v48, 1  ;;  %v1925_v23 = vmul.f32 %v4085_v34, %v1570_v41  ;;  %v304_v53 = vunpack.c.l.bf16 %v4291_v57  ;;  %v263_v45 = vld [vmem:[%s3462_s24 + $0x84] sm:$0xff]  }
  0xdb   : > { %v994_v10 = vadd.f32 %v962_v20, %v829_v37  ;;  %v2038_v56 = vrot.slane %v1924_v40, 2  ;;  %v961_v54 = vmul.f32 %v4221_v21, %v3466_v5  ;;  %v1035_v58 = vmul.f32 %v4221_v21, %v3468_v6 }
  0xdc   : > { %v1799_v14 = vrot.slane %v1684_v32, 1  ;;  %v2040_v25 = vrot.slane %v1925_v23, 2  ;;  %v344_v39 = vmul.f32 %v3455_v2, %v304_v53  ;;  %v386_v51 = vmul.f32 %v3457_v3, %v304_v53 }
  0xdd   : > { %v1235_v7 = vadd.f32 %v1153_v55, %v994_v10  ;;  %v628_v41 = vmul.f32 %v3464_v4, %v304_v53  ;;  %v1149_v57 = vrot.slane %v1035_v58, 1  ;;  %v1276_v37 = vmul.f32 %v4221_v21, %v3472_v9  ;;  %v264_v55 = vld [vmem:[%s3462_s24 + $0x8c] sm:$0x1] }
  0xde   : > { %v1800_v20 = vsel %vm455_vm0, %v1797_v59, %v1799_v14  ;;  %v2041_v49 = vsel %vm697_vm1, %v2038_v56, %v2040_v25  ;;  %v501_v31 = vrot.slane %v386_v51, 1  ;;  %v1568_v48 = vunpack.c.l.bf16 %v3191_v27  ;;  %v3150_v14 = vld [vmem:[%s3462_s24 + $0x98] sm:$0x1] }
  0xdf   : > { %v1476_v40 = vadd.f32 %v1394_v19, %v1235_v7  ;;  %v743_v32 = vrot.slane %v628_v41, 2  ;;  %v1151_v23 = vsel %vm455_vm0, %v1149_v57, %v1150_v30  ;;  %v1390_v44 = vrot.slane %v1276_v37, 2 }
  0xe0   : > { %v503_v53 = vsel %vm455_vm0, %v501_v31, %v502_v13  ;;  %v1608_v10 = vmul.f32 %v3475_v11, %v1568_v48  ;;  %v1682_v58 = vmul.f32 %v3477_v12, %v1568_v48  ;;  %v1923_v21 = vmul.f32 %v4085_v34, %v1568_v48 }
  0xe1   : > { %v1641_v15 = vadd.f32 %v1609_v29, %v1476_v40  ;;  %v586_v25 = vadd.f32 %v503_v53, %v344_v39  ;;  %v5573_v27 = vrot.slane %v4359_v33, 2  ;;  %v1392_v30 = vsel %vm697_vm1, %v1390_v44, %v1391_v8  ;;  %v3197_v53 = vld [vmem:[%s3462_s24 + $0x9c] sm:$0xff]  }
  0xe2   : > { %v1796_v51 = vrot.slane %v1682_v58, 1  ;;  %v2037_v7 = vrot.slane %v1923_v21, 2  ;;  %v311_v41 = vunpack.c.h.bf16 %v263_v45  ;;  %v312_v57 = vunpack.c.l.bf16 %v264_v55 }
  0xe3   : > { %v745_v19 = vsel %vm697_vm1, %v743_v32, %v5573_v27  ;;  %v1882_v13 = vadd.f32 %v1800_v20, %v1641_v15  ;;  %v929_v31 = vunpack.c.l.bf16 %v3150_v14  ;;  %v966_v48 = vmul.f32 %v4305_v50, %v3466_v5 }
  0xe4   : > { %v828_v37 = vadd.f32 %v745_v19, %v586_v25  ;;  %v1798_v29 = vsel %vm455_vm0, %v1796_v51, %v1797_v59  ;;  %v2039_v39 = vsel %vm697_vm1, %v2037_v7, %v2038_v56  ;;  %v349_v33 = vmul.f32 %v3455_v2, %v311_v41  ;;  %v3198_v51 = vld [vmem:[%s3462_s24 + $0xa4] sm:$0x1] }
  0xe5   : > { %v393_v40 = vmul.f32 %v3457_v3, %v311_v41  ;;  %v4422_v8 = vadd.f32 %v2041_v49, %v1882_v13  ;;  %v394_v32 = vmul.f32 %v3457_v3, %v312_v57  ;;  %v635_v15 = vmul.f32 %v3464_v4, %v311_v41 }
  0xe6   : > { %v993_v44 = vadd.f32 %v961_v54, %v828_v37  ;;  %v636_v55 = vmul.f32 %v3464_v4, %v312_v57  ;;  %v1042_v59 = vmul.f32 %v4305_v50, %v3468_v6  ;;  %v1043_v56 = vmul.f32 %v3468_v6, %v929_v31 }
  0xe7   : > { %5574 = vst [vmem:[#allocation11_spill] sm:$0xff] %v4422_v8  ;;  %v512_v20 = vrot.slane %v393_v40, 1  ;;  %2235 = vperm.xlu1 %3363, %v4422_v8   ;;  %v514_v49 = vrot.slane %v394_v32, 1  ;;  %v754_v21 = vrot.slane %v635_v15, 2  ;;  %v1283_v54 = vmul.f32 %v4305_v50, %v3472_v9 }
  0xe8   : > { %v1234_v58 = vadd.f32 %v1151_v23, %v993_v44  ;;  %v756_v14 = vrot.slane %v636_v55, 2  ;;  %v1160_v25 = vrot.slane %v1042_v59, 1  ;;  %v1162_v27 = vrot.slane %v1043_v56, 1 }
  0xe9   : > { %v1284_v19 = vmul.f32 %v3472_v9, %v929_v31  ;;  %v515_v41 = vsel %vm455_vm0, %v512_v20, %v514_v49  ;;  %v1401_v57 = vrot.slane %v1283_v54, 2  ;;  %v1575_v13 = vunpack.c.h.bf16 %v3197_v53 }
  0xea   : > { %v1475_v7 = vadd.f32 %v1392_v30, %v1234_v58  ;;  %v591_v37 = vadd.f32 %v515_v41, %v349_v33  ;;  %v757_v40 = vsel %vm697_vm1, %v754_v21, %v756_v14  ;;  %v1163_v23 = vsel %vm455_vm0, %v1160_v25, %v1162_v27 }
  0xeb   : > { %v1403_v44 = vrot.slane %v1284_v19, 2  ;;  %v1576_v15 = vunpack.c.l.bf16 %v3198_v51  ;;  %v1613_v55 = vmul.f32 %v3475_v11, %v1575_v13  ;;  %v1689_v59 = vmul.f32 %v3477_v12, %v1575_v13 }
  0xec   : > { %v1640_v32 = vadd.f32 %v1608_v10, %v1475_v7  ;;  %v833_v56 = vadd.f32 %v757_v40, %v591_v37  ;;  %v1930_v30 = vmul.f32 %v4085_v34, %v1575_v13  ;;  %v310_v58 = vunpack.c.l.bf16 %v263_v45 }
  0xed   : > { %v1404_v31 = vsel %vm697_vm1, %v1401_v57, %v1403_v44  ;;  %v1690_v33 = vmul.f32 %v3477_v12, %v1576_v15  ;;  %v1807_v54 = vrot.slane %v1689_v59, 1  ;;  %v1931_v14 = vmul.f32 %v4085_v34, %v1576_v15 }
  0xee   : > { %v1881_v49 = vadd.f32 %v1798_v29, %v1640_v32  ;;  %v998_v27 = vadd.f32 %v966_v48, %v833_v56  ;;  %v2048_v10 = vrot.slane %v1930_v30, 2  ;;  %v348_v19 = vmul.f32 %v3455_v2, %v310_v58  ;;  %v261_v48 = vld [vmem:[%s3462_s24 + $0x80] sm:$0x1] }
  0xef   : > { %v392_v51 = vmul.f32 %v3457_v3, %v310_v58  ;;  %v1809_v41 = vrot.slane %v1690_v33, 1  ;;  %v2050_v37 = vrot.slane %v1931_v14, 2  ;;  %v634_v13 = vmul.f32 %v3464_v4, %v310_v58 }
  0xf0   : > { %v4447_v7 = vadd.f32 %v2039_v39, %v1881_v49  ;;  %v1239_v45 = vadd.f32 %v1163_v23, %v998_v27  ;;  %v965_v40 = vmul.f32 %v4301_v26, %v3466_v5  ;;  %v1041_v44 = vmul.f32 %v4301_v26, %v3468_v6 }
  0xf1   : > { %v511_v29 = vrot.slane %v392_v51, 1  ;;  %v1810_v32 = vsel %vm455_vm0, %v1807_v54, %v1809_v41  ;;  %v2051_v39 = vsel %vm697_vm1, %v2048_v10, %v2050_v37  ;;  %v753_v15 = vrot.slane %v634_v13, 2 }
  0xf2   : > { %5575 = vst [vmem:[#allocation12_spill] sm:$0xff] %v4447_v7  ;;  %2230 = vperm.xlu0 %3362, %v4447_v7   ;;  %v1282_v59 = vmul.f32 %v4301_v26, %v3472_v9  ;;  %v1480_v23 = vadd.f32 %v1404_v31, %v1239_v45  ;;  %v1159_v30 = vrot.slane %v1041_v44, 1  ;;  %v1574_v58 = vunpack.c.l.bf16 %v3197_v53  ;;  %v3147_v7 = vld [vmem:[%s3462_s24 + $0x8c] sm:$0x1] }
  0xf3   : > { %v513_v56 = vsel %vm455_vm0, %v511_v29, %v512_v20  ;;  %v755_v33 = vsel %vm697_vm1, %v753_v15, %v754_v21  ;;  %v309_v27 = vunpack.c.l.bf16 %v261_v48  ;;  %v347_v53 = vmul.f32 %v4198_v43, %v3455_v2  ;;  %v3195_v15 = vld [vmem:[%s3462_s24 + $0x98] sm:$0x1] }
  0xf4   : > { %v590_v49 = vadd.f32 %v513_v56, %v348_v19  ;;  %v1400_v14 = vrot.slane %v1282_v59, 2  ;;  %v1645_v51 = vadd.f32 %v1613_v55, %v1480_v23  ;;  %v1161_v41 = vsel %vm455_vm0, %v1159_v30, %v1160_v25 }
  0xf5   : > { %v1612_v37 = vmul.f32 %v3475_v11, %v1574_v58  ;;  %v1688_v13 = vmul.f32 %v3477_v12, %v1574_v58  ;;  %v1929_v20 = vmul.f32 %v4085_v34, %v1574_v58  ;;  %v391_v55 = vmul.f32 %v3457_v3, %v309_v27 }
  0xf6   : > { %v832_v8 = vadd.f32 %v755_v33, %v590_v49  ;;  %v1402_v31 = vsel %vm697_vm1, %v1400_v14, %v1401_v57  ;;  %v1886_v21 = vadd.f32 %v1810_v32, %v1645_v51  ;;  %v633_v25 = vmul.f32 %v3464_v4, %v309_v27 }
  0xf7   : > { %v1806_v19 = vrot.slane %v1688_v13, 1  ;;  %v2047_v29 = vrot.slane %v1929_v20, 2  ;;  %v926_v44 = vunpack.c.l.bf16 %v3147_v7  ;;  %v964_v48 = vmul.f32 %v3466_v5, %v4299_v47 }
  0xf8   : > { %v997_v45 = vadd.f32 %v965_v40, %v832_v8  ;;  %v4475_v57 = vadd.f32 %v2051_v39, %v1886_v21  ;;  %v509_v23 = vrot.slane %v391_v55, 1  ;;  %v751_v43 = vrot.slane %v633_v25, 2  ;;  %v268_v8 = vld [vmem:[%s3462_s24 + $0x9c] sm:$0xff]  }
  0xf9   : > { %v1808_v59 = vsel %vm455_vm0, %v1806_v19, %v1807_v54  ;;  %v2049_v56 = vsel %vm697_vm1, %v2047_v29, %v2048_v10  ;;  %v1040_v30 = vmul.f32 %v3468_v6, %v926_v44  ;;  %v1281_v58 = vmul.f32 %v3472_v9, %v926_v44 }
  0xfa   : > { %5576 = vst [vmem:[#allocation13_spill] sm:$0xff] %v4475_v57  ;;  %v1238_v32 = vadd.f32 %v1161_v41, %v997_v45  ;;  %2255 = vperm.xlu2 %3364, %v4475_v57   ;;  %v5577_v7 = vrot.slane %v4268_v38, 1  ;;  %v5578_v40 = vrot.slane %v4297_v46, 2  ;;  %v1573_v39 = vunpack.c.l.bf16 %v3195_v15 }
  0xfb   : > { %v1611_v49 = vmul.f32 %v4305_v50, %v3475_v11  ;;  %v1157_v14 = vrot.slane %v1040_v30, 1  ;;  %v1398_v27 = vrot.slane %v1281_v58, 2  ;;  %v316_v38 = vunpack.c.l.bf16 %v268_v8 }
  0xfc   : > { %v510_v47 = vsel %vm455_vm0, %v5577_v7, %v509_v23  ;;  %v752_v54 = vsel %vm697_vm1, %v5578_v40, %v751_v43  ;;  %v1479_v10 = vadd.f32 %v1402_v31, %v1238_v32  ;;  %v1687_v51 = vmul.f32 %v3477_v12, %v1573_v39  ;;  %v3323_v23 = vld [vmem:[%s3462_s24 + $0xa8] sm:$0xff]   ;;  %v3202_v43 = vld [vmem:[%s3462_s24 + $0xb4] sm:$0xff]  }
  0xfd   : > { %v589_v33 = vadd.f32 %v510_v47, %v347_v53  ;;  %v1928_v41 = vmul.f32 %v4085_v34, %v1573_v39  ;;  %v4493_v13 = vunpack.c.h.bf16 %v268_v8  ;;  %v5579_v21 = vrot.slane %v4312_v18, 1 }
  0xfe   : > { %v1644_v46 = vadd.f32 %v1612_v37, %v1479_v10  ;;  %v5580_v31 = vrot.slane %v4320_v42, 2  ;;  %v1804_v55 = vrot.slane %v1687_v51, 1  ;;  %v352_v45 = vmul.f32 %v3455_v2, %v316_v38 }
  0xff   : > { %v831_v20 = vadd.f32 %v752_v54, %v589_v33  ;;  %v1158_v19 = vsel %vm455_vm0, %v5579_v21, %v1157_v14  ;;  %v2045_v25 = vrot.slane %v1928_v41, 2  ;;  %v398_v29 = vmul.f32 %v3457_v3, %v316_v38 }
 0x100   : > { %v1399_v53 = vsel %vm697_vm1, %v5580_v31, %v1398_v27  ;;  %v1885_v44 = vadd.f32 %v1808_v59, %v1644_v46  ;;  %v4505_v37 = vmul.f32 %v3457_v3, %v4493_v13  ;;  %v640_v18 = vmul.f32 %v3464_v4, %v316_v38  ;;  %v267_v59 = vld [vmem:[%s3462_s24 + $0x98] sm:$0x1] }
 0x101   : > { %v996_v15 = vadd.f32 %v964_v48, %v831_v20  ;;  %v5581_v42 = vrot.slane %v4330_v16, 1  ;;  %v5582_v30 = vrot.slane %v4340_v62, 2  ;;  %v521_v8 = vrot.slane %v398_v29, 1 }
 0x102   : > { %v4518_v48 = vmul.f32 %v3464_v4, %v4493_v13  ;;  %v4521_v7 = vadd.f32 %v2049_v56, %v1885_v44  ;;  %v5528_v40 = vrot.slane %v4505_v37, 1  ;;  %v763_v54 = vrot.slane %v640_v18, 2 }
 0x103   : > { %v1805_v32 = vsel %vm455_vm0, %v5581_v42, %v1804_v55  ;;  %v2046_v58 = vsel %vm697_vm1, %v5582_v30, %v2045_v25  ;;  %v1237_v47 = vadd.f32 %v1158_v19, %v996_v15  ;;  %v4525_v39 = vunpack.c.l.bf16 %v3323_v23 }
 0x104   : > { %5583 = vst [vmem:[#allocation14_spill] sm:$0xff] %v4521_v7  ;;  %v5527_v16 = vrot.slane %v4518_v48, 2  ;;  %v4527_v10 = vunpack.c.h.bf16 %v3323_v23  ;;  %v1580_v62 = vunpack.c.l.bf16 %v3202_v43  ;;  %2250 = vperm.xlu1 %3363, %v4521_v7   ;;  %v523_v14 = vsel %vm455_vm0, %v521_v8, %v5528_v40 }
 0x105   : > { %v1478_v33 = vadd.f32 %v1399_v53, %v1237_v47  ;;  %v4533_v56 = vunpack.c.h.bf16 %v3202_v43  ;;  %v315_v27 = vunpack.c.l.bf16 %v267_v59  ;;  %v594_v51 = vadd.f32 %v523_v14, %v352_v45  ;;  %v3152_v47 = vld [vmem:[%s3462_s24 + $0x9c] sm:$0xff]  }
 0x106   : > { %v765_v41 = vsel %vm697_vm1, %v763_v54, %v5527_v16  ;;  %v969_v38 = vmul.f32 %v4525_v39, %v3466_v5  ;;  %v1047_v46 = vmul.f32 %v4525_v39, %v3468_v6  ;;  %v4544_v21 = vmul.f32 %v4527_v10, %v3468_v6 }
 0x107   : > { %v1643_v20 = vadd.f32 %v1611_v49, %v1478_v33  ;;  %v1288_v19 = vmul.f32 %v4525_v39, %v3472_v9  ;;  %v4550_v31 = vmul.f32 %v4527_v10, %v3472_v9  ;;  %v836_v53 = vadd.f32 %v765_v41, %v594_v51 }
 0x108   : > { %v1169_v55 = vrot.slane %v1047_v46, 1  ;;  %v1616_v25 = vmul.f32 %v3475_v11, %v1580_v62  ;;  %v1694_v45 = vmul.f32 %v3477_v12, %v1580_v62  ;;  %v5525_v49 = vrot.slane %v4544_v21, 1 }
 0x109   : > { %v1884_v29 = vadd.f32 %v1805_v32, %v1643_v20  ;;  %v1410_v44 = vrot.slane %v1288_v19, 2  ;;  %v5524_v15 = vrot.slane %v4550_v31, 2  ;;  %v1001_v18 = vadd.f32 %v969_v38, %v836_v53  ;;  %v3153_v38 = vld [vmem:[%s3462_s24 + $0xa4] sm:$0x1] }
 0x10a   : > { %v4558_v23 = vmul.f32 %v3477_v12, %v4533_v56  ;;  %v1816_v43 = vrot.slane %v1694_v45, 1  ;;  %v1935_v42 = vmul.f32 %v4085_v34, %v1580_v62  ;;  %v1171_v32 = vsel %vm455_vm0, %v1169_v55, %v5525_v49  ;;  %v3201_v55 = vld [vmem:[%s3462_s24 + $0xb0] sm:$0x1] }
 0x10b   : > { %v4561_v30 = vadd.f32 %v2046_v58, %v1884_v29  ;;  %v1412_v8 = vsel %vm697_vm1, %v1410_v44, %v5524_v15  ;;  %v4571_v59 = vmul.f32 %v4085_v34, %v4533_v56  ;;  %v1242_v54 = vadd.f32 %v1171_v32, %v1001_v18 }
 0x10c   : > { %v5523_v33 = vrot.slane %v4558_v23, 1  ;;  %v2057_v62 = vrot.slane %v1935_v42, 2  ;;  %v351_v58 = vmul.f32 %v4305_v50, %v3455_v2  ;;  %v4581_v51 = vmul.f32 %v4305_v50, %v3457_v3 }
 0x10d   : > { %5584 = vst [vmem:[#allocation15_spill] sm:$0xff] %v4561_v30  ;;  %2245 = vperm.xlu0 %3362, %v4561_v30   ;;  %v5526_v14 = vrot.slane %v4571_v59, 2  ;;  %v397_v34 = vmul.f32 %v3457_v3, %v315_v27  ;;  %v4586_v41 = vmul.f32 %v4305_v50, %v3464_v4  ;;  %v1483_v46 = vadd.f32 %v1412_v8, %v1242_v54 }
 0x10e   : > { %v1818_v20 = vsel %vm455_vm0, %v1816_v43, %v5523_v33  ;;  %v639_v19 = vmul.f32 %v3464_v4, %v315_v27  ;;  %v931_v53 = vunpack.c.h.bf16 %v3152_v47  ;;  %v517_v29 = vrot.slane %v4581_v51, 1 }
 0x10f   : > { %v2059_v45 = vsel %vm697_vm1, %v2057_v62, %v5526_v14  ;;  %v519_v44 = vrot.slane %v397_v34, 1  ;;  %v759_v50 = vrot.slane %v4586_v41, 2  ;;  %v1648_v18 = vadd.f32 %v1616_v25, %v1483_v46 }
 0x110   : > { %v761_v42 = vrot.slane %v639_v19, 2  ;;  %v932_v32 = vunpack.c.l.bf16 %v3153_v38  ;;  %v968_v8 = vmul.f32 %v3466_v5, %v931_v53  ;;  %v1045_v27 = vmul.f32 %v3468_v6, %v931_v53 }
 0x111   : > { %v520_v43 = vsel %vm455_vm0, %v517_v29, %v519_v44  ;;  %v1286_v54 = vmul.f32 %v3472_v9, %v931_v53  ;;  %v1579_v33 = vunpack.c.l.bf16 %v3201_v55  ;;  %v1889_v15 = vadd.f32 %v1818_v20, %v1648_v18  ;;  %v4616_v55 = vld [vmem:[%s5470_s1 + $0x8] ss:$0 sm:$0xff] }
 0x112   : > { %v593_v49 = vadd.f32 %v520_v43, %v351_v58  ;;  %v762_v62 = vsel %vm697_vm1, %v759_v50, %v761_v42  ;;  %v1046_v51 = vmul.f32 %v3468_v6, %v932_v32  ;;  %v1165_v34 = vrot.slane %v1045_v27, 1 }
 0x113   : > { %v1287_v25 = vmul.f32 %v3472_v9, %v932_v32  ;;  %v1406_v41 = vrot.slane %v1286_v54, 2  ;;  %v1615_v38 = vmul.f32 %v4527_v10, %v3475_v11  ;;  %v4608_v46 = vadd.f32 %v2059_v45, %v1889_v15 }
 0x114   : > { %v835_v19 = vadd.f32 %v762_v62, %v593_v49  ;;  %v1167_v44 = vrot.slane %v1046_v51, 1  ;;  %v1692_v53 = vmul.f32 %v4527_v10, %v3477_v12  ;;  %v1693_v58 = vmul.f32 %v3477_v12, %v1579_v33 }
 0x115   : > { %v1408_v20 = vrot.slane %v1287_v25, 2  ;;  %v1933_v18 = vmul.f32 %v4616_v55, %v4527_v10  ;;  %v1934_v42 = vmul.f32 %v4616_v55, %v1579_v33  ;;  %2270 = vperm.xlu2 %3364, %v4608_v46   ;;  %v350_v32 = vmul.f32 %v4301_v26, %v3455_v2 }
 0x116   : > { %v1000_v49 = vadd.f32 %v968_v8, %v835_v19  ;;  %v1168_v15 = vsel %vm455_vm0, %v1165_v34, %v1167_v44  ;;  %v1812_v45 = vrot.slane %v1692_v53, 1  ;;  %v1814_v27 = vrot.slane %v1693_v58, 1  ;;  %v273_v58 = vld [vmem:[%s3462_s24 + $0xb0] sm:$0x1] }
 0x117   : > { %v1409_v43 = vsel %vm697_vm1, %v1406_v41, %v1408_v20  ;;  %v2053_v54 = vrot.slane %v1933_v18, 2  ;;  %v2055_v62 = vrot.slane %v1934_v42, 2  ;;  %v395_v25 = vmul.f32 %v4301_v26, %v3457_v3 }
 0x118   : > { %v1241_v51 = vadd.f32 %v1168_v15, %v1000_v49  ;;  %v637_v33 = vmul.f32 %v4301_v26, %v3464_v4  ;;  %v930_v8 = vunpack.c.l.bf16 %v3152_v47  ;;  %v1815_v19 = vsel %vm455_vm0, %v1812_v45, %v1814_v27 }
 0x119   : > { %v2056_v44 = vsel %vm697_vm1, %v2053_v54, %v2055_v62  ;;  %v1614_v53 = vmul.f32 %v4525_v39, %v3475_v11  ;;  %v1691_v20 = vmul.f32 %v4525_v39, %v3477_v12  ;;  %v516_v42 = vrot.slane %v395_v25, 1 }
 0x11a   : > { %v1482_v18 = vadd.f32 %v1409_v43, %v1241_v51  ;;  %v758_v49 = vrot.slane %v637_v33, 2  ;;  %v967_v15 = vmul.f32 %v3466_v5, %v930_v8  ;;  %v1044_v14 = vmul.f32 %v3468_v6, %v930_v8 }
 0x11b   : > { %v1285_v26 = vmul.f32 %v3472_v9, %v930_v8  ;;  %v1811_v47 = vrot.slane %v1691_v20, 1  ;;  %v1932_v27 = vmul.f32 %v4616_v55, %v4525_v39  ;;  %v518_v16 = vsel %vm455_vm0, %v516_v42, %v517_v29  ;;  %v3158_v29 = vld [vmem:[%s3462_s24 + $0xb4] sm:$0xff]  }
 0x11c   : > { %v1647_v62 = vadd.f32 %v1615_v38, %v1482_v18  ;;  %v760_v40 = vsel %vm697_vm1, %v758_v49, %v759_v50  ;;  %v321_v43 = vunpack.c.l.bf16 %v273_v58  ;;  %v592_v51 = vadd.f32 %v518_v16, %v350_v32  ;;  %v3332_v32 = vld [vmem:[%s3462_s24 + $0xc0] sm:$0xff]  }
 0x11d   : > { %v1164_v25 = vrot.slane %v1044_v14, 1  ;;  %v1405_v33 = vrot.slane %v1285_v26, 2  ;;  %v1813_v30 = vsel %vm455_vm0, %v1811_v47, %v1812_v45  ;;  %v2052_v8 = vrot.slane %v1932_v27, 2  ;;  %v3159_v14 = vld [vmem:[%s3462_s24 + $0xbc] sm:$0x1] }
 0x11e   : > { %v1888_v7 = vadd.f32 %v1815_v19, %v1647_v62  ;;  %v355_v20 = vmul.f32 %v4527_v10, %v3455_v2  ;;  %v4649_v38 = vmul.f32 %v4527_v10, %v3457_v3  ;;  %v834_v18 = vadd.f32 %v760_v40, %v592_v51  ;;  %v3207_v45 = vld [vmem:[%s3462_s24 + $0xc8] sm:$0x1] }
 0x11f   : > { %v1166_v50 = vsel %vm455_vm0, %v1164_v25, %v1165_v34  ;;  %v1407_v58 = vsel %vm697_vm1, %v1405_v33, %v1406_v41  ;;  %v403_v16 = vmul.f32 %v3457_v3, %v321_v43  ;;  %v2054_v42 = vsel %vm697_vm1, %v2052_v8, %v2053_v54 }
 0x120   : > { %v4658_v19 = vadd.f32 %v2056_v44, %v1888_v7  ;;  %v527_v49 = vrot.slane %v4649_v38, 1  ;;  %v4664_v26 = vmul.f32 %v4527_v10, %v3464_v4  ;;  %v999_v40 = vadd.f32 %v967_v15, %v834_v18 }
 0x121   : > { %v529_v47 = vrot.slane %v403_v16, 1  ;;  %v645_v34 = vmul.f32 %v3464_v4, %v321_v43  ;;  %v937_v41 = vunpack.c.h.bf16 %v3158_v29  ;;  %v938_v62 = vunpack.c.l.bf16 %v3159_v14 }
 0x122   : > { %5585 = vst [vmem:[#allocation16_spill] sm:$0xff] %v4658_v19  ;;  %2265 = vperm.xlu1 %3363, %v4658_v19   ;;  %v769_v27 = vrot.slane %v4664_v26, 2  ;;  %v4669_v7 = vunpack.c.h.bf16 %v3332_v32  ;;  %v1585_v44 = vunpack.c.l.bf16 %v3207_v45  ;;  %v1240_v54 = vadd.f32 %v1166_v50, %v999_v40  ;;  %v270_v19 = vld [vmem:[%s3462_s24 + $0xa4] sm:$0x1] }
 0x123   : > { %v530_v51 = vsel %vm455_vm0, %v527_v49, %v529_v47  ;;  %v771_v25 = vrot.slane %v645_v34, 2  ;;  %v972_v33 = vmul.f32 %v3466_v5, %v937_v41  ;;  %v4674_v15 = vmul.f32 %v3468_v6, %v937_v41 }
 0x124   : > { %v597_v8 = vadd.f32 %v530_v51, %v355_v20  ;;  %v1052_v43 = vmul.f32 %v3468_v6, %v938_v62  ;;  %v1292_v38 = vmul.f32 %v3472_v9, %v937_v41  ;;  %v1481_v18 = vadd.f32 %v1407_v58, %v1240_v54 }
 0x125   : > { %v772_v16 = vsel %vm697_vm1, %v769_v27, %v771_v25  ;;  %v1293_v14 = vmul.f32 %v3472_v9, %v938_v62  ;;  %v1619_v50 = vmul.f32 %v4669_v7, %v3475_v11  ;;  %v1175_v26 = vrot.slane %v4674_v15, 1 }
 0x126   : > { %v839_v45 = vadd.f32 %v772_v16, %v597_v8  ;;  %v1177_v40 = vrot.slane %v1052_v43, 1  ;;  %v1416_v20 = vrot.slane %v1292_v38, 2  ;;  %v1646_v47 = vadd.f32 %v1614_v53, %v1481_v18 }
 0x127   : > { %v1418_v34 = vrot.slane %v1293_v14, 2  ;;  %v1698_v51 = vmul.f32 %v4669_v7, %v3477_v12  ;;  %v1699_v58 = vmul.f32 %v3477_v12, %v1585_v44  ;;  %v1939_v62 = vmul.f32 %v4616_v55, %v4669_v7 }
 0x128   : > { %v1004_v41 = vadd.f32 %v972_v33, %v839_v45  ;;  %v1178_v54 = vsel %vm455_vm0, %v1175_v26, %v1177_v40  ;;  %v1940_v25 = vmul.f32 %v4616_v55, %v1585_v44  ;;  %v1887_v8 = vadd.f32 %v1813_v30, %v1646_v47 }
 0x129   : > { %v1419_v15 = vsel %vm697_vm1, %v1416_v20, %v1418_v34  ;;  %v1822_v43 = vrot.slane %v1698_v51, 1  ;;  %v1824_v53 = vrot.slane %v1699_v58, 1  ;;  %v2063_v18 = vrot.slane %v1939_v62, 2 }
 0x12a   : > { %v1245_v38 = vadd.f32 %v1178_v54, %v1004_v41  ;;  %v2065_v16 = vrot.slane %v1940_v25, 2  ;;  %v354_v14 = vmul.f32 %v4525_v39, %v3455_v2  ;;  %v4694_v33 = vadd.f32 %v2054_v42, %v1887_v8 }
 0x12b   : > { %v1825_v45 = vsel %vm455_vm0, %v1822_v43, %v1824_v53  ;;  %v401_v40 = vmul.f32 %v4525_v39, %v3457_v3  ;;  %v643_v30 = vmul.f32 %v4525_v39, %v3464_v4  ;;  %v936_v34 = vunpack.c.l.bf16 %v3158_v29 }
 0x12c   : > { %v1486_v44 = vadd.f32 %v1419_v15, %v1245_v38  ;;  %v2066_v47 = vsel %vm697_vm1, %v2063_v18, %v2065_v16  ;;  %v4702_v51 = vunpack.c.l.bf16 %v3332_v32  ;;  %2260 = vperm.xlu0 %3362, %v4694_v33   ;;  %v318_v42 = vunpack.c.l.bf16 %v270_v19 }
 0x12d   : > { %v526_v58 = vrot.slane %v401_v40, 1  ;;  %v768_v41 = vrot.slane %v643_v30, 2  ;;  %v353_v54 = vmul.f32 %v3455_v2, %v4493_v13  ;;  %v971_v25 = vmul.f32 %v3466_v5, %v936_v34 }
 0x12e   : > { %v1651_v62 = vadd.f32 %v1619_v50, %v1486_v44  ;;  %v1050_v39 = vmul.f32 %v3468_v6, %v936_v34  ;;  %v1291_v8 = vmul.f32 %v3472_v9, %v936_v34  ;;  %v1618_v15 = vmul.f32 %v4702_v51, %v3475_v11  ;;  %v3204_v44 = vld [vmem:[%s3462_s24 + $0xbc] sm:$0x1] }
 0x12f   : > { %v528_v29 = vsel %vm455_vm0, %v526_v58, %v527_v49  ;;  %v770_v32 = vsel %vm697_vm1, %v768_v41, %v769_v27  ;;  %v1697_v19 = vmul.f32 %v4702_v51, %v3477_v12  ;;  %v1938_v40 = vmul.f32 %v4616_v55, %v4702_v51  ;;  %v3156_v27 = vld [vmem:[%s3462_s24 + $0xb0] sm:$0x1] }
 0x130   : > { %v1892_v13 = vadd.f32 %v1825_v45, %v1651_v62  ;;  %v596_v50 = vadd.f32 %v528_v29, %v354_v14  ;;  %v1174_v53 = vrot.slane %v1050_v39, 1  ;;  %v1415_v38 = vrot.slane %v1291_v8, 2 }
 0x131   : > { %v1821_v16 = vrot.slane %v1697_v19, 1  ;;  %v400_v30 = vmul.f32 %v3457_v3, %v318_v42  ;;  %v642_v49 = vmul.f32 %v3464_v4, %v318_v42  ;;  %v2062_v62 = vrot.slane %v1938_v40, 2  ;;  %v276_v40 = vld [vmem:[%s3462_s24 + $0xbc] sm:$0x1] }
 0x132   : > { %v4722_v34 = vadd.f32 %v2066_v47, %v1892_v13  ;;  %v838_v58 = vadd.f32 %v770_v32, %v596_v50  ;;  %v1176_v41 = vsel %vm455_vm0, %v1174_v53, %v1175_v26  ;;  %v1417_v14 = vsel %vm697_vm1, %v1415_v38, %v1416_v20  ;;  %v4731_v13 = vld [vmem:[%s3462_s24 + $0xb4] sm:$0xff]  }
 0x133   : > { %v1823_v45 = vsel %vm455_vm0, %v1821_v16, %v1822_v43  ;;  %v524_v39 = vrot.slane %v400_v30, 1  ;;  %v766_v8 = vrot.slane %v642_v49, 2  ;;  %v935_v42 = vunpack.c.l.bf16 %v3156_v27 }
 0x134   : > { %2285 = vperm.xlu2 %3364, %v4722_v34   ;;  %v1003_v29 = vadd.f32 %v971_v25, %v838_v58  ;;  %v970_v19 = vmul.f32 %v4527_v10, %v3466_v5  ;;  %v1582_v47 = vunpack.c.l.bf16 %v3204_v44  ;;  %v2064_v26 = vsel %vm697_vm1, %v2062_v62, %v2063_v18 }
 0x135   : > { %v5586_v20 = vrot.slane %v4505_v37, 1  ;;  %v5587_v32 = vrot.slane %v4518_v48, 2  ;;  %v1617_v25 = vmul.f32 %v3475_v11, %v4533_v56  ;;  %v1049_v10 = vmul.f32 %v3468_v6, %v935_v42 }
 0x136   : > { %v1244_v53 = vadd.f32 %v1176_v41, %v1003_v29  ;;  %v1290_v16 = vmul.f32 %v3472_v9, %v935_v42  ;;  %v1696_v18 = vmul.f32 %v3477_v12, %v1582_v47  ;;  %v1937_v37 = vmul.f32 %v4616_v55, %v1582_v47 }
 0x137   : > { %v525_v43 = vsel %vm455_vm0, %v5586_v20, %v524_v39  ;;  %v767_v50 = vsel %vm697_vm1, %v5587_v32, %v766_v8  ;;  %v323_v30 = vunpack.c.h.bf16 %v4731_v13  ;;  %v1172_v27 = vrot.slane %v1049_v10, 1  ;;  %v3162_v20 = vld [vmem:[%s3462_s24 + $0xc8] sm:$0x1] }
 0x138   : > { %v595_v38 = vadd.f32 %v525_v43, %v353_v54  ;;  %v1485_v48 = vadd.f32 %v1417_v14, %v1244_v53  ;;  %v1413_v44 = vrot.slane %v1290_v16, 2  ;;  %v1819_v58 = vrot.slane %v1696_v18, 1 }
 0x139   : > { %v2060_v56 = vrot.slane %v1937_v37, 2  ;;  %v324_v41 = vunpack.c.l.bf16 %v276_v40  ;;  %v357_v54 = vmul.f32 %v3455_v2, %v323_v30  ;;  %v5588_v8 = vrot.slane %v4544_v21, 1 }
 0x13a   : > { %v837_v49 = vadd.f32 %v767_v50, %v595_v38  ;;  %v1650_v62 = vadd.f32 %v1618_v15, %v1485_v48  ;;  %v5589_v42 = vrot.slane %v4550_v31, 2  ;;  %v5590_v14 = vrot.slane %v4558_v23, 1 }
 0x13b   : > { %v1173_v29 = vsel %vm455_vm0, %v5588_v8, %v1172_v27  ;;  %v5591_v32 = vrot.slane %v4571_v59, 2  ;;  %v4763_v15 = vmul.f32 %v3457_v3, %v323_v30  ;;  %v406_v21 = vmul.f32 %v3457_v3, %v324_v41 }
 0x13c   : > { %v1002_v39 = vadd.f32 %v970_v19, %v837_v49  ;;  %v1414_v47 = vsel %vm697_vm1, %v5589_v42, %v1413_v44  ;;  %v1820_v43 = vsel %vm455_vm0, %v5590_v14, %v1819_v58  ;;  %v1891_v19 = vadd.f32 %v1823_v45, %v1650_v62 }
 0x13d   : > { %v2061_v50 = vsel %vm697_vm1, %v5591_v32, %v2060_v56  ;;  %v3403_v31 = vmov 1   ;;  %v4768_v38 = vmul.f32 %v3464_v4, %v323_v30  ;;  %v648_v23 = vmul.f32 %v3464_v4, %v324_v41  ;;  %v3209_v30 = vld [vmem:[%s3462_s24 + $0xcc] sm:$0xff]   ;;  %v3210_v56 = vld [vmem:[%s3462_s24 + $0xd4] sm:$0x1] }
 0x13e   : > { %v1243_v53 = vadd.f32 %v1173_v29, %v1002_v39  ;;  %3365 = vset.pattern.permute.xlu2 %v3403_v31  ;;  %v532_v59 = vrot.slane %v4763_v15, 1  ;;  %v534_v10 = vrot.slane %v406_v21, 1  ;;  %v941_v16 = vunpack.c.l.bf16 %v3162_v20 }
 0x13f   : > { %v974_v40 = vmul.f32 %v4669_v7, %v3466_v5  ;;  %2332 = vperm.xlu2 %3365, %v3732_v36   ;;  %v4775_v45 = vadd.f32 %v2064_v26, %v1891_v19  ;;  %v774_v37 = vrot.slane %v4768_v38, 2  ;;  %v776_v48 = vrot.slane %v648_v23, 2 }
 0x140   : > { %v1484_v18 = vadd.f32 %v1414_v47, %v1243_v53  ;;  %v535_v49 = vsel %vm455_vm0, %v532_v59, %v534_v10  ;;  %v1054_v27 = vmul.f32 %v4669_v7, %v3468_v6  ;;  %v1055_v44 = vmul.f32 %v3468_v6, %v941_v16 }
 0x141   : > { %5592 = vst [vmem:[#allocation17_spill] sm:$0xff] %v4775_v45  ;;  %v4785_v58 = vmul.f32 %v4669_v7, %v3472_v9  ;;  %2280 = vperm.xlu1 %3363, %v4775_v45   ;;  %v599_v41 = vadd.f32 %v535_v49, %v357_v54  ;;  %v777_v62 = vsel %vm697_vm1, %v774_v37, %v776_v48  ;;  %v1587_v47 = vunpack.c.h.bf16 %v3209_v30 }
 0x142   : > { %v1649_v26 = vadd.f32 %v1617_v25, %v1484_v18  ;;  %v1296_v39 = vmul.f32 %v3472_v9, %v941_v16  ;;  %v1180_v8 = vrot.slane %v1054_v27, 1  ;;  %v1182_v29 = vrot.slane %v1055_v44, 1  ;;  %v4802_v16 = vpop.permute.xlu2 %2160 }
 0x143   : > { %v1421_v42 = vrot.slane %v4785_v58, 2  ;;  %v841_v14 = vadd.f32 %v777_v62, %v599_v41  ;;  %v1588_v15 = vunpack.c.l.bf16 %v3210_v56  ;;  %v1701_v21 = vmul.f32 %v3477_v12, %v1587_v47 }
 0x144   : > { %v1890_v20 = vadd.f32 %v1820_v43, %v1649_v26  ;;  %v1423_v32 = vrot.slane %v1296_v39, 2  ;;  %v1183_v7 = vsel %vm455_vm0, %v1180_v8, %v1182_v29  ;;  %v1942_v25 = vmul.f32 %v4616_v55, %v1587_v47 }
 0x145   : > { %v1006_v19 = vadd.f32 %v974_v40, %v841_v14  ;;  %v1702_v53 = vmul.f32 %v3477_v12, %v1588_v15  ;;  %v1827_v23 = vrot.slane %v1701_v21, 1  ;;  %v1943_v10 = vmul.f32 %v4616_v55, %v1588_v15 }
 0x146   : > { %v4795_v54 = vadd.f32 %v2061_v50, %v1890_v20  ;;  %v1424_v38 = vsel %vm697_vm1, %v1421_v42, %v1423_v32  ;;  %v322_v43 = vunpack.c.l.bf16 %v4731_v13  ;;  %v1621_v50 = vmul.f32 %v3475_v11, %v1587_v47 }
 0x147   : > { %2344 = vperm.xlu2 %3365, %v3811_v28   ;;  %v1247_v18 = vadd.f32 %v1183_v7, %v1006_v19  ;;  %v1829_v48 = vrot.slane %v1702_v53, 1  ;;  %v2068_v40 = vrot.slane %v1942_v25, 2  ;;  %v2070_v49 = vrot.slane %v1943_v10, 2 }
 0x148   : > { %2275 = vperm.xlu0 %3362, %v4795_v54   ;;  %v404_v27 = vmul.f32 %v3457_v3, %v322_v43  ;;  %v646_v44 = vmul.f32 %v3464_v4, %v322_v43  ;;  %v1053_v58 = vmul.f32 %v4702_v51, %v3468_v6  ;;  %v356_v26 = vmul.f32 %v3455_v2, %v322_v43 }
 0x149   : > { %v1488_v13 = vadd.f32 %v1424_v38, %v1247_v18  ;;  %v1830_v56 = vsel %vm455_vm0, %v1827_v23, %v1829_v48  ;;  %v1294_v39 = vmul.f32 %v4702_v51, %v3472_v9  ;;  %v1586_v29 = vunpack.c.l.bf16 %v3209_v30 }
 0x14a   : > { %v531_v41 = vrot.slane %v404_v27, 1  ;;  %v773_v62 = vrot.slane %v646_v44, 2  ;;  %v2071_v20 = vsel %vm697_vm1, %v2068_v40, %v2070_v49  ;;  %v1179_v14 = vrot.slane %v1053_v58, 1  ;;  %v4821_v9 = vpop.permute.xlu2 %2165  ;;  %v5593_v27 = vld [vmem:[#allocation3_spill] sm:$0xff]  ;;  %v5594_v58 = vld [vmem:[#allocation4_spill] sm:$0xff] }
 0x14b   : > { %v1653_v47 = vadd.f32 %v1621_v50, %v1488_v13  ;;  %v973_v15 = vmul.f32 %v4702_v51, %v3466_v5  ;;  %v1420_v2 = vrot.slane %v1294_v39, 2  ;;  %v1700_v7 = vmul.f32 %v3477_v12, %v1586_v29  ;;  %v5595_v13 = vld [vmem:[#allocation10_spill] sm:$0xff] }
 0x14c   : > { %v533_v3 = vsel %vm455_vm0, %v531_v41, %v532_v59  ;;  %v775_v4 = vsel %vm697_vm1, %v773_v62, %v774_v37  ;;  %v1181_v59 = vsel %vm455_vm0, %v1179_v14, %v1180_v8  ;;  %v1941_v37 = vmul.f32 %v4616_v55, %v1586_v29  ;;  %v5597_v62 = vld [vmem:[#allocation6_spill] sm:$0xff] }
 0x14d   : > { %v1894_v6 = vadd.f32 %v1830_v56, %v1653_v47  ;;  %v598_v32 = vadd.f32 %v533_v3, %v356_v26  ;;  %v1422_v19 = vsel %vm697_vm1, %v1420_v2, %v1421_v42  ;;  %v1826_v5 = vrot.slane %v1700_v7, 1  ;;  %v5596_v26 = vld [vmem:[#allocation5_spill] sm:$0xff]  ;;  %v5598_v47 = vld [vmem:[#allocation8_spill] sm:$0xff]  ;;  %v5603_v7 = vld [vmem:[#allocation14_spill] sm:$0xff] }
 0x14e   : > { %v1620_v12 = vmul.f32 %v3475_v11, %v1586_v29  ;;  %v2067_v53 = vrot.slane %v1941_v37, 2  ;;  %v5606_v37 = vld [vmem:[#allocation15_spill] sm:$0xff] }
 0x14f   : > { %2352 = vperm.xlu2 %3365, %v3781_v63   ;;  %v4823_v30 = vadd.f32 %v2071_v20, %v1894_v6  ;;  %v840_v21 = vadd.f32 %v775_v4, %v598_v32  ;;  %v1828_v10 = vsel %vm455_vm0, %v1826_v5, %v1827_v23  ;;  %v4843_v23 = vpop.permute.xlu1 %2150  ;;  %v5599_v20 = vld [vmem:[#allocation9_spill] sm:$0xff]  ;;  %v5600_v6 = vld [vmem:[#allocation11_spill] sm:$0xff]  ;;  %v5601_v32 = vld [vmem:[#allocation12_spill] sm:$0xff] }
 0x150   : > { %v2069_v55 = vsel %vm697_vm1, %v2067_v53, %v2068_v40  ;;  %v2141_v40 = vpop.permute.xlu0 %2140 }
 0x151   : > { %2295 = vperm.xlu1 %3363, %v4823_v30   ;;  %v1005_v25 = vadd.f32 %v973_v15, %v840_v21 }
 0x152   : > { %v4832_v43 = vpop.permute.xlu2 %2180 }
 0x153   : > { %v1246_v51 = vadd.f32 %v1181_v59, %v1005_v25  ;;  %v4896_v59 = vld [vmem:[%s5471_s2] sm:$0xf]  ;;  %v3404_v25 = vmov 2  }
 0x154   : > { %5605 = vst [vmem:[#allocation10_spill] sm:$0xff] %v4896_v59  ;;  %v4904_v5 = vperm.slane %v4896_v59, 1 }
 0x155   : > { %v1487_v38 = vadd.f32 %v1422_v19, %v1246_v51  ;;  %v4900_v19 = vperm.slane %v4896_v59, 0 }
 0x157   : > { %2364 = vperm.xlu2 %3365, %v3897_v35   ;;  %v1652_v8 = vadd.f32 %v1620_v12, %v1487_v38  ;;  %v2156_v48 = vpop.permute.xlu1 %2155  ;;  %v2299_v12 = vmul.f32 %v4900_v19, %v2141_v40  ;;  %v5607_v38 = vld [vmem:[#allocation16_spill] sm:$0xff] }
 0x159   : > { %v1893_v18 = vadd.f32 %v1828_v10, %v1652_v8  ;;  %3367 = vset.pattern.permute.xlu1 %v3403_v31 }
 0x15a   : > { %2340 = vperm.xlu1 %3367, %v3667_v0   ;;  %v4841_v11 = vpop.permute.xlu2 %2195 }
 0x15b   : > { %v4837_v42 = vadd.f32 %v2069_v55, %v1893_v18 }
 0x15d   : > { %2290 = vperm.xlu0 %3362, %v4837_v42  }
 0x15f   : > { %2376 = vperm.xlu2 %3365, %v3997_v61   ;;  %v4857_v44 = vpop.permute.xlu1 %2175 }
 0x162   : > { %2348 = vperm.xlu1 %3367, %v3620_v22   ;;  %v4849_v50 = vpop.permute.xlu2 %2210 }
 0x165   : > { %3366 = vset.pattern.permute.xlu0 %v3403_v31  ;;  %v4859_v31 = vpop.permute.xlu0 %2145 }
 0x166   : > { %2336 = vperm.xlu0 %3366, %v3862_v24  }
 0x167   : > { %2388 = vperm.xlu2 %3365, %v4132_v1   ;;  %v4866_v41 = vpop.permute.xlu1 %2190 }
 0x16a   : > { %2360 = vperm.xlu1 %3367, %v3942_v52   ;;  %v4854_v49 = vpop.permute.xlu2 %2225 }
 0x16d   : > { %v4872_v29 = vpop.permute.xlu0 %2170 }
 0x16e   : > { %2356 = vperm.xlu0 %3366, %v3967_v17  }
 0x16f   : > { %2400 = vperm.xlu2 %3365, %v4241_v60   ;;  %v4879_v4 = vpop.permute.xlu1 %2205 }
 0x172   : > { %2372 = vperm.xlu1 %3367, %v5593_v27   ;;  %v4863_v56 = vpop.permute.xlu2 %2240 }
 0x175   : > { %v4881_v14 = vpop.permute.xlu0 %2185 }
 0x176   : > { %2368 = vperm.xlu0 %3366, %v5594_v58  }
 0x177   : > { %2412 = vperm.xlu2 %3365, %v5595_v13   ;;  %v4888_v2 = vpop.permute.xlu1 %2220 }
 0x178   : > { %5602 = vst [vmem:[#allocation3_spill] sm:$0xff] %v4888_v2  ;;  %v2302_v2 = vmul.f32 %v4900_v19, %v2156_v48 }
 0x17a   : > { %2384 = vperm.xlu1 %3367, %v5596_v26   ;;  %v4870_v39 = vpop.permute.xlu2 %2255 }
 0x17d   : > { %v4891_v21 = vpop.permute.xlu0 %2200 }
 0x17e   : > { %2380 = vperm.xlu0 %3366, %v5597_v62   ;;  %5604 = vst [vmem:[#allocation4_spill] sm:$0xff] %v4891_v21 }
 0x17f   : > { %2424 = vperm.xlu2 %3365, %v4475_v57   ;;  %v4909_v10 = vpop.permute.xlu1 %2235 }
 0x180   : > { %5608 = vst [vmem:[#allocation5_spill] sm:$0xff] %v4909_v10  ;;  %v2304_v10 = vmul.f32 %v4900_v19, %v4821_v9 }
 0x182   : > { %2396 = vperm.xlu1 %3367, %v5598_v47   ;;  %v4877_v3 = vpop.permute.xlu2 %2270 }
 0x185   : > { %v4913_v55 = vpop.permute.xlu0 %2215 }
 0x186   : > { %2392 = vperm.xlu0 %3366, %v5599_v20  }
 0x187   : > { %2436 = vperm.xlu2 %3365, %v4608_v46  }
 0x18a   : > { %2408 = vperm.xlu1 %3367, %v5600_v6  }
 0x18e   : > { %2404 = vperm.xlu0 %3366, %v5601_v32   ;;  %v4886_v15 = vpop.permute.xlu2 %2285 }
 0x18f   : > { %2448 = vperm.xlu2 %3365, %v4722_v34  }
 0x192   : > { %2420 = vperm.xlu1 %3367, %v5603_v7  }
 0x196   : > { %2416 = vperm.xlu0 %3366, %v5606_v37  }
 0x197   : > { %3368 = vset.pattern.permute.xlu2 %v3404_v25 }
 0x198   : > { %2525 = vperm.xlu2 %3368, %v3732_v36  }
 0x199   : > { %v2333_v51 = vpop.permute.xlu2 %2332 }
 0x19a   : > { %v2460_v53 = vmul.f32 %v4904_v5, %v2333_v51  ;;  %2432 = vperm.xlu1 %3367, %v5607_v38   ;;  %v4922_v51 = vpop.permute.xlu1 %2250 }
 0x19b   : > { %5609 = vst [vmem:[#allocation6_spill] sm:$0xff] %v4922_v51  ;;  %v2307_v51 = vmul.f32 %v4900_v19, %v4832_v43 }
 0x19c   : > { %v4911_v8 = vadd.f32 %v2460_v53, %v2299_v12  ;;  %v4925_v12 = vpop.permute.xlu0 %2230 }
 0x19d   : > { %5610 = vst [vmem:[#allocation8_spill] sm:$0xff] %v4925_v12 }
 0x19e   : > { %2428 = vperm.xlu0 %3366, %v4694_v33  }
 0x1a0   : > { %2537 = vperm.xlu2 %3368, %v3811_v28  }
 0x1a1   : > { %v2345_v18 = vpop.permute.xlu2 %2344 }
 0x1a2   : > { %v2463_v21 = vmul.f32 %v4904_v5, %v2345_v18  ;;  %2444 = vperm.xlu1 %3367, %v4775_v45  }
 0x1a4   : > { %v4920_v40 = vadd.f32 %v2463_v21, %v2302_v2  ;;  %v4935_v2 = vpop.permute.xlu1 %2265  ;;  %v4940_v12 = vpop.permute.xlu0 %2245 }
 0x1a5   : > { %5611 = vst [vmem:[#allocation9_spill] sm:$0xff] %v4935_v2 }
 0x1a6   : > { %2440 = vperm.xlu0 %3366, %v4795_v54   ;;  %5612 = vst [vmem:[#allocation11_spill] sm:$0xff] %v4940_v12 }
 0x1a8   : > { %2545 = vperm.xlu2 %3368, %v3781_v63  }
 0x1a9   : > { %v2353_v53 = vpop.permute.xlu2 %2352 }
 0x1aa   : > { %v2465_v48 = vmul.f32 %v4904_v5, %v2353_v53  ;;  %2456 = vperm.xlu1 %3367, %v4823_v30  }
 0x1ac   : > { %v4932_v18 = vadd.f32 %v2465_v48, %v2304_v10  ;;  %v2310_v48 = vmul.f32 %v4900_v19, %v4841_v11  ;;  %v4953_v12 = vpop.permute.xlu0 %2260 }
 0x1ae   : > { %2452 = vperm.xlu0 %3366, %v4837_v42  }
 0x1b0   : > { %2557 = vperm.xlu2 %3368, %v3897_v35  }
 0x1b1   : > { %v2365_v21 = vpop.permute.xlu2 %2364 }
 0x1b2   : > { %v2468_v9 = vmul.f32 %v4904_v5, %v2365_v21  ;;  %3370 = vset.pattern.permute.xlu1 %v3404_v25 }
 0x1b3   : > { %2533 = vperm.xlu1 %3370, %v3667_v0   ;;  %v4950_v2 = vpop.permute.xlu1 %2280 }
 0x1b4   : > { %v4944_v53 = vadd.f32 %v2468_v9, %v2307_v51  ;;  %5613 = vst [vmem:[#allocation12_spill] sm:$0xff] %v4950_v2  ;;  %v2313_v51 = vmul.f32 %v4900_v19, %v4849_v50 }
 0x1b6   : > { %3369 = vset.pattern.permute.xlu0 %v3404_v25 }
 0x1b7   : > { %2529 = vperm.xlu0 %3369, %v3862_v24  }
 0x1b8   : > { %2569 = vperm.xlu2 %3368, %v3997_v61  }
 0x1b9   : > { %v2377_v10 = vpop.permute.xlu2 %2376 }
 0x1ba   : > { %v2471_v43 = vmul.f32 %v4904_v5, %v2377_v10  ;;  %v4968_v2 = vpop.permute.xlu0 %2275 }
 0x1bb   : > { %2541 = vperm.xlu1 %3370, %v3620_v22  }
 0x1bc   : > { %v4956_v21 = vadd.f32 %v2471_v43, %v2310_v48  ;;  %v2316_v43 = vmul.f32 %v4900_v19, %v4854_v49 }
 0x1bf   : > { %2549 = vperm.xlu0 %3369, %v3967_v17  }
 0x1c0   : > { %2581 = vperm.xlu2 %3368, %v4132_v1  }
 0x1c1   : > { %v2389_v25 = vpop.permute.xlu2 %2388 }
 0x1c2   : > { %v2474_v11 = vmul.f32 %v4904_v5, %v2389_v25 }
 0x1c3   : > { %2553 = vperm.xlu1 %3370, %v3942_v52   ;;  %v4964_v9 = vpop.permute.xlu1 %2295 }
 0x1c4   : > { %5614 = vst [vmem:[#allocation14_spill] sm:$0xff] %v4964_v9  ;;  %v4966_v10 = vadd.f32 %v2474_v11, %v2313_v51  ;;  %v2301_v51 = vmul.f32 %v4900_v19, %v4843_v23 }
 0x1c7   : > { %2561 = vperm.xlu0 %3369, %v5594_v58  }
 0x1c8   : > { %2593 = vperm.xlu2 %3368, %v4241_v60  }
 0x1c9   : > { %v2401_v48 = vpop.permute.xlu2 %2400 }
 0x1ca   : > { %v2477_v50 = vmul.f32 %v4904_v5, %v2401_v48  ;;  %v2319_v48 = vmul.f32 %v4900_v19, %v4863_v56 }
 0x1cb   : > { %2565 = vperm.xlu1 %3370, %v5593_v27  }
 0x1cc   : > { %v4976_v25 = vadd.f32 %v2477_v50, %v2316_v43  ;;  %v2341_v52 = vpop.permute.xlu1 %2340 }
 0x1cd   : > { %v2462_v11 = vmul.f32 %v4904_v5, %v2341_v52  ;;  %v2303_v52 = vmul.f32 %v4900_v19, %v4802_v16 }
 0x1ce   : > { %5615 = vst [vmem:[#allocation15_spill] sm:$0xff] %v4976_v25 }
 0x1cf   : > { %2573 = vperm.xlu0 %3369, %v5597_v62   ;;  %v4982_v9 = vpop.permute.xlu0 %2290  ;;  %v4984_v60 = vadd.f32 %v2462_v11, %v2301_v51 }
 0x1d0   : > { %2605 = vperm.xlu2 %3368, %v5595_v13  }
 0x1d1   : > { %v2413_v49 = vpop.permute.xlu2 %2412 }
 0x1d2   : > { %v2480_v43 = vmul.f32 %v4904_v5, %v2413_v49  ;;  %v2300_v49 = vmul.f32 %v4900_v19, %v4859_v31 }
 0x1d3   : > { %2577 = vperm.xlu1 %3370, %v5596_v26  }
 0x1d4   : > { %v4991_v50 = vadd.f32 %v2480_v43, %v2319_v48  ;;  %v2349_v23 = vpop.permute.xlu1 %2348  ;;  %v2322_v48 = vmul.f32 %v4900_v19, %v4870_v39 }
 0x1d5   : > { %v2464_v25 = vmul.f32 %v4904_v5, %v2349_v23 }
 0x1d6   : > { %5616 = vst [vmem:[#allocation16_spill] sm:$0xff] %v4991_v50 }
 0x1d7   : > { %2585 = vperm.xlu0 %3369, %v5599_v20   ;;  %v4997_v51 = vadd.f32 %v2464_v25, %v2303_v52  ;;  %v2306_v52 = vmul.f32 %v4900_v19, %v4857_v44 }
 0x1d8   : > { %2617 = vperm.xlu2 %3368, %v4475_v57   ;;  %v2337_v11 = vpop.permute.xlu0 %2336 }
 0x1d9   : > { %v2425_v56 = vpop.permute.xlu2 %2424  ;;  %v2461_v43 = vmul.f32 %v4904_v5, %v2337_v11 }
 0x1da   : > { %v2483_v16 = vmul.f32 %v4904_v5, %v2425_v56  ;;  %v2305_v56 = vmul.f32 %v4900_v19, %v4872_v29 }
 0x1db   : > { %v5006_v50 = vadd.f32 %v2461_v43, %v2300_v49  ;;  %2589 = vperm.xlu1 %3370, %v5598_v47   ;;  %v2325_v49 = vmul.f32 %v4900_v19, %v4877_v3 }
 0x1dc   : > { %v5009_v25 = vadd.f32 %v2483_v16, %v2322_v48  ;;  %v2361_v23 = vpop.permute.xlu1 %2360 }
 0x1dd   : > { %v2467_v57 = vmul.f32 %v4904_v5, %v2361_v23  ;;  %v2309_v23 = vmul.f32 %v4900_v19, %v4866_v41 }
 0x1df   : > { %2597 = vperm.xlu0 %3369, %v5601_v32   ;;  %v5015_v31 = vadd.f32 %v2467_v57, %v2306_v52 }
 0x1e0   : > { %2629 = vperm.xlu2 %3368, %v4608_v46   ;;  %v2357_v39 = vpop.permute.xlu0 %2356 }
 0x1e1   : > { %v2437_v11 = vpop.permute.xlu2 %2436  ;;  %v2466_v48 = vmul.f32 %v4904_v5, %v2357_v39 }
 0x1e2   : > { %v2486_v44 = vmul.f32 %v4904_v5, %v2437_v11  ;;  %v2308_v11 = vmul.f32 %v4900_v19, %v4881_v14 }
 0x1e3   : > { %v5024_v43 = vadd.f32 %v2466_v48, %v2305_v56  ;;  %2601 = vperm.xlu1 %3370, %v5600_v6   ;;  %v2328_v56 = vmul.f32 %v4900_v19, %v4886_v15  ;;  %v3405_v15 = vmov 3  }
 0x1e4   : > { %v5027_v57 = vadd.f32 %v2486_v44, %v2325_v49  ;;  %v2373_v16 = vpop.permute.xlu1 %2372 }
 0x1e5   : > { %v2470_v52 = vmul.f32 %v4904_v5, %v2373_v16 }
 0x1e7   : > { %2609 = vperm.xlu0 %3369, %v5606_v37   ;;  %v5033_v29 = vadd.f32 %v2470_v52, %v2309_v23  ;;  %v2312_v23 = vmul.f32 %v4900_v19, %v4879_v4 }
 0x1e8   : > { %2641 = vperm.xlu2 %3368, %v4722_v34   ;;  %v2369_v3 = vpop.permute.xlu0 %2368 }
 0x1e9   : > { %v2449_v39 = vpop.permute.xlu2 %2448  ;;  %v2469_v49 = vmul.f32 %v4904_v5, %v2369_v3 }
 0x1ea   : > { %v2489_v41 = vmul.f32 %v4904_v5, %v2449_v39  ;;  %v5055_v39 = vperm.slane %v4896_v59, 2 }
 0x1eb   : > { %v5042_v48 = vadd.f32 %v2469_v49, %v2308_v11  ;;  %2613 = vperm.xlu1 %3370, %v5603_v7   ;;  %v5618_v11 = vld [vmem:[#allocation4_spill] sm:$0xff] }
 0x1ec   : > { %v5045_v44 = vadd.f32 %v2489_v41, %v2328_v56  ;;  %v2385_v16 = vpop.permute.xlu1 %2384  ;;  %v2311_v56 = vmul.f32 %v4900_v19, %v5618_v11 }
 0x1ed   : > { %v2473_v52 = vmul.f32 %v4904_v5, %v2385_v16 }
 0x1ef   : > { %2621 = vperm.xlu0 %3369, %v4694_v33   ;;  %v5051_v14 = vadd.f32 %v2473_v52, %v2312_v23 }
 0x1f0   : > { %3371 = vset.pattern.permute.xlu2 %v3405_v15  ;;  %v2381_v3 = vpop.permute.xlu0 %2380 }
 0x1f1   : > { %5617 = vst [vmem:[#allocation18_spill] sm:$0xff] %v5051_v14  ;;  %2718 = vperm.xlu2 %3371, %v3732_v36   ;;  %v2472_v49 = vmul.f32 %v4904_v5, %v2381_v3  ;;  %v5619_v36 = vld [vmem:[#allocation3_spill] sm:$0xff] }
 0x1f2   : > { %v2526_v4 = vpop.permute.xlu2 %2525  ;;  %v2315_v59 = vmul.f32 %v4900_v19, %v5619_v36 }
 0x1f3   : > { %v2653_v41 = vmul.f32 %v5055_v39, %v2526_v4  ;;  %v5061_v16 = vadd.f32 %v2472_v49, %v2311_v56  ;;  %2625 = vperm.xlu1 %3370, %v5607_v38   ;;  %v2314_v56 = vmul.f32 %v4900_v19, %v4913_v55 }
 0x1f4   : > { %v2397_v23 = vpop.permute.xlu1 %2396 }
 0x1f5   : > { %v5065_v52 = vadd.f32 %v2653_v41, %v4911_v8  ;;  %v2476_v14 = vmul.f32 %v4904_v5, %v2397_v23 }
 0x1f7   : > { %2633 = vperm.xlu0 %3369, %v4795_v54   ;;  %v5071_v11 = vadd.f32 %v2476_v14, %v2315_v59  ;;  %v5620_v59 = vld [vmem:[#allocation5_spill] sm:$0xff] }
 0x1f8   : > { %v2393_v3 = vpop.permute.xlu0 %2392  ;;  %v2318_v14 = vmul.f32 %v4900_v19, %v5620_v59 }
 0x1f9   : > { %2730 = vperm.xlu2 %3371, %v3811_v28   ;;  %v2475_v49 = vmul.f32 %v4904_v5, %v2393_v3 }
 0x1fa   : > { %v2538_v4 = vpop.permute.xlu2 %2537 }
 0x1fb   : > { %v2656_v8 = vmul.f32 %v5055_v39, %v2538_v4  ;;  %v5078_v41 = vadd.f32 %v2475_v49, %v2314_v56  ;;  %2637 = vperm.xlu1 %3370, %v4775_v45   ;;  %v5621_v56 = vld [vmem:[#allocation8_spill] sm:$0xff] }
 0x1fc   : > { %v2409_v23 = vpop.permute.xlu1 %2408  ;;  %v2317_v49 = vmul.f32 %v4900_v19, %v5621_v56 }
 0x1fd   : > { %v5082_v36 = vadd.f32 %v2656_v8, %v4920_v40  ;;  %v2479_v28 = vmul.f32 %v4904_v5, %v2409_v23 }
 0x1ff   : > { %2645 = vperm.xlu0 %3369, %v4837_v42   ;;  %v5088_v55 = vadd.f32 %v2479_v28, %v2318_v14  ;;  %v5623_v14 = vld [vmem:[#allocation6_spill] sm:$0xff] }
 0x200   : > { %v2405_v3 = vpop.permute.xlu0 %2404  ;;  %v2321_v28 = vmul.f32 %v4900_v19, %v5623_v14 }
 0x201   : > { %2738 = vperm.xlu2 %3371, %v3781_v63   ;;  %v2478_v4 = vmul.f32 %v4904_v5, %v2405_v3 }
 0x202   : > { %v2546_v45 = vpop.permute.xlu2 %2545 }
 0x203   : > { %v2658_v40 = vmul.f32 %v5055_v39, %v2546_v45  ;;  %v5095_v8 = vadd.f32 %v2478_v4, %v2317_v49  ;;  %2649 = vperm.xlu1 %3370, %v4823_v30   ;;  %v5624_v45 = vld [vmem:[#allocation11_spill] sm:$0xff] }
 0x204   : > { %v2421_v23 = vpop.permute.xlu1 %2420  ;;  %v2320_v49 = vmul.f32 %v4900_v19, %v5624_v45 }
 0x205   : > { %v5099_v59 = vadd.f32 %v2658_v40, %v4932_v18  ;;  %v2482_v63 = vmul.f32 %v4904_v5, %v2421_v23 }
 0x207   : > { %5622 = vst [vmem:[#allocation4_spill] sm:$0xff] %v5099_v59  ;;  %3372 = vset.pattern.permute.xlu0 %v3405_v15  ;;  %v5104_v56 = vadd.f32 %v2482_v63, %v2321_v28 }
 0x208   : > { %2722 = vperm.xlu0 %3372, %v3862_v24   ;;  %v2417_v3 = vpop.permute.xlu0 %2416  ;;  %v5625_v24 = vld [vmem:[#allocation9_spill] sm:$0xff] }
 0x209   : > { %2750 = vperm.xlu2 %3371, %v3897_v35   ;;  %v2481_v4 = vmul.f32 %v4904_v5, %v2417_v3  ;;  %v2324_v35 = vmul.f32 %v4900_v19, %v5625_v24  ;;  %v2326_v24 = vmul.f32 %v4900_v19, %v4968_v2 }
 0x20a   : > { %v2558_v18 = vpop.permute.xlu2 %2557 }
 0x20b   : > { %v2661_v40 = vmul.f32 %v5055_v39, %v2558_v18  ;;  %v5112_v59 = vadd.f32 %v2481_v4, %v2320_v49  ;;  %3373 = vset.pattern.permute.xlu1 %v3405_v15  ;;  %v2323_v15 = vmul.f32 %v4900_v19, %v4953_v12 }
 0x20c   : > { %2726 = vperm.xlu1 %3373, %v3667_v0   ;;  %v2433_v23 = vpop.permute.xlu1 %2432 }
 0x20d   : > { %v5116_v14 = vadd.f32 %v2661_v40, %v4944_v53  ;;  %v2485_v28 = vmul.f32 %v4904_v5, %v2433_v23 }
 0x20f   : > { %v5121_v63 = vadd.f32 %v2485_v28, %v2324_v35 }
 0x210   : > { %2742 = vperm.xlu0 %3372, %v3967_v17   ;;  %v2429_v3 = vpop.permute.xlu0 %2428  ;;  %v5626_v17 = vld [vmem:[#allocation12_spill] sm:$0xff] }
 0x211   : > { %2762 = vperm.xlu2 %3371, %v3997_v61   ;;  %v2484_v0 = vmul.f32 %v4904_v5, %v2429_v3  ;;  %v2327_v40 = vmul.f32 %v4900_v19, %v5626_v17  ;;  %v5627_v3 = vld [vmem:[#allocation2_spill] sm:$0xff]  ;;  %v2329_v17 = vmul.f32 %v4900_v19, %v4982_v9 }
 0x212   : > { %v2570_v45 = vpop.permute.xlu2 %2569 }
 0x213   : > { %v2664_v53 = vmul.f32 %v5055_v39, %v2570_v45  ;;  %v5129_v49 = vadd.f32 %v2484_v0, %v2323_v15 }
 0x214   : > { %2734 = vperm.xlu1 %3373, %v3620_v22   ;;  %v2445_v4 = vpop.permute.xlu1 %2444 }
 0x215   : > { %v5133_v18 = vadd.f32 %v2664_v53, %v4956_v21  ;;  %v2488_v61 = vmul.f32 %v4904_v5, %v2445_v4  ;;  %v5629_v4 = vld [vmem:[#allocation7_spill] sm:$0xff] }
 0x217   : > { %v5138_v23 = vadd.f32 %v2488_v61, %v2327_v40 }
 0x218   : > { %2754 = vperm.xlu0 %3372, %v5594_v58   ;;  %v2441_v12 = vpop.permute.xlu0 %2440  ;;  %v5628_v58 = vld [vmem:[#allocation14_spill] sm:$0xff] }
 0x219   : > { %2774 = vperm.xlu2 %3371, %v4132_v1   ;;  %v2487_v22 = vmul.f32 %v4904_v5, %v2441_v12  ;;  %v2330_v45 = vmul.f32 %v4900_v19, %v5628_v58 }
 0x21a   : > { %v2582_v35 = vpop.permute.xlu2 %2581 }
 0x21b   : > { %v2667_v21 = vmul.f32 %v5055_v39, %v2582_v35  ;;  %v5146_v28 = vadd.f32 %v2487_v22, %v2326_v24  ;;  %v5630_v24 = vld [vmem:[#allocation15_spill] sm:$0xff] }
 0x21c   : > { %2746 = vperm.xlu1 %3373, %v5627_v3   ;;  %v2457_v15 = vpop.permute.xlu1 %2456 }
 0x21d   : > { %v5150_v0 = vadd.f32 %v2667_v21, %v4966_v10  ;;  %v2491_v1 = vmul.f32 %v4904_v5, %v2457_v15  ;;  %v5631_v15 = vld [vmem:[#allocation16_spill] sm:$0xff] }
 0x21f   : > { %v5155_v53 = vadd.f32 %v2491_v1, %v2330_v45  ;;  %v5632_v45 = vld [vmem:[#allocation13_spill] sm:$0xff] }
 0x220   : > { %2766 = vperm.xlu0 %3372, %v5597_v62   ;;  %v2453_v2 = vpop.permute.xlu0 %2452 }
 0x221   : > { %2786 = vperm.xlu2 %3371, %v5629_v4   ;;  %v2490_v40 = vmul.f32 %v4904_v5, %v2453_v2 }
 0x222   : > { %v2594_v61 = vpop.permute.xlu2 %2593 }
 0x223   : > { %v2670_v10 = vmul.f32 %v5055_v39, %v2594_v61  ;;  %v5163_v12 = vadd.f32 %v2490_v40, %v2329_v17 }
 0x224   : > { %2758 = vperm.xlu1 %3373, %v5593_v27  }
 0x225   : > { %v5167_v22 = vadd.f32 %v2670_v10, %v5630_v24  ;;  %v2534_v35 = vpop.permute.xlu1 %2533 }
 0x226   : > { %v2655_v62 = vmul.f32 %v5055_v39, %v2534_v35 }
 0x228   : > { %2778 = vperm.xlu0 %3372, %v5599_v20   ;;  %v5172_v21 = vadd.f32 %v2655_v62, %v4984_v60 }
 0x229   : > { %2798 = vperm.xlu2 %3371, %v5595_v13   ;;  %v2530_v19 = vpop.permute.xlu0 %2529 }
 0x22a   : > { %v2606_v5 = vpop.permute.xlu2 %2605  ;;  %v2654_v9 = vmul.f32 %v5055_v39, %v2530_v19 }
 0x22b   : > { %v2673_v3 = vmul.f32 %v5055_v39, %v2606_v5 }
 0x22c   : > { %v5178_v27 = vadd.f32 %v2654_v9, %v5006_v50  ;;  %2770 = vperm.xlu1 %3373, %v5596_v26  }
 0x22d   : > { %v5182_v58 = vadd.f32 %v2673_v3, %v5631_v15  ;;  %v2542_v20 = vpop.permute.xlu1 %2541  ;;  %v5634_v3 = vld [vmem:[#allocation10_spill] sm:$0xff] }
 0x22e   : > { %v2657_v60 = vmul.f32 %v5055_v39, %v2542_v20  ;;  %v5235_v15 = vperm.slane %v5634_v3, 3 }
 0x230   : > { %2790 = vperm.xlu0 %3372, %v5601_v32   ;;  %v5187_v13 = vadd.f32 %v2657_v60, %v4997_v51 }
 0x231   : > { %2810 = vperm.xlu2 %3371, %v5632_v45   ;;  %v2550_v1 = vpop.permute.xlu0 %2549 }
 0x232   : > { %v2618_v2 = vpop.permute.xlu2 %2617  ;;  %v2659_v50 = vmul.f32 %v5055_v39, %v2550_v1 }
 0x233   : > { %v2676_v4 = vmul.f32 %v5055_v39, %v2618_v2 }
 0x234   : > { %v5193_v26 = vadd.f32 %v2659_v50, %v5024_v43  ;;  %2782 = vperm.xlu1 %3373, %v5598_v47  }
 0x235   : > { %v5197_v17 = vadd.f32 %v2676_v4, %v5009_v25  ;;  %v2554_v32 = vpop.permute.xlu1 %2553 }
 0x236   : > { %v2660_v51 = vmul.f32 %v5055_v39, %v2554_v32  ;;  %v5635_v32 = vld [vmem:[#allocation17_spill] sm:$0xff] }
 0x238   : > { %2802 = vperm.xlu0 %3372, %v5606_v37   ;;  %v5202_v40 = vadd.f32 %v2660_v51, %v5015_v31 }
 0x239   : > { %2822 = vperm.xlu2 %3371, %v4608_v46   ;;  %v2562_v61 = vpop.permute.xlu0 %2561 }
 0x23a   : > { %v2630_v10 = vpop.permute.xlu2 %2629  ;;  %v2662_v43 = vmul.f32 %v5055_v39, %v2562_v61 }
 0x23b   : > { %v2679_v24 = vmul.f32 %v5055_v39, %v2630_v10 }
 0x23c   : > { %v5208_v47 = vadd.f32 %v2662_v43, %v5042_v48  ;;  %2794 = vperm.xlu1 %3373, %v5600_v6  }
 0x23d   : > { %v5212_v25 = vadd.f32 %v2679_v24, %v5027_v57  ;;  %v2566_v37 = vpop.permute.xlu1 %2565 }
 0x23e   : > { %v2663_v31 = vmul.f32 %v5055_v39, %v2566_v37 }
 0x240   : > { %2814 = vperm.xlu0 %3372, %v4694_v33   ;;  %v5217_v46 = vadd.f32 %v2663_v31, %v5033_v29 }
 0x241   : > { %2834 = vperm.xlu2 %3371, %v4722_v34   ;;  %v2574_v35 = vpop.permute.xlu0 %2573  ;;  %v5633_v34 = vld [vmem:[#allocation18_spill] sm:$0xff] }
 0x242   : > { %v2642_v62 = vpop.permute.xlu2 %2641  ;;  %v2665_v48 = vmul.f32 %v5055_v39, %v2574_v35 }
 0x243   : > { %v2682_v19 = vmul.f32 %v5055_v39, %v2642_v62 }
 0x244   : > { %v5223_v6 = vadd.f32 %v2665_v48, %v5061_v16  ;;  %2806 = vperm.xlu1 %3373, %v5603_v7  }
 0x245   : > { %v5227_v57 = vadd.f32 %v2682_v19, %v5045_v44  ;;  %v2578_v33 = vpop.permute.xlu1 %2577  ;;  %v5636_v19 = vld [vmem:[#allocation4_spill] sm:$0xff] }
 0x246   : > { %v2666_v29 = vmul.f32 %v5055_v39, %v2578_v33 }
 0x248   : > { %2826 = vperm.xlu0 %3372, %v4795_v54   ;;  %v5232_v5 = vadd.f32 %v2666_v29, %v5633_v34  ;;  %v5246_v54 = vld [vmem:[%s5472_s3] ss:$0 sm:$0xff] }
 0x249   : > { %v2586_v9 = vpop.permute.xlu0 %2585 }
 0x24a   : > { %v2668_v16 = vmul.f32 %v5055_v39, %v2586_v9 }
 0x24b   : > { %v2719_v20 = vpop.permute.xlu2 %2718 }
 0x24c   : > { %v2846_v7 = vmul.f32 %v5235_v15, %v2719_v20  ;;  %v5240_v44 = vadd.f32 %v2668_v16, %v5078_v41  ;;  %2818 = vperm.xlu1 %3373, %v5607_v38  }
 0x24d   : > { %v2590_v60 = vpop.permute.xlu1 %2589 }
 0x24e   : > { %v2878_v45 = vadd.f32 %v2846_v7, %v5065_v52  ;;  %v2669_v1 = vmul.f32 %v5055_v39, %v2590_v60 }
 0x250   : > { %v2913_v2 = vadd.f32 %v5246_v54, %v2878_v45  ;;  %2838 = vperm.xlu0 %3372, %v4837_v42   ;;  %v5254_v41 = vadd.f32 %v2669_v1, %v5071_v11 }
 0x251   : > { %v2598_v38 = vpop.permute.xlu0 %2597 }
 0x252   : > { %v2945_v50 = vpack.c.bf16 %v2913_v2, %v2913_v2  ;;  %v2671_v52 = vmul.f32 %v5055_v39, %v2598_v38 }
 0x253   : > { %v2731_v4 = vpop.permute.xlu2 %2730 }
 0x254   : > { %2978 = vst.msk [vmem:[%s5259_s12] sm:$0xf] %vm2977_vm2, %v2945_v50  ;;  %v2849_v42 = vmul.f32 %v5235_v15, %v2731_v4  ;;  %v5266_v11 = vadd.f32 %v2671_v52, %v5095_v8  ;;  %2830 = vperm.xlu1 %3373, %v5635_v32  }
 0x255   : > { %v2602_v51 = vpop.permute.xlu1 %2601 }
 0x256   : > { %v2881_v61 = vadd.f32 %v2849_v42, %v5082_v36  ;;  %v2672_v10 = vmul.f32 %v5055_v39, %v2602_v51 }
 0x258   : > { %v2916_v43 = vadd.f32 %v5246_v54, %v2881_v61  ;;  %v5273_v24 = vadd.f32 %v2672_v10, %v5088_v55 }
 0x259   : > { %v2610_v37 = vpop.permute.xlu0 %2609 }
 0x25a   : > { %v2948_v31 = vpack.c.bf16 %v2916_v43, %v2916_v43  ;;  %v2674_v35 = vmul.f32 %v5055_v39, %v2610_v37 }
 0x25b   : > { %v2739_v62 = vpop.permute.xlu2 %2738 }
 0x25c   : > { %2981 = vst.msk [vmem:[%s5259_s12 + $0xc] sm:$0xf] %vm2977_vm2, %v2948_v31  ;;  %v2851_v8 = vmul.f32 %v5235_v15, %v2739_v62  ;;  %v5280_v48 = vadd.f32 %v2674_v35, %v5112_v59  ;;  %2842 = vperm.xlu1 %3373, %v4823_v30  }
 0x25d   : > { %v2614_v36 = vpop.permute.xlu1 %2613 }
 0x25e   : > { %v2883_v33 = vadd.f32 %v2851_v8, %v5636_v19  ;;  %v2675_v55 = vmul.f32 %v5055_v39, %v2614_v36 }
 0x260   : > { %v2918_v29 = vadd.f32 %v5246_v54, %v2883_v33  ;;  %v5287_v34 = vadd.f32 %v2675_v55, %v5104_v56 }
 0x261   : > { %v2622_v9 = vpop.permute.xlu0 %2621 }
 0x262   : > { %v2950_v3 = vpack.c.bf16 %v2918_v29, %v2918_v29  ;;  %v2677_v16 = vmul.f32 %v5055_v39, %v2622_v9 }
 0x263   : > { %v2751_v20 = vpop.permute.xlu2 %2750 }
 0x264   : > { %2983 = vst.msk [vmem:[%s5259_s12 + $0x14] sm:$0xf] %vm2977_vm2, %v2950_v3  ;;  %v2854_v30 = vmul.f32 %v5235_v15, %v2751_v20  ;;  %v5294_v59 = vadd.f32 %v2677_v16, %v5129_v49 }
 0x265   : > { %v2626_v7 = vpop.permute.xlu1 %2625 }
 0x266   : > { %v2886_v60 = vadd.f32 %v2854_v30, %v5116_v14  ;;  %v2678_v45 = vmul.f32 %v5055_v39, %v2626_v7 }
 0x268   : > { %v2921_v56 = vadd.f32 %v5246_v54, %v2886_v60  ;;  %v5300_v1 = vadd.f32 %v2678_v45, %v5121_v63 }
 0x269   : > { %v2634_v2 = vpop.permute.xlu0 %2633 }
 0x26a   : > { %v2953_v38 = vpack.c.bf16 %v2921_v56, %v2921_v56  ;;  %v2680_v50 = vmul.f32 %v5055_v39, %v2634_v2 }
 0x26b   : > { %v2763_v52 = vpop.permute.xlu2 %2762 }
 0x26c   : > { %2986 = vst.msk [vmem:[%s5259_s12 + $0x20] sm:$0xf] %vm2977_vm2, %v2953_v38  ;;  %v2857_v49 = vmul.f32 %v5235_v15, %v2763_v52  ;;  %v5307_v4 = vadd.f32 %v2680_v50, %v5146_v28 }
 0x26d   : > { %v2638_v14 = vpop.permute.xlu1 %2637 }
 0x26e   : > { %v2889_v42 = vadd.f32 %v2857_v49, %v5133_v18  ;;  %v2681_v32 = vmul.f32 %v5055_v39, %v2638_v14 }
 0x270   : > { %v2924_v63 = vadd.f32 %v5246_v54, %v2889_v42  ;;  %v5313_v51 = vadd.f32 %v2681_v32, %v5138_v23 }
 0x271   : > { %v2646_v61 = vpop.permute.xlu0 %2645 }
 0x272   : > { %v2956_v10 = vpack.c.bf16 %v2924_v63, %v2924_v63  ;;  %v2683_v43 = vmul.f32 %v5055_v39, %v2646_v61 }
 0x273   : > { %v2775_v37 = vpop.permute.xlu2 %2774 }
 0x274   : > { %2989 = vst.msk [vmem:[%s5259_s12 + $0x2c] sm:$0xf] %vm2977_vm2, %v2956_v10  ;;  %v2860_v28 = vmul.f32 %v5235_v15, %v2775_v37  ;;  %v5320_v31 = vadd.f32 %v2683_v43, %v5163_v12 }
 0x275   : > { %v2650_v18 = vpop.permute.xlu1 %2649 }
 0x276   : > { %v2892_v35 = vadd.f32 %v2860_v28, %v5150_v0  ;;  %v2684_v62 = vmul.f32 %v5055_v39, %v2650_v18 }
 0x278   : > { %v2927_v23 = vadd.f32 %v5246_v54, %v2892_v35  ;;  %v5326_v8 = vadd.f32 %v2684_v62, %v5155_v53 }
 0x27a   : > { %v2959_v36 = vpack.c.bf16 %v2927_v23, %v2927_v23  ;;  %v2723_v19 = vpop.permute.xlu0 %2722 }
 0x27b   : > { %v2787_v33 = vpop.permute.xlu2 %2786  ;;  %v2847_v55 = vmul.f32 %v5235_v15, %v2723_v19 }
 0x27c   : > { %2992 = vst.msk [vmem:[%s5259_s12 + $0x38] sm:$0xf] %vm2977_vm2, %v2959_v36  ;;  %v2863_v12 = vmul.f32 %v5235_v15, %v2787_v33 }
 0x27d   : > { %v2879_v0 = vadd.f32 %v2847_v55, %v5178_v27 }
 0x27e   : > { %v2895_v39 = vadd.f32 %v2863_v12, %v5167_v22  ;;  %v2727_v29 = vpop.permute.xlu1 %2726 }
 0x27f   : > { %v2914_v9 = vadd.f32 %v5246_v54, %v2879_v0  ;;  %v2848_v53 = vmul.f32 %v5235_v15, %v2727_v29 }
 0x280   : > { %v2930_v3 = vadd.f32 %v5246_v54, %v2895_v39 }
 0x281   : > { %v2946_v16 = vpack.c.bf16 %v2914_v9, %v2914_v9  ;;  %v2880_v20 = vadd.f32 %v2848_v53, %v5172_v21 }
 0x282   : > { %v2962_v30 = vpack.c.bf16 %v2930_v3, %v2930_v3  ;;  %v2743_v7 = vpop.permute.xlu0 %2742 }
 0x283   : > { %v2799_v60 = vpop.permute.xlu2 %2798  ;;  %2979 = vst.msk [vmem:[%s5259_s12 + $0x4] sm:$0xf] %vm2977_vm2, %v2946_v16  ;;  %v2852_v27 = vmul.f32 %v5235_v15, %v2743_v7  ;;  %v2915_v22 = vadd.f32 %v5246_v54, %v2880_v20 }
 0x284   : > { %v2866_v45 = vmul.f32 %v5235_v15, %v2799_v60  ;;  %2995 = vst.msk [vmem:[%s5259_s12 + $0x44] sm:$0xf] %vm2977_vm2, %v2962_v30 }
 0x285   : > { %v2884_v56 = vadd.f32 %v2852_v27, %v5193_v26  ;;  %v2947_v2 = vpack.c.bf16 %v2915_v22, %v2915_v22 }
 0x286   : > { %v2898_v21 = vadd.f32 %v2866_v45, %v5182_v58  ;;  %v2735_v38 = vpop.permute.xlu1 %2734 }
 0x287   : > { %v2919_v50 = vadd.f32 %v5246_v54, %v2884_v56  ;;  %2980 = vst.msk [vmem:[%s5259_s12 + $0x8] sm:$0xf] %vm2977_vm2, %v2947_v2  ;;  %v2850_v52 = vmul.f32 %v5235_v15, %v2735_v38 }
 0x288   : > { %v2933_v49 = vadd.f32 %v5246_v54, %v2898_v21 }
 0x289   : > { %v2951_v14 = vpack.c.bf16 %v2919_v50, %v2919_v50  ;;  %v2882_v42 = vadd.f32 %v2850_v52, %v5187_v13 }
 0x28a   : > { %v2965_v32 = vpack.c.bf16 %v2933_v49, %v2933_v49  ;;  %v2755_v63 = vpop.permute.xlu0 %2754 }
 0x28b   : > { %v2811_v26 = vpop.permute.xlu2 %2810  ;;  %2984 = vst.msk [vmem:[%s5259_s12 + $0x18] sm:$0xf] %vm2977_vm2, %v2951_v14  ;;  %v2855_v58 = vmul.f32 %v5235_v15, %v2755_v63  ;;  %v2917_v61 = vadd.f32 %v5246_v54, %v2882_v42 }
 0x28c   : > { %v2869_v10 = vmul.f32 %v5235_v15, %v2811_v26  ;;  %2998 = vst.msk [vmem:[%s5259_s12 + $0x50] sm:$0xf] %vm2977_vm2, %v2965_v32 }
 0x28d   : > { %v2887_v43 = vadd.f32 %v2855_v58, %v5208_v47  ;;  %v2949_v37 = vpack.c.bf16 %v2917_v61, %v2917_v61 }
 0x28e   : > { %v2901_v13 = vadd.f32 %v2869_v10, %v5197_v17  ;;  %v2747_v28 = vpop.permute.xlu1 %2746 }
 0x28f   : > { %v2922_v18 = vadd.f32 %v5246_v54, %v2887_v43  ;;  %2982 = vst.msk [vmem:[%s5259_s12 + $0x10] sm:$0xf] %vm2977_vm2, %v2949_v37  ;;  %v2853_v35 = vmul.f32 %v5235_v15, %v2747_v28 }
 0x290   : > { %v2936_v62 = vadd.f32 %v5246_v54, %v2901_v13 }
 0x291   : > { %v2954_v23 = vpack.c.bf16 %v2922_v18, %v2922_v18  ;;  %v2885_v36 = vadd.f32 %v2853_v35, %v5202_v40 }
 0x292   : > { %v2968_v19 = vpack.c.bf16 %v2936_v62, %v2936_v62  ;;  %v2767_v33 = vpop.permute.xlu0 %2766 }
 0x293   : > { %v2823_v47 = vpop.permute.xlu2 %2822  ;;  %2987 = vst.msk [vmem:[%s5259_s12 + $0x24] sm:$0xf] %vm2977_vm2, %v2954_v23  ;;  %v2858_v17 = vmul.f32 %v5235_v15, %v2767_v33  ;;  %v2920_v55 = vadd.f32 %v5246_v54, %v2885_v36 }
 0x294   : > { %v2872_v12 = vmul.f32 %v5235_v15, %v2823_v47  ;;  %3001 = vst.msk [vmem:[%s5259_s12 + $0x5c] sm:$0xf] %vm2977_vm2, %v2968_v19 }
 0x295   : > { %v2890_v0 = vadd.f32 %v2858_v17, %v5223_v6  ;;  %v2952_v39 = vpack.c.bf16 %v2920_v55, %v2920_v55 }
 0x296   : > { %v2904_v40 = vadd.f32 %v2872_v12, %v5212_v25  ;;  %v2759_v29 = vpop.permute.xlu1 %2758 }
 0x297   : > { %v2925_v9 = vadd.f32 %v5246_v54, %v2890_v0  ;;  %2985 = vst.msk [vmem:[%s5259_s12 + $0x1c] sm:$0xf] %vm2977_vm2, %v2952_v39  ;;  %v2856_v53 = vmul.f32 %v5235_v15, %v2759_v29 }
 0x298   : > { %v2939_v3 = vadd.f32 %v5246_v54, %v2904_v40 }
 0x299   : > { %v2957_v16 = vpack.c.bf16 %v2925_v9, %v2925_v9  ;;  %v2888_v20 = vadd.f32 %v2856_v53, %v5217_v46 }
 0x29a   : > { %v2971_v30 = vpack.c.bf16 %v2939_v3, %v2939_v3  ;;  %v2779_v7 = vpop.permute.xlu0 %2778 }
 0x29b   : > { %v2835_v6 = vpop.permute.xlu2 %2834  ;;  %2990 = vst.msk [vmem:[%s5259_s12 + $0x30] sm:$0xf] %vm2977_vm2, %v2957_v16  ;;  %v2861_v25 = vmul.f32 %v5235_v15, %v2779_v7  ;;  %v2923_v60 = vadd.f32 %v5246_v54, %v2888_v20 }
 0x29c   : > { %v2875_v27 = vmul.f32 %v5235_v15, %v2835_v6  ;;  %3004 = vst.msk [vmem:[%s5259_s12 + $0x68] sm:$0xf] %vm2977_vm2, %v2971_v30 }
 0x29d   : > { %v2893_v22 = vadd.f32 %v2861_v25, %v5240_v44  ;;  %v2955_v45 = vpack.c.bf16 %v2923_v60, %v2923_v60 }
 0x29e   : > { %v2907_v46 = vadd.f32 %v2875_v27, %v5227_v57  ;;  %v2771_v56 = vpop.permute.xlu1 %2770 }
 0x29f   : > { %v2928_v2 = vadd.f32 %v5246_v54, %v2893_v22  ;;  %2988 = vst.msk [vmem:[%s5259_s12 + $0x28] sm:$0xf] %vm2977_vm2, %v2955_v45  ;;  %v2859_v21 = vmul.f32 %v5235_v15, %v2771_v56 }
 0x2a0   : > { %v2942_v38 = vadd.f32 %v5246_v54, %v2907_v46 }
 0x2a1   : > { %v2960_v50 = vpack.c.bf16 %v2928_v2, %v2928_v2  ;;  %v2891_v52 = vadd.f32 %v2859_v21, %v5232_v5 }
 0x2a2   : > { %v2974_v49 = vpack.c.bf16 %v2942_v38, %v2942_v38  ;;  %v2791_v14 = vpop.permute.xlu0 %2790 }
 0x2a3   : > { %2993 = vst.msk [vmem:[%s5259_s12 + $0x3c] sm:$0xf] %vm2977_vm2, %v2960_v50  ;;  %v2864_v57 = vmul.f32 %v5235_v15, %v2791_v14  ;;  %v2926_v44 = vadd.f32 %v5246_v54, %v2891_v52 }
 0x2a4   : > { %3007 = vst.msk [vmem:[%s5259_s12 + $0x74] sm:$0xf] %vm2977_vm2, %v2974_v49 }
 0x2a5   : > { %v2896_v42 = vadd.f32 %v2864_v57, %v5266_v11  ;;  %v2958_v32 = vpack.c.bf16 %v2926_v44, %v2926_v44 }
 0x2a6   : > { %v2783_v63 = vpop.permute.xlu1 %2782 }
 0x2a7   : > { %v2931_v26 = vadd.f32 %v5246_v54, %v2896_v42  ;;  %2991 = vst.msk [vmem:[%s5259_s12 + $0x34] sm:$0xf] %vm2977_vm2, %v2958_v32  ;;  %v2862_v5 = vmul.f32 %v5235_v15, %v2783_v63 }
 0x2a9   : > { %v2963_v58 = vpack.c.bf16 %v2931_v26, %v2931_v26  ;;  %v2894_v61 = vadd.f32 %v2862_v5, %v5254_v41 }
 0x2aa   : > { %v2803_v10 = vpop.permute.xlu0 %2802 }
 0x2ab   : > { %2996 = vst.msk [vmem:[%s5259_s12 + $0x48] sm:$0xf] %vm2977_vm2, %v2963_v58  ;;  %v2867_v43 = vmul.f32 %v5235_v15, %v2803_v10  ;;  %v2929_v11 = vadd.f32 %v5246_v54, %v2894_v61 }
 0x2ad   : > { %v2899_v37 = vadd.f32 %v2867_v43, %v5280_v48  ;;  %v2961_v13 = vpack.c.bf16 %v2929_v11, %v2929_v11 }
 0x2ae   : > { %v2795_v28 = vpop.permute.xlu1 %2794 }
 0x2af   : > { %v2934_v18 = vadd.f32 %v5246_v54, %v2899_v37  ;;  %2994 = vst.msk [vmem:[%s5259_s12 + $0x40] sm:$0xf] %vm2977_vm2, %v2961_v13  ;;  %v2865_v35 = vmul.f32 %v5235_v15, %v2795_v28 }
 0x2b1   : > { %v2966_v41 = vpack.c.bf16 %v2934_v18, %v2934_v18  ;;  %v2897_v62 = vadd.f32 %v2865_v35, %v5273_v24 }
 0x2b2   : > { %v2815_v23 = vpop.permute.xlu0 %2814 }
 0x2b3   : > { %2999 = vst.msk [vmem:[%s5259_s12 + $0x54] sm:$0xf] %vm2977_vm2, %v2966_v41  ;;  %v2870_v36 = vmul.f32 %v5235_v15, %v2815_v23  ;;  %v2932_v48 = vadd.f32 %v5246_v54, %v2897_v62 }
 0x2b5   : > { %v2902_v19 = vadd.f32 %v2870_v36, %v5294_v59  ;;  %v2964_v33 = vpack.c.bf16 %v2932_v48, %v2932_v48 }
 0x2b6   : > { %v2807_v47 = vpop.permute.xlu1 %2806 }
 0x2b7   : > { %v2937_v17 = vadd.f32 %v5246_v54, %v2902_v19  ;;  %2997 = vst.msk [vmem:[%s5259_s12 + $0x4c] sm:$0xf] %vm2977_vm2, %v2964_v33  ;;  %v2868_v55 = vmul.f32 %v5235_v15, %v2807_v47 }
 0x2b9   : > { %v2969_v24 = vpack.c.bf16 %v2937_v17, %v2937_v17  ;;  %v2900_v12 = vadd.f32 %v2868_v55, %v5287_v34 }
 0x2ba   : > { %v2827_v0 = vpop.permute.xlu0 %2826 }
 0x2bb   : > { %3002 = vst.msk [vmem:[%s5259_s12 + $0x60] sm:$0xf] %vm2977_vm2, %v2969_v24  ;;  %v2873_v39 = vmul.f32 %v5235_v15, %v2827_v0  ;;  %v2935_v59 = vadd.f32 %v5246_v54, %v2900_v12 }
 0x2bd   : > { %v2905_v40 = vadd.f32 %v2873_v39, %v5307_v4  ;;  %v2967_v29 = vpack.c.bf16 %v2935_v59, %v2935_v59 }
 0x2be   : > { %v2819_v9 = vpop.permute.xlu1 %2818 }
 0x2bf   : > { %v2940_v53 = vadd.f32 %v5246_v54, %v2905_v40  ;;  %3000 = vst.msk [vmem:[%s5259_s12 + $0x58] sm:$0xf] %vm2977_vm2, %v2967_v29  ;;  %v2871_v3 = vmul.f32 %v5235_v15, %v2819_v9 }
 0x2c1   : > { %v2972_v34 = vpack.c.bf16 %v2940_v53, %v2940_v53  ;;  %v2903_v16 = vadd.f32 %v2871_v3, %v5300_v1 }
 0x2c2   : > { %v2839_v20 = vpop.permute.xlu0 %2838 }
 0x2c3   : > { %3005 = vst.msk [vmem:[%s5259_s12 + $0x6c] sm:$0xf] %vm2977_vm2, %v2972_v34  ;;  %v2876_v30 = vmul.f32 %v5235_v15, %v2839_v20  ;;  %v2938_v4 = vadd.f32 %v5246_v54, %v2903_v16 }
 0x2c5   : > { %v2908_v7 = vadd.f32 %v2876_v30, %v5320_v31  ;;  %v2970_v6 = vpack.c.bf16 %v2938_v4, %v2938_v4 }
 0x2c6   : > { %v2831_v25 = vpop.permute.xlu1 %2830 }
 0x2c7   : > { %v2943_v60 = vadd.f32 %v5246_v54, %v2908_v7  ;;  %3003 = vst.msk [vmem:[%s5259_s12 + $0x64] sm:$0xf] %vm2977_vm2, %v2970_v6  ;;  %v2874_v27 = vmul.f32 %v5235_v15, %v2831_v25 }
 0x2c9   : > { %v2975_v1 = vpack.c.bf16 %v2943_v60, %v2943_v60  ;;  %v2906_v22 = vadd.f32 %v2874_v27, %v5313_v51 }
 0x2cb   : > { %3008 = vst.msk [vmem:[%s5259_s12 + $0x78] sm:$0xf] %vm2977_vm2, %v2975_v1  ;;  %v2941_v45 = vadd.f32 %v5246_v54, %v2906_v22 }
 0x2cd   : > { %v2973_v46 = vpack.c.bf16 %v2941_v45, %v2941_v45 }
 0x2ce   : > { %v2843_v56 = vpop.permute.xlu1 %2842 }
 0x2cf   : > { %3006 = vst.msk [vmem:[%s5259_s12 + $0x70] sm:$0xf] %vm2977_vm2, %v2973_v46  ;;  %v2877_v31 = vmul.f32 %v5235_v15, %v2843_v56 }
 0x2d1   : > { %v2909_v2 = vadd.f32 %v2877_v31, %v5326_v8 }
 0x2d3   : > { %v2944_v21 = vadd.f32 %v5246_v54, %v2909_v2 }
 0x2d5   : > { %v2976_v38 = vpack.c.bf16 %v2944_v21, %v2944_v21 }
 0x2d7   : > { %3009 = vst.msk [vmem:[%s5259_s12 + $0x7c] sm:$0xf] %vm2977_vm2, %v2976_v38 }
 0x2d8 PF: > { %s14_s17 = sadd.s32 1, %s3400_s17   ;;  %s5637_s15 = smov %s3396_s16 }
 0x2d9   : > { %p11_p5 = scmp.ge.s32.totalorder %s14_s17, 4   ;;  %s5638_s16 = smov %s5640_s18 }
 0x2db   :  { %13 = sbr.rel (!%p11_p5) target bundleno = 2 (0x2), region = 69 }

</bundles_post_ra>
